<compile_context>
chip_gen: v7x
topology: tpu7x:2x2x1
jax: 0.10.0
libtpu: 0.0.40
codegen_flags: <defaults>
</compile_context>

<pallas_src>
import jax
import jax.numpy as jnp
from jax.experimental import pallas as pl
from jax.experimental.pallas import tpu as pltpu

# ----------------------------- config (small, consistent with the module) ----
B, C, IMG, PATCH = 2, 3, 32, 16          # batch, channels, image size, patch
HP, WP = IMG // PATCH, IMG // PATCH
P = HP * WP                              # patches per image
S_V = P + 1                              # vision sequence (class token + patches)
D, HEADS, MLP, LAYERS = 32, 4, 64, 2     # vision hidden / heads / mlp / layers
Q, S_T, VOCAB = 2, 8, 64                 # queries per image, text seq len, vocab
D_T, HEADS_T, LAYERS_T = 32, 4, 1        # text hidden / heads / layers
PROJ = 32                                # text projection dim (query dim)
PATCH_DIM = C * PATCH * PATCH
LN_EPS = 1e-5


# ----------------------------- in-kernel helpers ------------------------------
def _ln(x, g, b):
    mu = jnp.mean(x, axis=-1, keepdims=True)
    var = jnp.mean(jnp.square(x - mu), axis=-1, keepdims=True)
    return (x - mu) * jax.lax.rsqrt(var + LN_EPS) * g + b


def _encoder_layer(x, nb, seq, heads, w, abuf, bias=None):
    """One CLIP/OWLv2 encoder layer, fully in-VMEM.

    x: (nb*seq, d) value.  w: dict of weight values (fused wqkv).  abuf: VMEM
    scratch ref of shape (nb*seq, d) used to assemble per-head attention output.
    bias: optional (nb, seq, seq) additive attention bias value.
    """
    d = x.shape[-1]
    hd = d // heads
    scale = hd ** -0.5

    h = _ln(x, w["ln1_g"], w["ln1_b"])
    qkv = jnp.dot(h, w["wqkv"], preferred_element_type=jnp.float32) + w["bqkv"]
    q, k, v = qkv[:, :d], qkv[:, d:2 * d], qkv[:, 2 * d:]

    for b in range(nb):                     # static python loops (tiny sizes)
        r0 = b * seq
        for hh in range(heads):
            c0 = hh * hd
            qb = q[r0:r0 + seq, c0:c0 + hd]
            kb = k[r0:r0 + seq, c0:c0 + hd]
            vb = v[r0:r0 + seq, c0:c0 + hd]
            s = jax.lax.dot_general(qb, kb, (((1,), (1,)), ((), ())),
                                    preferred_element_type=jnp.float32) * scale
            if bias is not None:
                s = s + bias[b]
            s = s - jnp.max(s, axis=-1, keepdims=True)
            p = jnp.exp(s)
            p = p / jnp.sum(p, axis=-1, keepdims=True)
            abuf[r0:r0 + seq, c0:c0 + hd] = jnp.dot(
                p, vb, preferred_element_type=jnp.float32)

    ao = abuf[...]
    x = x + jnp.dot(ao, w["wo"], preferred_element_type=jnp.float32) + w["bo"]

    h = _ln(x, w["ln2_g"], w["ln2_b"])
    h = jnp.dot(h, w["fc1_w"], preferred_element_type=jnp.float32) + w["fc1_b"]
    h = h * jax.nn.sigmoid(1.702 * h)            # quick_gelu
    h = jnp.dot(h, w["fc2_w"], preferred_element_type=jnp.float32) + w["fc2_b"]
    return x + h


def _layer_weights(l, ln1_g, ln1_b, wqkv, bqkv, wo, bo, ln2_g, ln2_b,
                   fc1_w, fc1_b, fc2_w, fc2_b):
    return dict(ln1_g=ln1_g[l], ln1_b=ln1_b[l], wqkv=wqkv[l], bqkv=bqkv[l],
                wo=wo[l], bo=bo[l], ln2_g=ln2_g[l], ln2_b=ln2_b[l],
                fc1_w=fc1_w[l], fc1_b=fc1_b[l], fc2_w=fc2_w[l], fc2_b=fc2_b[l])


# ----------------------------- vision tower megakernel ------------------------
def _vision_tower_kernel(patches_ref, patch_w_ref, cls_ref, pos_ref, pre_g_ref, pre_b_ref,
                         ln1_g_ref, ln1_b_ref, wqkv_ref, bqkv_ref, wo_ref, bo_ref,
                         ln2_g_ref, ln2_b_ref, fc1_w_ref, fc1_b_ref, fc2_w_ref, fc2_b_ref,
                         last_ref, xbuf):
    # patch embedding: stride-PATCH conv == (B*P, PATCH_DIM) @ (PATCH_DIM, D)
    pe = jnp.dot(patches_ref[0], patch_w_ref[...],
                 preferred_element_type=jnp.float32)            # (B*P, D)
    pos = pos_ref[...]                                          # (S_V, D)
    cls_tok = cls_ref[...]                                      # (1, D)

    # assemble [cls; patches] + pos_emb per image into VMEM scratch
    for b in range(B):
        xbuf[b * S_V:b * S_V + 1, :] = cls_tok + pos[0:1, :]
        xbuf[b * S_V + 1:(b + 1) * S_V, :] = pe[b * P:(b + 1) * P, :] + pos[1:, :]

    x = _ln(xbuf[...], pre_g_ref[...], pre_b_ref[...])          # pre_layernorm

    for l in range(LAYERS):
        w = _layer_weights(l, ln1_g_ref, ln1_b_ref, wqkv_ref, bqkv_ref, wo_ref, bo_ref,
                           ln2_g_ref, ln2_b_ref, fc1_w_ref, fc1_b_ref, fc2_w_ref, fc2_b_ref)
        x = _encoder_layer(x, B, S_V, HEADS, w, xbuf)           # no bias (all zeros)

    last_ref[0] = x                                             # last_hidden_state


def _full_spec(shape):
    zeros = (0,) * len(shape)
    return pl.BlockSpec(shape, lambda i: zeros)


def run_vision(vp, patches):
    weights = [vp["patch_w"], vp["class_emb"], vp["pos_emb"], vp["pre_ln_g"], vp["pre_ln_b"],
               vp["ln1_g"], vp["ln1_b"], vp["wqkv"], vp["bqkv"], vp["wo"], vp["bo"],
               vp["ln2_g"], vp["ln2_b"], vp["fc1_w"], vp["fc1_b"], vp["fc2_w"], vp["fc2_b"]]
    in_specs = ([pl.BlockSpec((1, B * P, PATCH_DIM), lambda m: (m, 0, 0))]
                + [_full_spec(w.shape) for w in weights])
    return pl.pallas_call(
        _vision_tower_kernel,
        out_shape=jax.ShapeDtypeStruct((2, B * S_V, D), jnp.float32),
        grid=(2,),                                              # IR / RGB tower
        in_specs=in_specs,
        out_specs=pl.BlockSpec((1, B * S_V, D), lambda m: (m, 0, 0)),
        scratch_shapes=[pltpu.VMEM((B * S_V, D), jnp.float32)],
        compiler_params=pltpu.CompilerParams(
            dimension_semantics=("parallel",)),                 # v7x: one tower per TC
    )(patches, *weights)


# ----------------------------- text tower megakernel --------------------------
def _text_tower_kernel(x_ref, bias_ref,
                       ln1_g_ref, ln1_b_ref, wqkv_ref, bqkv_ref, wo_ref, bo_ref,
                       ln2_g_ref, ln2_b_ref, fc1_w_ref, fc1_b_ref, fc2_w_ref, fc2_b_ref,
                       fin_g_ref, fin_b_ref, out_ref, abuf):
    x = x_ref[...]                                              # (T*S_T, D_T)
    bias = bias_ref[...]                                        # (T, S_T, S_T)
    nseq = bias.shape[0]
    for l in range(LAYERS_T):
        w = _layer_weights(l, ln1_g_ref, ln1_b_ref, wqkv_ref, bqkv_ref, wo_ref, bo_ref,
                           ln2_g_ref, ln2_b_ref, fc1_w_ref, fc1_b_ref, fc2_w_ref, fc2_b_ref)
        x = _encoder_layer(x, nseq, S_T, HEADS_T, w, abuf, bias=bias)
    out_ref[...] = _ln(x, fin_g_ref[...], fin_b_ref[...])       # final_layer_norm


def run_text(tp, x_emb, bias):
    weights = [tp["ln1_g"], tp["ln1_b"], tp["wqkv"], tp["bqkv"], tp["wo"], tp["bo"],
               tp["ln2_g"], tp["ln2_b"], tp["fc1_w"], tp["fc1_b"], tp["fc2_w"], tp["fc2_b"],
               tp["final_ln_g"], tp["final_ln_b"]]
    in_specs = ([_full_spec(x_emb.shape), _full_spec(bias.shape)]
                + [_full_spec(w.shape) for w in weights])
    return pl.pallas_call(
        _text_tower_kernel,
        out_shape=jax.ShapeDtypeStruct(x_emb.shape, jnp.float32),
        grid=(1,),
        in_specs=in_specs,
        out_specs=_full_spec(x_emb.shape),
        scratch_shapes=[pltpu.VMEM(x_emb.shape, jnp.float32)],
    )(x_emb, bias, *weights)


# ----------------------------- heads megakernel -------------------------------
def _heads_kernel(vis_ref, post_g_ref, post_b_ref, merge_g_ref, merge_b_ref,
                  pooled_ref, proj_w_ref, qmask_ref, cls_w_ref, cls_b_ref,
                  bw0_ref, bb0_ref, bw1_ref, bb1_ref, bw2_ref, bb2_ref, box_bias_ref,
                  logits_ref, boxes_ref, loss_ref, fbuf):
    x_ir = vis_ref[0]                                           # (B*S_V, D) IR tower
    x_rgb = vis_ref[1]                                          # (B*S_V, D) RGB tower

    # ---- post-LN + class-token fusion + merge-LN (IR only) ----
    e = _ln(x_ir, post_g_ref[...], post_b_ref[...])
    for b in range(B):
        cls_row = e[b * S_V:b * S_V + 1, :]
        fbuf[b * P:(b + 1) * P, :] = e[b * S_V + 1:(b + 1) * S_V, :] * cls_row
    feats = _ln(fbuf[...], merge_g_ref[...], merge_b_ref[...])  # (B*P, D)

    # ---- text projection (query embeds) ----
    q_emb = jnp.dot(pooled_ref[...], proj_w_ref[...],
                    preferred_element_type=jnp.float32)         # (B*Q, PROJ)
    q_n = q_emb / (jnp.sqrt(jnp.sum(q_emb * q_emb, axis=-1, keepdims=True)) + 1e-6)
    qmask = qmask_ref[...]                                      # (B, Q) float

    # ---- class head: dense0 / logit-shift / logit-scale fused in one matmul ----
    co = jnp.dot(feats, cls_w_ref[...], preferred_element_type=jnp.float32) + cls_b_ref[...]
    img_class = co[:, :PROJ]
    shift = co[:, PROJ:PROJ + 1]
    scale_raw = co[:, PROJ + 1:PROJ + 2]
    img_n = img_class / (jnp.sqrt(jnp.sum(img_class * img_class, axis=-1,
                                          keepdims=True)) + 1e-6)
    for b in range(B):
        ic = img_n[b * P:(b + 1) * P, :]
        qb = q_n[b * Q:(b + 1) * Q, :]
        lg = jax.lax.dot_general(ic, qb, (((1,), (1,)), ((), ())),
                                 preferred_element_type=jnp.float32)   # (P, Q)
        sc = scale_raw[b * P:(b + 1) * P, :]
        logit_scale = jnp.where(sc > 0, sc, jnp.exp(sc) - 1.0) + 1.0   # ELU + 1
        lg = (lg + shift[b * P:(b + 1) * P, :]) * logit_scale
        lg = jnp.where(qmask[b:b + 1, :] > 0, lg, jnp.finfo(jnp.float32).min)
        logits_ref[b] = lg

    # ---- box head: 3 linears (+gelu) fused, intermediates stay in vregs ----
    h = jax.nn.gelu(jnp.dot(feats, bw0_ref[...], preferred_element_type=jnp.float32)
                    + bb0_ref[...], approximate=True)
    h = jax.nn.gelu(jnp.dot(h, bw1_ref[...], preferred_element_type=jnp.float32)
                    + bb1_ref[...], approximate=True)
    bx = jnp.dot(h, bw2_ref[...], preferred_element_type=jnp.float32) + bb2_ref[...]
    bbias = box_bias_ref[...]                                   # (P, 4)
    for b in range(B):
        boxes_ref[b] = jax.nn.sigmoid(bx[b * P:(b + 1) * P, :] + bbias)

    # ---- domain-invariance loss: cosine of per-image mean patch embeddings ----
    loss = jnp.zeros((1, 1), jnp.float32)
    for b in range(B):
        ir_m = jnp.mean(x_ir[b * S_V + 1:(b + 1) * S_V, :], axis=0, keepdims=True)
        rgb_m = jnp.mean(x_rgb[b * S_V + 1:(b + 1) * S_V, :], axis=0, keepdims=True)
        dotp = jnp.sum(ir_m * rgb_m, axis=-1, keepdims=True)
        n1 = jnp.sqrt(jnp.sum(ir_m * ir_m, axis=-1, keepdims=True))
        n2 = jnp.sqrt(jnp.sum(rgb_m * rgb_m, axis=-1, keepdims=True))
        loss = loss + (1.0 - dotp / jnp.maximum(n1 * n2, 1e-8))
    loss_ref[...] = loss / B


def run_heads(params, vis_last, pooled, query_mask, box_bias):
    vp, ch, bh = params["vision"], params["class_head"], params["box_head"]
    ins = [vis_last, vp["post_ln_g"], vp["post_ln_b"],
           params["merge_ln_g"], params["merge_ln_b"],
           pooled, params["text"]["proj_w"], query_mask,
           ch["w"], ch["b"],
           bh["w0"], bh["b0"], bh["w1"], bh["b1"], bh["w2"], bh["b2"], box_bias]
    out_shape = [jax.ShapeDtypeStruct((B, P, Q), jnp.float32),
                 jax.ShapeDtypeStruct((B, P, 4), jnp.float32),
                 jax.ShapeDtypeStruct((1, 1), jnp.float32)]
    out_specs = [_full_spec((B, P, Q)), _full_spec((B, P, 4)), _full_spec((1, 1))]
    return pl.pallas_call(
        _heads_kernel,
        out_shape=out_shape,
        grid=(1,),
        in_specs=[_full_spec(a.shape) for a in ins],
        out_specs=out_specs,
        scratch_shapes=[pltpu.VMEM((B * P, D), jnp.float32)],
    )(*ins)


# ----------------------------- plain-JAX glue ---------------------------------
def compute_box_bias(hp, wp):
    xs = jnp.arange(1, wp + 1, dtype=jnp.float32) / wp
    ys = jnp.arange(1, hp + 1, dtype=jnp.float32) / hp
    xx, yy = jnp.meshgrid(xs, ys)
    coords = jnp.clip(jnp.stack([xx, yy], axis=-1).reshape(-1, 2), 0.0, 1.0)
    coord_bias = jnp.log(coords + 1e-4) - jnp.log1p(-coords + 1e-4)
    size = jnp.concatenate([jnp.full((hp * wp, 1), 1.0 / wp),
                            jnp.full((hp * wp, 1), 1.0 / hp)], axis=-1)
    size_bias = jnp.log(size + 1e-4) - jnp.log1p(-size + 1e-4)
    return jnp.concatenate([coord_bias, size_bias], axis=-1)    # (P, 4)


def forward(params, ir_pixel_values, rgb_pixel_values, input_ids, attention_mask,
            targets=None):
    batch_size = ir_pixel_values.shape[0]
    vh, vw = ir_pixel_values.shape[-2:]
    hp, wp = vh // PATCH, vw // PATCH

    # --- IR + RGB batched into one vision-tower call (modality axis on the grid)
    pix = jnp.stack([ir_pixel_values, rgb_pixel_values], axis=0)   # (2, B, C, H, W)
    patches = pix.reshape(2, batch_size, C, hp, PATCH, wp, PATCH)
    patches = patches.transpose(0, 1, 3, 5, 2, 4, 6).reshape(
        2, batch_size * hp * wp, C * PATCH * PATCH)
    # interpolate_pos_encoding=True: pos grid matches exactly here -> identity interp
    vis_last = run_vision(params["vision"], patches)               # (2, B*S_V, D)

    # --- text tower
    tp = params["text"]
    T, S = input_ids.shape
    x_emb = (tp["tok_emb"][input_ids] + tp["pos_emb"][None, :S, :]).reshape(T * S, D_T)
    causal = jnp.triu(jnp.full((S, S), -1e9, jnp.float32), k=1)
    pad = (1.0 - attention_mask.astype(jnp.float32))[:, None, :] * -1e9
    bias = causal[None, :, :] + pad                                 # (T, S, S)
    hidden = run_text(tp, x_emb, bias).reshape(T, S, D_T)
    eos = jnp.argmax(input_ids, axis=-1)            # OWLv2/CLIP: pool at max-id (EOS)
    pooled = hidden[jnp.arange(T), eos]                             # (T, D_T)

    num_q = T // batch_size
    query_mask = (input_ids.reshape(batch_size, num_q, S)[..., 0] > 0).astype(jnp.float32)
    box_bias = compute_box_bias(hp, wp)

    # --- fused detection heads + domain-invariance loss
    pred_logits_ir, pred_boxes_ir, dom = run_heads(params, vis_last, pooled,
                                                   query_mask, box_bias)
    dom_loss = dom[0, 0]

    del pred_logits_ir, pred_boxes_ir  # computed but discarded, as in reference forward
    # TODO(synk): reference detection loss is a constant 0.0 (no matcher); kept as 0.0
    detection_loss_ir = jnp.float32(0.0)
    total_loss = dom_loss + detection_loss_ir
    return {"total_loss": total_loss,
            "domain_invariance_loss": dom_loss,
            "detection_loss_ir": detection_loss_ir}


# ----------------------------- deterministic parameter init -------------------
def init_params(key):
    keys = iter(jax.random.split(key, 64))

    def nrm(shape, s=0.02):
        return s * jax.random.normal(next(keys), shape, jnp.float32)

    def enc_stack(nl, dim, mlp):
        return dict(
            ln1_g=jnp.ones((nl, 1, dim), jnp.float32),
            ln1_b=jnp.zeros((nl, 1, dim), jnp.float32),
            wqkv=nrm((nl, dim, 3 * dim)), bqkv=jnp.zeros((nl, 1, 3 * dim), jnp.float32),
            wo=nrm((nl, dim, dim)), bo=jnp.zeros((nl, 1, dim), jnp.float32),
            ln2_g=jnp.ones((nl, 1, dim), jnp.float32),
            ln2_b=jnp.zeros((nl, 1, dim), jnp.float32),
            fc1_w=nrm((nl, dim, mlp)), fc1_b=jnp.zeros((nl, 1, mlp), jnp.float32),
            fc2_w=nrm((nl, mlp, dim)), fc2_b=jnp.zeros((nl, 1, dim), jnp.float32),
        )

    vision = dict(
        patch_w=nrm((PATCH_DIM, D)),
        class_emb=nrm((1, D)),
        pos_emb=nrm((S_V, D)),
        pre_ln_g=jnp.ones((1, D), jnp.float32), pre_ln_b=jnp.zeros((1, D), jnp.float32),
        post_ln_g=jnp.ones((1, D), jnp.float32), post_ln_b=jnp.zeros((1, D), jnp.float32),
        **enc_stack(LAYERS, D, MLP),
    )
    text = dict(
        tok_emb=nrm((VOCAB, D_T)),
        pos_emb=nrm((S_T, D_T)),
        final_ln_g=jnp.ones((1, D_T), jnp.float32),
        final_ln_b=jnp.zeros((1, D_T), jnp.float32),
        proj_w=nrm((D_T, PROJ)),
        **enc_stack(LAYERS_T, D_T, 2 * D_T),
    )
    return dict(
        vision=vision,
        merge_ln_g=jnp.ones((1, D), jnp.float32),
        merge_ln_b=jnp.zeros((1, D), jnp.float32),
        text=text,
        # dense0 / logit_shift / logit_scale fused into one (D, PROJ+2) weight
        class_head=dict(w=nrm((D, PROJ + 2)), b=jnp.zeros((1, PROJ + 2), jnp.float32)),
        box_head=dict(w0=nrm((D, D)), b0=jnp.zeros((1, D), jnp.float32),
                      w1=nrm((D, D)), b1=jnp.zeros((1, D), jnp.float32),
                      w2=nrm((D, 4)), b2=jnp.zeros((1, 4), jnp.float32)),
    )


# ----------------------------- main --------------------------------------------
if __name__ == "__main__":
    key = jax.random.PRNGKey(0)
    pkey, k1, k2, k3 = jax.random.split(key, 4)
    params = init_params(pkey)

    ir_pixel_values = jax.random.normal(k1, (B, C, IMG, IMG), jnp.float32)
    rgb_pixel_values = jax.random.normal(k2, (B, C, IMG, IMG), jnp.float32)
    input_ids = jax.random.randint(k3, (B * Q, S_T), 1, VOCAB - 1, dtype=jnp.int32)
    input_ids = input_ids.at[:, -1].set(VOCAB - 1)        # EOS = max token id
    attention_mask = jnp.ones((B * Q, S_T), jnp.int32)

    fwd = jax.jit(forward)
    out = fwd(params, ir_pixel_values, rgb_pixel_values, input_ids, attention_mask)
    out = jax.block_until_ready(out)
    assert bool(jnp.isfinite(out["total_loss"]))
    assert bool(jnp.isfinite(out["domain_invariance_loss"]))
    print("KERNEL_OK")
</pallas_src>

<mosaic_0001>
module attributes {stable_mosaic.version = 11 : i64} {
  func.func @_vision_tower_kernel(%arg0: i32, %arg1: memref<1x8x768xf32, #tpu.memory_space<vmem>>, %arg2: memref<768x32xf32, #tpu.memory_space<vmem>>, %arg3: memref<1x32xf32, #tpu.memory_space<vmem>>, %arg4: memref<5x32xf32, #tpu.memory_space<vmem>>, %arg5: memref<1x32xf32, #tpu.memory_space<vmem>>, %arg6: memref<1x32xf32, #tpu.memory_space<vmem>>, %arg7: memref<2x1x32xf32, #tpu.memory_space<vmem>>, %arg8: memref<2x1x32xf32, #tpu.memory_space<vmem>>, %arg9: memref<2x32x96xf32, #tpu.memory_space<vmem>>, %arg10: memref<2x1x96xf32, #tpu.memory_space<vmem>>, %arg11: memref<2x32x32xf32, #tpu.memory_space<vmem>>, %arg12: memref<2x1x32xf32, #tpu.memory_space<vmem>>, %arg13: memref<2x1x32xf32, #tpu.memory_space<vmem>>, %arg14: memref<2x1x32xf32, #tpu.memory_space<vmem>>, %arg15: memref<2x32x64xf32, #tpu.memory_space<vmem>>, %arg16: memref<2x1x64xf32, #tpu.memory_space<vmem>>, %arg17: memref<2x64x32xf32, #tpu.memory_space<vmem>>, %arg18: memref<2x1x32xf32, #tpu.memory_space<vmem>>, %arg19: memref<1x10x32xf32, #tpu.memory_space<vmem>>, %arg20: memref<10x32xf32, #tpu.memory_space<vmem>>) attributes {dimension_semantics = [#tpu.dimension_semantics<parallel>], iteration_bounds = array<i64: 2>, scalar_prefetch = 0 : i64, scratch_operands = 1 : i64, tpu.core_type = #tpu.core_type<tc>, window_params = [{transform_indices = @transform_0, window_bounds = array<i64: 1, 8, 768>}, {pipeline_mode = #tpu.pipeline_mode<synchronous>, transform_indices = @transform_1, window_bounds = array<i64: 768, 32>}, {pipeline_mode = #tpu.pipeline_mode<synchronous>, transform_indices = @transform_2, window_bounds = array<i64: 1, 32>}, {pipeline_mode = #tpu.pipeline_mode<synchronous>, transform_indices = @transform_3, window_bounds = array<i64: 5, 32>}, {pipeline_mode = #tpu.pipeline_mode<synchronous>, transform_indices = @transform_4, window_bounds = array<i64: 1, 32>}, {pipeline_mode = #tpu.pipeline_mode<synchronous>, transform_indices = @transform_5, window_bounds = array<i64: 1, 32>}, {pipeline_mode = #tpu.pipeline_mode<synchronous>, transform_indices = @transform_6, window_bounds = array<i64: 2, 1, 32>}, {pipeline_mode = #tpu.pipeline_mode<synchronous>, transform_indices = @transform_7, window_bounds = array<i64: 2, 1, 32>}, {pipeline_mode = #tpu.pipeline_mode<synchronous>, transform_indices = @transform_8, window_bounds = array<i64: 2, 32, 96>}, {pipeline_mode = #tpu.pipeline_mode<synchronous>, transform_indices = @transform_9, window_bounds = array<i64: 2, 1, 96>}, {pipeline_mode = #tpu.pipeline_mode<synchronous>, transform_indices = @transform_10, window_bounds = array<i64: 2, 32, 32>}, {pipeline_mode = #tpu.pipeline_mode<synchronous>, transform_indices = @transform_11, window_bounds = array<i64: 2, 1, 32>}, {pipeline_mode = #tpu.pipeline_mode<synchronous>, transform_indices = @transform_12, window_bounds = array<i64: 2, 1, 32>}, {pipeline_mode = #tpu.pipeline_mode<synchronous>, transform_indices = @transform_13, window_bounds = array<i64: 2, 1, 32>}, {pipeline_mode = #tpu.pipeline_mode<synchronous>, transform_indices = @transform_14, window_bounds = array<i64: 2, 32, 64>}, {pipeline_mode = #tpu.pipeline_mode<synchronous>, transform_indices = @transform_15, window_bounds = array<i64: 2, 1, 64>}, {pipeline_mode = #tpu.pipeline_mode<synchronous>, transform_indices = @transform_16, window_bounds = array<i64: 2, 64, 32>}, {pipeline_mode = #tpu.pipeline_mode<synchronous>, transform_indices = @transform_17, window_bounds = array<i64: 2, 1, 32>}, {transform_indices = @transform_18, window_bounds = array<i64: 1, 10, 32>}]} {
    %c0 = arith.constant 0 : index
    %c0_0 = arith.constant 0 : index
    %c0_1 = arith.constant 0 : index
    %0 = vector.load %arg1[%c0, %c0_0, %c0_1] : memref<1x8x768xf32, #tpu.memory_space<vmem>>, vector<1x8x768xf32>
    %1 = vector.shape_cast %0 : vector<1x8x768xf32> to vector<8x768xf32>
    %c0_2 = arith.constant 0 : index
    %c0_3 = arith.constant 0 : index
    %2 = vector.load %arg2[%c0_2, %c0_3] : memref<768x32xf32, #tpu.memory_space<vmem>>, vector<768x32xf32>
    %cst = arith.constant dense<0.000000e+00> : vector<8x32xf32>
    %3 = tpu.matmul %1, %2, %cst {dimension_numbers = #tpu.dot_dimension_numbers<[1], [0], [0], [1], [0, 0, 1, 1], [], []>} : vector<8x768xf32>, vector<768x32xf32>, vector<8x32xf32> -> vector<8x32xf32>
    %c0_4 = arith.constant 0 : index
    %c0_5 = arith.constant 0 : index
    %4 = vector.load %arg4[%c0_4, %c0_5] : memref<5x32xf32, #tpu.memory_space<vmem>>, vector<5x32xf32>
    %c0_6 = arith.constant 0 : index
    %c0_7 = arith.constant 0 : index
    %5 = vector.load %arg3[%c0_6, %c0_7] : memref<1x32xf32, #tpu.memory_space<vmem>>, vector<1x32xf32>
    %6 = vector.extract_strided_slice %4 {offsets = [0, 0], sizes = [1, 32], strides = [1, 1]} : vector<5x32xf32> to vector<1x32xf32>
    %7 = arith.addf %5, %6 : vector<1x32xf32>
    %c0_8 = arith.constant 0 : index
    %c0_9 = arith.constant 0 : index
    %8 = vector.load %arg20[%c0_8, %c0_9] : memref<10x32xf32, #tpu.memory_space<vmem>>, vector<1x32xf32>
    tpu.vector_store %arg20[%c0_8, %c0_9], %7 {strides = array<i32>} : memref<10x32xf32, #tpu.memory_space<vmem>>, vector<1x32xf32>,
    %9 = vector.extract_strided_slice %3 {offsets = [0, 0], sizes = [4, 32], strides = [1, 1]} : vector<8x32xf32> to vector<4x32xf32>
    %10 = vector.extract_strided_slice %4 {offsets = [1, 0], sizes = [4, 32], strides = [1, 1]} : vector<5x32xf32> to vector<4x32xf32>
    %11 = arith.addf %9, %10 : vector<4x32xf32>
    %c1 = arith.constant 1 : index
    %c0_10 = arith.constant 0 : index
    %12 = vector.load %arg20[%c1, %c0_10] : memref<10x32xf32, #tpu.memory_space<vmem>>, vector<4x32xf32>
    tpu.vector_store %arg20[%c1, %c0_10], %11 {strides = array<i32>} : memref<10x32xf32, #tpu.memory_space<vmem>>, vector<4x32xf32>,
    %13 = vector.extract_strided_slice %4 {offsets = [0, 0], sizes = [1, 32], strides = [1, 1]} : vector<5x32xf32> to vector<1x32xf32>
    %14 = arith.addf %5, %13 : vector<1x32xf32>
    %c5 = arith.constant 5 : index
    %c0_11 = arith.constant 0 : index
    %15 = vector.load %arg20[%c5, %c0_11] : memref<10x32xf32, #tpu.memory_space<vmem>>, vector<1x32xf32>
    tpu.vector_store %arg20[%c5, %c0_11], %14 {strides = array<i32>} : memref<10x32xf32, #tpu.memory_space<vmem>>, vector<1x32xf32>,
    %16 = vector.extract_strided_slice %3 {offsets = [4, 0], sizes = [4, 32], strides = [1, 1]} : vector<8x32xf32> to vector<4x32xf32>
    %17 = vector.extract_strided_slice %4 {offsets = [1, 0], sizes = [4, 32], strides = [1, 1]} : vector<5x32xf32> to vector<4x32xf32>
    %18 = arith.addf %16, %17 : vector<4x32xf32>
    %c6 = arith.constant 6 : index
    %c0_12 = arith.constant 0 : index
    %19 = vector.load %arg20[%c6, %c0_12] : memref<10x32xf32, #tpu.memory_space<vmem>>, vector<4x32xf32>
    tpu.vector_store %arg20[%c6, %c0_12], %18 {strides = array<i32>} : memref<10x32xf32, #tpu.memory_space<vmem>>, vector<4x32xf32>,
    %c0_13 = arith.constant 0 : index
    %c0_14 = arith.constant 0 : index
    %20 = vector.load %arg20[%c0_13, %c0_14] : memref<10x32xf32, #tpu.memory_space<vmem>>, vector<10x32xf32>
    %c0_15 = arith.constant 0 : index
    %c0_16 = arith.constant 0 : index
    %21 = vector.load %arg5[%c0_15, %c0_16] : memref<1x32xf32, #tpu.memory_space<vmem>>, vector<1x32xf32>
    %c0_17 = arith.constant 0 : index
    %c0_18 = arith.constant 0 : index
    %22 = vector.load %arg6[%c0_17, %c0_18] : memref<1x32xf32, #tpu.memory_space<vmem>>, vector<1x32xf32>
    %cst_19 = arith.constant dense<0.000000e+00> : vector<10xf32>
    %23 = vector.multi_reduction <add>, %20, %cst_19 [1] : vector<10x32xf32> to vector<10xf32>
    %24 = vector.shape_cast %23 : vector<10xf32> to vector<10x1xf32>
    %cst_20 = arith.constant 3.200000e+01 : f32
    %25 = vector.broadcast %cst_20 : f32 to vector<10x1xf32>
    %26 = arith.divf %24, %25 : vector<10x1xf32>
    %27 = vector.broadcast %26 : vector<10x1xf32> to vector<10x32xf32>
    %28 = arith.subf %20, %27 : vector<10x32xf32>
    %29 = arith.mulf %28, %28 : vector<10x32xf32>
    %cst_21 = arith.constant dense<0.000000e+00> : vector<10xf32>
    %30 = vector.multi_reduction <add>, %29, %cst_21 [1] : vector<10x32xf32> to vector<10xf32>
    %31 = vector.shape_cast %30 : vector<10xf32> to vector<10x1xf32>
    %cst_22 = arith.constant 3.200000e+01 : f32
    %32 = vector.broadcast %cst_22 : f32 to vector<10x1xf32>
    %33 = arith.divf %31, %32 : vector<10x1xf32>
    %34 = vector.broadcast %26 : vector<10x1xf32> to vector<10x32xf32>
    %35 = arith.subf %20, %34 : vector<10x32xf32>
    %cst_23 = arith.constant 9.99999974E-6 : f32
    %36 = vector.broadcast %cst_23 : f32 to vector<10x1xf32>
    %37 = arith.addf %33, %36 : vector<10x1xf32>
    %38 = math.rsqrt %37 : vector<10x1xf32>
    %39 = vector.broadcast %38 : vector<10x1xf32> to vector<10x32xf32>
    %40 = arith.mulf %35, %39 : vector<10x32xf32>
    %41 = vector.broadcast %21 : vector<1x32xf32> to vector<10x32xf32>
    %42 = arith.mulf %40, %41 : vector<10x32xf32>
    %43 = vector.broadcast %22 : vector<1x32xf32> to vector<10x32xf32>
    %44 = arith.addf %42, %43 : vector<10x32xf32>
    %c0_24 = arith.constant 0 : index
    %c0_25 = arith.constant 0 : index
    %c0_26 = arith.constant 0 : index
    %45 = vector.load %arg7[%c0_24, %c0_25, %c0_26] : memref<2x1x32xf32, #tpu.memory_space<vmem>>, vector<1x1x32xf32>
    %46 = vector.shape_cast %45 : vector<1x1x32xf32> to vector<1x32xf32>
    %c0_27 = arith.constant 0 : index
    %c0_28 = arith.constant 0 : index
    %c0_29 = arith.constant 0 : index
    %47 = vector.load %arg8[%c0_27, %c0_28, %c0_29] : memref<2x1x32xf32, #tpu.memory_space<vmem>>, vector<1x1x32xf32>
    %48 = vector.shape_cast %47 : vector<1x1x32xf32> to vector<1x32xf32>
    %c0_30 = arith.constant 0 : index
    %c0_31 = arith.constant 0 : index
    %c0_32 = arith.constant 0 : index
    %49 = vector.load %arg9[%c0_30, %c0_31, %c0_32] : memref<2x32x96xf32, #tpu.memory_space<vmem>>, vector<1x32x96xf32>
    %50 = vector.shape_cast %49 : vector<1x32x96xf32> to vector<32x96xf32>
    %c0_33 = arith.constant 0 : index
    %c0_34 = arith.constant 0 : index
    %c0_35 = arith.constant 0 : index
    %51 = vector.load %arg10[%c0_33, %c0_34, %c0_35] : memref<2x1x96xf32, #tpu.memory_space<vmem>>, vector<1x1x96xf32>
    %52 = vector.shape_cast %51 : vector<1x1x96xf32> to vector<1x96xf32>
    %c0_36 = arith.constant 0 : index
    %c0_37 = arith.constant 0 : index
    %c0_38 = arith.constant 0 : index
    %53 = vector.load %arg11[%c0_36, %c0_37, %c0_38] : memref<2x32x32xf32, #tpu.memory_space<vmem>>, vector<1x32x32xf32>
    %54 = vector.shape_cast %53 : vector<1x32x32xf32> to vector<32x32xf32>
    %c0_39 = arith.constant 0 : index
    %c0_40 = arith.constant 0 : index
    %c0_41 = arith.constant 0 : index
    %55 = vector.load %arg12[%c0_39, %c0_40, %c0_41] : memref<2x1x32xf32, #tpu.memory_space<vmem>>, vector<1x1x32xf32>
    %56 = vector.shape_cast %55 : vector<1x1x32xf32> to vector<1x32xf32>
    %c0_42 = arith.constant 0 : index
    %c0_43 = arith.constant 0 : index
    %c0_44 = arith.constant 0 : index
    %57 = vector.load %arg13[%c0_42, %c0_43, %c0_44] : memref<2x1x32xf32, #tpu.memory_space<vmem>>, vector<1x1x32xf32>
    %58 = vector.shape_cast %57 : vector<1x1x32xf32> to vector<1x32xf32>
    %c0_45 = arith.constant 0 : index
    %c0_46 = arith.constant 0 : index
    %c0_47 = arith.constant 0 : index
    %59 = vector.load %arg14[%c0_45, %c0_46, %c0_47] : memref<2x1x32xf32, #tpu.memory_space<vmem>>, vector<1x1x32xf32>
    %60 = vector.shape_cast %59 : vector<1x1x32xf32> to vector<1x32xf32>
    %c0_48 = arith.constant 0 : index
    %c0_49 = arith.constant 0 : index
    %c0_50 = arith.constant 0 : index
    %61 = vector.load %arg15[%c0_48, %c0_49, %c0_50] : memref<2x32x64xf32, #tpu.memory_space<vmem>>, vector<1x32x64xf32>
    %62 = vector.shape_cast %61 : vector<1x32x64xf32> to vector<32x64xf32>
    %c0_51 = arith.constant 0 : index
    %c0_52 = arith.constant 0 : index
    %c0_53 = arith.constant 0 : index
    %63 = vector.load %arg16[%c0_51, %c0_52, %c0_53] : memref<2x1x64xf32, #tpu.memory_space<vmem>>, vector<1x1x64xf32>
    %64 = vector.shape_cast %63 : vector<1x1x64xf32> to vector<1x64xf32>
    %c0_54 = arith.constant 0 : index
    %c0_55 = arith.constant 0 : index
    %c0_56 = arith.constant 0 : index
    %65 = vector.load %arg17[%c0_54, %c0_55, %c0_56] : memref<2x64x32xf32, #tpu.memory_space<vmem>>, vector<1x64x32xf32>
    %66 = vector.shape_cast %65 : vector<1x64x32xf32> to vector<64x32xf32>
    %c0_57 = arith.constant 0 : index
    %c0_58 = arith.constant 0 : index
    %c0_59 = arith.constant 0 : index
    %67 = vector.load %arg18[%c0_57, %c0_58, %c0_59] : memref<2x1x32xf32, #tpu.memory_space<vmem>>, vector<1x1x32xf32>
    %68 = vector.shape_cast %67 : vector<1x1x32xf32> to vector<1x32xf32>
    %cst_60 = arith.constant dense<0.000000e+00> : vector<10xf32>
    %69 = vector.multi_reduction <add>, %44, %cst_60 [1] : vector<10x32xf32> to vector<10xf32>
    %70 = vector.shape_cast %69 : vector<10xf32> to vector<10x1xf32>
    %cst_61 = arith.constant 3.200000e+01 : f32
    %71 = vector.broadcast %cst_61 : f32 to vector<10x1xf32>
    %72 = arith.divf %70, %71 : vector<10x1xf32>
    %73 = vector.broadcast %72 : vector<10x1xf32> to vector<10x32xf32>
    %74 = arith.subf %44, %73 : vector<10x32xf32>
    %75 = arith.mulf %74, %74 : vector<10x32xf32>
    %cst_62 = arith.constant dense<0.000000e+00> : vector<10xf32>
    %76 = vector.multi_reduction <add>, %75, %cst_62 [1] : vector<10x32xf32> to vector<10xf32>
    %77 = vector.shape_cast %76 : vector<10xf32> to vector<10x1xf32>
    %cst_63 = arith.constant 3.200000e+01 : f32
    %78 = vector.broadcast %cst_63 : f32 to vector<10x1xf32>
    %79 = arith.divf %77, %78 : vector<10x1xf32>
    %80 = vector.broadcast %72 : vector<10x1xf32> to vector<10x32xf32>
    %81 = arith.subf %44, %80 : vector<10x32xf32>
    %cst_64 = arith.constant 9.99999974E-6 : f32
    %82 = vector.broadcast %cst_64 : f32 to vector<10x1xf32>
    %83 = arith.addf %79, %82 : vector<10x1xf32>
    %84 = math.rsqrt %83 : vector<10x1xf32>
    %85 = vector.broadcast %84 : vector<10x1xf32> to vector<10x32xf32>
    %86 = arith.mulf %81, %85 : vector<10x32xf32>
    %87 = vector.broadcast %46 : vector<1x32xf32> to vector<10x32xf32>
    %88 = arith.mulf %86, %87 : vector<10x32xf32>
    %89 = vector.broadcast %48 : vector<1x32xf32> to vector<10x32xf32>
    %90 = arith.addf %88, %89 : vector<10x32xf32>
    %cst_65 = arith.constant dense<0.000000e+00> : vector<10x96xf32>
    %91 = tpu.matmul %90, %50, %cst_65 {dimension_numbers = #tpu.dot_dimension_numbers<[1], [0], [0], [1], [0, 0, 1, 1], [], []>} : vector<10x32xf32>, vector<32x96xf32>, vector<10x96xf32> -> vector<10x96xf32>
    %92 = vector.broadcast %52 : vector<1x96xf32> to vector<10x96xf32>
    %93 = arith.addf %91, %92 : vector<10x96xf32>
    %94 = vector.extract_strided_slice %93 {offsets = [0, 0], sizes = [10, 32], strides = [1, 1]} : vector<10x96xf32> to vector<10x32xf32>
    %95 = vector.extract_strided_slice %93 {offsets = [0, 32], sizes = [10, 32], strides = [1, 1]} : vector<10x96xf32> to vector<10x32xf32>
    %96 = vector.extract_strided_slice %93 {offsets = [0, 64], sizes = [10, 32], strides = [1, 1]} : vector<10x96xf32> to vector<10x32xf32>
    %97 = vector.extract_strided_slice %94 {offsets = [0, 0], sizes = [5, 8], strides = [1, 1]} : vector<10x32xf32> to vector<5x8xf32>
    %98 = vector.extract_strided_slice %95 {offsets = [0, 0], sizes = [5, 8], strides = [1, 1]} : vector<10x32xf32> to vector<5x8xf32>
    %99 = vector.extract_strided_slice %96 {offsets = [0, 0], sizes = [5, 8], strides = [1, 1]} : vector<10x32xf32> to vector<5x8xf32>
    %cst_66 = arith.constant dense<0.000000e+00> : vector<5x5xf32>
    %100 = tpu.matmul %97, %98, %cst_66 {dimension_numbers = #tpu.dot_dimension_numbers<[1], [1], [0], [0], [0, 0, 1, 0], [], []>} : vector<5x8xf32>, vector<5x8xf32>, vector<5x5xf32> -> vector<5x5xf32>
    %cst_67 = arith.constant 0.353553385 : f32
    %101 = vector.broadcast %cst_67 : f32 to vector<5x5xf32>
    %102 = arith.mulf %100, %101 : vector<5x5xf32>
    %cst_68 = arith.constant dense<0xFF800000> : vector<5xf32>
    %103 = vector.multi_reduction <maximumf>, %102, %cst_68 [1] : vector<5x5xf32> to vector<5xf32>
    %104 = vector.shape_cast %103 : vector<5xf32> to vector<5x1xf32>
    %105 = vector.broadcast %104 : vector<5x1xf32> to vector<5x5xf32>
    %106 = arith.subf %102, %105 : vector<5x5xf32>
    %107 = math.exp %106 : vector<5x5xf32>
    %cst_69 = arith.constant dense<0.000000e+00> : vector<5xf32>
    %108 = vector.multi_reduction <add>, %107, %cst_69 [1] : vector<5x5xf32> to vector<5xf32>
    %109 = vector.shape_cast %108 : vector<5xf32> to vector<5x1xf32>
    %110 = vector.broadcast %109 : vector<5x1xf32> to vector<5x5xf32>
    %111 = arith.divf %107, %110 : vector<5x5xf32>
    %cst_70 = arith.constant dense<0.000000e+00> : vector<5x8xf32>
    %112 = tpu.matmul %111, %99, %cst_70 {dimension_numbers = #tpu.dot_dimension_numbers<[1], [0], [0], [1], [0, 0, 1, 1], [], []>} : vector<5x5xf32>, vector<5x8xf32>, vector<5x8xf32> -> vector<5x8xf32>
    %c0_71 = arith.constant 0 : index
    %c0_72 = arith.constant 0 : index
    %113 = vector.load %arg20[%c0_71, %c0_72] : memref<10x32xf32, #tpu.memory_space<vmem>>, vector<5x8xf32>
    tpu.vector_store %arg20[%c0_71, %c0_72], %112 {strides = array<i32>} : memref<10x32xf32, #tpu.memory_space<vmem>>, vector<5x8xf32>,
    %114 = vector.extract_strided_slice %94 {offsets = [0, 8], sizes = [5, 8], strides = [1, 1]} : vector<10x32xf32> to vector<5x8xf32>
    %115 = vector.extract_strided_slice %95 {offsets = [0, 8], sizes = [5, 8], strides = [1, 1]} : vector<10x32xf32> to vector<5x8xf32>
    %116 = vector.extract_strided_slice %96 {offsets = [0, 8], sizes = [5, 8], strides = [1, 1]} : vector<10x32xf32> to vector<5x8xf32>
    %cst_73 = arith.constant dense<0.000000e+00> : vector<5x5xf32>
    %117 = tpu.matmul %114, %115, %cst_73 {dimension_numbers = #tpu.dot_dimension_numbers<[1], [1], [0], [0], [0, 0, 1, 0], [], []>} : vector<5x8xf32>, vector<5x8xf32>, vector<5x5xf32> -> vector<5x5xf32>
    %cst_74 = arith.constant 0.353553385 : f32
    %118 = vector.broadcast %cst_74 : f32 to vector<5x5xf32>
    %119 = arith.mulf %117, %118 : vector<5x5xf32>
    %cst_75 = arith.constant dense<0xFF800000> : vector<5xf32>
    %120 = vector.multi_reduction <maximumf>, %119, %cst_75 [1] : vector<5x5xf32> to vector<5xf32>
    %121 = vector.shape_cast %120 : vector<5xf32> to vector<5x1xf32>
    %122 = vector.broadcast %121 : vector<5x1xf32> to vector<5x5xf32>
    %123 = arith.subf %119, %122 : vector<5x5xf32>
    %124 = math.exp %123 : vector<5x5xf32>
    %cst_76 = arith.constant dense<0.000000e+00> : vector<5xf32>
    %125 = vector.multi_reduction <add>, %124, %cst_76 [1] : vector<5x5xf32> to vector<5xf32>
    %126 = vector.shape_cast %125 : vector<5xf32> to vector<5x1xf32>
    %127 = vector.broadcast %126 : vector<5x1xf32> to vector<5x5xf32>
    %128 = arith.divf %124, %127 : vector<5x5xf32>
    %cst_77 = arith.constant dense<0.000000e+00> : vector<5x8xf32>
    %129 = tpu.matmul %128, %116, %cst_77 {dimension_numbers = #tpu.dot_dimension_numbers<[1], [0], [0], [1], [0, 0, 1, 1], [], []>} : vector<5x5xf32>, vector<5x8xf32>, vector<5x8xf32> -> vector<5x8xf32>
    %c0_78 = arith.constant 0 : index
    %c8 = arith.constant 8 : index
    %130 = vector.load %arg20[%c0_78, %c8] : memref<10x32xf32, #tpu.memory_space<vmem>>, vector<5x8xf32>
    tpu.vector_store %arg20[%c0_78, %c8], %129 {strides = array<i32>} : memref<10x32xf32, #tpu.memory_space<vmem>>, vector<5x8xf32>,
    %131 = vector.extract_strided_slice %94 {offsets = [0, 16], sizes = [5, 8], strides = [1, 1]} : vector<10x32xf32> to vector<5x8xf32>
    %132 = vector.extract_strided_slice %95 {offsets = [0, 16], sizes = [5, 8], strides = [1, 1]} : vector<10x32xf32> to vector<5x8xf32>
    %133 = vector.extract_strided_slice %96 {offsets = [0, 16], sizes = [5, 8], strides = [1, 1]} : vector<10x32xf32> to vector<5x8xf32>
    %cst_79 = arith.constant dense<0.000000e+00> : vector<5x5xf32>
    %134 = tpu.matmul %131, %132, %cst_79 {dimension_numbers = #tpu.dot_dimension_numbers<[1], [1], [0], [0], [0, 0, 1, 0], [], []>} : vector<5x8xf32>, vector<5x8xf32>, vector<5x5xf32> -> vector<5x5xf32>
    %cst_80 = arith.constant 0.353553385 : f32
    %135 = vector.broadcast %cst_80 : f32 to vector<5x5xf32>
    %136 = arith.mulf %134, %135 : vector<5x5xf32>
    %cst_81 = arith.constant dense<0xFF800000> : vector<5xf32>
    %137 = vector.multi_reduction <maximumf>, %136, %cst_81 [1] : vector<5x5xf32> to vector<5xf32>
    %138 = vector.shape_cast %137 : vector<5xf32> to vector<5x1xf32>
    %139 = vector.broadcast %138 : vector<5x1xf32> to vector<5x5xf32>
    %140 = arith.subf %136, %139 : vector<5x5xf32>
    %141 = math.exp %140 : vector<5x5xf32>
    %cst_82 = arith.constant dense<0.000000e+00> : vector<5xf32>
    %142 = vector.multi_reduction <add>, %141, %cst_82 [1] : vector<5x5xf32> to vector<5xf32>
    %143 = vector.shape_cast %142 : vector<5xf32> to vector<5x1xf32>
    %144 = vector.broadcast %143 : vector<5x1xf32> to vector<5x5xf32>
    %145 = arith.divf %141, %144 : vector<5x5xf32>
    %cst_83 = arith.constant dense<0.000000e+00> : vector<5x8xf32>
    %146 = tpu.matmul %145, %133, %cst_83 {dimension_numbers = #tpu.dot_dimension_numbers<[1], [0], [0], [1], [0, 0, 1, 1], [], []>} : vector<5x5xf32>, vector<5x8xf32>, vector<5x8xf32> -> vector<5x8xf32>
    %c0_84 = arith.constant 0 : index
    %c16 = arith.constant 16 : index
    %147 = vector.load %arg20[%c0_84, %c16] : memref<10x32xf32, #tpu.memory_space<vmem>>, vector<5x8xf32>
    tpu.vector_store %arg20[%c0_84, %c16], %146 {strides = array<i32>} : memref<10x32xf32, #tpu.memory_space<vmem>>, vector<5x8xf32>,
    %148 = vector.extract_strided_slice %94 {offsets = [0, 24], sizes = [5, 8], strides = [1, 1]} : vector<10x32xf32> to vector<5x8xf32>
    %149 = vector.extract_strided_slice %95 {offsets = [0, 24], sizes = [5, 8], strides = [1, 1]} : vector<10x32xf32> to vector<5x8xf32>
    %150 = vector.extract_strided_slice %96 {offsets = [0, 24], sizes = [5, 8], strides = [1, 1]} : vector<10x32xf32> to vector<5x8xf32>
    %cst_85 = arith.constant dense<0.000000e+00> : vector<5x5xf32>
    %151 = tpu.matmul %148, %149, %cst_85 {dimension_numbers = #tpu.dot_dimension_numbers<[1], [1], [0], [0], [0, 0, 1, 0], [], []>} : vector<5x8xf32>, vector<5x8xf32>, vector<5x5xf32> -> vector<5x5xf32>
    %cst_86 = arith.constant 0.353553385 : f32
    %152 = vector.broadcast %cst_86 : f32 to vector<5x5xf32>
    %153 = arith.mulf %151, %152 : vector<5x5xf32>
    %cst_87 = arith.constant dense<0xFF800000> : vector<5xf32>
    %154 = vector.multi_reduction <maximumf>, %153, %cst_87 [1] : vector<5x5xf32> to vector<5xf32>
    %155 = vector.shape_cast %154 : vector<5xf32> to vector<5x1xf32>
    %156 = vector.broadcast %155 : vector<5x1xf32> to vector<5x5xf32>
    %157 = arith.subf %153, %156 : vector<5x5xf32>
    %158 = math.exp %157 : vector<5x5xf32>
    %cst_88 = arith.constant dense<0.000000e+00> : vector<5xf32>
    %159 = vector.multi_reduction <add>, %158, %cst_88 [1] : vector<5x5xf32> to vector<5xf32>
    %160 = vector.shape_cast %159 : vector<5xf32> to vector<5x1xf32>
    %161 = vector.broadcast %160 : vector<5x1xf32> to vector<5x5xf32>
    %162 = arith.divf %158, %161 : vector<5x5xf32>
    %cst_89 = arith.constant dense<0.000000e+00> : vector<5x8xf32>
    %163 = tpu.matmul %162, %150, %cst_89 {dimension_numbers = #tpu.dot_dimension_numbers<[1], [0], [0], [1], [0, 0, 1, 1], [], []>} : vector<5x5xf32>, vector<5x8xf32>, vector<5x8xf32> -> vector<5x8xf32>
    %c0_90 = arith.constant 0 : index
    %c24 = arith.constant 24 : index
    %164 = vector.load %arg20[%c0_90, %c24] : memref<10x32xf32, #tpu.memory_space<vmem>>, vector<5x8xf32>
    tpu.vector_store %arg20[%c0_90, %c24], %163 {strides = array<i32>} : memref<10x32xf32, #tpu.memory_space<vmem>>, vector<5x8xf32>,
    %165 = vector.extract_strided_slice %94 {offsets = [5, 0], sizes = [5, 8], strides = [1, 1]} : vector<10x32xf32> to vector<5x8xf32>
    %166 = vector.extract_strided_slice %95 {offsets = [5, 0], sizes = [5, 8], strides = [1, 1]} : vector<10x32xf32> to vector<5x8xf32>
    %167 = vector.extract_strided_slice %96 {offsets = [5, 0], sizes = [5, 8], strides = [1, 1]} : vector<10x32xf32> to vector<5x8xf32>
    %cst_91 = arith.constant dense<0.000000e+00> : vector<5x5xf32>
    %168 = tpu.matmul %165, %166, %cst_91 {dimension_numbers = #tpu.dot_dimension_numbers<[1], [1], [0], [0], [0, 0, 1, 0], [], []>} : vector<5x8xf32>, vector<5x8xf32>, vector<5x5xf32> -> vector<5x5xf32>
    %cst_92 = arith.constant 0.353553385 : f32
    %169 = vector.broadcast %cst_92 : f32 to vector<5x5xf32>
    %170 = arith.mulf %168, %169 : vector<5x5xf32>
    %cst_93 = arith.constant dense<0xFF800000> : vector<5xf32>
    %171 = vector.multi_reduction <maximumf>, %170, %cst_93 [1] : vector<5x5xf32> to vector<5xf32>
    %172 = vector.shape_cast %171 : vector<5xf32> to vector<5x1xf32>
    %173 = vector.broadcast %172 : vector<5x1xf32> to vector<5x5xf32>
    %174 = arith.subf %170, %173 : vector<5x5xf32>
    %175 = math.exp %174 : vector<5x5xf32>
    %cst_94 = arith.constant dense<0.000000e+00> : vector<5xf32>
    %176 = vector.multi_reduction <add>, %175, %cst_94 [1] : vector<5x5xf32> to vector<5xf32>
    %177 = vector.shape_cast %176 : vector<5xf32> to vector<5x1xf32>
    %178 = vector.broadcast %177 : vector<5x1xf32> to vector<5x5xf32>
    %179 = arith.divf %175, %178 : vector<5x5xf32>
    %cst_95 = arith.constant dense<0.000000e+00> : vector<5x8xf32>
    %180 = tpu.matmul %179, %167, %cst_95 {dimension_numbers = #tpu.dot_dimension_numbers<[1], [0], [0], [1], [0, 0, 1, 1], [], []>} : vector<5x5xf32>, vector<5x8xf32>, vector<5x8xf32> -> vector<5x8xf32>
    %c5_96 = arith.constant 5 : index
    %c0_97 = arith.constant 0 : index
    %181 = vector.load %arg20[%c5_96, %c0_97] : memref<10x32xf32, #tpu.memory_space<vmem>>, vector<5x8xf32>
    tpu.vector_store %arg20[%c5_96, %c0_97], %180 {strides = array<i32>} : memref<10x32xf32, #tpu.memory_space<vmem>>, vector<5x8xf32>,
    %182 = vector.extract_strided_slice %94 {offsets = [5, 8], sizes = [5, 8], strides = [1, 1]} : vector<10x32xf32> to vector<5x8xf32>
    %183 = vector.extract_strided_slice %95 {offsets = [5, 8], sizes = [5, 8], strides = [1, 1]} : vector<10x32xf32> to vector<5x8xf32>
    %184 = vector.extract_strided_slice %96 {offsets = [5, 8], sizes = [5, 8], strides = [1, 1]} : vector<10x32xf32> to vector<5x8xf32>
    %cst_98 = arith.constant dense<0.000000e+00> : vector<5x5xf32>
    %185 = tpu.matmul %182, %183, %cst_98 {dimension_numbers = #tpu.dot_dimension_numbers<[1], [1], [0], [0], [0, 0, 1, 0], [], []>} : vector<5x8xf32>, vector<5x8xf32>, vector<5x5xf32> -> vector<5x5xf32>
    %cst_99 = arith.constant 0.353553385 : f32
    %186 = vector.broadcast %cst_99 : f32 to vector<5x5xf32>
    %187 = arith.mulf %185, %186 : vector<5x5xf32>
    %cst_100 = arith.constant dense<0xFF800000> : vector<5xf32>
    %188 = vector.multi_reduction <maximumf>, %187, %cst_100 [1] : vector<5x5xf32> to vector<5xf32>
    %189 = vector.shape_cast %188 : vector<5xf32> to vector<5x1xf32>
    %190 = vector.broadcast %189 : vector<5x1xf32> to vector<5x5xf32>
    %191 = arith.subf %187, %190 : vector<5x5xf32>
    %192 = math.exp %191 : vector<5x5xf32>
    %cst_101 = arith.constant dense<0.000000e+00> : vector<5xf32>
    %193 = vector.multi_reduction <add>, %192, %cst_101 [1] : vector<5x5xf32> to vector<5xf32>
    %194 = vector.shape_cast %193 : vector<5xf32> to vector<5x1xf32>
    %195 = vector.broadcast %194 : vector<5x1xf32> to vector<5x5xf32>
    %196 = arith.divf %192, %195 : vector<5x5xf32>
    %cst_102 = arith.constant dense<0.000000e+00> : vector<5x8xf32>
    %197 = tpu.matmul %196, %184, %cst_102 {dimension_numbers = #tpu.dot_dimension_numbers<[1], [0], [0], [1], [0, 0, 1, 1], [], []>} : vector<5x5xf32>, vector<5x8xf32>, vector<5x8xf32> -> vector<5x8xf32>
    %c5_103 = arith.constant 5 : index
    %c8_104 = arith.constant 8 : index
    %198 = vector.load %arg20[%c5_103, %c8_104] : memref<10x32xf32, #tpu.memory_space<vmem>>, vector<5x8xf32>
    tpu.vector_store %arg20[%c5_103, %c8_104], %197 {strides = array<i32>} : memref<10x32xf32, #tpu.memory_space<vmem>>, vector<5x8xf32>,
    %199 = vector.extract_strided_slice %94 {offsets = [5, 16], sizes = [5, 8], strides = [1, 1]} : vector<10x32xf32> to vector<5x8xf32>
    %200 = vector.extract_strided_slice %95 {offsets = [5, 16], sizes = [5, 8], strides = [1, 1]} : vector<10x32xf32> to vector<5x8xf32>
    %201 = vector.extract_strided_slice %96 {offsets = [5, 16], sizes = [5, 8], strides = [1, 1]} : vector<10x32xf32> to vector<5x8xf32>
    %cst_105 = arith.constant dense<0.000000e+00> : vector<5x5xf32>
    %202 = tpu.matmul %199, %200, %cst_105 {dimension_numbers = #tpu.dot_dimension_numbers<[1], [1], [0], [0], [0, 0, 1, 0], [], []>} : vector<5x8xf32>, vector<5x8xf32>, vector<5x5xf32> -> vector<5x5xf32>
    %cst_106 = arith.constant 0.353553385 : f32
    %203 = vector.broadcast %cst_106 : f32 to vector<5x5xf32>
    %204 = arith.mulf %202, %203 : vector<5x5xf32>
    %cst_107 = arith.constant dense<0xFF800000> : vector<5xf32>
    %205 = vector.multi_reduction <maximumf>, %204, %cst_107 [1] : vector<5x5xf32> to vector<5xf32>
    %206 = vector.shape_cast %205 : vector<5xf32> to vector<5x1xf32>
    %207 = vector.broadcast %206 : vector<5x1xf32> to vector<5x5xf32>
    %208 = arith.subf %204, %207 : vector<5x5xf32>
    %209 = math.exp %208 : vector<5x5xf32>
    %cst_108 = arith.constant dense<0.000000e+00> : vector<5xf32>
    %210 = vector.multi_reduction <add>, %209, %cst_108 [1] : vector<5x5xf32> to vector<5xf32>
    %211 = vector.shape_cast %210 : vector<5xf32> to vector<5x1xf32>
    %212 = vector.broadcast %211 : vector<5x1xf32> to vector<5x5xf32>
    %213 = arith.divf %209, %212 : vector<5x5xf32>
    %cst_109 = arith.constant dense<0.000000e+00> : vector<5x8xf32>
    %214 = tpu.matmul %213, %201, %cst_109 {dimension_numbers = #tpu.dot_dimension_numbers<[1], [0], [0], [1], [0, 0, 1, 1], [], []>} : vector<5x5xf32>, vector<5x8xf32>, vector<5x8xf32> -> vector<5x8xf32>
    %c5_110 = arith.constant 5 : index
    %c16_111 = arith.constant 16 : index
    %215 = vector.load %arg20[%c5_110, %c16_111] : memref<10x32xf32, #tpu.memory_space<vmem>>, vector<5x8xf32>
    tpu.vector_store %arg20[%c5_110, %c16_111], %214 {strides = array<i32>} : memref<10x32xf32, #tpu.memory_space<vmem>>, vector<5x8xf32>,
    %216 = vector.extract_strided_slice %94 {offsets = [5, 24], sizes = [5, 8], strides = [1, 1]} : vector<10x32xf32> to vector<5x8xf32>
    %217 = vector.extract_strided_slice %95 {offsets = [5, 24], sizes = [5, 8], strides = [1, 1]} : vector<10x32xf32> to vector<5x8xf32>
    %218 = vector.extract_strided_slice %96 {offsets = [5, 24], sizes = [5, 8], strides = [1, 1]} : vector<10x32xf32> to vector<5x8xf32>
    %cst_112 = arith.constant dense<0.000000e+00> : vector<5x5xf32>
    %219 = tpu.matmul %216, %217, %cst_112 {dimension_numbers = #tpu.dot_dimension_numbers<[1], [1], [0], [0], [0, 0, 1, 0], [], []>} : vector<5x8xf32>, vector<5x8xf32>, vector<5x5xf32> -> vector<5x5xf32>
    %cst_113 = arith.constant 0.353553385 : f32
    %220 = vector.broadcast %cst_113 : f32 to vector<5x5xf32>
    %221 = arith.mulf %219, %220 : vector<5x5xf32>
    %cst_114 = arith.constant dense<0xFF800000> : vector<5xf32>
    %222 = vector.multi_reduction <maximumf>, %221, %cst_114 [1] : vector<5x5xf32> to vector<5xf32>
    %223 = vector.shape_cast %222 : vector<5xf32> to vector<5x1xf32>
    %224 = vector.broadcast %223 : vector<5x1xf32> to vector<5x5xf32>
    %225 = arith.subf %221, %224 : vector<5x5xf32>
    %226 = math.exp %225 : vector<5x5xf32>
    %cst_115 = arith.constant dense<0.000000e+00> : vector<5xf32>
    %227 = vector.multi_reduction <add>, %226, %cst_115 [1] : vector<5x5xf32> to vector<5xf32>
    %228 = vector.shape_cast %227 : vector<5xf32> to vector<5x1xf32>
    %229 = vector.broadcast %228 : vector<5x1xf32> to vector<5x5xf32>
    %230 = arith.divf %226, %229 : vector<5x5xf32>
    %cst_116 = arith.constant dense<0.000000e+00> : vector<5x8xf32>
    %231 = tpu.matmul %230, %218, %cst_116 {dimension_numbers = #tpu.dot_dimension_numbers<[1], [0], [0], [1], [0, 0, 1, 1], [], []>} : vector<5x5xf32>, vector<5x8xf32>, vector<5x8xf32> -> vector<5x8xf32>
    %c5_117 = arith.constant 5 : index
    %c24_118 = arith.constant 24 : index
    %232 = vector.load %arg20[%c5_117, %c24_118] : memref<10x32xf32, #tpu.memory_space<vmem>>, vector<5x8xf32>
    tpu.vector_store %arg20[%c5_117, %c24_118], %231 {strides = array<i32>} : memref<10x32xf32, #tpu.memory_space<vmem>>, vector<5x8xf32>,
    %c0_119 = arith.constant 0 : index
    %c0_120 = arith.constant 0 : index
    %233 = vector.load %arg20[%c0_119, %c0_120] : memref<10x32xf32, #tpu.memory_space<vmem>>, vector<10x32xf32>
    %cst_121 = arith.constant dense<0.000000e+00> : vector<10x32xf32>
    %234 = tpu.matmul %233, %54, %cst_121 {dimension_numbers = #tpu.dot_dimension_numbers<[1], [0], [0], [1], [0, 0, 1, 1], [], []>} : vector<10x32xf32>, vector<32x32xf32>, vector<10x32xf32> -> vector<10x32xf32>
    %235 = arith.addf %44, %234 : vector<10x32xf32>
    %236 = vector.broadcast %56 : vector<1x32xf32> to vector<10x32xf32>
    %237 = arith.addf %235, %236 : vector<10x32xf32>
    %cst_122 = arith.constant dense<0.000000e+00> : vector<10xf32>
    %238 = vector.multi_reduction <add>, %237, %cst_122 [1] : vector<10x32xf32> to vector<10xf32>
    %239 = vector.shape_cast %238 : vector<10xf32> to vector<10x1xf32>
    %cst_123 = arith.constant 3.200000e+01 : f32
    %240 = vector.broadcast %cst_123 : f32 to vector<10x1xf32>
    %241 = arith.divf %239, %240 : vector<10x1xf32>
    %242 = vector.broadcast %241 : vector<10x1xf32> to vector<10x32xf32>
    %243 = arith.subf %237, %242 : vector<10x32xf32>
    %244 = arith.mulf %243, %243 : vector<10x32xf32>
    %cst_124 = arith.constant dense<0.000000e+00> : vector<10xf32>
    %245 = vector.multi_reduction <add>, %244, %cst_124 [1] : vector<10x32xf32> to vector<10xf32>
    %246 = vector.shape_cast %245 : vector<10xf32> to vector<10x1xf32>
    %cst_125 = arith.constant 3.200000e+01 : f32
    %247 = vector.broadcast %cst_125 : f32 to vector<10x1xf32>
    %248 = arith.divf %246, %247 : vector<10x1xf32>
    %249 = vector.broadcast %241 : vector<10x1xf32> to vector<10x32xf32>
    %250 = arith.subf %237, %249 : vector<10x32xf32>
    %cst_126 = arith.constant 9.99999974E-6 : f32
    %251 = vector.broadcast %cst_126 : f32 to vector<10x1xf32>
    %252 = arith.addf %248, %251 : vector<10x1xf32>
    %253 = math.rsqrt %252 : vector<10x1xf32>
    %254 = vector.broadcast %253 : vector<10x1xf32> to vector<10x32xf32>
    %255 = arith.mulf %250, %254 : vector<10x32xf32>
    %256 = vector.broadcast %58 : vector<1x32xf32> to vector<10x32xf32>
    %257 = arith.mulf %255, %256 : vector<10x32xf32>
    %258 = vector.broadcast %60 : vector<1x32xf32> to vector<10x32xf32>
    %259 = arith.addf %257, %258 : vector<10x32xf32>
    %cst_127 = arith.constant dense<0.000000e+00> : vector<10x64xf32>
    %260 = tpu.matmul %259, %62, %cst_127 {dimension_numbers = #tpu.dot_dimension_numbers<[1], [0], [0], [1], [0, 0, 1, 1], [], []>} : vector<10x32xf32>, vector<32x64xf32>, vector<10x64xf32> -> vector<10x64xf32>
    %261 = vector.broadcast %64 : vector<1x64xf32> to vector<10x64xf32>
    %262 = arith.addf %260, %261 : vector<10x64xf32>
    %cst_128 = arith.constant 1.702000e+00 : f32
    %263 = vector.broadcast %cst_128 : f32 to vector<10x64xf32>
    %264 = arith.mulf %263, %262 : vector<10x64xf32>
    %265 = arith.negf %264 : vector<10x64xf32>
    %266 = math.exp %265 : vector<10x64xf32>
    %cst_129 = arith.constant 1.000000e+00 : f32
    %267 = vector.broadcast %cst_129 : f32 to vector<10x64xf32>
    %268 = arith.addf %267, %266 : vector<10x64xf32>
    %269 = arith.divf %267, %268 : vector<10x64xf32>
    %270 = arith.mulf %262, %269 : vector<10x64xf32>
    %cst_130 = arith.constant dense<0.000000e+00> : vector<10x32xf32>
    %271 = tpu.matmul %270, %66, %cst_130 {dimension_numbers = #tpu.dot_dimension_numbers<[1], [0], [0], [1], [0, 0, 1, 1], [], []>} : vector<10x64xf32>, vector<64x32xf32>, vector<10x32xf32> -> vector<10x32xf32>
    %272 = vector.broadcast %68 : vector<1x32xf32> to vector<10x32xf32>
    %273 = arith.addf %271, %272 : vector<10x32xf32>
    %274 = arith.addf %237, %273 : vector<10x32xf32>
    %c1_131 = arith.constant 1 : index
    %c0_132 = arith.constant 0 : index
    %c0_133 = arith.constant 0 : index
    %275 = vector.load %arg7[%c1_131, %c0_132, %c0_133] : memref<2x1x32xf32, #tpu.memory_space<vmem>>, vector<1x1x32xf32>
    %276 = vector.shape_cast %275 : vector<1x1x32xf32> to vector<1x32xf32>
    %c1_134 = arith.constant 1 : index
    %c0_135 = arith.constant 0 : index
    %c0_136 = arith.constant 0 : index
    %277 = vector.load %arg8[%c1_134, %c0_135, %c0_136] : memref<2x1x32xf32, #tpu.memory_space<vmem>>, vector<1x1x32xf32>
    %278 = vector.shape_cast %277 : vector<1x1x32xf32> to vector<1x32xf32>
    %c1_137 = arith.constant 1 : index
    %c0_138 = arith.constant 0 : index
    %c0_139 = arith.constant 0 : index
    %279 = vector.load %arg9[%c1_137, %c0_138, %c0_139] : memref<2x32x96xf32, #tpu.memory_space<vmem>>, vector<1x32x96xf32>
    %280 = vector.shape_cast %279 : vector<1x32x96xf32> to vector<32x96xf32>
    %c1_140 = arith.constant 1 : index
    %c0_141 = arith.constant 0 : index
    %c0_142 = arith.constant 0 : index
    %281 = vector.load %arg10[%c1_140, %c0_141, %c0_142] : memref<2x1x96xf32, #tpu.memory_space<vmem>>, vector<1x1x96xf32>
    %282 = vector.shape_cast %281 : vector<1x1x96xf32> to vector<1x96xf32>
    %c1_143 = arith.constant 1 : index
    %c0_144 = arith.constant 0 : index
    %c0_145 = arith.constant 0 : index
    %283 = vector.load %arg11[%c1_143, %c0_144, %c0_145] : memref<2x32x32xf32, #tpu.memory_space<vmem>>, vector<1x32x32xf32>
    %284 = vector.shape_cast %283 : vector<1x32x32xf32> to vector<32x32xf32>
    %c1_146 = arith.constant 1 : index
    %c0_147 = arith.constant 0 : index
    %c0_148 = arith.constant 0 : index
    %285 = vector.load %arg12[%c1_146, %c0_147, %c0_148] : memref<2x1x32xf32, #tpu.memory_space<vmem>>, vector<1x1x32xf32>
    %286 = vector.shape_cast %285 : vector<1x1x32xf32> to vector<1x32xf32>
    %c1_149 = arith.constant 1 : index
    %c0_150 = arith.constant 0 : index
    %c0_151 = arith.constant 0 : index
    %287 = vector.load %arg13[%c1_149, %c0_150, %c0_151] : memref<2x1x32xf32, #tpu.memory_space<vmem>>, vector<1x1x32xf32>
    %288 = vector.shape_cast %287 : vector<1x1x32xf32> to vector<1x32xf32>
    %c1_152 = arith.constant 1 : index
    %c0_153 = arith.constant 0 : index
    %c0_154 = arith.constant 0 : index
    %289 = vector.load %arg14[%c1_152, %c0_153, %c0_154] : memref<2x1x32xf32, #tpu.memory_space<vmem>>, vector<1x1x32xf32>
    %290 = vector.shape_cast %289 : vector<1x1x32xf32> to vector<1x32xf32>
    %c1_155 = arith.constant 1 : index
    %c0_156 = arith.constant 0 : index
    %c0_157 = arith.constant 0 : index
    %291 = vector.load %arg15[%c1_155, %c0_156, %c0_157] : memref<2x32x64xf32, #tpu.memory_space<vmem>>, vector<1x32x64xf32>
    %292 = vector.shape_cast %291 : vector<1x32x64xf32> to vector<32x64xf32>
    %c1_158 = arith.constant 1 : index
    %c0_159 = arith.constant 0 : index
    %c0_160 = arith.constant 0 : index
    %293 = vector.load %arg16[%c1_158, %c0_159, %c0_160] : memref<2x1x64xf32, #tpu.memory_space<vmem>>, vector<1x1x64xf32>
    %294 = vector.shape_cast %293 : vector<1x1x64xf32> to vector<1x64xf32>
    %c1_161 = arith.constant 1 : index
    %c0_162 = arith.constant 0 : index
    %c0_163 = arith.constant 0 : index
    %295 = vector.load %arg17[%c1_161, %c0_162, %c0_163] : memref<2x64x32xf32, #tpu.memory_space<vmem>>, vector<1x64x32xf32>
    %296 = vector.shape_cast %295 : vector<1x64x32xf32> to vector<64x32xf32>
    %c1_164 = arith.constant 1 : index
    %c0_165 = arith.constant 0 : index
    %c0_166 = arith.constant 0 : index
    %297 = vector.load %arg18[%c1_164, %c0_165, %c0_166] : memref<2x1x32xf32, #tpu.memory_space<vmem>>, vector<1x1x32xf32>
    %298 = vector.shape_cast %297 : vector<1x1x32xf32> to vector<1x32xf32>
    %cst_167 = arith.constant dense<0.000000e+00> : vector<10xf32>
    %299 = vector.multi_reduction <add>, %274, %cst_167 [1] : vector<10x32xf32> to vector<10xf32>
    %300 = vector.shape_cast %299 : vector<10xf32> to vector<10x1xf32>
    %cst_168 = arith.constant 3.200000e+01 : f32
    %301 = vector.broadcast %cst_168 : f32 to vector<10x1xf32>
    %302 = arith.divf %300, %301 : vector<10x1xf32>
    %303 = vector.broadcast %302 : vector<10x1xf32> to vector<10x32xf32>
    %304 = arith.subf %274, %303 : vector<10x32xf32>
    %305 = arith.mulf %304, %304 : vector<10x32xf32>
    %cst_169 = arith.constant dense<0.000000e+00> : vector<10xf32>
    %306 = vector.multi_reduction <add>, %305, %cst_169 [1] : vector<10x32xf32> to vector<10xf32>
    %307 = vector.shape_cast %306 : vector<10xf32> to vector<10x1xf32>
    %cst_170 = arith.constant 3.200000e+01 : f32
    %308 = vector.broadcast %cst_170 : f32 to vector<10x1xf32>
    %309 = arith.divf %307, %308 : vector<10x1xf32>
    %310 = vector.broadcast %302 : vector<10x1xf32> to vector<10x32xf32>
    %311 = arith.subf %274, %310 : vector<10x32xf32>
    %cst_171 = arith.constant 9.99999974E-6 : f32
    %312 = vector.broadcast %cst_171 : f32 to vector<10x1xf32>
    %313 = arith.addf %309, %312 : vector<10x1xf32>
    %314 = math.rsqrt %313 : vector<10x1xf32>
    %315 = vector.broadcast %314 : vector<10x1xf32> to vector<10x32xf32>
    %316 = arith.mulf %311, %315 : vector<10x32xf32>
    %317 = vector.broadcast %276 : vector<1x32xf32> to vector<10x32xf32>
    %318 = arith.mulf %316, %317 : vector<10x32xf32>
    %319 = vector.broadcast %278 : vector<1x32xf32> to vector<10x32xf32>
    %320 = arith.addf %318, %319 : vector<10x32xf32>
    %cst_172 = arith.constant dense<0.000000e+00> : vector<10x96xf32>
    %321 = tpu.matmul %320, %280, %cst_172 {dimension_numbers = #tpu.dot_dimension_numbers<[1], [0], [0], [1], [0, 0, 1, 1], [], []>} : vector<10x32xf32>, vector<32x96xf32>, vector<10x96xf32> -> vector<10x96xf32>
    %322 = vector.broadcast %282 : vector<1x96xf32> to vector<10x96xf32>
    %323 = arith.addf %321, %322 : vector<10x96xf32>
    %324 = vector.extract_strided_slice %323 {offsets = [0, 0], sizes = [10, 32], strides = [1, 1]} : vector<10x96xf32> to vector<10x32xf32>
    %325 = vector.extract_strided_slice %323 {offsets = [0, 32], sizes = [10, 32], strides = [1, 1]} : vector<10x96xf32> to vector<10x32xf32>
    %326 = vector.extract_strided_slice %323 {offsets = [0, 64], sizes = [10, 32], strides = [1, 1]} : vector<10x96xf32> to vector<10x32xf32>
    %327 = vector.extract_strided_slice %324 {offsets = [0, 0], sizes = [5, 8], strides = [1, 1]} : vector<10x32xf32> to vector<5x8xf32>
    %328 = vector.extract_strided_slice %325 {offsets = [0, 0], sizes = [5, 8], strides = [1, 1]} : vector<10x32xf32> to vector<5x8xf32>
    %329 = vector.extract_strided_slice %326 {offsets = [0, 0], sizes = [5, 8], strides = [1, 1]} : vector<10x32xf32> to vector<5x8xf32>
    %cst_173 = arith.constant dense<0.000000e+00> : vector<5x5xf32>
    %330 = tpu.matmul %327, %328, %cst_173 {dimension_numbers = #tpu.dot_dimension_numbers<[1], [1], [0], [0], [0, 0, 1, 0], [], []>} : vector<5x8xf32>, vector<5x8xf32>, vector<5x5xf32> -> vector<5x5xf32>
    %cst_174 = arith.constant 0.353553385 : f32
    %331 = vector.broadcast %cst_174 : f32 to vector<5x5xf32>
    %332 = arith.mulf %330, %331 : vector<5x5xf32>
    %cst_175 = arith.constant dense<0xFF800000> : vector<5xf32>
    %333 = vector.multi_reduction <maximumf>, %332, %cst_175 [1] : vector<5x5xf32> to vector<5xf32>
    %334 = vector.shape_cast %333 : vector<5xf32> to vector<5x1xf32>
    %335 = vector.broadcast %334 : vector<5x1xf32> to vector<5x5xf32>
    %336 = arith.subf %332, %335 : vector<5x5xf32>
    %337 = math.exp %336 : vector<5x5xf32>
    %cst_176 = arith.constant dense<0.000000e+00> : vector<5xf32>
    %338 = vector.multi_reduction <add>, %337, %cst_176 [1] : vector<5x5xf32> to vector<5xf32>
    %339 = vector.shape_cast %338 : vector<5xf32> to vector<5x1xf32>
    %340 = vector.broadcast %339 : vector<5x1xf32> to vector<5x5xf32>
    %341 = arith.divf %337, %340 : vector<5x5xf32>
    %cst_177 = arith.constant dense<0.000000e+00> : vector<5x8xf32>
    %342 = tpu.matmul %341, %329, %cst_177 {dimension_numbers = #tpu.dot_dimension_numbers<[1], [0], [0], [1], [0, 0, 1, 1], [], []>} : vector<5x5xf32>, vector<5x8xf32>, vector<5x8xf32> -> vector<5x8xf32>
    %c0_178 = arith.constant 0 : index
    %c0_179 = arith.constant 0 : index
    %343 = vector.load %arg20[%c0_178, %c0_179] : memref<10x32xf32, #tpu.memory_space<vmem>>, vector<5x8xf32>
    tpu.vector_store %arg20[%c0_178, %c0_179], %342 {strides = array<i32>} : memref<10x32xf32, #tpu.memory_space<vmem>>, vector<5x8xf32>,
    %344 = vector.extract_strided_slice %324 {offsets = [0, 8], sizes = [5, 8], strides = [1, 1]} : vector<10x32xf32> to vector<5x8xf32>
    %345 = vector.extract_strided_slice %325 {offsets = [0, 8], sizes = [5, 8], strides = [1, 1]} : vector<10x32xf32> to vector<5x8xf32>
    %346 = vector.extract_strided_slice %326 {offsets = [0, 8], sizes = [5, 8], strides = [1, 1]} : vector<10x32xf32> to vector<5x8xf32>
    %cst_180 = arith.constant dense<0.000000e+00> : vector<5x5xf32>
    %347 = tpu.matmul %344, %345, %cst_180 {dimension_numbers = #tpu.dot_dimension_numbers<[1], [1], [0], [0], [0, 0, 1, 0], [], []>} : vector<5x8xf32>, vector<5x8xf32>, vector<5x5xf32> -> vector<5x5xf32>
    %cst_181 = arith.constant 0.353553385 : f32
    %348 = vector.broadcast %cst_181 : f32 to vector<5x5xf32>
    %349 = arith.mulf %347, %348 : vector<5x5xf32>
    %cst_182 = arith.constant dense<0xFF800000> : vector<5xf32>
    %350 = vector.multi_reduction <maximumf>, %349, %cst_182 [1] : vector<5x5xf32> to vector<5xf32>
    %351 = vector.shape_cast %350 : vector<5xf32> to vector<5x1xf32>
    %352 = vector.broadcast %351 : vector<5x1xf32> to vector<5x5xf32>
    %353 = arith.subf %349, %352 : vector<5x5xf32>
    %354 = math.exp %353 : vector<5x5xf32>
    %cst_183 = arith.constant dense<0.000000e+00> : vector<5xf32>
    %355 = vector.multi_reduction <add>, %354, %cst_183 [1] : vector<5x5xf32> to vector<5xf32>
    %356 = vector.shape_cast %355 : vector<5xf32> to vector<5x1xf32>
    %357 = vector.broadcast %356 : vector<5x1xf32> to vector<5x5xf32>
    %358 = arith.divf %354, %357 : vector<5x5xf32>
    %cst_184 = arith.constant dense<0.000000e+00> : vector<5x8xf32>
    %359 = tpu.matmul %358, %346, %cst_184 {dimension_numbers = #tpu.dot_dimension_numbers<[1], [0], [0], [1], [0, 0, 1, 1], [], []>} : vector<5x5xf32>, vector<5x8xf32>, vector<5x8xf32> -> vector<5x8xf32>
    %c0_185 = arith.constant 0 : index
    %c8_186 = arith.constant 8 : index
    %360 = vector.load %arg20[%c0_185, %c8_186] : memref<10x32xf32, #tpu.memory_space<vmem>>, vector<5x8xf32>
    tpu.vector_store %arg20[%c0_185, %c8_186], %359 {strides = array<i32>} : memref<10x32xf32, #tpu.memory_space<vmem>>, vector<5x8xf32>,
    %361 = vector.extract_strided_slice %324 {offsets = [0, 16], sizes = [5, 8], strides = [1, 1]} : vector<10x32xf32> to vector<5x8xf32>
    %362 = vector.extract_strided_slice %325 {offsets = [0, 16], sizes = [5, 8], strides = [1, 1]} : vector<10x32xf32> to vector<5x8xf32>
    %363 = vector.extract_strided_slice %326 {offsets = [0, 16], sizes = [5, 8], strides = [1, 1]} : vector<10x32xf32> to vector<5x8xf32>
    %cst_187 = arith.constant dense<0.000000e+00> : vector<5x5xf32>
    %364 = tpu.matmul %361, %362, %cst_187 {dimension_numbers = #tpu.dot_dimension_numbers<[1], [1], [0], [0], [0, 0, 1, 0], [], []>} : vector<5x8xf32>, vector<5x8xf32>, vector<5x5xf32> -> vector<5x5xf32>
    %cst_188 = arith.constant 0.353553385 : f32
    %365 = vector.broadcast %cst_188 : f32 to vector<5x5xf32>
    %366 = arith.mulf %364, %365 : vector<5x5xf32>
    %cst_189 = arith.constant dense<0xFF800000> : vector<5xf32>
    %367 = vector.multi_reduction <maximumf>, %366, %cst_189 [1] : vector<5x5xf32> to vector<5xf32>
    %368 = vector.shape_cast %367 : vector<5xf32> to vector<5x1xf32>
    %369 = vector.broadcast %368 : vector<5x1xf32> to vector<5x5xf32>
    %370 = arith.subf %366, %369 : vector<5x5xf32>
    %371 = math.exp %370 : vector<5x5xf32>
    %cst_190 = arith.constant dense<0.000000e+00> : vector<5xf32>
    %372 = vector.multi_reduction <add>, %371, %cst_190 [1] : vector<5x5xf32> to vector<5xf32>
    %373 = vector.shape_cast %372 : vector<5xf32> to vector<5x1xf32>
    %374 = vector.broadcast %373 : vector<5x1xf32> to vector<5x5xf32>
    %375 = arith.divf %371, %374 : vector<5x5xf32>
    %cst_191 = arith.constant dense<0.000000e+00> : vector<5x8xf32>
    %376 = tpu.matmul %375, %363, %cst_191 {dimension_numbers = #tpu.dot_dimension_numbers<[1], [0], [0], [1], [0, 0, 1, 1], [], []>} : vector<5x5xf32>, vector<5x8xf32>, vector<5x8xf32> -> vector<5x8xf32>
    %c0_192 = arith.constant 0 : index
    %c16_193 = arith.constant 16 : index
    %377 = vector.load %arg20[%c0_192, %c16_193] : memref<10x32xf32, #tpu.memory_space<vmem>>, vector<5x8xf32>
    tpu.vector_store %arg20[%c0_192, %c16_193], %376 {strides = array<i32>} : memref<10x32xf32, #tpu.memory_space<vmem>>, vector<5x8xf32>,
    %378 = vector.extract_strided_slice %324 {offsets = [0, 24], sizes = [5, 8], strides = [1, 1]} : vector<10x32xf32> to vector<5x8xf32>
    %379 = vector.extract_strided_slice %325 {offsets = [0, 24], sizes = [5, 8], strides = [1, 1]} : vector<10x32xf32> to vector<5x8xf32>
    %380 = vector.extract_strided_slice %326 {offsets = [0, 24], sizes = [5, 8], strides = [1, 1]} : vector<10x32xf32> to vector<5x8xf32>
    %cst_194 = arith.constant dense<0.000000e+00> : vector<5x5xf32>
    %381 = tpu.matmul %378, %379, %cst_194 {dimension_numbers = #tpu.dot_dimension_numbers<[1], [1], [0], [0], [0, 0, 1, 0], [], []>} : vector<5x8xf32>, vector<5x8xf32>, vector<5x5xf32> -> vector<5x5xf32>
    %cst_195 = arith.constant 0.353553385 : f32
    %382 = vector.broadcast %cst_195 : f32 to vector<5x5xf32>
    %383 = arith.mulf %381, %382 : vector<5x5xf32>
    %cst_196 = arith.constant dense<0xFF800000> : vector<5xf32>
    %384 = vector.multi_reduction <maximumf>, %383, %cst_196 [1] : vector<5x5xf32> to vector<5xf32>
    %385 = vector.shape_cast %384 : vector<5xf32> to vector<5x1xf32>
    %386 = vector.broadcast %385 : vector<5x1xf32> to vector<5x5xf32>
    %387 = arith.subf %383, %386 : vector<5x5xf32>
    %388 = math.exp %387 : vector<5x5xf32>
    %cst_197 = arith.constant dense<0.000000e+00> : vector<5xf32>
    %389 = vector.multi_reduction <add>, %388, %cst_197 [1] : vector<5x5xf32> to vector<5xf32>
    %390 = vector.shape_cast %389 : vector<5xf32> to vector<5x1xf32>
    %391 = vector.broadcast %390 : vector<5x1xf32> to vector<5x5xf32>
    %392 = arith.divf %388, %391 : vector<5x5xf32>
    %cst_198 = arith.constant dense<0.000000e+00> : vector<5x8xf32>
    %393 = tpu.matmul %392, %380, %cst_198 {dimension_numbers = #tpu.dot_dimension_numbers<[1], [0], [0], [1], [0, 0, 1, 1], [], []>} : vector<5x5xf32>, vector<5x8xf32>, vector<5x8xf32> -> vector<5x8xf32>
    %c0_199 = arith.constant 0 : index
    %c24_200 = arith.constant 24 : index
    %394 = vector.load %arg20[%c0_199, %c24_200] : memref<10x32xf32, #tpu.memory_space<vmem>>, vector<5x8xf32>
    tpu.vector_store %arg20[%c0_199, %c24_200], %393 {strides = array<i32>} : memref<10x32xf32, #tpu.memory_space<vmem>>, vector<5x8xf32>,
    %395 = vector.extract_strided_slice %324 {offsets = [5, 0], sizes = [5, 8], strides = [1, 1]} : vector<10x32xf32> to vector<5x8xf32>
    %396 = vector.extract_strided_slice %325 {offsets = [5, 0], sizes = [5, 8], strides = [1, 1]} : vector<10x32xf32> to vector<5x8xf32>
    %397 = vector.extract_strided_slice %326 {offsets = [5, 0], sizes = [5, 8], strides = [1, 1]} : vector<10x32xf32> to vector<5x8xf32>
    %cst_201 = arith.constant dense<0.000000e+00> : vector<5x5xf32>
    %398 = tpu.matmul %395, %396, %cst_201 {dimension_numbers = #tpu.dot_dimension_numbers<[1], [1], [0], [0], [0, 0, 1, 0], [], []>} : vector<5x8xf32>, vector<5x8xf32>, vector<5x5xf32> -> vector<5x5xf32>
    %cst_202 = arith.constant 0.353553385 : f32
    %399 = vector.broadcast %cst_202 : f32 to vector<5x5xf32>
    %400 = arith.mulf %398, %399 : vector<5x5xf32>
    %cst_203 = arith.constant dense<0xFF800000> : vector<5xf32>
    %401 = vector.multi_reduction <maximumf>, %400, %cst_203 [1] : vector<5x5xf32> to vector<5xf32>
    %402 = vector.shape_cast %401 : vector<5xf32> to vector<5x1xf32>
    %403 = vector.broadcast %402 : vector<5x1xf32> to vector<5x5xf32>
    %404 = arith.subf %400, %403 : vector<5x5xf32>
    %405 = math.exp %404 : vector<5x5xf32>
    %cst_204 = arith.constant dense<0.000000e+00> : vector<5xf32>
    %406 = vector.multi_reduction <add>, %405, %cst_204 [1] : vector<5x5xf32> to vector<5xf32>
    %407 = vector.shape_cast %406 : vector<5xf32> to vector<5x1xf32>
    %408 = vector.broadcast %407 : vector<5x1xf32> to vector<5x5xf32>
    %409 = arith.divf %405, %408 : vector<5x5xf32>
    %cst_205 = arith.constant dense<0.000000e+00> : vector<5x8xf32>
    %410 = tpu.matmul %409, %397, %cst_205 {dimension_numbers = #tpu.dot_dimension_numbers<[1], [0], [0], [1], [0, 0, 1, 1], [], []>} : vector<5x5xf32>, vector<5x8xf32>, vector<5x8xf32> -> vector<5x8xf32>
    %c5_206 = arith.constant 5 : index
    %c0_207 = arith.constant 0 : index
    %411 = vector.load %arg20[%c5_206, %c0_207] : memref<10x32xf32, #tpu.memory_space<vmem>>, vector<5x8xf32>
    tpu.vector_store %arg20[%c5_206, %c0_207], %410 {strides = array<i32>} : memref<10x32xf32, #tpu.memory_space<vmem>>, vector<5x8xf32>,
    %412 = vector.extract_strided_slice %324 {offsets = [5, 8], sizes = [5, 8], strides = [1, 1]} : vector<10x32xf32> to vector<5x8xf32>
    %413 = vector.extract_strided_slice %325 {offsets = [5, 8], sizes = [5, 8], strides = [1, 1]} : vector<10x32xf32> to vector<5x8xf32>
    %414 = vector.extract_strided_slice %326 {offsets = [5, 8], sizes = [5, 8], strides = [1, 1]} : vector<10x32xf32> to vector<5x8xf32>
    %cst_208 = arith.constant dense<0.000000e+00> : vector<5x5xf32>
    %415 = tpu.matmul %412, %413, %cst_208 {dimension_numbers = #tpu.dot_dimension_numbers<[1], [1], [0], [0], [0, 0, 1, 0], [], []>} : vector<5x8xf32>, vector<5x8xf32>, vector<5x5xf32> -> vector<5x5xf32>
    %cst_209 = arith.constant 0.353553385 : f32
    %416 = vector.broadcast %cst_209 : f32 to vector<5x5xf32>
    %417 = arith.mulf %415, %416 : vector<5x5xf32>
    %cst_210 = arith.constant dense<0xFF800000> : vector<5xf32>
    %418 = vector.multi_reduction <maximumf>, %417, %cst_210 [1] : vector<5x5xf32> to vector<5xf32>
    %419 = vector.shape_cast %418 : vector<5xf32> to vector<5x1xf32>
    %420 = vector.broadcast %419 : vector<5x1xf32> to vector<5x5xf32>
    %421 = arith.subf %417, %420 : vector<5x5xf32>
    %422 = math.exp %421 : vector<5x5xf32>
    %cst_211 = arith.constant dense<0.000000e+00> : vector<5xf32>
    %423 = vector.multi_reduction <add>, %422, %cst_211 [1] : vector<5x5xf32> to vector<5xf32>
    %424 = vector.shape_cast %423 : vector<5xf32> to vector<5x1xf32>
    %425 = vector.broadcast %424 : vector<5x1xf32> to vector<5x5xf32>
    %426 = arith.divf %422, %425 : vector<5x5xf32>
    %cst_212 = arith.constant dense<0.000000e+00> : vector<5x8xf32>
    %427 = tpu.matmul %426, %414, %cst_212 {dimension_numbers = #tpu.dot_dimension_numbers<[1], [0], [0], [1], [0, 0, 1, 1], [], []>} : vector<5x5xf32>, vector<5x8xf32>, vector<5x8xf32> -> vector<5x8xf32>
    %c5_213 = arith.constant 5 : index
    %c8_214 = arith.constant 8 : index
    %428 = vector.load %arg20[%c5_213, %c8_214] : memref<10x32xf32, #tpu.memory_space<vmem>>, vector<5x8xf32>
    tpu.vector_store %arg20[%c5_213, %c8_214], %427 {strides = array<i32>} : memref<10x32xf32, #tpu.memory_space<vmem>>, vector<5x8xf32>,
    %429 = vector.extract_strided_slice %324 {offsets = [5, 16], sizes = [5, 8], strides = [1, 1]} : vector<10x32xf32> to vector<5x8xf32>
    %430 = vector.extract_strided_slice %325 {offsets = [5, 16], sizes = [5, 8], strides = [1, 1]} : vector<10x32xf32> to vector<5x8xf32>
    %431 = vector.extract_strided_slice %326 {offsets = [5, 16], sizes = [5, 8], strides = [1, 1]} : vector<10x32xf32> to vector<5x8xf32>
    %cst_215 = arith.constant dense<0.000000e+00> : vector<5x5xf32>
    %432 = tpu.matmul %429, %430, %cst_215 {dimension_numbers = #tpu.dot_dimension_numbers<[1], [1], [0], [0], [0, 0, 1, 0], [], []>} : vector<5x8xf32>, vector<5x8xf32>, vector<5x5xf32> -> vector<5x5xf32>
    %cst_216 = arith.constant 0.353553385 : f32
    %433 = vector.broadcast %cst_216 : f32 to vector<5x5xf32>
    %434 = arith.mulf %432, %433 : vector<5x5xf32>
    %cst_217 = arith.constant dense<0xFF800000> : vector<5xf32>
    %435 = vector.multi_reduction <maximumf>, %434, %cst_217 [1] : vector<5x5xf32> to vector<5xf32>
    %436 = vector.shape_cast %435 : vector<5xf32> to vector<5x1xf32>
    %437 = vector.broadcast %436 : vector<5x1xf32> to vector<5x5xf32>
    %438 = arith.subf %434, %437 : vector<5x5xf32>
    %439 = math.exp %438 : vector<5x5xf32>
    %cst_218 = arith.constant dense<0.000000e+00> : vector<5xf32>
    %440 = vector.multi_reduction <add>, %439, %cst_218 [1] : vector<5x5xf32> to vector<5xf32>
    %441 = vector.shape_cast %440 : vector<5xf32> to vector<5x1xf32>
    %442 = vector.broadcast %441 : vector<5x1xf32> to vector<5x5xf32>
    %443 = arith.divf %439, %442 : vector<5x5xf32>
    %cst_219 = arith.constant dense<0.000000e+00> : vector<5x8xf32>
    %444 = tpu.matmul %443, %431, %cst_219 {dimension_numbers = #tpu.dot_dimension_numbers<[1], [0], [0], [1], [0, 0, 1, 1], [], []>} : vector<5x5xf32>, vector<5x8xf32>, vector<5x8xf32> -> vector<5x8xf32>
    %c5_220 = arith.constant 5 : index
    %c16_221 = arith.constant 16 : index
    %445 = vector.load %arg20[%c5_220, %c16_221] : memref<10x32xf32, #tpu.memory_space<vmem>>, vector<5x8xf32>
    tpu.vector_store %arg20[%c5_220, %c16_221], %444 {strides = array<i32>} : memref<10x32xf32, #tpu.memory_space<vmem>>, vector<5x8xf32>,
    %446 = vector.extract_strided_slice %324 {offsets = [5, 24], sizes = [5, 8], strides = [1, 1]} : vector<10x32xf32> to vector<5x8xf32>
    %447 = vector.extract_strided_slice %325 {offsets = [5, 24], sizes = [5, 8], strides = [1, 1]} : vector<10x32xf32> to vector<5x8xf32>
    %448 = vector.extract_strided_slice %326 {offsets = [5, 24], sizes = [5, 8], strides = [1, 1]} : vector<10x32xf32> to vector<5x8xf32>
    %cst_222 = arith.constant dense<0.000000e+00> : vector<5x5xf32>
    %449 = tpu.matmul %446, %447, %cst_222 {dimension_numbers = #tpu.dot_dimension_numbers<[1], [1], [0], [0], [0, 0, 1, 0], [], []>} : vector<5x8xf32>, vector<5x8xf32>, vector<5x5xf32> -> vector<5x5xf32>
    %cst_223 = arith.constant 0.353553385 : f32
    %450 = vector.broadcast %cst_223 : f32 to vector<5x5xf32>
    %451 = arith.mulf %449, %450 : vector<5x5xf32>
    %cst_224 = arith.constant dense<0xFF800000> : vector<5xf32>
    %452 = vector.multi_reduction <maximumf>, %451, %cst_224 [1] : vector<5x5xf32> to vector<5xf32>
    %453 = vector.shape_cast %452 : vector<5xf32> to vector<5x1xf32>
    %454 = vector.broadcast %453 : vector<5x1xf32> to vector<5x5xf32>
    %455 = arith.subf %451, %454 : vector<5x5xf32>
    %456 = math.exp %455 : vector<5x5xf32>
    %cst_225 = arith.constant dense<0.000000e+00> : vector<5xf32>
    %457 = vector.multi_reduction <add>, %456, %cst_225 [1] : vector<5x5xf32> to vector<5xf32>
    %458 = vector.shape_cast %457 : vector<5xf32> to vector<5x1xf32>
    %459 = vector.broadcast %458 : vector<5x1xf32> to vector<5x5xf32>
    %460 = arith.divf %456, %459 : vector<5x5xf32>
    %cst_226 = arith.constant dense<0.000000e+00> : vector<5x8xf32>
    %461 = tpu.matmul %460, %448, %cst_226 {dimension_numbers = #tpu.dot_dimension_numbers<[1], [0], [0], [1], [0, 0, 1, 1], [], []>} : vector<5x5xf32>, vector<5x8xf32>, vector<5x8xf32> -> vector<5x8xf32>
    %c5_227 = arith.constant 5 : index
    %c24_228 = arith.constant 24 : index
    %462 = vector.load %arg20[%c5_227, %c24_228] : memref<10x32xf32, #tpu.memory_space<vmem>>, vector<5x8xf32>
    tpu.vector_store %arg20[%c5_227, %c24_228], %461 {strides = array<i32>} : memref<10x32xf32, #tpu.memory_space<vmem>>, vector<5x8xf32>,
    %c0_229 = arith.constant 0 : index
    %c0_230 = arith.constant 0 : index
    %463 = vector.load %arg20[%c0_229, %c0_230] : memref<10x32xf32, #tpu.memory_space<vmem>>, vector<10x32xf32>
    %cst_231 = arith.constant dense<0.000000e+00> : vector<10x32xf32>
    %464 = tpu.matmul %463, %284, %cst_231 {dimension_numbers = #tpu.dot_dimension_numbers<[1], [0], [0], [1], [0, 0, 1, 1], [], []>} : vector<10x32xf32>, vector<32x32xf32>, vector<10x32xf32> -> vector<10x32xf32>
    %465 = arith.addf %274, %464 : vector<10x32xf32>
    %466 = vector.broadcast %286 : vector<1x32xf32> to vector<10x32xf32>
    %467 = arith.addf %465, %466 : vector<10x32xf32>
    %cst_232 = arith.constant dense<0.000000e+00> : vector<10xf32>
    %468 = vector.multi_reduction <add>, %467, %cst_232 [1] : vector<10x32xf32> to vector<10xf32>
    %469 = vector.shape_cast %468 : vector<10xf32> to vector<10x1xf32>
    %cst_233 = arith.constant 3.200000e+01 : f32
    %470 = vector.broadcast %cst_233 : f32 to vector<10x1xf32>
    %471 = arith.divf %469, %470 : vector<10x1xf32>
    %472 = vector.broadcast %471 : vector<10x1xf32> to vector<10x32xf32>
    %473 = arith.subf %467, %472 : vector<10x32xf32>
    %474 = arith.mulf %473, %473 : vector<10x32xf32>
    %cst_234 = arith.constant dense<0.000000e+00> : vector<10xf32>
    %475 = vector.multi_reduction <add>, %474, %cst_234 [1] : vector<10x32xf32> to vector<10xf32>
    %476 = vector.shape_cast %475 : vector<10xf32> to vector<10x1xf32>
    %cst_235 = arith.constant 3.200000e+01 : f32
    %477 = vector.broadcast %cst_235 : f32 to vector<10x1xf32>
    %478 = arith.divf %476, %477 : vector<10x1xf32>
    %479 = vector.broadcast %471 : vector<10x1xf32> to vector<10x32xf32>
    %480 = arith.subf %467, %479 : vector<10x32xf32>
    %cst_236 = arith.constant 9.99999974E-6 : f32
    %481 = vector.broadcast %cst_236 : f32 to vector<10x1xf32>
    %482 = arith.addf %478, %481 : vector<10x1xf32>
    %483 = math.rsqrt %482 : vector<10x1xf32>
    %484 = vector.broadcast %483 : vector<10x1xf32> to vector<10x32xf32>
    %485 = arith.mulf %480, %484 : vector<10x32xf32>
    %486 = vector.broadcast %288 : vector<1x32xf32> to vector<10x32xf32>
    %487 = arith.mulf %485, %486 : vector<10x32xf32>
    %488 = vector.broadcast %290 : vector<1x32xf32> to vector<10x32xf32>
    %489 = arith.addf %487, %488 : vector<10x32xf32>
    %cst_237 = arith.constant dense<0.000000e+00> : vector<10x64xf32>
    %490 = tpu.matmul %489, %292, %cst_237 {dimension_numbers = #tpu.dot_dimension_numbers<[1], [0], [0], [1], [0, 0, 1, 1], [], []>} : vector<10x32xf32>, vector<32x64xf32>, vector<10x64xf32> -> vector<10x64xf32>
    %491 = vector.broadcast %294 : vector<1x64xf32> to vector<10x64xf32>
    %492 = arith.addf %490, %491 : vector<10x64xf32>
    %cst_238 = arith.constant 1.702000e+00 : f32
    %493 = vector.broadcast %cst_238 : f32 to vector<10x64xf32>
    %494 = arith.mulf %493, %492 : vector<10x64xf32>
    %495 = arith.negf %494 : vector<10x64xf32>
    %496 = math.exp %495 : vector<10x64xf32>
    %cst_239 = arith.constant 1.000000e+00 : f32
    %497 = vector.broadcast %cst_239 : f32 to vector<10x64xf32>
    %498 = arith.addf %497, %496 : vector<10x64xf32>
    %499 = arith.divf %497, %498 : vector<10x64xf32>
    %500 = arith.mulf %492, %499 : vector<10x64xf32>
    %cst_240 = arith.constant dense<0.000000e+00> : vector<10x32xf32>
    %501 = tpu.matmul %500, %296, %cst_240 {dimension_numbers = #tpu.dot_dimension_numbers<[1], [0], [0], [1], [0, 0, 1, 1], [], []>} : vector<10x64xf32>, vector<64x32xf32>, vector<10x32xf32> -> vector<10x32xf32>
    %502 = vector.broadcast %298 : vector<1x32xf32> to vector<10x32xf32>
    %503 = arith.addf %501, %502 : vector<10x32xf32>
    %504 = arith.addf %467, %503 : vector<10x32xf32>
    %c0_241 = arith.constant 0 : index
    %c0_242 = arith.constant 0 : index
    %c0_243 = arith.constant 0 : index
    %505 = vector.load %arg19[%c0_241, %c0_242, %c0_243] : memref<1x10x32xf32, #tpu.memory_space<vmem>>, vector<1x10x32xf32>
    %506 = vector.shape_cast %505 : vector<1x10x32xf32> to vector<10x32xf32>
    %507 = vector.shape_cast %504 : vector<10x32xf32> to vector<1x10x32xf32>
    tpu.vector_store %arg19[%c0_241, %c0_242, %c0_243], %507 {strides = array<i32>} : memref<1x10x32xf32, #tpu.memory_space<vmem>>, vector<1x10x32xf32>,
    return
  }
  func.func @transform_0(%arg0: i32) -> (i32, i32, i32) {
    %c0_i32 = arith.constant 0 : i32
    %c0_i32_0 = arith.constant 0 : i32
    %c0_i32_1 = arith.constant 0 : i32
    return %arg0, %c0_i32, %c0_i32_0 : i32, i32, i32
  }
  func.func @transform_1(%arg0: i32) -> (i32, i32) {
    %c0_i32 = arith.constant 0 : i32
    %c0_i32_0 = arith.constant 0 : i32
    %c0_i32_1 = arith.constant 0 : i32
    return %c0_i32, %c0_i32_0 : i32, i32
  }
  func.func @transform_2(%arg0: i32) -> (i32, i32) {
    %c0_i32 = arith.constant 0 : i32
    %c0_i32_0 = arith.constant 0 : i32
    %c0_i32_1 = arith.constant 0 : i32
    return %c0_i32, %c0_i32_0 : i32, i32
  }
  func.func @transform_3(%arg0: i32) -> (i32, i32) {
    %c0_i32 = arith.constant 0 : i32
    %c0_i32_0 = arith.constant 0 : i32
    %c0_i32_1 = arith.constant 0 : i32
    return %c0_i32, %c0_i32_0 : i32, i32
  }
  func.func @transform_4(%arg0: i32) -> (i32, i32) {
    %c0_i32 = arith.constant 0 : i32
    %c0_i32_0 = arith.constant 0 : i32
    %c0_i32_1 = arith.constant 0 : i32
    return %c0_i32, %c0_i32_0 : i32, i32
  }
  func.func @transform_5(%arg0: i32) -> (i32, i32) {
    %c0_i32 = arith.constant 0 : i32
    %c0_i32_0 = arith.constant 0 : i32
    %c0_i32_1 = arith.constant 0 : i32
    return %c0_i32, %c0_i32_0 : i32, i32
  }
  func.func @transform_6(%arg0: i32) -> (i32, i32, i32) {
    %c0_i32 = arith.constant 0 : i32
    %c0_i32_0 = arith.constant 0 : i32
    %c0_i32_1 = arith.constant 0 : i32
    %c0_i32_2 = arith.constant 0 : i32
    return %c0_i32, %c0_i32_0, %c0_i32_1 : i32, i32, i32
  }
  func.func @transform_7(%arg0: i32) -> (i32, i32, i32) {
    %c0_i32 = arith.constant 0 : i32
    %c0_i32_0 = arith.constant 0 : i32
    %c0_i32_1 = arith.constant 0 : i32
    %c0_i32_2 = arith.constant 0 : i32
    return %c0_i32, %c0_i32_0, %c0_i32_1 : i32, i32, i32
  }
  func.func @transform_8(%arg0: i32) -> (i32, i32, i32) {
    %c0_i32 = arith.constant 0 : i32
    %c0_i32_0 = arith.constant 0 : i32
    %c0_i32_1 = arith.constant 0 : i32
    %c0_i32_2 = arith.constant 0 : i32
    return %c0_i32, %c0_i32_0, %c0_i32_1 : i32, i32, i32
  }
  func.func @transform_9(%arg0: i32) -> (i32, i32, i32) {
    %c0_i32 = arith.constant 0 : i32
    %c0_i32_0 = arith.constant 0 : i32
    %c0_i32_1 = arith.constant 0 : i32
    %c0_i32_2 = arith.constant 0 : i32
    return %c0_i32, %c0_i32_0, %c0_i32_1 : i32, i32, i32
  }
  func.func @transform_10(%arg0: i32) -> (i32, i32, i32) {
    %c0_i32 = arith.constant 0 : i32
    %c0_i32_0 = arith.constant 0 : i32
    %c0_i32_1 = arith.constant 0 : i32
    %c0_i32_2 = arith.constant 0 : i32
    return %c0_i32, %c0_i32_0, %c0_i32_1 : i32, i32, i32
  }
  func.func @transform_11(%arg0: i32) -> (i32, i32, i32) {
    %c0_i32 = arith.constant 0 : i32
    %c0_i32_0 = arith.constant 0 : i32
    %c0_i32_1 = arith.constant 0 : i32
    %c0_i32_2 = arith.constant 0 : i32
    return %c0_i32, %c0_i32_0, %c0_i32_1 : i32, i32, i32
  }
  func.func @transform_12(%arg0: i32) -> (i32, i32, i32) {
    %c0_i32 = arith.constant 0 : i32
    %c0_i32_0 = arith.constant 0 : i32
    %c0_i32_1 = arith.constant 0 : i32
    %c0_i32_2 = arith.constant 0 : i32
    return %c0_i32, %c0_i32_0, %c0_i32_1 : i32, i32, i32
  }
  func.func @transform_13(%arg0: i32) -> (i32, i32, i32) {
    %c0_i32 = arith.constant 0 : i32
    %c0_i32_0 = arith.constant 0 : i32
    %c0_i32_1 = arith.constant 0 : i32
    %c0_i32_2 = arith.constant 0 : i32
    return %c0_i32, %c0_i32_0, %c0_i32_1 : i32, i32, i32
  }
  func.func @transform_14(%arg0: i32) -> (i32, i32, i32) {
    %c0_i32 = arith.constant 0 : i32
    %c0_i32_0 = arith.constant 0 : i32
    %c0_i32_1 = arith.constant 0 : i32
    %c0_i32_2 = arith.constant 0 : i32
    return %c0_i32, %c0_i32_0, %c0_i32_1 : i32, i32, i32
  }
  func.func @transform_15(%arg0: i32) -> (i32, i32, i32) {
    %c0_i32 = arith.constant 0 : i32
    %c0_i32_0 = arith.constant 0 : i32
    %c0_i32_1 = arith.constant 0 : i32
    %c0_i32_2 = arith.constant 0 : i32
    return %c0_i32, %c0_i32_0, %c0_i32_1 : i32, i32, i32
  }
  func.func @transform_16(%arg0: i32) -> (i32, i32, i32) {
    %c0_i32 = arith.constant 0 : i32
    %c0_i32_0 = arith.constant 0 : i32
    %c0_i32_1 = arith.constant 0 : i32
    %c0_i32_2 = arith.constant 0 : i32
    return %c0_i32, %c0_i32_0, %c0_i32_1 : i32, i32, i32
  }
  func.func @transform_17(%arg0: i32) -> (i32, i32, i32) {
    %c0_i32 = arith.constant 0 : i32
    %c0_i32_0 = arith.constant 0 : i32
    %c0_i32_1 = arith.constant 0 : i32
    %c0_i32_2 = arith.constant 0 : i32
    return %c0_i32, %c0_i32_0, %c0_i32_1 : i32, i32, i32
  }
  func.func @transform_18(%arg0: i32) -> (i32, i32, i32) {
    %c0_i32 = arith.constant 0 : i32
    %c0_i32_0 = arith.constant 0 : i32
    %c0_i32_1 = arith.constant 0 : i32
    return %arg0, %c0_i32, %c0_i32_0 : i32, i32, i32
  }
}

module attributes {stable_mosaic.version = 11 : i64} {
  func.func @_text_tower_kernel(%arg0: i32, %arg1: memref<32x32xf32, #tpu.memory_space<vmem>>, %arg2: memref<4x8x8xf32, #tpu.memory_space<vmem>>, %arg3: memref<1x1x32xf32, #tpu.memory_space<vmem>>, %arg4: memref<1x1x32xf32, #tpu.memory_space<vmem>>, %arg5: memref<1x32x96xf32, #tpu.memory_space<vmem>>, %arg6: memref<1x1x96xf32, #tpu.memory_space<vmem>>, %arg7: memref<1x32x32xf32, #tpu.memory_space<vmem>>, %arg8: memref<1x1x32xf32, #tpu.memory_space<vmem>>, %arg9: memref<1x1x32xf32, #tpu.memory_space<vmem>>, %arg10: memref<1x1x32xf32, #tpu.memory_space<vmem>>, %arg11: memref<1x32x64xf32, #tpu.memory_space<vmem>>, %arg12: memref<1x1x64xf32, #tpu.memory_space<vmem>>, %arg13: memref<1x64x32xf32, #tpu.memory_space<vmem>>, %arg14: memref<1x1x32xf32, #tpu.memory_space<vmem>>, %arg15: memref<1x32xf32, #tpu.memory_space<vmem>>, %arg16: memref<1x32xf32, #tpu.memory_space<vmem>>, %arg17: memref<32x32xf32, #tpu.memory_space<vmem>>, %arg18: memref<32x32xf32, #tpu.memory_space<vmem>>) attributes {dimension_semantics = [#tpu.dimension_semantics<arbitrary>], iteration_bounds = array<i64: 1>, scalar_prefetch = 0 : i64, scratch_operands = 1 : i64, tpu.core_type = #tpu.core_type<tc>, window_params = [{pipeline_mode = #tpu.pipeline_mode<synchronous>, transform_indices = @transform_0, window_bounds = array<i64: 32, 32>}, {pipeline_mode = #tpu.pipeline_mode<synchronous>, transform_indices = @transform_1, window_bounds = array<i64: 4, 8, 8>}, {pipeline_mode = #tpu.pipeline_mode<synchronous>, transform_indices = @transform_2, window_bounds = array<i64: 1, 1, 32>}, {pipeline_mode = #tpu.pipeline_mode<synchronous>, transform_indices = @transform_3, window_bounds = array<i64: 1, 1, 32>}, {pipeline_mode = #tpu.pipeline_mode<synchronous>, transform_indices = @transform_4, window_bounds = array<i64: 1, 32, 96>}, {pipeline_mode = #tpu.pipeline_mode<synchronous>, transform_indices = @transform_5, window_bounds = array<i64: 1, 1, 96>}, {pipeline_mode = #tpu.pipeline_mode<synchronous>, transform_indices = @transform_6, window_bounds = array<i64: 1, 32, 32>}, {pipeline_mode = #tpu.pipeline_mode<synchronous>, transform_indices = @transform_7, window_bounds = array<i64: 1, 1, 32>}, {pipeline_mode = #tpu.pipeline_mode<synchronous>, transform_indices = @transform_8, window_bounds = array<i64: 1, 1, 32>}, {pipeline_mode = #tpu.pipeline_mode<synchronous>, transform_indices = @transform_9, window_bounds = array<i64: 1, 1, 32>}, {pipeline_mode = #tpu.pipeline_mode<synchronous>, transform_indices = @transform_10, window_bounds = array<i64: 1, 32, 64>}, {pipeline_mode = #tpu.pipeline_mode<synchronous>, transform_indices = @transform_11, window_bounds = array<i64: 1, 1, 64>}, {pipeline_mode = #tpu.pipeline_mode<synchronous>, transform_indices = @transform_12, window_bounds = array<i64: 1, 64, 32>}, {pipeline_mode = #tpu.pipeline_mode<synchronous>, transform_indices = @transform_13, window_bounds = array<i64: 1, 1, 32>}, {pipeline_mode = #tpu.pipeline_mode<synchronous>, transform_indices = @transform_14, window_bounds = array<i64: 1, 32>}, {pipeline_mode = #tpu.pipeline_mode<synchronous>, transform_indices = @transform_15, window_bounds = array<i64: 1, 32>}, {pipeline_mode = #tpu.pipeline_mode<synchronous>, transform_indices = @transform_16, window_bounds = array<i64: 32, 32>}]} {
    %c0 = arith.constant 0 : index
    %c0_0 = arith.constant 0 : index
    %0 = vector.load %arg1[%c0, %c0_0] : memref<32x32xf32, #tpu.memory_space<vmem>>, vector<32x32xf32>
    %c0_1 = arith.constant 0 : index
    %c0_2 = arith.constant 0 : index
    %c0_3 = arith.constant 0 : index
    %1 = vector.load %arg2[%c0_1, %c0_2, %c0_3] : memref<4x8x8xf32, #tpu.memory_space<vmem>>, vector<4x8x8xf32>
    %c0_4 = arith.constant 0 : index
    %c0_5 = arith.constant 0 : index
    %c0_6 = arith.constant 0 : index
    %2 = vector.load %arg3[%c0_4, %c0_5, %c0_6] : memref<1x1x32xf32, #tpu.memory_space<vmem>>, vector<1x1x32xf32>
    %3 = vector.shape_cast %2 : vector<1x1x32xf32> to vector<1x32xf32>
    %c0_7 = arith.constant 0 : index
    %c0_8 = arith.constant 0 : index
    %c0_9 = arith.constant 0 : index
    %4 = vector.load %arg4[%c0_7, %c0_8, %c0_9] : memref<1x1x32xf32, #tpu.memory_space<vmem>>, vector<1x1x32xf32>
    %5 = vector.shape_cast %4 : vector<1x1x32xf32> to vector<1x32xf32>
    %c0_10 = arith.constant 0 : index
    %c0_11 = arith.constant 0 : index
    %c0_12 = arith.constant 0 : index
    %6 = vector.load %arg5[%c0_10, %c0_11, %c0_12] : memref<1x32x96xf32, #tpu.memory_space<vmem>>, vector<1x32x96xf32>
    %7 = vector.shape_cast %6 : vector<1x32x96xf32> to vector<32x96xf32>
    %c0_13 = arith.constant 0 : index
    %c0_14 = arith.constant 0 : index
    %c0_15 = arith.constant 0 : index
    %8 = vector.load %arg6[%c0_13, %c0_14, %c0_15] : memref<1x1x96xf32, #tpu.memory_space<vmem>>, vector<1x1x96xf32>
    %9 = vector.shape_cast %8 : vector<1x1x96xf32> to vector<1x96xf32>
    %c0_16 = arith.constant 0 : index
    %c0_17 = arith.constant 0 : index
    %c0_18 = arith.constant 0 : index
    %10 = vector.load %arg7[%c0_16, %c0_17, %c0_18] : memref<1x32x32xf32, #tpu.memory_space<vmem>>, vector<1x32x32xf32>
    %11 = vector.shape_cast %10 : vector<1x32x32xf32> to vector<32x32xf32>
    %c0_19 = arith.constant 0 : index
    %c0_20 = arith.constant 0 : index
    %c0_21 = arith.constant 0 : index
    %12 = vector.load %arg8[%c0_19, %c0_20, %c0_21] : memref<1x1x32xf32, #tpu.memory_space<vmem>>, vector<1x1x32xf32>
    %13 = vector.shape_cast %12 : vector<1x1x32xf32> to vector<1x32xf32>
    %c0_22 = arith.constant 0 : index
    %c0_23 = arith.constant 0 : index
    %c0_24 = arith.constant 0 : index
    %14 = vector.load %arg9[%c0_22, %c0_23, %c0_24] : memref<1x1x32xf32, #tpu.memory_space<vmem>>, vector<1x1x32xf32>
    %15 = vector.shape_cast %14 : vector<1x1x32xf32> to vector<1x32xf32>
    %c0_25 = arith.constant 0 : index
    %c0_26 = arith.constant 0 : index
    %c0_27 = arith.constant 0 : index
    %16 = vector.load %arg10[%c0_25, %c0_26, %c0_27] : memref<1x1x32xf32, #tpu.memory_space<vmem>>, vector<1x1x32xf32>
    %17 = vector.shape_cast %16 : vector<1x1x32xf32> to vector<1x32xf32>
    %c0_28 = arith.constant 0 : index
    %c0_29 = arith.constant 0 : index
    %c0_30 = arith.constant 0 : index
    %18 = vector.load %arg11[%c0_28, %c0_29, %c0_30] : memref<1x32x64xf32, #tpu.memory_space<vmem>>, vector<1x32x64xf32>
    %19 = vector.shape_cast %18 : vector<1x32x64xf32> to vector<32x64xf32>
    %c0_31 = arith.constant 0 : index
    %c0_32 = arith.constant 0 : index
    %c0_33 = arith.constant 0 : index
    %20 = vector.load %arg12[%c0_31, %c0_32, %c0_33] : memref<1x1x64xf32, #tpu.memory_space<vmem>>, vector<1x1x64xf32>
    %21 = vector.shape_cast %20 : vector<1x1x64xf32> to vector<1x64xf32>
    %c0_34 = arith.constant 0 : index
    %c0_35 = arith.constant 0 : index
    %c0_36 = arith.constant 0 : index
    %22 = vector.load %arg13[%c0_34, %c0_35, %c0_36] : memref<1x64x32xf32, #tpu.memory_space<vmem>>, vector<1x64x32xf32>
    %23 = vector.shape_cast %22 : vector<1x64x32xf32> to vector<64x32xf32>
    %c0_37 = arith.constant 0 : index
    %c0_38 = arith.constant 0 : index
    %c0_39 = arith.constant 0 : index
    %24 = vector.load %arg14[%c0_37, %c0_38, %c0_39] : memref<1x1x32xf32, #tpu.memory_space<vmem>>, vector<1x1x32xf32>
    %25 = vector.shape_cast %24 : vector<1x1x32xf32> to vector<1x32xf32>
    %cst = arith.constant dense<0.000000e+00> : vector<32xf32>
    %26 = vector.multi_reduction <add>, %0, %cst [1] : vector<32x32xf32> to vector<32xf32>
    %27 = vector.shape_cast %26 : vector<32xf32> to vector<32x1xf32>
    %cst_40 = arith.constant 3.200000e+01 : f32
    %28 = vector.broadcast %cst_40 : f32 to vector<32x1xf32>
    %29 = arith.divf %27, %28 : vector<32x1xf32>
    %30 = vector.broadcast %29 : vector<32x1xf32> to vector<32x32xf32>
    %31 = arith.subf %0, %30 : vector<32x32xf32>
    %32 = arith.mulf %31, %31 : vector<32x32xf32>
    %cst_41 = arith.constant dense<0.000000e+00> : vector<32xf32>
    %33 = vector.multi_reduction <add>, %32, %cst_41 [1] : vector<32x32xf32> to vector<32xf32>
    %34 = vector.shape_cast %33 : vector<32xf32> to vector<32x1xf32>
    %cst_42 = arith.constant 3.200000e+01 : f32
    %35 = vector.broadcast %cst_42 : f32 to vector<32x1xf32>
    %36 = arith.divf %34, %35 : vector<32x1xf32>
    %37 = vector.broadcast %29 : vector<32x1xf32> to vector<32x32xf32>
    %38 = arith.subf %0, %37 : vector<32x32xf32>
    %cst_43 = arith.constant 9.99999974E-6 : f32
    %39 = vector.broadcast %cst_43 : f32 to vector<32x1xf32>
    %40 = arith.addf %36, %39 : vector<32x1xf32>
    %41 = math.rsqrt %40 : vector<32x1xf32>
    %42 = vector.broadcast %41 : vector<32x1xf32> to vector<32x32xf32>
    %43 = arith.mulf %38, %42 : vector<32x32xf32>
    %44 = vector.broadcast %3 : vector<1x32xf32> to vector<32x32xf32>
    %45 = arith.mulf %43, %44 : vector<32x32xf32>
    %46 = vector.broadcast %5 : vector<1x32xf32> to vector<32x32xf32>
    %47 = arith.addf %45, %46 : vector<32x32xf32>
    %cst_44 = arith.constant dense<0.000000e+00> : vector<32x96xf32>
    %48 = tpu.matmul %47, %7, %cst_44 {dimension_numbers = #tpu.dot_dimension_numbers<[1], [0], [0], [1], [0, 0, 1, 1], [], []>} : vector<32x32xf32>, vector<32x96xf32>, vector<32x96xf32> -> vector<32x96xf32>
    %49 = vector.broadcast %9 : vector<1x96xf32> to vector<32x96xf32>
    %50 = arith.addf %48, %49 : vector<32x96xf32>
    %51 = vector.extract_strided_slice %50 {offsets = [0, 0], sizes = [32, 32], strides = [1, 1]} : vector<32x96xf32> to vector<32x32xf32>
    %52 = vector.extract_strided_slice %50 {offsets = [0, 32], sizes = [32, 32], strides = [1, 1]} : vector<32x96xf32> to vector<32x32xf32>
    %53 = vector.extract_strided_slice %50 {offsets = [0, 64], sizes = [32, 32], strides = [1, 1]} : vector<32x96xf32> to vector<32x32xf32>
    %54 = vector.extract_strided_slice %51 {offsets = [0, 0], sizes = [8, 8], strides = [1, 1]} : vector<32x32xf32> to vector<8x8xf32>
    %55 = vector.extract_strided_slice %52 {offsets = [0, 0], sizes = [8, 8], strides = [1, 1]} : vector<32x32xf32> to vector<8x8xf32>
    %56 = vector.extract_strided_slice %53 {offsets = [0, 0], sizes = [8, 8], strides = [1, 1]} : vector<32x32xf32> to vector<8x8xf32>
    %cst_45 = arith.constant dense<0.000000e+00> : vector<8x8xf32>
    %57 = tpu.matmul %54, %55, %cst_45 {dimension_numbers = #tpu.dot_dimension_numbers<[1], [1], [0], [0], [0, 0, 1, 0], [], []>} : vector<8x8xf32>, vector<8x8xf32>, vector<8x8xf32> -> vector<8x8xf32>
    %cst_46 = arith.constant 0.353553385 : f32
    %58 = vector.broadcast %cst_46 : f32 to vector<8x8xf32>
    %59 = arith.mulf %57, %58 : vector<8x8xf32>
    %60 = vector.extract_strided_slice %1 {offsets = [0, 0, 0], sizes = [1, 8, 8], strides = [1, 1, 1]} : vector<4x8x8xf32> to vector<1x8x8xf32>
    %61 = vector.shape_cast %60 : vector<1x8x8xf32> to vector<8x8xf32>
    %62 = arith.addf %59, %61 : vector<8x8xf32>
    %cst_47 = arith.constant dense<0xFF800000> : vector<8xf32>
    %63 = vector.multi_reduction <maximumf>, %62, %cst_47 [1] : vector<8x8xf32> to vector<8xf32>
    %64 = vector.shape_cast %63 : vector<8xf32> to vector<8x1xf32>
    %65 = vector.broadcast %64 : vector<8x1xf32> to vector<8x8xf32>
    %66 = arith.subf %62, %65 : vector<8x8xf32>
    %67 = math.exp %66 : vector<8x8xf32>
    %cst_48 = arith.constant dense<0.000000e+00> : vector<8xf32>
    %68 = vector.multi_reduction <add>, %67, %cst_48 [1] : vector<8x8xf32> to vector<8xf32>
    %69 = vector.shape_cast %68 : vector<8xf32> to vector<8x1xf32>
    %70 = vector.broadcast %69 : vector<8x1xf32> to vector<8x8xf32>
    %71 = arith.divf %67, %70 : vector<8x8xf32>
    %cst_49 = arith.constant dense<0.000000e+00> : vector<8x8xf32>
    %72 = tpu.matmul %71, %56, %cst_49 {dimension_numbers = #tpu.dot_dimension_numbers<[1], [0], [0], [1], [0, 0, 1, 1], [], []>} : vector<8x8xf32>, vector<8x8xf32>, vector<8x8xf32> -> vector<8x8xf32>
    %c0_50 = arith.constant 0 : index
    %c0_51 = arith.constant 0 : index
    %73 = vector.load %arg18[%c0_50, %c0_51] : memref<32x32xf32, #tpu.memory_space<vmem>>, vector<8x8xf32>
    tpu.vector_store %arg18[%c0_50, %c0_51], %72 {strides = array<i32>} : memref<32x32xf32, #tpu.memory_space<vmem>>, vector<8x8xf32>,
    %74 = vector.extract_strided_slice %51 {offsets = [0, 8], sizes = [8, 8], strides = [1, 1]} : vector<32x32xf32> to vector<8x8xf32>
    %75 = vector.extract_strided_slice %52 {offsets = [0, 8], sizes = [8, 8], strides = [1, 1]} : vector<32x32xf32> to vector<8x8xf32>
    %76 = vector.extract_strided_slice %53 {offsets = [0, 8], sizes = [8, 8], strides = [1, 1]} : vector<32x32xf32> to vector<8x8xf32>
    %cst_52 = arith.constant dense<0.000000e+00> : vector<8x8xf32>
    %77 = tpu.matmul %74, %75, %cst_52 {dimension_numbers = #tpu.dot_dimension_numbers<[1], [1], [0], [0], [0, 0, 1, 0], [], []>} : vector<8x8xf32>, vector<8x8xf32>, vector<8x8xf32> -> vector<8x8xf32>
    %cst_53 = arith.constant 0.353553385 : f32
    %78 = vector.broadcast %cst_53 : f32 to vector<8x8xf32>
    %79 = arith.mulf %77, %78 : vector<8x8xf32>
    %80 = vector.extract_strided_slice %1 {offsets = [0, 0, 0], sizes = [1, 8, 8], strides = [1, 1, 1]} : vector<4x8x8xf32> to vector<1x8x8xf32>
    %81 = vector.shape_cast %80 : vector<1x8x8xf32> to vector<8x8xf32>
    %82 = arith.addf %79, %81 : vector<8x8xf32>
    %cst_54 = arith.constant dense<0xFF800000> : vector<8xf32>
    %83 = vector.multi_reduction <maximumf>, %82, %cst_54 [1] : vector<8x8xf32> to vector<8xf32>
    %84 = vector.shape_cast %83 : vector<8xf32> to vector<8x1xf32>
    %85 = vector.broadcast %84 : vector<8x1xf32> to vector<8x8xf32>
    %86 = arith.subf %82, %85 : vector<8x8xf32>
    %87 = math.exp %86 : vector<8x8xf32>
    %cst_55 = arith.constant dense<0.000000e+00> : vector<8xf32>
    %88 = vector.multi_reduction <add>, %87, %cst_55 [1] : vector<8x8xf32> to vector<8xf32>
    %89 = vector.shape_cast %88 : vector<8xf32> to vector<8x1xf32>
    %90 = vector.broadcast %89 : vector<8x1xf32> to vector<8x8xf32>
    %91 = arith.divf %87, %90 : vector<8x8xf32>
    %cst_56 = arith.constant dense<0.000000e+00> : vector<8x8xf32>
    %92 = tpu.matmul %91, %76, %cst_56 {dimension_numbers = #tpu.dot_dimension_numbers<[1], [0], [0], [1], [0, 0, 1, 1], [], []>} : vector<8x8xf32>, vector<8x8xf32>, vector<8x8xf32> -> vector<8x8xf32>
    %c0_57 = arith.constant 0 : index
    %c8 = arith.constant 8 : index
    %93 = vector.load %arg18[%c0_57, %c8] : memref<32x32xf32, #tpu.memory_space<vmem>>, vector<8x8xf32>
    tpu.vector_store %arg18[%c0_57, %c8], %92 {strides = array<i32>} : memref<32x32xf32, #tpu.memory_space<vmem>>, vector<8x8xf32>,
    %94 = vector.extract_strided_slice %51 {offsets = [0, 16], sizes = [8, 8], strides = [1, 1]} : vector<32x32xf32> to vector<8x8xf32>
    %95 = vector.extract_strided_slice %52 {offsets = [0, 16], sizes = [8, 8], strides = [1, 1]} : vector<32x32xf32> to vector<8x8xf32>
    %96 = vector.extract_strided_slice %53 {offsets = [0, 16], sizes = [8, 8], strides = [1, 1]} : vector<32x32xf32> to vector<8x8xf32>
    %cst_58 = arith.constant dense<0.000000e+00> : vector<8x8xf32>
    %97 = tpu.matmul %94, %95, %cst_58 {dimension_numbers = #tpu.dot_dimension_numbers<[1], [1], [0], [0], [0, 0, 1, 0], [], []>} : vector<8x8xf32>, vector<8x8xf32>, vector<8x8xf32> -> vector<8x8xf32>
    %cst_59 = arith.constant 0.353553385 : f32
    %98 = vector.broadcast %cst_59 : f32 to vector<8x8xf32>
    %99 = arith.mulf %97, %98 : vector<8x8xf32>
    %100 = vector.extract_strided_slice %1 {offsets = [0, 0, 0], sizes = [1, 8, 8], strides = [1, 1, 1]} : vector<4x8x8xf32> to vector<1x8x8xf32>
    %101 = vector.shape_cast %100 : vector<1x8x8xf32> to vector<8x8xf32>
    %102 = arith.addf %99, %101 : vector<8x8xf32>
    %cst_60 = arith.constant dense<0xFF800000> : vector<8xf32>
    %103 = vector.multi_reduction <maximumf>, %102, %cst_60 [1] : vector<8x8xf32> to vector<8xf32>
    %104 = vector.shape_cast %103 : vector<8xf32> to vector<8x1xf32>
    %105 = vector.broadcast %104 : vector<8x1xf32> to vector<8x8xf32>
    %106 = arith.subf %102, %105 : vector<8x8xf32>
    %107 = math.exp %106 : vector<8x8xf32>
    %cst_61 = arith.constant dense<0.000000e+00> : vector<8xf32>
    %108 = vector.multi_reduction <add>, %107, %cst_61 [1] : vector<8x8xf32> to vector<8xf32>
    %109 = vector.shape_cast %108 : vector<8xf32> to vector<8x1xf32>
    %110 = vector.broadcast %109 : vector<8x1xf32> to vector<8x8xf32>
    %111 = arith.divf %107, %110 : vector<8x8xf32>
    %cst_62 = arith.constant dense<0.000000e+00> : vector<8x8xf32>
    %112 = tpu.matmul %111, %96, %cst_62 {dimension_numbers = #tpu.dot_dimension_numbers<[1], [0], [0], [1], [0, 0, 1, 1], [], []>} : vector<8x8xf32>, vector<8x8xf32>, vector<8x8xf32> -> vector<8x8xf32>
    %c0_63 = arith.constant 0 : index
    %c16 = arith.constant 16 : index
    %113 = vector.load %arg18[%c0_63, %c16] : memref<32x32xf32, #tpu.memory_space<vmem>>, vector<8x8xf32>
    tpu.vector_store %arg18[%c0_63, %c16], %112 {strides = array<i32>} : memref<32x32xf32, #tpu.memory_space<vmem>>, vector<8x8xf32>,
    %114 = vector.extract_strided_slice %51 {offsets = [0, 24], sizes = [8, 8], strides = [1, 1]} : vector<32x32xf32> to vector<8x8xf32>
    %115 = vector.extract_strided_slice %52 {offsets = [0, 24], sizes = [8, 8], strides = [1, 1]} : vector<32x32xf32> to vector<8x8xf32>
    %116 = vector.extract_strided_slice %53 {offsets = [0, 24], sizes = [8, 8], strides = [1, 1]} : vector<32x32xf32> to vector<8x8xf32>
    %cst_64 = arith.constant dense<0.000000e+00> : vector<8x8xf32>
    %117 = tpu.matmul %114, %115, %cst_64 {dimension_numbers = #tpu.dot_dimension_numbers<[1], [1], [0], [0], [0, 0, 1, 0], [], []>} : vector<8x8xf32>, vector<8x8xf32>, vector<8x8xf32> -> vector<8x8xf32>
    %cst_65 = arith.constant 0.353553385 : f32
    %118 = vector.broadcast %cst_65 : f32 to vector<8x8xf32>
    %119 = arith.mulf %117, %118 : vector<8x8xf32>
    %120 = vector.extract_strided_slice %1 {offsets = [0, 0, 0], sizes = [1, 8, 8], strides = [1, 1, 1]} : vector<4x8x8xf32> to vector<1x8x8xf32>
    %121 = vector.shape_cast %120 : vector<1x8x8xf32> to vector<8x8xf32>
    %122 = arith.addf %119, %121 : vector<8x8xf32>
    %cst_66 = arith.constant dense<0xFF800000> : vector<8xf32>
    %123 = vector.multi_reduction <maximumf>, %122, %cst_66 [1] : vector<8x8xf32> to vector<8xf32>
    %124 = vector.shape_cast %123 : vector<8xf32> to vector<8x1xf32>
    %125 = vector.broadcast %124 : vector<8x1xf32> to vector<8x8xf32>
    %126 = arith.subf %122, %125 : vector<8x8xf32>
    %127 = math.exp %126 : vector<8x8xf32>
    %cst_67 = arith.constant dense<0.000000e+00> : vector<8xf32>
    %128 = vector.multi_reduction <add>, %127, %cst_67 [1] : vector<8x8xf32> to vector<8xf32>
    %129 = vector.shape_cast %128 : vector<8xf32> to vector<8x1xf32>
    %130 = vector.broadcast %129 : vector<8x1xf32> to vector<8x8xf32>
    %131 = arith.divf %127, %130 : vector<8x8xf32>
    %cst_68 = arith.constant dense<0.000000e+00> : vector<8x8xf32>
    %132 = tpu.matmul %131, %116, %cst_68 {dimension_numbers = #tpu.dot_dimension_numbers<[1], [0], [0], [1], [0, 0, 1, 1], [], []>} : vector<8x8xf32>, vector<8x8xf32>, vector<8x8xf32> -> vector<8x8xf32>
    %c0_69 = arith.constant 0 : index
    %c24 = arith.constant 24 : index
    %133 = vector.load %arg18[%c0_69, %c24] : memref<32x32xf32, #tpu.memory_space<vmem>>, vector<8x8xf32>
    tpu.vector_store %arg18[%c0_69, %c24], %132 {strides = array<i32>} : memref<32x32xf32, #tpu.memory_space<vmem>>, vector<8x8xf32>,
    %134 = vector.extract_strided_slice %51 {offsets = [8, 0], sizes = [8, 8], strides = [1, 1]} : vector<32x32xf32> to vector<8x8xf32>
    %135 = vector.extract_strided_slice %52 {offsets = [8, 0], sizes = [8, 8], strides = [1, 1]} : vector<32x32xf32> to vector<8x8xf32>
    %136 = vector.extract_strided_slice %53 {offsets = [8, 0], sizes = [8, 8], strides = [1, 1]} : vector<32x32xf32> to vector<8x8xf32>
    %cst_70 = arith.constant dense<0.000000e+00> : vector<8x8xf32>
    %137 = tpu.matmul %134, %135, %cst_70 {dimension_numbers = #tpu.dot_dimension_numbers<[1], [1], [0], [0], [0, 0, 1, 0], [], []>} : vector<8x8xf32>, vector<8x8xf32>, vector<8x8xf32> -> vector<8x8xf32>
    %cst_71 = arith.constant 0.353553385 : f32
    %138 = vector.broadcast %cst_71 : f32 to vector<8x8xf32>
    %139 = arith.mulf %137, %138 : vector<8x8xf32>
    %140 = vector.extract_strided_slice %1 {offsets = [1, 0, 0], sizes = [1, 8, 8], strides = [1, 1, 1]} : vector<4x8x8xf32> to vector<1x8x8xf32>
    %141 = vector.shape_cast %140 : vector<1x8x8xf32> to vector<8x8xf32>
    %142 = arith.addf %139, %141 : vector<8x8xf32>
    %cst_72 = arith.constant dense<0xFF800000> : vector<8xf32>
    %143 = vector.multi_reduction <maximumf>, %142, %cst_72 [1] : vector<8x8xf32> to vector<8xf32>
    %144 = vector.shape_cast %143 : vector<8xf32> to vector<8x1xf32>
    %145 = vector.broadcast %144 : vector<8x1xf32> to vector<8x8xf32>
    %146 = arith.subf %142, %145 : vector<8x8xf32>
    %147 = math.exp %146 : vector<8x8xf32>
    %cst_73 = arith.constant dense<0.000000e+00> : vector<8xf32>
    %148 = vector.multi_reduction <add>, %147, %cst_73 [1] : vector<8x8xf32> to vector<8xf32>
    %149 = vector.shape_cast %148 : vector<8xf32> to vector<8x1xf32>
    %150 = vector.broadcast %149 : vector<8x1xf32> to vector<8x8xf32>
    %151 = arith.divf %147, %150 : vector<8x8xf32>
    %cst_74 = arith.constant dense<0.000000e+00> : vector<8x8xf32>
    %152 = tpu.matmul %151, %136, %cst_74 {dimension_numbers = #tpu.dot_dimension_numbers<[1], [0], [0], [1], [0, 0, 1, 1], [], []>} : vector<8x8xf32>, vector<8x8xf32>, vector<8x8xf32> -> vector<8x8xf32>
    %c8_75 = arith.constant 8 : index
    %c0_76 = arith.constant 0 : index
    %153 = vector.load %arg18[%c8_75, %c0_76] : memref<32x32xf32, #tpu.memory_space<vmem>>, vector<8x8xf32>
    tpu.vector_store %arg18[%c8_75, %c0_76], %152 {strides = array<i32>} : memref<32x32xf32, #tpu.memory_space<vmem>>, vector<8x8xf32>,
    %154 = vector.extract_strided_slice %51 {offsets = [8, 8], sizes = [8, 8], strides = [1, 1]} : vector<32x32xf32> to vector<8x8xf32>
    %155 = vector.extract_strided_slice %52 {offsets = [8, 8], sizes = [8, 8], strides = [1, 1]} : vector<32x32xf32> to vector<8x8xf32>
    %156 = vector.extract_strided_slice %53 {offsets = [8, 8], sizes = [8, 8], strides = [1, 1]} : vector<32x32xf32> to vector<8x8xf32>
    %cst_77 = arith.constant dense<0.000000e+00> : vector<8x8xf32>
    %157 = tpu.matmul %154, %155, %cst_77 {dimension_numbers = #tpu.dot_dimension_numbers<[1], [1], [0], [0], [0, 0, 1, 0], [], []>} : vector<8x8xf32>, vector<8x8xf32>, vector<8x8xf32> -> vector<8x8xf32>
    %cst_78 = arith.constant 0.353553385 : f32
    %158 = vector.broadcast %cst_78 : f32 to vector<8x8xf32>
    %159 = arith.mulf %157, %158 : vector<8x8xf32>
    %160 = vector.extract_strided_slice %1 {offsets = [1, 0, 0], sizes = [1, 8, 8], strides = [1, 1, 1]} : vector<4x8x8xf32> to vector<1x8x8xf32>
    %161 = vector.shape_cast %160 : vector<1x8x8xf32> to vector<8x8xf32>
    %162 = arith.addf %159, %161 : vector<8x8xf32>
    %cst_79 = arith.constant dense<0xFF800000> : vector<8xf32>
    %163 = vector.multi_reduction <maximumf>, %162, %cst_79 [1] : vector<8x8xf32> to vector<8xf32>
    %164 = vector.shape_cast %163 : vector<8xf32> to vector<8x1xf32>
    %165 = vector.broadcast %164 : vector<8x1xf32> to vector<8x8xf32>
    %166 = arith.subf %162, %165 : vector<8x8xf32>
    %167 = math.exp %166 : vector<8x8xf32>
    %cst_80 = arith.constant dense<0.000000e+00> : vector<8xf32>
    %168 = vector.multi_reduction <add>, %167, %cst_80 [1] : vector<8x8xf32> to vector<8xf32>
    %169 = vector.shape_cast %168 : vector<8xf32> to vector<8x1xf32>
    %170 = vector.broadcast %169 : vector<8x1xf32> to vector<8x8xf32>
    %171 = arith.divf %167, %170 : vector<8x8xf32>
    %cst_81 = arith.constant dense<0.000000e+00> : vector<8x8xf32>
    %172 = tpu.matmul %171, %156, %cst_81 {dimension_numbers = #tpu.dot_dimension_numbers<[1], [0], [0], [1], [0, 0, 1, 1], [], []>} : vector<8x8xf32>, vector<8x8xf32>, vector<8x8xf32> -> vector<8x8xf32>
    %c8_82 = arith.constant 8 : index
    %c8_83 = arith.constant 8 : index
    %173 = vector.load %arg18[%c8_82, %c8_83] : memref<32x32xf32, #tpu.memory_space<vmem>>, vector<8x8xf32>
    tpu.vector_store %arg18[%c8_82, %c8_83], %172 {strides = array<i32>} : memref<32x32xf32, #tpu.memory_space<vmem>>, vector<8x8xf32>,
    %174 = vector.extract_strided_slice %51 {offsets = [8, 16], sizes = [8, 8], strides = [1, 1]} : vector<32x32xf32> to vector<8x8xf32>
    %175 = vector.extract_strided_slice %52 {offsets = [8, 16], sizes = [8, 8], strides = [1, 1]} : vector<32x32xf32> to vector<8x8xf32>
    %176 = vector.extract_strided_slice %53 {offsets = [8, 16], sizes = [8, 8], strides = [1, 1]} : vector<32x32xf32> to vector<8x8xf32>
    %cst_84 = arith.constant dense<0.000000e+00> : vector<8x8xf32>
    %177 = tpu.matmul %174, %175, %cst_84 {dimension_numbers = #tpu.dot_dimension_numbers<[1], [1], [0], [0], [0, 0, 1, 0], [], []>} : vector<8x8xf32>, vector<8x8xf32>, vector<8x8xf32> -> vector<8x8xf32>
    %cst_85 = arith.constant 0.353553385 : f32
    %178 = vector.broadcast %cst_85 : f32 to vector<8x8xf32>
    %179 = arith.mulf %177, %178 : vector<8x8xf32>
    %180 = vector.extract_strided_slice %1 {offsets = [1, 0, 0], sizes = [1, 8, 8], strides = [1, 1, 1]} : vector<4x8x8xf32> to vector<1x8x8xf32>
    %181 = vector.shape_cast %180 : vector<1x8x8xf32> to vector<8x8xf32>
    %182 = arith.addf %179, %181 : vector<8x8xf32>
    %cst_86 = arith.constant dense<0xFF800000> : vector<8xf32>
    %183 = vector.multi_reduction <maximumf>, %182, %cst_86 [1] : vector<8x8xf32> to vector<8xf32>
    %184 = vector.shape_cast %183 : vector<8xf32> to vector<8x1xf32>
    %185 = vector.broadcast %184 : vector<8x1xf32> to vector<8x8xf32>
    %186 = arith.subf %182, %185 : vector<8x8xf32>
    %187 = math.exp %186 : vector<8x8xf32>
    %cst_87 = arith.constant dense<0.000000e+00> : vector<8xf32>
    %188 = vector.multi_reduction <add>, %187, %cst_87 [1] : vector<8x8xf32> to vector<8xf32>
    %189 = vector.shape_cast %188 : vector<8xf32> to vector<8x1xf32>
    %190 = vector.broadcast %189 : vector<8x1xf32> to vector<8x8xf32>
    %191 = arith.divf %187, %190 : vector<8x8xf32>
    %cst_88 = arith.constant dense<0.000000e+00> : vector<8x8xf32>
    %192 = tpu.matmul %191, %176, %cst_88 {dimension_numbers = #tpu.dot_dimension_numbers<[1], [0], [0], [1], [0, 0, 1, 1], [], []>} : vector<8x8xf32>, vector<8x8xf32>, vector<8x8xf32> -> vector<8x8xf32>
    %c8_89 = arith.constant 8 : index
    %c16_90 = arith.constant 16 : index
    %193 = vector.load %arg18[%c8_89, %c16_90] : memref<32x32xf32, #tpu.memory_space<vmem>>, vector<8x8xf32>
    tpu.vector_store %arg18[%c8_89, %c16_90], %192 {strides = array<i32>} : memref<32x32xf32, #tpu.memory_space<vmem>>, vector<8x8xf32>,
    %194 = vector.extract_strided_slice %51 {offsets = [8, 24], sizes = [8, 8], strides = [1, 1]} : vector<32x32xf32> to vector<8x8xf32>
    %195 = vector.extract_strided_slice %52 {offsets = [8, 24], sizes = [8, 8], strides = [1, 1]} : vector<32x32xf32> to vector<8x8xf32>
    %196 = vector.extract_strided_slice %53 {offsets = [8, 24], sizes = [8, 8], strides = [1, 1]} : vector<32x32xf32> to vector<8x8xf32>
    %cst_91 = arith.constant dense<0.000000e+00> : vector<8x8xf32>
    %197 = tpu.matmul %194, %195, %cst_91 {dimension_numbers = #tpu.dot_dimension_numbers<[1], [1], [0], [0], [0, 0, 1, 0], [], []>} : vector<8x8xf32>, vector<8x8xf32>, vector<8x8xf32> -> vector<8x8xf32>
    %cst_92 = arith.constant 0.353553385 : f32
    %198 = vector.broadcast %cst_92 : f32 to vector<8x8xf32>
    %199 = arith.mulf %197, %198 : vector<8x8xf32>
    %200 = vector.extract_strided_slice %1 {offsets = [1, 0, 0], sizes = [1, 8, 8], strides = [1, 1, 1]} : vector<4x8x8xf32> to vector<1x8x8xf32>
    %201 = vector.shape_cast %200 : vector<1x8x8xf32> to vector<8x8xf32>
    %202 = arith.addf %199, %201 : vector<8x8xf32>
    %cst_93 = arith.constant dense<0xFF800000> : vector<8xf32>
    %203 = vector.multi_reduction <maximumf>, %202, %cst_93 [1] : vector<8x8xf32> to vector<8xf32>
    %204 = vector.shape_cast %203 : vector<8xf32> to vector<8x1xf32>
    %205 = vector.broadcast %204 : vector<8x1xf32> to vector<8x8xf32>
    %206 = arith.subf %202, %205 : vector<8x8xf32>
    %207 = math.exp %206 : vector<8x8xf32>
    %cst_94 = arith.constant dense<0.000000e+00> : vector<8xf32>
    %208 = vector.multi_reduction <add>, %207, %cst_94 [1] : vector<8x8xf32> to vector<8xf32>
    %209 = vector.shape_cast %208 : vector<8xf32> to vector<8x1xf32>
    %210 = vector.broadcast %209 : vector<8x1xf32> to vector<8x8xf32>
    %211 = arith.divf %207, %210 : vector<8x8xf32>
    %cst_95 = arith.constant dense<0.000000e+00> : vector<8x8xf32>
    %212 = tpu.matmul %211, %196, %cst_95 {dimension_numbers = #tpu.dot_dimension_numbers<[1], [0], [0], [1], [0, 0, 1, 1], [], []>} : vector<8x8xf32>, vector<8x8xf32>, vector<8x8xf32> -> vector<8x8xf32>
    %c8_96 = arith.constant 8 : index
    %c24_97 = arith.constant 24 : index
    %213 = vector.load %arg18[%c8_96, %c24_97] : memref<32x32xf32, #tpu.memory_space<vmem>>, vector<8x8xf32>
    tpu.vector_store %arg18[%c8_96, %c24_97], %212 {strides = array<i32>} : memref<32x32xf32, #tpu.memory_space<vmem>>, vector<8x8xf32>,
    %214 = vector.extract_strided_slice %51 {offsets = [16, 0], sizes = [8, 8], strides = [1, 1]} : vector<32x32xf32> to vector<8x8xf32>
    %215 = vector.extract_strided_slice %52 {offsets = [16, 0], sizes = [8, 8], strides = [1, 1]} : vector<32x32xf32> to vector<8x8xf32>
    %216 = vector.extract_strided_slice %53 {offsets = [16, 0], sizes = [8, 8], strides = [1, 1]} : vector<32x32xf32> to vector<8x8xf32>
    %cst_98 = arith.constant dense<0.000000e+00> : vector<8x8xf32>
    %217 = tpu.matmul %214, %215, %cst_98 {dimension_numbers = #tpu.dot_dimension_numbers<[1], [1], [0], [0], [0, 0, 1, 0], [], []>} : vector<8x8xf32>, vector<8x8xf32>, vector<8x8xf32> -> vector<8x8xf32>
    %cst_99 = arith.constant 0.353553385 : f32
    %218 = vector.broadcast %cst_99 : f32 to vector<8x8xf32>
    %219 = arith.mulf %217, %218 : vector<8x8xf32>
    %220 = vector.extract_strided_slice %1 {offsets = [2, 0, 0], sizes = [1, 8, 8], strides = [1, 1, 1]} : vector<4x8x8xf32> to vector<1x8x8xf32>
    %221 = vector.shape_cast %220 : vector<1x8x8xf32> to vector<8x8xf32>
    %222 = arith.addf %219, %221 : vector<8x8xf32>
    %cst_100 = arith.constant dense<0xFF800000> : vector<8xf32>
    %223 = vector.multi_reduction <maximumf>, %222, %cst_100 [1] : vector<8x8xf32> to vector<8xf32>
    %224 = vector.shape_cast %223 : vector<8xf32> to vector<8x1xf32>
    %225 = vector.broadcast %224 : vector<8x1xf32> to vector<8x8xf32>
    %226 = arith.subf %222, %225 : vector<8x8xf32>
    %227 = math.exp %226 : vector<8x8xf32>
    %cst_101 = arith.constant dense<0.000000e+00> : vector<8xf32>
    %228 = vector.multi_reduction <add>, %227, %cst_101 [1] : vector<8x8xf32> to vector<8xf32>
    %229 = vector.shape_cast %228 : vector<8xf32> to vector<8x1xf32>
    %230 = vector.broadcast %229 : vector<8x1xf32> to vector<8x8xf32>
    %231 = arith.divf %227, %230 : vector<8x8xf32>
    %cst_102 = arith.constant dense<0.000000e+00> : vector<8x8xf32>
    %232 = tpu.matmul %231, %216, %cst_102 {dimension_numbers = #tpu.dot_dimension_numbers<[1], [0], [0], [1], [0, 0, 1, 1], [], []>} : vector<8x8xf32>, vector<8x8xf32>, vector<8x8xf32> -> vector<8x8xf32>
    %c16_103 = arith.constant 16 : index
    %c0_104 = arith.constant 0 : index
    %233 = vector.load %arg18[%c16_103, %c0_104] : memref<32x32xf32, #tpu.memory_space<vmem>>, vector<8x8xf32>
    tpu.vector_store %arg18[%c16_103, %c0_104], %232 {strides = array<i32>} : memref<32x32xf32, #tpu.memory_space<vmem>>, vector<8x8xf32>,
    %234 = vector.extract_strided_slice %51 {offsets = [16, 8], sizes = [8, 8], strides = [1, 1]} : vector<32x32xf32> to vector<8x8xf32>
    %235 = vector.extract_strided_slice %52 {offsets = [16, 8], sizes = [8, 8], strides = [1, 1]} : vector<32x32xf32> to vector<8x8xf32>
    %236 = vector.extract_strided_slice %53 {offsets = [16, 8], sizes = [8, 8], strides = [1, 1]} : vector<32x32xf32> to vector<8x8xf32>
    %cst_105 = arith.constant dense<0.000000e+00> : vector<8x8xf32>
    %237 = tpu.matmul %234, %235, %cst_105 {dimension_numbers = #tpu.dot_dimension_numbers<[1], [1], [0], [0], [0, 0, 1, 0], [], []>} : vector<8x8xf32>, vector<8x8xf32>, vector<8x8xf32> -> vector<8x8xf32>
    %cst_106 = arith.constant 0.353553385 : f32
    %238 = vector.broadcast %cst_106 : f32 to vector<8x8xf32>
    %239 = arith.mulf %237, %238 : vector<8x8xf32>
    %240 = vector.extract_strided_slice %1 {offsets = [2, 0, 0], sizes = [1, 8, 8], strides = [1, 1, 1]} : vector<4x8x8xf32> to vector<1x8x8xf32>
    %241 = vector.shape_cast %240 : vector<1x8x8xf32> to vector<8x8xf32>
    %242 = arith.addf %239, %241 : vector<8x8xf32>
    %cst_107 = arith.constant dense<0xFF800000> : vector<8xf32>
    %243 = vector.multi_reduction <maximumf>, %242, %cst_107 [1] : vector<8x8xf32> to vector<8xf32>
    %244 = vector.shape_cast %243 : vector<8xf32> to vector<8x1xf32>
    %245 = vector.broadcast %244 : vector<8x1xf32> to vector<8x8xf32>
    %246 = arith.subf %242, %245 : vector<8x8xf32>
    %247 = math.exp %246 : vector<8x8xf32>
    %cst_108 = arith.constant dense<0.000000e+00> : vector<8xf32>
    %248 = vector.multi_reduction <add>, %247, %cst_108 [1] : vector<8x8xf32> to vector<8xf32>
    %249 = vector.shape_cast %248 : vector<8xf32> to vector<8x1xf32>
    %250 = vector.broadcast %249 : vector<8x1xf32> to vector<8x8xf32>
    %251 = arith.divf %247, %250 : vector<8x8xf32>
    %cst_109 = arith.constant dense<0.000000e+00> : vector<8x8xf32>
    %252 = tpu.matmul %251, %236, %cst_109 {dimension_numbers = #tpu.dot_dimension_numbers<[1], [0], [0], [1], [0, 0, 1, 1], [], []>} : vector<8x8xf32>, vector<8x8xf32>, vector<8x8xf32> -> vector<8x8xf32>
    %c16_110 = arith.constant 16 : index
    %c8_111 = arith.constant 8 : index
    %253 = vector.load %arg18[%c16_110, %c8_111] : memref<32x32xf32, #tpu.memory_space<vmem>>, vector<8x8xf32>
    tpu.vector_store %arg18[%c16_110, %c8_111], %252 {strides = array<i32>} : memref<32x32xf32, #tpu.memory_space<vmem>>, vector<8x8xf32>,
    %254 = vector.extract_strided_slice %51 {offsets = [16, 16], sizes = [8, 8], strides = [1, 1]} : vector<32x32xf32> to vector<8x8xf32>
    %255 = vector.extract_strided_slice %52 {offsets = [16, 16], sizes = [8, 8], strides = [1, 1]} : vector<32x32xf32> to vector<8x8xf32>
    %256 = vector.extract_strided_slice %53 {offsets = [16, 16], sizes = [8, 8], strides = [1, 1]} : vector<32x32xf32> to vector<8x8xf32>
    %cst_112 = arith.constant dense<0.000000e+00> : vector<8x8xf32>
    %257 = tpu.matmul %254, %255, %cst_112 {dimension_numbers = #tpu.dot_dimension_numbers<[1], [1], [0], [0], [0, 0, 1, 0], [], []>} : vector<8x8xf32>, vector<8x8xf32>, vector<8x8xf32> -> vector<8x8xf32>
    %cst_113 = arith.constant 0.353553385 : f32
    %258 = vector.broadcast %cst_113 : f32 to vector<8x8xf32>
    %259 = arith.mulf %257, %258 : vector<8x8xf32>
    %260 = vector.extract_strided_slice %1 {offsets = [2, 0, 0], sizes = [1, 8, 8], strides = [1, 1, 1]} : vector<4x8x8xf32> to vector<1x8x8xf32>
    %261 = vector.shape_cast %260 : vector<1x8x8xf32> to vector<8x8xf32>
    %262 = arith.addf %259, %261 : vector<8x8xf32>
    %cst_114 = arith.constant dense<0xFF800000> : vector<8xf32>
    %263 = vector.multi_reduction <maximumf>, %262, %cst_114 [1] : vector<8x8xf32> to vector<8xf32>
    %264 = vector.shape_cast %263 : vector<8xf32> to vector<8x1xf32>
    %265 = vector.broadcast %264 : vector<8x1xf32> to vector<8x8xf32>
    %266 = arith.subf %262, %265 : vector<8x8xf32>
    %267 = math.exp %266 : vector<8x8xf32>
    %cst_115 = arith.constant dense<0.000000e+00> : vector<8xf32>
    %268 = vector.multi_reduction <add>, %267, %cst_115 [1] : vector<8x8xf32> to vector<8xf32>
    %269 = vector.shape_cast %268 : vector<8xf32> to vector<8x1xf32>
    %270 = vector.broadcast %269 : vector<8x1xf32> to vector<8x8xf32>
    %271 = arith.divf %267, %270 : vector<8x8xf32>
    %cst_116 = arith.constant dense<0.000000e+00> : vector<8x8xf32>
    %272 = tpu.matmul %271, %256, %cst_116 {dimension_numbers = #tpu.dot_dimension_numbers<[1], [0], [0], [1], [0, 0, 1, 1], [], []>} : vector<8x8xf32>, vector<8x8xf32>, vector<8x8xf32> -> vector<8x8xf32>
    %c16_117 = arith.constant 16 : index
    %c16_118 = arith.constant 16 : index
    %273 = vector.load %arg18[%c16_117, %c16_118] : memref<32x32xf32, #tpu.memory_space<vmem>>, vector<8x8xf32>
    tpu.vector_store %arg18[%c16_117, %c16_118], %272 {strides = array<i32>} : memref<32x32xf32, #tpu.memory_space<vmem>>, vector<8x8xf32>,
    %274 = vector.extract_strided_slice %51 {offsets = [16, 24], sizes = [8, 8], strides = [1, 1]} : vector<32x32xf32> to vector<8x8xf32>
    %275 = vector.extract_strided_slice %52 {offsets = [16, 24], sizes = [8, 8], strides = [1, 1]} : vector<32x32xf32> to vector<8x8xf32>
    %276 = vector.extract_strided_slice %53 {offsets = [16, 24], sizes = [8, 8], strides = [1, 1]} : vector<32x32xf32> to vector<8x8xf32>
    %cst_119 = arith.constant dense<0.000000e+00> : vector<8x8xf32>
    %277 = tpu.matmul %274, %275, %cst_119 {dimension_numbers = #tpu.dot_dimension_numbers<[1], [1], [0], [0], [0, 0, 1, 0], [], []>} : vector<8x8xf32>, vector<8x8xf32>, vector<8x8xf32> -> vector<8x8xf32>
    %cst_120 = arith.constant 0.353553385 : f32
    %278 = vector.broadcast %cst_120 : f32 to vector<8x8xf32>
    %279 = arith.mulf %277, %278 : vector<8x8xf32>
    %280 = vector.extract_strided_slice %1 {offsets = [2, 0, 0], sizes = [1, 8, 8], strides = [1, 1, 1]} : vector<4x8x8xf32> to vector<1x8x8xf32>
    %281 = vector.shape_cast %280 : vector<1x8x8xf32> to vector<8x8xf32>
    %282 = arith.addf %279, %281 : vector<8x8xf32>
    %cst_121 = arith.constant dense<0xFF800000> : vector<8xf32>
    %283 = vector.multi_reduction <maximumf>, %282, %cst_121 [1] : vector<8x8xf32> to vector<8xf32>
    %284 = vector.shape_cast %283 : vector<8xf32> to vector<8x1xf32>
    %285 = vector.broadcast %284 : vector<8x1xf32> to vector<8x8xf32>
    %286 = arith.subf %282, %285 : vector<8x8xf32>
    %287 = math.exp %286 : vector<8x8xf32>
    %cst_122 = arith.constant dense<0.000000e+00> : vector<8xf32>
    %288 = vector.multi_reduction <add>, %287, %cst_122 [1] : vector<8x8xf32> to vector<8xf32>
    %289 = vector.shape_cast %288 : vector<8xf32> to vector<8x1xf32>
    %290 = vector.broadcast %289 : vector<8x1xf32> to vector<8x8xf32>
    %291 = arith.divf %287, %290 : vector<8x8xf32>
    %cst_123 = arith.constant dense<0.000000e+00> : vector<8x8xf32>
    %292 = tpu.matmul %291, %276, %cst_123 {dimension_numbers = #tpu.dot_dimension_numbers<[1], [0], [0], [1], [0, 0, 1, 1], [], []>} : vector<8x8xf32>, vector<8x8xf32>, vector<8x8xf32> -> vector<8x8xf32>
    %c16_124 = arith.constant 16 : index
    %c24_125 = arith.constant 24 : index
    %293 = vector.load %arg18[%c16_124, %c24_125] : memref<32x32xf32, #tpu.memory_space<vmem>>, vector<8x8xf32>
    tpu.vector_store %arg18[%c16_124, %c24_125], %292 {strides = array<i32>} : memref<32x32xf32, #tpu.memory_space<vmem>>, vector<8x8xf32>,
    %294 = vector.extract_strided_slice %51 {offsets = [24, 0], sizes = [8, 8], strides = [1, 1]} : vector<32x32xf32> to vector<8x8xf32>
    %295 = vector.extract_strided_slice %52 {offsets = [24, 0], sizes = [8, 8], strides = [1, 1]} : vector<32x32xf32> to vector<8x8xf32>
    %296 = vector.extract_strided_slice %53 {offsets = [24, 0], sizes = [8, 8], strides = [1, 1]} : vector<32x32xf32> to vector<8x8xf32>
    %cst_126 = arith.constant dense<0.000000e+00> : vector<8x8xf32>
    %297 = tpu.matmul %294, %295, %cst_126 {dimension_numbers = #tpu.dot_dimension_numbers<[1], [1], [0], [0], [0, 0, 1, 0], [], []>} : vector<8x8xf32>, vector<8x8xf32>, vector<8x8xf32> -> vector<8x8xf32>
    %cst_127 = arith.constant 0.353553385 : f32
    %298 = vector.broadcast %cst_127 : f32 to vector<8x8xf32>
    %299 = arith.mulf %297, %298 : vector<8x8xf32>
    %300 = vector.extract_strided_slice %1 {offsets = [3, 0, 0], sizes = [1, 8, 8], strides = [1, 1, 1]} : vector<4x8x8xf32> to vector<1x8x8xf32>
    %301 = vector.shape_cast %300 : vector<1x8x8xf32> to vector<8x8xf32>
    %302 = arith.addf %299, %301 : vector<8x8xf32>
    %cst_128 = arith.constant dense<0xFF800000> : vector<8xf32>
    %303 = vector.multi_reduction <maximumf>, %302, %cst_128 [1] : vector<8x8xf32> to vector<8xf32>
    %304 = vector.shape_cast %303 : vector<8xf32> to vector<8x1xf32>
    %305 = vector.broadcast %304 : vector<8x1xf32> to vector<8x8xf32>
    %306 = arith.subf %302, %305 : vector<8x8xf32>
    %307 = math.exp %306 : vector<8x8xf32>
    %cst_129 = arith.constant dense<0.000000e+00> : vector<8xf32>
    %308 = vector.multi_reduction <add>, %307, %cst_129 [1] : vector<8x8xf32> to vector<8xf32>
    %309 = vector.shape_cast %308 : vector<8xf32> to vector<8x1xf32>
    %310 = vector.broadcast %309 : vector<8x1xf32> to vector<8x8xf32>
    %311 = arith.divf %307, %310 : vector<8x8xf32>
    %cst_130 = arith.constant dense<0.000000e+00> : vector<8x8xf32>
    %312 = tpu.matmul %311, %296, %cst_130 {dimension_numbers = #tpu.dot_dimension_numbers<[1], [0], [0], [1], [0, 0, 1, 1], [], []>} : vector<8x8xf32>, vector<8x8xf32>, vector<8x8xf32> -> vector<8x8xf32>
    %c24_131 = arith.constant 24 : index
    %c0_132 = arith.constant 0 : index
    %313 = vector.load %arg18[%c24_131, %c0_132] : memref<32x32xf32, #tpu.memory_space<vmem>>, vector<8x8xf32>
    tpu.vector_store %arg18[%c24_131, %c0_132], %312 {strides = array<i32>} : memref<32x32xf32, #tpu.memory_space<vmem>>, vector<8x8xf32>,
    %314 = vector.extract_strided_slice %51 {offsets = [24, 8], sizes = [8, 8], strides = [1, 1]} : vector<32x32xf32> to vector<8x8xf32>
    %315 = vector.extract_strided_slice %52 {offsets = [24, 8], sizes = [8, 8], strides = [1, 1]} : vector<32x32xf32> to vector<8x8xf32>
    %316 = vector.extract_strided_slice %53 {offsets = [24, 8], sizes = [8, 8], strides = [1, 1]} : vector<32x32xf32> to vector<8x8xf32>
    %cst_133 = arith.constant dense<0.000000e+00> : vector<8x8xf32>
    %317 = tpu.matmul %314, %315, %cst_133 {dimension_numbers = #tpu.dot_dimension_numbers<[1], [1], [0], [0], [0, 0, 1, 0], [], []>} : vector<8x8xf32>, vector<8x8xf32>, vector<8x8xf32> -> vector<8x8xf32>
    %cst_134 = arith.constant 0.353553385 : f32
    %318 = vector.broadcast %cst_134 : f32 to vector<8x8xf32>
    %319 = arith.mulf %317, %318 : vector<8x8xf32>
    %320 = vector.extract_strided_slice %1 {offsets = [3, 0, 0], sizes = [1, 8, 8], strides = [1, 1, 1]} : vector<4x8x8xf32> to vector<1x8x8xf32>
    %321 = vector.shape_cast %320 : vector<1x8x8xf32> to vector<8x8xf32>
    %322 = arith.addf %319, %321 : vector<8x8xf32>
    %cst_135 = arith.constant dense<0xFF800000> : vector<8xf32>
    %323 = vector.multi_reduction <maximumf>, %322, %cst_135 [1] : vector<8x8xf32> to vector<8xf32>
    %324 = vector.shape_cast %323 : vector<8xf32> to vector<8x1xf32>
    %325 = vector.broadcast %324 : vector<8x1xf32> to vector<8x8xf32>
    %326 = arith.subf %322, %325 : vector<8x8xf32>
    %327 = math.exp %326 : vector<8x8xf32>
    %cst_136 = arith.constant dense<0.000000e+00> : vector<8xf32>
    %328 = vector.multi_reduction <add>, %327, %cst_136 [1] : vector<8x8xf32> to vector<8xf32>
    %329 = vector.shape_cast %328 : vector<8xf32> to vector<8x1xf32>
    %330 = vector.broadcast %329 : vector<8x1xf32> to vector<8x8xf32>
    %331 = arith.divf %327, %330 : vector<8x8xf32>
    %cst_137 = arith.constant dense<0.000000e+00> : vector<8x8xf32>
    %332 = tpu.matmul %331, %316, %cst_137 {dimension_numbers = #tpu.dot_dimension_numbers<[1], [0], [0], [1], [0, 0, 1, 1], [], []>} : vector<8x8xf32>, vector<8x8xf32>, vector<8x8xf32> -> vector<8x8xf32>
    %c24_138 = arith.constant 24 : index
    %c8_139 = arith.constant 8 : index
    %333 = vector.load %arg18[%c24_138, %c8_139] : memref<32x32xf32, #tpu.memory_space<vmem>>, vector<8x8xf32>
    tpu.vector_store %arg18[%c24_138, %c8_139], %332 {strides = array<i32>} : memref<32x32xf32, #tpu.memory_space<vmem>>, vector<8x8xf32>,
    %334 = vector.extract_strided_slice %51 {offsets = [24, 16], sizes = [8, 8], strides = [1, 1]} : vector<32x32xf32> to vector<8x8xf32>
    %335 = vector.extract_strided_slice %52 {offsets = [24, 16], sizes = [8, 8], strides = [1, 1]} : vector<32x32xf32> to vector<8x8xf32>
    %336 = vector.extract_strided_slice %53 {offsets = [24, 16], sizes = [8, 8], strides = [1, 1]} : vector<32x32xf32> to vector<8x8xf32>
    %cst_140 = arith.constant dense<0.000000e+00> : vector<8x8xf32>
    %337 = tpu.matmul %334, %335, %cst_140 {dimension_numbers = #tpu.dot_dimension_numbers<[1], [1], [0], [0], [0, 0, 1, 0], [], []>} : vector<8x8xf32>, vector<8x8xf32>, vector<8x8xf32> -> vector<8x8xf32>
    %cst_141 = arith.constant 0.353553385 : f32
    %338 = vector.broadcast %cst_141 : f32 to vector<8x8xf32>
    %339 = arith.mulf %337, %338 : vector<8x8xf32>
    %340 = vector.extract_strided_slice %1 {offsets = [3, 0, 0], sizes = [1, 8, 8], strides = [1, 1, 1]} : vector<4x8x8xf32> to vector<1x8x8xf32>
    %341 = vector.shape_cast %340 : vector<1x8x8xf32> to vector<8x8xf32>
    %342 = arith.addf %339, %341 : vector<8x8xf32>
    %cst_142 = arith.constant dense<0xFF800000> : vector<8xf32>
    %343 = vector.multi_reduction <maximumf>, %342, %cst_142 [1] : vector<8x8xf32> to vector<8xf32>
    %344 = vector.shape_cast %343 : vector<8xf32> to vector<8x1xf32>
    %345 = vector.broadcast %344 : vector<8x1xf32> to vector<8x8xf32>
    %346 = arith.subf %342, %345 : vector<8x8xf32>
    %347 = math.exp %346 : vector<8x8xf32>
    %cst_143 = arith.constant dense<0.000000e+00> : vector<8xf32>
    %348 = vector.multi_reduction <add>, %347, %cst_143 [1] : vector<8x8xf32> to vector<8xf32>
    %349 = vector.shape_cast %348 : vector<8xf32> to vector<8x1xf32>
    %350 = vector.broadcast %349 : vector<8x1xf32> to vector<8x8xf32>
    %351 = arith.divf %347, %350 : vector<8x8xf32>
    %cst_144 = arith.constant dense<0.000000e+00> : vector<8x8xf32>
    %352 = tpu.matmul %351, %336, %cst_144 {dimension_numbers = #tpu.dot_dimension_numbers<[1], [0], [0], [1], [0, 0, 1, 1], [], []>} : vector<8x8xf32>, vector<8x8xf32>, vector<8x8xf32> -> vector<8x8xf32>
    %c24_145 = arith.constant 24 : index
    %c16_146 = arith.constant 16 : index
    %353 = vector.load %arg18[%c24_145, %c16_146] : memref<32x32xf32, #tpu.memory_space<vmem>>, vector<8x8xf32>
    tpu.vector_store %arg18[%c24_145, %c16_146], %352 {strides = array<i32>} : memref<32x32xf32, #tpu.memory_space<vmem>>, vector<8x8xf32>,
    %354 = vector.extract_strided_slice %51 {offsets = [24, 24], sizes = [8, 8], strides = [1, 1]} : vector<32x32xf32> to vector<8x8xf32>
    %355 = vector.extract_strided_slice %52 {offsets = [24, 24], sizes = [8, 8], strides = [1, 1]} : vector<32x32xf32> to vector<8x8xf32>
    %356 = vector.extract_strided_slice %53 {offsets = [24, 24], sizes = [8, 8], strides = [1, 1]} : vector<32x32xf32> to vector<8x8xf32>
    %cst_147 = arith.constant dense<0.000000e+00> : vector<8x8xf32>
    %357 = tpu.matmul %354, %355, %cst_147 {dimension_numbers = #tpu.dot_dimension_numbers<[1], [1], [0], [0], [0, 0, 1, 0], [], []>} : vector<8x8xf32>, vector<8x8xf32>, vector<8x8xf32> -> vector<8x8xf32>
    %cst_148 = arith.constant 0.353553385 : f32
    %358 = vector.broadcast %cst_148 : f32 to vector<8x8xf32>
    %359 = arith.mulf %357, %358 : vector<8x8xf32>
    %360 = vector.extract_strided_slice %1 {offsets = [3, 0, 0], sizes = [1, 8, 8], strides = [1, 1, 1]} : vector<4x8x8xf32> to vector<1x8x8xf32>
    %361 = vector.shape_cast %360 : vector<1x8x8xf32> to vector<8x8xf32>
    %362 = arith.addf %359, %361 : vector<8x8xf32>
    %cst_149 = arith.constant dense<0xFF800000> : vector<8xf32>
    %363 = vector.multi_reduction <maximumf>, %362, %cst_149 [1] : vector<8x8xf32> to vector<8xf32>
    %364 = vector.shape_cast %363 : vector<8xf32> to vector<8x1xf32>
    %365 = vector.broadcast %364 : vector<8x1xf32> to vector<8x8xf32>
    %366 = arith.subf %362, %365 : vector<8x8xf32>
    %367 = math.exp %366 : vector<8x8xf32>
    %cst_150 = arith.constant dense<0.000000e+00> : vector<8xf32>
    %368 = vector.multi_reduction <add>, %367, %cst_150 [1] : vector<8x8xf32> to vector<8xf32>
    %369 = vector.shape_cast %368 : vector<8xf32> to vector<8x1xf32>
    %370 = vector.broadcast %369 : vector<8x1xf32> to vector<8x8xf32>
    %371 = arith.divf %367, %370 : vector<8x8xf32>
    %cst_151 = arith.constant dense<0.000000e+00> : vector<8x8xf32>
    %372 = tpu.matmul %371, %356, %cst_151 {dimension_numbers = #tpu.dot_dimension_numbers<[1], [0], [0], [1], [0, 0, 1, 1], [], []>} : vector<8x8xf32>, vector<8x8xf32>, vector<8x8xf32> -> vector<8x8xf32>
    %c24_152 = arith.constant 24 : index
    %c24_153 = arith.constant 24 : index
    %373 = vector.load %arg18[%c24_152, %c24_153] : memref<32x32xf32, #tpu.memory_space<vmem>>, vector<8x8xf32>
    tpu.vector_store %arg18[%c24_152, %c24_153], %372 {strides = array<i32>} : memref<32x32xf32, #tpu.memory_space<vmem>>, vector<8x8xf32>,
    %c0_154 = arith.constant 0 : index
    %c0_155 = arith.constant 0 : index
    %374 = vector.load %arg18[%c0_154, %c0_155] : memref<32x32xf32, #tpu.memory_space<vmem>>, vector<32x32xf32>
    %cst_156 = arith.constant dense<0.000000e+00> : vector<32x32xf32>
    %375 = tpu.matmul %374, %11, %cst_156 {dimension_numbers = #tpu.dot_dimension_numbers<[1], [0], [0], [1], [0, 0, 1, 1], [], []>} : vector<32x32xf32>, vector<32x32xf32>, vector<32x32xf32> -> vector<32x32xf32>
    %376 = arith.addf %0, %375 : vector<32x32xf32>
    %377 = vector.broadcast %13 : vector<1x32xf32> to vector<32x32xf32>
    %378 = arith.addf %376, %377 : vector<32x32xf32>
    %cst_157 = arith.constant dense<0.000000e+00> : vector<32xf32>
    %379 = vector.multi_reduction <add>, %378, %cst_157 [1] : vector<32x32xf32> to vector<32xf32>
    %380 = vector.shape_cast %379 : vector<32xf32> to vector<32x1xf32>
    %cst_158 = arith.constant 3.200000e+01 : f32
    %381 = vector.broadcast %cst_158 : f32 to vector<32x1xf32>
    %382 = arith.divf %380, %381 : vector<32x1xf32>
    %383 = vector.broadcast %382 : vector<32x1xf32> to vector<32x32xf32>
    %384 = arith.subf %378, %383 : vector<32x32xf32>
    %385 = arith.mulf %384, %384 : vector<32x32xf32>
    %cst_159 = arith.constant dense<0.000000e+00> : vector<32xf32>
    %386 = vector.multi_reduction <add>, %385, %cst_159 [1] : vector<32x32xf32> to vector<32xf32>
    %387 = vector.shape_cast %386 : vector<32xf32> to vector<32x1xf32>
    %cst_160 = arith.constant 3.200000e+01 : f32
    %388 = vector.broadcast %cst_160 : f32 to vector<32x1xf32>
    %389 = arith.divf %387, %388 : vector<32x1xf32>
    %390 = vector.broadcast %382 : vector<32x1xf32> to vector<32x32xf32>
    %391 = arith.subf %378, %390 : vector<32x32xf32>
    %cst_161 = arith.constant 9.99999974E-6 : f32
    %392 = vector.broadcast %cst_161 : f32 to vector<32x1xf32>
    %393 = arith.addf %389, %392 : vector<32x1xf32>
    %394 = math.rsqrt %393 : vector<32x1xf32>
    %395 = vector.broadcast %394 : vector<32x1xf32> to vector<32x32xf32>
    %396 = arith.mulf %391, %395 : vector<32x32xf32>
    %397 = vector.broadcast %15 : vector<1x32xf32> to vector<32x32xf32>
    %398 = arith.mulf %396, %397 : vector<32x32xf32>
    %399 = vector.broadcast %17 : vector<1x32xf32> to vector<32x32xf32>
    %400 = arith.addf %398, %399 : vector<32x32xf32>
    %cst_162 = arith.constant dense<0.000000e+00> : vector<32x64xf32>
    %401 = tpu.matmul %400, %19, %cst_162 {dimension_numbers = #tpu.dot_dimension_numbers<[1], [0], [0], [1], [0, 0, 1, 1], [], []>} : vector<32x32xf32>, vector<32x64xf32>, vector<32x64xf32> -> vector<32x64xf32>
    %402 = vector.broadcast %21 : vector<1x64xf32> to vector<32x64xf32>
    %403 = arith.addf %401, %402 : vector<32x64xf32>
    %cst_163 = arith.constant 1.702000e+00 : f32
    %404 = vector.broadcast %cst_163 : f32 to vector<32x64xf32>
    %405 = arith.mulf %404, %403 : vector<32x64xf32>
    %406 = arith.negf %405 : vector<32x64xf32>
    %407 = math.exp %406 : vector<32x64xf32>
    %cst_164 = arith.constant 1.000000e+00 : f32
    %408 = vector.broadcast %cst_164 : f32 to vector<32x64xf32>
    %409 = arith.addf %408, %407 : vector<32x64xf32>
    %410 = arith.divf %408, %409 : vector<32x64xf32>
    %411 = arith.mulf %403, %410 : vector<32x64xf32>
    %cst_165 = arith.constant dense<0.000000e+00> : vector<32x32xf32>
    %412 = tpu.matmul %411, %23, %cst_165 {dimension_numbers = #tpu.dot_dimension_numbers<[1], [0], [0], [1], [0, 0, 1, 1], [], []>} : vector<32x64xf32>, vector<64x32xf32>, vector<32x32xf32> -> vector<32x32xf32>
    %413 = vector.broadcast %25 : vector<1x32xf32> to vector<32x32xf32>
    %414 = arith.addf %412, %413 : vector<32x32xf32>
    %415 = arith.addf %378, %414 : vector<32x32xf32>
    %c0_166 = arith.constant 0 : index
    %c0_167 = arith.constant 0 : index
    %416 = vector.load %arg15[%c0_166, %c0_167] : memref<1x32xf32, #tpu.memory_space<vmem>>, vector<1x32xf32>
    %c0_168 = arith.constant 0 : index
    %c0_169 = arith.constant 0 : index
    %417 = vector.load %arg16[%c0_168, %c0_169] : memref<1x32xf32, #tpu.memory_space<vmem>>, vector<1x32xf32>
    %cst_170 = arith.constant dense<0.000000e+00> : vector<32xf32>
    %418 = vector.multi_reduction <add>, %415, %cst_170 [1] : vector<32x32xf32> to vector<32xf32>
    %419 = vector.shape_cast %418 : vector<32xf32> to vector<32x1xf32>
    %cst_171 = arith.constant 3.200000e+01 : f32
    %420 = vector.broadcast %cst_171 : f32 to vector<32x1xf32>
    %421 = arith.divf %419, %420 : vector<32x1xf32>
    %422 = vector.broadcast %421 : vector<32x1xf32> to vector<32x32xf32>
    %423 = arith.subf %415, %422 : vector<32x32xf32>
    %424 = arith.mulf %423, %423 : vector<32x32xf32>
    %cst_172 = arith.constant dense<0.000000e+00> : vector<32xf32>
    %425 = vector.multi_reduction <add>, %424, %cst_172 [1] : vector<32x32xf32> to vector<32xf32>
    %426 = vector.shape_cast %425 : vector<32xf32> to vector<32x1xf32>
    %cst_173 = arith.constant 3.200000e+01 : f32
    %427 = vector.broadcast %cst_173 : f32 to vector<32x1xf32>
    %428 = arith.divf %426, %427 : vector<32x1xf32>
    %429 = vector.broadcast %421 : vector<32x1xf32> to vector<32x32xf32>
    %430 = arith.subf %415, %429 : vector<32x32xf32>
    %cst_174 = arith.constant 9.99999974E-6 : f32
    %431 = vector.broadcast %cst_174 : f32 to vector<32x1xf32>
    %432 = arith.addf %428, %431 : vector<32x1xf32>
    %433 = math.rsqrt %432 : vector<32x1xf32>
    %434 = vector.broadcast %433 : vector<32x1xf32> to vector<32x32xf32>
    %435 = arith.mulf %430, %434 : vector<32x32xf32>
    %436 = vector.broadcast %416 : vector<1x32xf32> to vector<32x32xf32>
    %437 = arith.mulf %435, %436 : vector<32x32xf32>
    %438 = vector.broadcast %417 : vector<1x32xf32> to vector<32x32xf32>
    %439 = arith.addf %437, %438 : vector<32x32xf32>
    %c0_175 = arith.constant 0 : index
    %c0_176 = arith.constant 0 : index
    %440 = vector.load %arg17[%c0_175, %c0_176] : memref<32x32xf32, #tpu.memory_space<vmem>>, vector<32x32xf32>
    tpu.vector_store %arg17[%c0_175, %c0_176], %439 {strides = array<i32>} : memref<32x32xf32, #tpu.memory_space<vmem>>, vector<32x32xf32>,
    return
  }
  func.func @transform_0(%arg0: i32) -> (i32, i32) {
    %c0_i32 = arith.constant 0 : i32
    %c0_i32_0 = arith.constant 0 : i32
    %c0_i32_1 = arith.constant 0 : i32
    return %c0_i32, %c0_i32_0 : i32, i32
  }
  func.func @transform_1(%arg0: i32) -> (i32, i32, i32) {
    %c0_i32 = arith.constant 0 : i32
    %c0_i32_0 = arith.constant 0 : i32
    %c0_i32_1 = arith.constant 0 : i32
    %c0_i32_2 = arith.constant 0 : i32
    return %c0_i32, %c0_i32_0, %c0_i32_1 : i32, i32, i32
  }
  func.func @transform_2(%arg0: i32) -> (i32, i32, i32) {
    %c0_i32 = arith.constant 0 : i32
    %c0_i32_0 = arith.constant 0 : i32
    %c0_i32_1 = arith.constant 0 : i32
    %c0_i32_2 = arith.constant 0 : i32
    return %c0_i32, %c0_i32_0, %c0_i32_1 : i32, i32, i32
  }
  func.func @transform_3(%arg0: i32) -> (i32, i32, i32) {
    %c0_i32 = arith.constant 0 : i32
    %c0_i32_0 = arith.constant 0 : i32
    %c0_i32_1 = arith.constant 0 : i32
    %c0_i32_2 = arith.constant 0 : i32
    return %c0_i32, %c0_i32_0, %c0_i32_1 : i32, i32, i32
  }
  func.func @transform_4(%arg0: i32) -> (i32, i32, i32) {
    %c0_i32 = arith.constant 0 : i32
    %c0_i32_0 = arith.constant 0 : i32
    %c0_i32_1 = arith.constant 0 : i32
    %c0_i32_2 = arith.constant 0 : i32
    return %c0_i32, %c0_i32_0, %c0_i32_1 : i32, i32, i32
  }
  func.func @transform_5(%arg0: i32) -> (i32, i32, i32) {
    %c0_i32 = arith.constant 0 : i32
    %c0_i32_0 = arith.constant 0 : i32
    %c0_i32_1 = arith.constant 0 : i32
    %c0_i32_2 = arith.constant 0 : i32
    return %c0_i32, %c0_i32_0, %c0_i32_1 : i32, i32, i32
  }
  func.func @transform_6(%arg0: i32) -> (i32, i32, i32) {
    %c0_i32 = arith.constant 0 : i32
    %c0_i32_0 = arith.constant 0 : i32
    %c0_i32_1 = arith.constant 0 : i32
    %c0_i32_2 = arith.constant 0 : i32
    return %c0_i32, %c0_i32_0, %c0_i32_1 : i32, i32, i32
  }
  func.func @transform_7(%arg0: i32) -> (i32, i32, i32) {
    %c0_i32 = arith.constant 0 : i32
    %c0_i32_0 = arith.constant 0 : i32
    %c0_i32_1 = arith.constant 0 : i32
    %c0_i32_2 = arith.constant 0 : i32
    return %c0_i32, %c0_i32_0, %c0_i32_1 : i32, i32, i32
  }
  func.func @transform_8(%arg0: i32) -> (i32, i32, i32) {
    %c0_i32 = arith.constant 0 : i32
    %c0_i32_0 = arith.constant 0 : i32
    %c0_i32_1 = arith.constant 0 : i32
    %c0_i32_2 = arith.constant 0 : i32
    return %c0_i32, %c0_i32_0, %c0_i32_1 : i32, i32, i32
  }
  func.func @transform_9(%arg0: i32) -> (i32, i32, i32) {
    %c0_i32 = arith.constant 0 : i32
    %c0_i32_0 = arith.constant 0 : i32
    %c0_i32_1 = arith.constant 0 : i32
    %c0_i32_2 = arith.constant 0 : i32
    return %c0_i32, %c0_i32_0, %c0_i32_1 : i32, i32, i32
  }
  func.func @transform_10(%arg0: i32) -> (i32, i32, i32) {
    %c0_i32 = arith.constant 0 : i32
    %c0_i32_0 = arith.constant 0 : i32
    %c0_i32_1 = arith.constant 0 : i32
    %c0_i32_2 = arith.constant 0 : i32
    return %c0_i32, %c0_i32_0, %c0_i32_1 : i32, i32, i32
  }
  func.func @transform_11(%arg0: i32) -> (i32, i32, i32) {
    %c0_i32 = arith.constant 0 : i32
    %c0_i32_0 = arith.constant 0 : i32
    %c0_i32_1 = arith.constant 0 : i32
    %c0_i32_2 = arith.constant 0 : i32
    return %c0_i32, %c0_i32_0, %c0_i32_1 : i32, i32, i32
  }
  func.func @transform_12(%arg0: i32) -> (i32, i32, i32) {
    %c0_i32 = arith.constant 0 : i32
    %c0_i32_0 = arith.constant 0 : i32
    %c0_i32_1 = arith.constant 0 : i32
    %c0_i32_2 = arith.constant 0 : i32
    return %c0_i32, %c0_i32_0, %c0_i32_1 : i32, i32, i32
  }
  func.func @transform_13(%arg0: i32) -> (i32, i32, i32) {
    %c0_i32 = arith.constant 0 : i32
    %c0_i32_0 = arith.constant 0 : i32
    %c0_i32_1 = arith.constant 0 : i32
    %c0_i32_2 = arith.constant 0 : i32
    return %c0_i32, %c0_i32_0, %c0_i32_1 : i32, i32, i32
  }
  func.func @transform_14(%arg0: i32) -> (i32, i32) {
    %c0_i32 = arith.constant 0 : i32
    %c0_i32_0 = arith.constant 0 : i32
    %c0_i32_1 = arith.constant 0 : i32
    return %c0_i32, %c0_i32_0 : i32, i32
  }
  func.func @transform_15(%arg0: i32) -> (i32, i32) {
    %c0_i32 = arith.constant 0 : i32
    %c0_i32_0 = arith.constant 0 : i32
    %c0_i32_1 = arith.constant 0 : i32
    return %c0_i32, %c0_i32_0 : i32, i32
  }
  func.func @transform_16(%arg0: i32) -> (i32, i32) {
    %c0_i32 = arith.constant 0 : i32
    %c0_i32_0 = arith.constant 0 : i32
    %c0_i32_1 = arith.constant 0 : i32
    return %c0_i32, %c0_i32_0 : i32, i32
  }
}

module attributes {stable_mosaic.version = 11 : i64} {
  func.func @_heads_kernel(%arg0: i32, %arg1: memref<2x10x32xf32, #tpu.memory_space<vmem>>, %arg2: memref<1x32xf32, #tpu.memory_space<vmem>>, %arg3: memref<1x32xf32, #tpu.memory_space<vmem>>, %arg4: memref<1x32xf32, #tpu.memory_space<vmem>>, %arg5: memref<1x32xf32, #tpu.memory_space<vmem>>, %arg6: memref<4x32xf32, #tpu.memory_space<vmem>>, %arg7: memref<32x32xf32, #tpu.memory_space<vmem>>, %arg8: memref<2x2xf32, #tpu.memory_space<vmem>>, %arg9: memref<32x34xf32, #tpu.memory_space<vmem>>, %arg10: memref<1x34xf32, #tpu.memory_space<vmem>>, %arg11: memref<32x32xf32, #tpu.memory_space<vmem>>, %arg12: memref<1x32xf32, #tpu.memory_space<vmem>>, %arg13: memref<32x32xf32, #tpu.memory_space<vmem>>, %arg14: memref<1x32xf32, #tpu.memory_space<vmem>>, %arg15: memref<32x4xf32, #tpu.memory_space<vmem>>, %arg16: memref<1x4xf32, #tpu.memory_space<vmem>>, %arg17: memref<4x4xf32, #tpu.memory_space<vmem>>, %arg18: memref<2x4x2xf32, #tpu.memory_space<vmem>>, %arg19: memref<2x4x4xf32, #tpu.memory_space<vmem>>, %arg20: memref<1x1xf32, #tpu.memory_space<vmem>>, %arg21: memref<8x32xf32, #tpu.memory_space<vmem>>) attributes {dimension_semantics = [#tpu.dimension_semantics<arbitrary>], iteration_bounds = array<i64: 1>, scalar_prefetch = 0 : i64, scratch_operands = 1 : i64, tpu.core_type = #tpu.core_type<tc>, window_params = [{pipeline_mode = #tpu.pipeline_mode<synchronous>, transform_indices = @transform_0, window_bounds = array<i64: 2, 10, 32>}, {pipeline_mode = #tpu.pipeline_mode<synchronous>, transform_indices = @transform_1, window_bounds = array<i64: 1, 32>}, {pipeline_mode = #tpu.pipeline_mode<synchronous>, transform_indices = @transform_2, window_bounds = array<i64: 1, 32>}, {pipeline_mode = #tpu.pipeline_mode<synchronous>, transform_indices = @transform_3, window_bounds = array<i64: 1, 32>}, {pipeline_mode = #tpu.pipeline_mode<synchronous>, transform_indices = @transform_4, window_bounds = array<i64: 1, 32>}, {pipeline_mode = #tpu.pipeline_mode<synchronous>, transform_indices = @transform_5, window_bounds = array<i64: 4, 32>}, {pipeline_mode = #tpu.pipeline_mode<synchronous>, transform_indices = @transform_6, window_bounds = array<i64: 32, 32>}, {pipeline_mode = #tpu.pipeline_mode<synchronous>, transform_indices = @transform_7, window_bounds = array<i64: 2, 2>}, {pipeline_mode = #tpu.pipeline_mode<synchronous>, transform_indices = @transform_8, window_bounds = array<i64: 32, 34>}, {pipeline_mode = #tpu.pipeline_mode<synchronous>, transform_indices = @transform_9, window_bounds = array<i64: 1, 34>}, {pipeline_mode = #tpu.pipeline_mode<synchronous>, transform_indices = @transform_10, window_bounds = array<i64: 32, 32>}, {pipeline_mode = #tpu.pipeline_mode<synchronous>, transform_indices = @transform_11, window_bounds = array<i64: 1, 32>}, {pipeline_mode = #tpu.pipeline_mode<synchronous>, transform_indices = @transform_12, window_bounds = array<i64: 32, 32>}, {pipeline_mode = #tpu.pipeline_mode<synchronous>, transform_indices = @transform_13, window_bounds = array<i64: 1, 32>}, {pipeline_mode = #tpu.pipeline_mode<synchronous>, transform_indices = @transform_14, window_bounds = array<i64: 32, 4>}, {pipeline_mode = #tpu.pipeline_mode<synchronous>, transform_indices = @transform_15, window_bounds = array<i64: 1, 4>}, {pipeline_mode = #tpu.pipeline_mode<synchronous>, transform_indices = @transform_16, window_bounds = array<i64: 4, 4>}, {pipeline_mode = #tpu.pipeline_mode<synchronous>, transform_indices = @transform_17, window_bounds = array<i64: 2, 4, 2>}, {pipeline_mode = #tpu.pipeline_mode<synchronous>, transform_indices = @transform_18, window_bounds = array<i64: 2, 4, 4>}, {pipeline_mode = #tpu.pipeline_mode<synchronous>, transform_indices = @transform_19, window_bounds = array<i64: 1, 1>}]} {
    %c0 = arith.constant 0 : index
    %c0_0 = arith.constant 0 : index
    %c0_1 = arith.constant 0 : index
    %0 = vector.load %arg1[%c0, %c0_0, %c0_1] : memref<2x10x32xf32, #tpu.memory_space<vmem>>, vector<1x10x32xf32>
    %1 = vector.shape_cast %0 : vector<1x10x32xf32> to vector<10x32xf32>
    %c1 = arith.constant 1 : index
    %c0_2 = arith.constant 0 : index
    %c0_3 = arith.constant 0 : index
    %2 = vector.load %arg1[%c1, %c0_2, %c0_3] : memref<2x10x32xf32, #tpu.memory_space<vmem>>, vector<1x10x32xf32>
    %3 = vector.shape_cast %2 : vector<1x10x32xf32> to vector<10x32xf32>
    %c0_4 = arith.constant 0 : index
    %c0_5 = arith.constant 0 : index
    %4 = vector.load %arg2[%c0_4, %c0_5] : memref<1x32xf32, #tpu.memory_space<vmem>>, vector<1x32xf32>
    %c0_6 = arith.constant 0 : index
    %c0_7 = arith.constant 0 : index
    %5 = vector.load %arg3[%c0_6, %c0_7] : memref<1x32xf32, #tpu.memory_space<vmem>>, vector<1x32xf32>
    %cst = arith.constant dense<0.000000e+00> : vector<10xf32>
    %6 = vector.multi_reduction <add>, %1, %cst [1] : vector<10x32xf32> to vector<10xf32>
    %7 = vector.shape_cast %6 : vector<10xf32> to vector<10x1xf32>
    %cst_8 = arith.constant 3.200000e+01 : f32
    %8 = vector.broadcast %cst_8 : f32 to vector<10x1xf32>
    %9 = arith.divf %7, %8 : vector<10x1xf32>
    %10 = vector.broadcast %9 : vector<10x1xf32> to vector<10x32xf32>
    %11 = arith.subf %1, %10 : vector<10x32xf32>
    %12 = arith.mulf %11, %11 : vector<10x32xf32>
    %cst_9 = arith.constant dense<0.000000e+00> : vector<10xf32>
    %13 = vector.multi_reduction <add>, %12, %cst_9 [1] : vector<10x32xf32> to vector<10xf32>
    %14 = vector.shape_cast %13 : vector<10xf32> to vector<10x1xf32>
    %cst_10 = arith.constant 3.200000e+01 : f32
    %15 = vector.broadcast %cst_10 : f32 to vector<10x1xf32>
    %16 = arith.divf %14, %15 : vector<10x1xf32>
    %17 = vector.broadcast %9 : vector<10x1xf32> to vector<10x32xf32>
    %18 = arith.subf %1, %17 : vector<10x32xf32>
    %cst_11 = arith.constant 9.99999974E-6 : f32
    %19 = vector.broadcast %cst_11 : f32 to vector<10x1xf32>
    %20 = arith.addf %16, %19 : vector<10x1xf32>
    %21 = math.rsqrt %20 : vector<10x1xf32>
    %22 = vector.broadcast %21 : vector<10x1xf32> to vector<10x32xf32>
    %23 = arith.mulf %18, %22 : vector<10x32xf32>
    %24 = vector.broadcast %4 : vector<1x32xf32> to vector<10x32xf32>
    %25 = arith.mulf %23, %24 : vector<10x32xf32>
    %26 = vector.broadcast %5 : vector<1x32xf32> to vector<10x32xf32>
    %27 = arith.addf %25, %26 : vector<10x32xf32>
    %28 = vector.extract_strided_slice %27 {offsets = [0, 0], sizes = [1, 32], strides = [1, 1]} : vector<10x32xf32> to vector<1x32xf32>
    %29 = vector.extract_strided_slice %27 {offsets = [1, 0], sizes = [4, 32], strides = [1, 1]} : vector<10x32xf32> to vector<4x32xf32>
    %30 = vector.broadcast %28 : vector<1x32xf32> to vector<4x32xf32>
    %31 = arith.mulf %29, %30 : vector<4x32xf32>
    %c0_12 = arith.constant 0 : index
    %c0_13 = arith.constant 0 : index
    %32 = vector.load %arg21[%c0_12, %c0_13] : memref<8x32xf32, #tpu.memory_space<vmem>>, vector<4x32xf32>
    tpu.vector_store %arg21[%c0_12, %c0_13], %31 {strides = array<i32>} : memref<8x32xf32, #tpu.memory_space<vmem>>, vector<4x32xf32>,
    %33 = vector.extract_strided_slice %27 {offsets = [5, 0], sizes = [1, 32], strides = [1, 1]} : vector<10x32xf32> to vector<1x32xf32>
    %34 = vector.extract_strided_slice %27 {offsets = [6, 0], sizes = [4, 32], strides = [1, 1]} : vector<10x32xf32> to vector<4x32xf32>
    %35 = vector.broadcast %33 : vector<1x32xf32> to vector<4x32xf32>
    %36 = arith.mulf %34, %35 : vector<4x32xf32>
    %c4 = arith.constant 4 : index
    %c0_14 = arith.constant 0 : index
    %37 = vector.load %arg21[%c4, %c0_14] : memref<8x32xf32, #tpu.memory_space<vmem>>, vector<4x32xf32>
    tpu.vector_store %arg21[%c4, %c0_14], %36 {strides = array<i32>} : memref<8x32xf32, #tpu.memory_space<vmem>>, vector<4x32xf32>,
    %c0_15 = arith.constant 0 : index
    %c0_16 = arith.constant 0 : index
    %38 = vector.load %arg21[%c0_15, %c0_16] : memref<8x32xf32, #tpu.memory_space<vmem>>, vector<8x32xf32>
    %c0_17 = arith.constant 0 : index
    %c0_18 = arith.constant 0 : index
    %39 = vector.load %arg4[%c0_17, %c0_18] : memref<1x32xf32, #tpu.memory_space<vmem>>, vector<1x32xf32>
    %c0_19 = arith.constant 0 : index
    %c0_20 = arith.constant 0 : index
    %40 = vector.load %arg5[%c0_19, %c0_20] : memref<1x32xf32, #tpu.memory_space<vmem>>, vector<1x32xf32>
    %cst_21 = arith.constant dense<0.000000e+00> : vector<8xf32>
    %41 = vector.multi_reduction <add>, %38, %cst_21 [1] : vector<8x32xf32> to vector<8xf32>
    %42 = vector.shape_cast %41 : vector<8xf32> to vector<8x1xf32>
    %cst_22 = arith.constant 3.200000e+01 : f32
    %43 = vector.broadcast %cst_22 : f32 to vector<8x1xf32>
    %44 = arith.divf %42, %43 : vector<8x1xf32>
    %45 = vector.broadcast %44 : vector<8x1xf32> to vector<8x32xf32>
    %46 = arith.subf %38, %45 : vector<8x32xf32>
    %47 = arith.mulf %46, %46 : vector<8x32xf32>
    %cst_23 = arith.constant dense<0.000000e+00> : vector<8xf32>
    %48 = vector.multi_reduction <add>, %47, %cst_23 [1] : vector<8x32xf32> to vector<8xf32>
    %49 = vector.shape_cast %48 : vector<8xf32> to vector<8x1xf32>
    %cst_24 = arith.constant 3.200000e+01 : f32
    %50 = vector.broadcast %cst_24 : f32 to vector<8x1xf32>
    %51 = arith.divf %49, %50 : vector<8x1xf32>
    %52 = vector.broadcast %44 : vector<8x1xf32> to vector<8x32xf32>
    %53 = arith.subf %38, %52 : vector<8x32xf32>
    %cst_25 = arith.constant 9.99999974E-6 : f32
    %54 = vector.broadcast %cst_25 : f32 to vector<8x1xf32>
    %55 = arith.addf %51, %54 : vector<8x1xf32>
    %56 = math.rsqrt %55 : vector<8x1xf32>
    %57 = vector.broadcast %56 : vector<8x1xf32> to vector<8x32xf32>
    %58 = arith.mulf %53, %57 : vector<8x32xf32>
    %59 = vector.broadcast %39 : vector<1x32xf32> to vector<8x32xf32>
    %60 = arith.mulf %58, %59 : vector<8x32xf32>
    %61 = vector.broadcast %40 : vector<1x32xf32> to vector<8x32xf32>
    %62 = arith.addf %60, %61 : vector<8x32xf32>
    %c0_26 = arith.constant 0 : index
    %c0_27 = arith.constant 0 : index
    %63 = vector.load %arg6[%c0_26, %c0_27] : memref<4x32xf32, #tpu.memory_space<vmem>>, vector<4x32xf32>
    %c0_28 = arith.constant 0 : index
    %c0_29 = arith.constant 0 : index
    %64 = vector.load %arg7[%c0_28, %c0_29] : memref<32x32xf32, #tpu.memory_space<vmem>>, vector<32x32xf32>
    %cst_30 = arith.constant dense<0.000000e+00> : vector<4x32xf32>
    %65 = tpu.matmul %63, %64, %cst_30 {dimension_numbers = #tpu.dot_dimension_numbers<[1], [0], [0], [1], [0, 0, 1, 1], [], []>} : vector<4x32xf32>, vector<32x32xf32>, vector<4x32xf32> -> vector<4x32xf32>
    %66 = arith.mulf %65, %65 : vector<4x32xf32>
    %cst_31 = arith.constant dense<0.000000e+00> : vector<4xf32>
    %67 = vector.multi_reduction <add>, %66, %cst_31 [1] : vector<4x32xf32> to vector<4xf32>
    %68 = vector.shape_cast %67 : vector<4xf32> to vector<4x1xf32>
    %69 = math.sqrt %68 : vector<4x1xf32>
    %cst_32 = arith.constant 9.99999997E-7 : f32
    %70 = vector.broadcast %cst_32 : f32 to vector<4x1xf32>
    %71 = arith.addf %69, %70 : vector<4x1xf32>
    %72 = vector.broadcast %71 : vector<4x1xf32> to vector<4x32xf32>
    %73 = arith.divf %65, %72 : vector<4x32xf32>
    %c0_33 = arith.constant 0 : index
    %c0_34 = arith.constant 0 : index
    %74 = vector.load %arg8[%c0_33, %c0_34] : memref<2x2xf32, #tpu.memory_space<vmem>>, vector<2x2xf32>
    %c0_35 = arith.constant 0 : index
    %c0_36 = arith.constant 0 : index
    %75 = vector.load %arg9[%c0_35, %c0_36] : memref<32x34xf32, #tpu.memory_space<vmem>>, vector<32x34xf32>
    %cst_37 = arith.constant dense<0.000000e+00> : vector<8x34xf32>
    %76 = tpu.matmul %62, %75, %cst_37 {dimension_numbers = #tpu.dot_dimension_numbers<[1], [0], [0], [1], [0, 0, 1, 1], [], []>} : vector<8x32xf32>, vector<32x34xf32>, vector<8x34xf32> -> vector<8x34xf32>
    %c0_38 = arith.constant 0 : index
    %c0_39 = arith.constant 0 : index
    %77 = vector.load %arg10[%c0_38, %c0_39] : memref<1x34xf32, #tpu.memory_space<vmem>>, vector<1x34xf32>
    %78 = vector.broadcast %77 : vector<1x34xf32> to vector<8x34xf32>
    %79 = arith.addf %76, %78 : vector<8x34xf32>
    %80 = vector.extract_strided_slice %79 {offsets = [0, 0], sizes = [8, 32], strides = [1, 1]} : vector<8x34xf32> to vector<8x32xf32>
    %81 = vector.extract_strided_slice %79 {offsets = [0, 32], sizes = [8, 1], strides = [1, 1]} : vector<8x34xf32> to vector<8x1xf32>
    %82 = vector.extract_strided_slice %79 {offsets = [0, 33], sizes = [8, 1], strides = [1, 1]} : vector<8x34xf32> to vector<8x1xf32>
    %83 = arith.mulf %80, %80 : vector<8x32xf32>
    %cst_40 = arith.constant dense<0.000000e+00> : vector<8xf32>
    %84 = vector.multi_reduction <add>, %83, %cst_40 [1] : vector<8x32xf32> to vector<8xf32>
    %85 = vector.shape_cast %84 : vector<8xf32> to vector<8x1xf32>
    %86 = math.sqrt %85 : vector<8x1xf32>
    %cst_41 = arith.constant 9.99999997E-7 : f32
    %87 = vector.broadcast %cst_41 : f32 to vector<8x1xf32>
    %88 = arith.addf %86, %87 : vector<8x1xf32>
    %89 = vector.broadcast %88 : vector<8x1xf32> to vector<8x32xf32>
    %90 = arith.divf %80, %89 : vector<8x32xf32>
    %91 = vector.extract_strided_slice %90 {offsets = [0, 0], sizes = [4, 32], strides = [1, 1]} : vector<8x32xf32> to vector<4x32xf32>
    %92 = vector.extract_strided_slice %73 {offsets = [0, 0], sizes = [2, 32], strides = [1, 1]} : vector<4x32xf32> to vector<2x32xf32>
    %cst_42 = arith.constant dense<0.000000e+00> : vector<4x2xf32>
    %93 = tpu.matmul %91, %92, %cst_42 {dimension_numbers = #tpu.dot_dimension_numbers<[1], [1], [0], [0], [0, 0, 1, 0], [], []>} : vector<4x32xf32>, vector<2x32xf32>, vector<4x2xf32> -> vector<4x2xf32>
    %94 = vector.extract_strided_slice %82 {offsets = [0, 0], sizes = [4, 1], strides = [1, 1]} : vector<8x1xf32> to vector<4x1xf32>
    %cst_43 = arith.constant 0.000000e+00 : f32
    %95 = vector.broadcast %cst_43 : f32 to vector<4x1xf32>
    %96 = arith.cmpf ogt, %94, %95 : vector<4x1xf32>
    %97 = math.exp %94 : vector<4x1xf32>
    %cst_44 = arith.constant 1.000000e+00 : f32
    %98 = vector.broadcast %cst_44 : f32 to vector<4x1xf32>
    %99 = arith.subf %97, %98 : vector<4x1xf32>
    %100 = arith.select %96, %94, %99 : vector<4x1xi1>, vector<4x1xf32>
    %cst_45 = arith.constant 1.000000e+00 : f32
    %101 = vector.broadcast %cst_45 : f32 to vector<4x1xf32>
    %102 = arith.addf %100, %101 : vector<4x1xf32>
    %103 = vector.extract_strided_slice %81 {offsets = [0, 0], sizes = [4, 1], strides = [1, 1]} : vector<8x1xf32> to vector<4x1xf32>
    %104 = vector.broadcast %103 : vector<4x1xf32> to vector<4x2xf32>
    %105 = arith.addf %93, %104 : vector<4x2xf32>
    %106 = vector.broadcast %102 : vector<4x1xf32> to vector<4x2xf32>
    %107 = arith.mulf %105, %106 : vector<4x2xf32>
    %108 = vector.extract_strided_slice %74 {offsets = [0, 0], sizes = [1, 2], strides = [1, 1]} : vector<2x2xf32> to vector<1x2xf32>
    %cst_46 = arith.constant 0.000000e+00 : f32
    %109 = vector.broadcast %cst_46 : f32 to vector<1x2xf32>
    %110 = arith.cmpf ogt, %108, %109 : vector<1x2xf32>
    %cst_47 = arith.constant -3.40282347E+38 : f32
    %111 = vector.shape_cast %110 : vector<1x2xi1> to vector<1x2xi1>
    %112 = vector.broadcast %111 : vector<1x2xi1> to vector<4x2xi1>
    %113 = vector.broadcast %cst_47 : f32 to vector<4x2xf32>
    %114 = arith.select %112, %107, %113 : vector<4x2xi1>, vector<4x2xf32>
    %c0_48 = arith.constant 0 : index
    %c0_49 = arith.constant 0 : index
    %c0_50 = arith.constant 0 : index
    %115 = vector.load %arg18[%c0_48, %c0_49, %c0_50] : memref<2x4x2xf32, #tpu.memory_space<vmem>>, vector<1x4x2xf32>
    %116 = vector.shape_cast %115 : vector<1x4x2xf32> to vector<4x2xf32>
    %117 = vector.shape_cast %114 : vector<4x2xf32> to vector<1x4x2xf32>
    tpu.vector_store %arg18[%c0_48, %c0_49, %c0_50], %117 {strides = array<i32>} : memref<2x4x2xf32, #tpu.memory_space<vmem>>, vector<1x4x2xf32>,
    %118 = vector.extract_strided_slice %90 {offsets = [4, 0], sizes = [4, 32], strides = [1, 1]} : vector<8x32xf32> to vector<4x32xf32>
    %119 = vector.extract_strided_slice %73 {offsets = [2, 0], sizes = [2, 32], strides = [1, 1]} : vector<4x32xf32> to vector<2x32xf32>
    %cst_51 = arith.constant dense<0.000000e+00> : vector<4x2xf32>
    %120 = tpu.matmul %118, %119, %cst_51 {dimension_numbers = #tpu.dot_dimension_numbers<[1], [1], [0], [0], [0, 0, 1, 0], [], []>} : vector<4x32xf32>, vector<2x32xf32>, vector<4x2xf32> -> vector<4x2xf32>
    %121 = vector.extract_strided_slice %82 {offsets = [4, 0], sizes = [4, 1], strides = [1, 1]} : vector<8x1xf32> to vector<4x1xf32>
    %cst_52 = arith.constant 0.000000e+00 : f32
    %122 = vector.broadcast %cst_52 : f32 to vector<4x1xf32>
    %123 = arith.cmpf ogt, %121, %122 : vector<4x1xf32>
    %124 = math.exp %121 : vector<4x1xf32>
    %cst_53 = arith.constant 1.000000e+00 : f32
    %125 = vector.broadcast %cst_53 : f32 to vector<4x1xf32>
    %126 = arith.subf %124, %125 : vector<4x1xf32>
    %127 = arith.select %123, %121, %126 : vector<4x1xi1>, vector<4x1xf32>
    %cst_54 = arith.constant 1.000000e+00 : f32
    %128 = vector.broadcast %cst_54 : f32 to vector<4x1xf32>
    %129 = arith.addf %127, %128 : vector<4x1xf32>
    %130 = vector.extract_strided_slice %81 {offsets = [4, 0], sizes = [4, 1], strides = [1, 1]} : vector<8x1xf32> to vector<4x1xf32>
    %131 = vector.broadcast %130 : vector<4x1xf32> to vector<4x2xf32>
    %132 = arith.addf %120, %131 : vector<4x2xf32>
    %133 = vector.broadcast %129 : vector<4x1xf32> to vector<4x2xf32>
    %134 = arith.mulf %132, %133 : vector<4x2xf32>
    %135 = vector.extract_strided_slice %74 {offsets = [1, 0], sizes = [1, 2], strides = [1, 1]} : vector<2x2xf32> to vector<1x2xf32>
    %cst_55 = arith.constant 0.000000e+00 : f32
    %136 = vector.broadcast %cst_55 : f32 to vector<1x2xf32>
    %137 = arith.cmpf ogt, %135, %136 : vector<1x2xf32>
    %cst_56 = arith.constant -3.40282347E+38 : f32
    %138 = vector.shape_cast %137 : vector<1x2xi1> to vector<1x2xi1>
    %139 = vector.broadcast %138 : vector<1x2xi1> to vector<4x2xi1>
    %140 = vector.broadcast %cst_56 : f32 to vector<4x2xf32>
    %141 = arith.select %139, %134, %140 : vector<4x2xi1>, vector<4x2xf32>
    %c1_57 = arith.constant 1 : index
    %c0_58 = arith.constant 0 : index
    %c0_59 = arith.constant 0 : index
    %142 = vector.load %arg18[%c1_57, %c0_58, %c0_59] : memref<2x4x2xf32, #tpu.memory_space<vmem>>, vector<1x4x2xf32>
    %143 = vector.shape_cast %142 : vector<1x4x2xf32> to vector<4x2xf32>
    %144 = vector.shape_cast %141 : vector<4x2xf32> to vector<1x4x2xf32>
    tpu.vector_store %arg18[%c1_57, %c0_58, %c0_59], %144 {strides = array<i32>} : memref<2x4x2xf32, #tpu.memory_space<vmem>>, vector<1x4x2xf32>,
    %c0_60 = arith.constant 0 : index
    %c0_61 = arith.constant 0 : index
    %145 = vector.load %arg11[%c0_60, %c0_61] : memref<32x32xf32, #tpu.memory_space<vmem>>, vector<32x32xf32>
    %cst_62 = arith.constant dense<0.000000e+00> : vector<8x32xf32>
    %146 = tpu.matmul %62, %145, %cst_62 {dimension_numbers = #tpu.dot_dimension_numbers<[1], [0], [0], [1], [0, 0, 1, 1], [], []>} : vector<8x32xf32>, vector<32x32xf32>, vector<8x32xf32> -> vector<8x32xf32>
    %c0_63 = arith.constant 0 : index
    %c0_64 = arith.constant 0 : index
    %147 = vector.load %arg12[%c0_63, %c0_64] : memref<1x32xf32, #tpu.memory_space<vmem>>, vector<1x32xf32>
    %148 = vector.broadcast %147 : vector<1x32xf32> to vector<8x32xf32>
    %149 = arith.addf %146, %148 : vector<8x32xf32>
    %150 = arith.mulf %149, %149 : vector<8x32xf32>
    %151 = arith.mulf %149, %150 : vector<8x32xf32>
    %cst_65 = arith.constant 4.471500e-02 : f32
    %152 = vector.broadcast %cst_65 : f32 to vector<8x32xf32>
    %153 = arith.mulf %152, %151 : vector<8x32xf32>
    %154 = arith.addf %149, %153 : vector<8x32xf32>
    %cst_66 = arith.constant 0.797884583 : f32
    %155 = vector.broadcast %cst_66 : f32 to vector<8x32xf32>
    %156 = arith.mulf %155, %154 : vector<8x32xf32>
    %157 = math.tanh %156 : vector<8x32xf32>
    %cst_67 = arith.constant 1.000000e+00 : f32
    %158 = vector.broadcast %cst_67 : f32 to vector<8x32xf32>
    %159 = arith.addf %158, %157 : vector<8x32xf32>
    %cst_68 = arith.constant 5.000000e-01 : f32
    %160 = vector.broadcast %cst_68 : f32 to vector<8x32xf32>
    %161 = arith.mulf %160, %159 : vector<8x32xf32>
    %162 = arith.mulf %149, %161 : vector<8x32xf32>
    %c0_69 = arith.constant 0 : index
    %c0_70 = arith.constant 0 : index
    %163 = vector.load %arg13[%c0_69, %c0_70] : memref<32x32xf32, #tpu.memory_space<vmem>>, vector<32x32xf32>
    %cst_71 = arith.constant dense<0.000000e+00> : vector<8x32xf32>
    %164 = tpu.matmul %162, %163, %cst_71 {dimension_numbers = #tpu.dot_dimension_numbers<[1], [0], [0], [1], [0, 0, 1, 1], [], []>} : vector<8x32xf32>, vector<32x32xf32>, vector<8x32xf32> -> vector<8x32xf32>
    %c0_72 = arith.constant 0 : index
    %c0_73 = arith.constant 0 : index
    %165 = vector.load %arg14[%c0_72, %c0_73] : memref<1x32xf32, #tpu.memory_space<vmem>>, vector<1x32xf32>
    %166 = vector.broadcast %165 : vector<1x32xf32> to vector<8x32xf32>
    %167 = arith.addf %164, %166 : vector<8x32xf32>
    %168 = arith.mulf %167, %167 : vector<8x32xf32>
    %169 = arith.mulf %167, %168 : vector<8x32xf32>
    %cst_74 = arith.constant 4.471500e-02 : f32
    %170 = vector.broadcast %cst_74 : f32 to vector<8x32xf32>
    %171 = arith.mulf %170, %169 : vector<8x32xf32>
    %172 = arith.addf %167, %171 : vector<8x32xf32>
    %cst_75 = arith.constant 0.797884583 : f32
    %173 = vector.broadcast %cst_75 : f32 to vector<8x32xf32>
    %174 = arith.mulf %173, %172 : vector<8x32xf32>
    %175 = math.tanh %174 : vector<8x32xf32>
    %cst_76 = arith.constant 1.000000e+00 : f32
    %176 = vector.broadcast %cst_76 : f32 to vector<8x32xf32>
    %177 = arith.addf %176, %175 : vector<8x32xf32>
    %cst_77 = arith.constant 5.000000e-01 : f32
    %178 = vector.broadcast %cst_77 : f32 to vector<8x32xf32>
    %179 = arith.mulf %178, %177 : vector<8x32xf32>
    %180 = arith.mulf %167, %179 : vector<8x32xf32>
    %c0_78 = arith.constant 0 : index
    %c0_79 = arith.constant 0 : index
    %181 = vector.load %arg15[%c0_78, %c0_79] : memref<32x4xf32, #tpu.memory_space<vmem>>, vector<32x4xf32>
    %cst_80 = arith.constant dense<0.000000e+00> : vector<8x4xf32>
    %182 = tpu.matmul %180, %181, %cst_80 {dimension_numbers = #tpu.dot_dimension_numbers<[1], [0], [0], [1], [0, 0, 1, 1], [], []>} : vector<8x32xf32>, vector<32x4xf32>, vector<8x4xf32> -> vector<8x4xf32>
    %c0_81 = arith.constant 0 : index
    %c0_82 = arith.constant 0 : index
    %183 = vector.load %arg16[%c0_81, %c0_82] : memref<1x4xf32, #tpu.memory_space<vmem>>, vector<1x4xf32>
    %184 = vector.broadcast %183 : vector<1x4xf32> to vector<8x4xf32>
    %185 = arith.addf %182, %184 : vector<8x4xf32>
    %c0_83 = arith.constant 0 : index
    %c0_84 = arith.constant 0 : index
    %186 = vector.load %arg17[%c0_83, %c0_84] : memref<4x4xf32, #tpu.memory_space<vmem>>, vector<4x4xf32>
    %187 = vector.extract_strided_slice %185 {offsets = [0, 0], sizes = [4, 4], strides = [1, 1]} : vector<8x4xf32> to vector<4x4xf32>
    %188 = arith.addf %187, %186 : vector<4x4xf32>
    %189 = arith.negf %188 : vector<4x4xf32>
    %190 = math.exp %189 : vector<4x4xf32>
    %cst_85 = arith.constant 1.000000e+00 : f32
    %191 = vector.broadcast %cst_85 : f32 to vector<4x4xf32>
    %192 = arith.addf %191, %190 : vector<4x4xf32>
    %193 = arith.divf %191, %192 : vector<4x4xf32>
    %c0_86 = arith.constant 0 : index
    %c0_87 = arith.constant 0 : index
    %c0_88 = arith.constant 0 : index
    %194 = vector.load %arg19[%c0_86, %c0_87, %c0_88] : memref<2x4x4xf32, #tpu.memory_space<vmem>>, vector<1x4x4xf32>
    %195 = vector.shape_cast %194 : vector<1x4x4xf32> to vector<4x4xf32>
    %196 = vector.shape_cast %193 : vector<4x4xf32> to vector<1x4x4xf32>
    tpu.vector_store %arg19[%c0_86, %c0_87, %c0_88], %196 {strides = array<i32>} : memref<2x4x4xf32, #tpu.memory_space<vmem>>, vector<1x4x4xf32>,
    %197 = vector.extract_strided_slice %185 {offsets = [4, 0], sizes = [4, 4], strides = [1, 1]} : vector<8x4xf32> to vector<4x4xf32>
    %198 = arith.addf %197, %186 : vector<4x4xf32>
    %199 = arith.negf %198 : vector<4x4xf32>
    %200 = math.exp %199 : vector<4x4xf32>
    %cst_89 = arith.constant 1.000000e+00 : f32
    %201 = vector.broadcast %cst_89 : f32 to vector<4x4xf32>
    %202 = arith.addf %201, %200 : vector<4x4xf32>
    %203 = arith.divf %201, %202 : vector<4x4xf32>
    %c1_90 = arith.constant 1 : index
    %c0_91 = arith.constant 0 : index
    %c0_92 = arith.constant 0 : index
    %204 = vector.load %arg19[%c1_90, %c0_91, %c0_92] : memref<2x4x4xf32, #tpu.memory_space<vmem>>, vector<1x4x4xf32>
    %205 = vector.shape_cast %204 : vector<1x4x4xf32> to vector<4x4xf32>
    %206 = vector.shape_cast %203 : vector<4x4xf32> to vector<1x4x4xf32>
    tpu.vector_store %arg19[%c1_90, %c0_91, %c0_92], %206 {strides = array<i32>} : memref<2x4x4xf32, #tpu.memory_space<vmem>>, vector<1x4x4xf32>,
    %cst_93 = arith.constant 0.000000e+00 : f32
    %207 = vector.broadcast %cst_93 : f32 to vector<1x1xf32>
    %208 = vector.extract_strided_slice %1 {offsets = [1, 0], sizes = [4, 32], strides = [1, 1]} : vector<10x32xf32> to vector<4x32xf32>
    %cst_94 = arith.constant dense<0.000000e+00> : vector<32xf32>
    %209 = vector.multi_reduction <add>, %208, %cst_94 [0] : vector<4x32xf32> to vector<32xf32>
    %210 = vector.shape_cast %209 : vector<32xf32> to vector<1x32xf32>
    %cst_95 = arith.constant 4.000000e+00 : f32
    %211 = vector.broadcast %cst_95 : f32 to vector<1x32xf32>
    %212 = arith.divf %210, %211 : vector<1x32xf32>
    %213 = vector.extract_strided_slice %3 {offsets = [1, 0], sizes = [4, 32], strides = [1, 1]} : vector<10x32xf32> to vector<4x32xf32>
    %cst_96 = arith.constant dense<0.000000e+00> : vector<32xf32>
    %214 = vector.multi_reduction <add>, %213, %cst_96 [0] : vector<4x32xf32> to vector<32xf32>
    %215 = vector.shape_cast %214 : vector<32xf32> to vector<1x32xf32>
    %cst_97 = arith.constant 4.000000e+00 : f32
    %216 = vector.broadcast %cst_97 : f32 to vector<1x32xf32>
    %217 = arith.divf %215, %216 : vector<1x32xf32>
    %218 = arith.mulf %212, %217 : vector<1x32xf32>
    %cst_98 = arith.constant dense<0.000000e+00> : vector<1xf32>
    %219 = vector.multi_reduction <add>, %218, %cst_98 [1] : vector<1x32xf32> to vector<1xf32>
    %220 = vector.shape_cast %219 : vector<1xf32> to vector<1x1xf32>
    %221 = arith.mulf %212, %212 : vector<1x32xf32>
    %cst_99 = arith.constant dense<0.000000e+00> : vector<1xf32>
    %222 = vector.multi_reduction <add>, %221, %cst_99 [1] : vector<1x32xf32> to vector<1xf32>
    %223 = vector.shape_cast %222 : vector<1xf32> to vector<1x1xf32>
    %224 = math.sqrt %223 : vector<1x1xf32>
    %225 = arith.mulf %217, %217 : vector<1x32xf32>
    %cst_100 = arith.constant dense<0.000000e+00> : vector<1xf32>
    %226 = vector.multi_reduction <add>, %225, %cst_100 [1] : vector<1x32xf32> to vector<1xf32>
    %227 = vector.shape_cast %226 : vector<1xf32> to vector<1x1xf32>
    %228 = math.sqrt %227 : vector<1x1xf32>
    %229 = arith.mulf %224, %228 : vector<1x1xf32>
    %cst_101 = arith.constant 9.99999993E-9 : f32
    %230 = vector.broadcast %cst_101 : f32 to vector<1x1xf32>
    %231 = arith.maximumf %229, %230 : vector<1x1xf32>
    %232 = arith.divf %220, %231 : vector<1x1xf32>
    %cst_102 = arith.constant 1.000000e+00 : f32
    %233 = vector.broadcast %cst_102 : f32 to vector<1x1xf32>
    %234 = arith.subf %233, %232 : vector<1x1xf32>
    %235 = arith.addf %207, %234 : vector<1x1xf32>
    %236 = vector.extract_strided_slice %1 {offsets = [6, 0], sizes = [4, 32], strides = [1, 1]} : vector<10x32xf32> to vector<4x32xf32>
    %cst_103 = arith.constant dense<0.000000e+00> : vector<32xf32>
    %237 = vector.multi_reduction <add>, %236, %cst_103 [0] : vector<4x32xf32> to vector<32xf32>
    %238 = vector.shape_cast %237 : vector<32xf32> to vector<1x32xf32>
    %cst_104 = arith.constant 4.000000e+00 : f32
    %239 = vector.broadcast %cst_104 : f32 to vector<1x32xf32>
    %240 = arith.divf %238, %239 : vector<1x32xf32>
    %241 = vector.extract_strided_slice %3 {offsets = [6, 0], sizes = [4, 32], strides = [1, 1]} : vector<10x32xf32> to vector<4x32xf32>
    %cst_105 = arith.constant dense<0.000000e+00> : vector<32xf32>
    %242 = vector.multi_reduction <add>, %241, %cst_105 [0] : vector<4x32xf32> to vector<32xf32>
    %243 = vector.shape_cast %242 : vector<32xf32> to vector<1x32xf32>
    %cst_106 = arith.constant 4.000000e+00 : f32
    %244 = vector.broadcast %cst_106 : f32 to vector<1x32xf32>
    %245 = arith.divf %243, %244 : vector<1x32xf32>
    %246 = arith.mulf %240, %245 : vector<1x32xf32>
    %cst_107 = arith.constant dense<0.000000e+00> : vector<1xf32>
    %247 = vector.multi_reduction <add>, %246, %cst_107 [1] : vector<1x32xf32> to vector<1xf32>
    %248 = vector.shape_cast %247 : vector<1xf32> to vector<1x1xf32>
    %249 = arith.mulf %240, %240 : vector<1x32xf32>
    %cst_108 = arith.constant dense<0.000000e+00> : vector<1xf32>
    %250 = vector.multi_reduction <add>, %249, %cst_108 [1] : vector<1x32xf32> to vector<1xf32>
    %251 = vector.shape_cast %250 : vector<1xf32> to vector<1x1xf32>
    %252 = math.sqrt %251 : vector<1x1xf32>
    %253 = arith.mulf %245, %245 : vector<1x32xf32>
    %cst_109 = arith.constant dense<0.000000e+00> : vector<1xf32>
    %254 = vector.multi_reduction <add>, %253, %cst_109 [1] : vector<1x32xf32> to vector<1xf32>
    %255 = vector.shape_cast %254 : vector<1xf32> to vector<1x1xf32>
    %256 = math.sqrt %255 : vector<1x1xf32>
    %257 = arith.mulf %252, %256 : vector<1x1xf32>
    %cst_110 = arith.constant 9.99999993E-9 : f32
    %258 = vector.broadcast %cst_110 : f32 to vector<1x1xf32>
    %259 = arith.maximumf %257, %258 : vector<1x1xf32>
    %260 = arith.divf %248, %259 : vector<1x1xf32>
    %cst_111 = arith.constant 1.000000e+00 : f32
    %261 = vector.broadcast %cst_111 : f32 to vector<1x1xf32>
    %262 = arith.subf %261, %260 : vector<1x1xf32>
    %263 = arith.addf %235, %262 : vector<1x1xf32>
    %cst_112 = arith.constant 2.000000e+00 : f32
    %264 = vector.broadcast %cst_112 : f32 to vector<1x1xf32>
    %265 = arith.divf %263, %264 : vector<1x1xf32>
    %c0_113 = arith.constant 0 : index
    %c0_114 = arith.constant 0 : index
    %266 = vector.load %arg20[%c0_113, %c0_114] : memref<1x1xf32, #tpu.memory_space<vmem>>, vector<1x1xf32>
    tpu.vector_store %arg20[%c0_113, %c0_114], %265 {strides = array<i32>} : memref<1x1xf32, #tpu.memory_space<vmem>>, vector<1x1xf32>,
    return
  }
  func.func @transform_0(%arg0: i32) -> (i32, i32, i32) {
    %c0_i32 = arith.constant 0 : i32
    %c0_i32_0 = arith.constant 0 : i32
    %c0_i32_1 = arith.constant 0 : i32
    %c0_i32_2 = arith.constant 0 : i32
    return %c0_i32, %c0_i32_0, %c0_i32_1 : i32, i32, i32
  }
  func.func @transform_1(%arg0: i32) -> (i32, i32) {
    %c0_i32 = arith.constant 0 : i32
    %c0_i32_0 = arith.constant 0 : i32
    %c0_i32_1 = arith.constant 0 : i32
    return %c0_i32, %c0_i32_0 : i32, i32
  }
  func.func @transform_2(%arg0: i32) -> (i32, i32) {
    %c0_i32 = arith.constant 0 : i32
    %c0_i32_0 = arith.constant 0 : i32
    %c0_i32_1 = arith.constant 0 : i32
    return %c0_i32, %c0_i32_0 : i32, i32
  }
  func.func @transform_3(%arg0: i32) -> (i32, i32) {
    %c0_i32 = arith.constant 0 : i32
    %c0_i32_0 = arith.constant 0 : i32
    %c0_i32_1 = arith.constant 0 : i32
    return %c0_i32, %c0_i32_0 : i32, i32
  }
  func.func @transform_4(%arg0: i32) -> (i32, i32) {
    %c0_i32 = arith.constant 0 : i32
    %c0_i32_0 = arith.constant 0 : i32
    %c0_i32_1 = arith.constant 0 : i32
    return %c0_i32, %c0_i32_0 : i32, i32
  }
  func.func @transform_5(%arg0: i32) -> (i32, i32) {
    %c0_i32 = arith.constant 0 : i32
    %c0_i32_0 = arith.constant 0 : i32
    %c0_i32_1 = arith.constant 0 : i32
    return %c0_i32, %c0_i32_0 : i32, i32
  }
  func.func @transform_6(%arg0: i32) -> (i32, i32) {
    %c0_i32 = arith.constant 0 : i32
    %c0_i32_0 = arith.constant 0 : i32
    %c0_i32_1 = arith.constant 0 : i32
    return %c0_i32, %c0_i32_0 : i32, i32
  }
  func.func @transform_7(%arg0: i32) -> (i32, i32) {
    %c0_i32 = arith.constant 0 : i32
    %c0_i32_0 = arith.constant 0 : i32
    %c0_i32_1 = arith.constant 0 : i32
    return %c0_i32, %c0_i32_0 : i32, i32
  }
  func.func @transform_8(%arg0: i32) -> (i32, i32) {
    %c0_i32 = arith.constant 0 : i32
    %c0_i32_0 = arith.constant 0 : i32
    %c0_i32_1 = arith.constant 0 : i32
    return %c0_i32, %c0_i32_0 : i32, i32
  }
  func.func @transform_9(%arg0: i32) -> (i32, i32) {
    %c0_i32 = arith.constant 0 : i32
    %c0_i32_0 = arith.constant 0 : i32
    %c0_i32_1 = arith.constant 0 : i32
    return %c0_i32, %c0_i32_0 : i32, i32
  }
  func.func @transform_10(%arg0: i32) -> (i32, i32) {
    %c0_i32 = arith.constant 0 : i32
    %c0_i32_0 = arith.constant 0 : i32
    %c0_i32_1 = arith.constant 0 : i32
    return %c0_i32, %c0_i32_0 : i32, i32
  }
  func.func @transform_11(%arg0: i32) -> (i32, i32) {
    %c0_i32 = arith.constant 0 : i32
    %c0_i32_0 = arith.constant 0 : i32
    %c0_i32_1 = arith.constant 0 : i32
    return %c0_i32, %c0_i32_0 : i32, i32
  }
  func.func @transform_12(%arg0: i32) -> (i32, i32) {
    %c0_i32 = arith.constant 0 : i32
    %c0_i32_0 = arith.constant 0 : i32
    %c0_i32_1 = arith.constant 0 : i32
    return %c0_i32, %c0_i32_0 : i32, i32
  }
  func.func @transform_13(%arg0: i32) -> (i32, i32) {
    %c0_i32 = arith.constant 0 : i32
    %c0_i32_0 = arith.constant 0 : i32
    %c0_i32_1 = arith.constant 0 : i32
    return %c0_i32, %c0_i32_0 : i32, i32
  }
  func.func @transform_14(%arg0: i32) -> (i32, i32) {
    %c0_i32 = arith.constant 0 : i32
    %c0_i32_0 = arith.constant 0 : i32
    %c0_i32_1 = arith.constant 0 : i32
    return %c0_i32, %c0_i32_0 : i32, i32
  }
  func.func @transform_15(%arg0: i32) -> (i32, i32) {
    %c0_i32 = arith.constant 0 : i32
    %c0_i32_0 = arith.constant 0 : i32
    %c0_i32_1 = arith.constant 0 : i32
    return %c0_i32, %c0_i32_0 : i32, i32
  }
  func.func @transform_16(%arg0: i32) -> (i32, i32) {
    %c0_i32 = arith.constant 0 : i32
    %c0_i32_0 = arith.constant 0 : i32
    %c0_i32_1 = arith.constant 0 : i32
    return %c0_i32, %c0_i32_0 : i32, i32
  }
  func.func @transform_17(%arg0: i32) -> (i32, i32, i32) {
    %c0_i32 = arith.constant 0 : i32
    %c0_i32_0 = arith.constant 0 : i32
    %c0_i32_1 = arith.constant 0 : i32
    %c0_i32_2 = arith.constant 0 : i32
    return %c0_i32, %c0_i32_0, %c0_i32_1 : i32, i32, i32
  }
  func.func @transform_18(%arg0: i32) -> (i32, i32, i32) {
    %c0_i32 = arith.constant 0 : i32
    %c0_i32_0 = arith.constant 0 : i32
    %c0_i32_1 = arith.constant 0 : i32
    %c0_i32_2 = arith.constant 0 : i32
    return %c0_i32, %c0_i32_0, %c0_i32_1 : i32, i32, i32
  }
  func.func @transform_19(%arg0: i32) -> (i32, i32) {
    %c0_i32 = arith.constant 0 : i32
    %c0_i32_0 = arith.constant 0 : i32
    %c0_i32_1 = arith.constant 0 : i32
    return %c0_i32, %c0_i32_0 : i32, i32
  }
}

</mosaic_0001>

<bundles_post_ra>
// kernel: forward.5
= control target key start
LH: loop header
LB: loop body
LE: loop exit
PB: predicated region body
PF: predicated region fallthrough
CT: control target
= control target key end

     0   :  { %s1640_s0 = inlined_call_operand.vmem [shape: f32[2,10,32], index: 0, kind: input, shape index: {}]   ;;  %s1641_s1 = inlined_call_operand.vmem [shape: f32[1,32], index: 1, kind: input, shape index: {}]   ;;  %s1642_s2 = inlined_call_operand.vmem [shape: f32[1,32], index: 2, kind: input, shape index: {}]   ;;  %s1643_s3 = inlined_call_operand.vmem [shape: f32[1,32], index: 3, kind: input, shape index: {}]   ;;  %s1644_s4 = inlined_call_operand.vmem [shape: f32[1,32], index: 4, kind: input, shape index: {}]   ;;  %s1645_s5 = inlined_call_operand.vmem [shape: f32[4,32], index: 5, kind: input, shape index: {}]   ;;  %s1646_s6 = inlined_call_operand.vmem [shape: f32[32,32], index: 6, kind: input, shape index: {}]   ;;  %s1647_s7 = inlined_call_operand.vmem [shape: f32[2,2], index: 7, kind: input, shape index: {}]   ;;  %s1648_s8 = inlined_call_operand.vmem [shape: f32[32,34], index: 8, kind: input, shape index: {}]   ;;  %s1649_s9 = inlined_call_operand.vmem [shape: f32[1,34], index: 9, kind: input, shape index: {}]   ;;  %s1650_s10 = inlined_call_operand.vmem [shape: f32[32,32], index: 10, kind: input, shape index: {}]   ;;  %s1651_s11 = inlined_call_operand.vmem [shape: f32[1,32], index: 11, kind: input, shape index: {}]   ;;  %s1652_s12 = inlined_call_operand.vmem [shape: f32[32,32], index: 12, kind: input, shape index: {}]   ;;  %s1653_s13 = inlined_call_operand.vmem [shape: f32[1,32], index: 13, kind: input, shape index: {}]   ;;  %s1654_s14 = inlined_call_operand.vmem [shape: f32[32,4], index: 14, kind: input, shape index: {}]   ;;  %s1655_s15 = inlined_call_operand.vmem [shape: f32[1,4], index: 15, kind: input, shape index: {}]   ;;  %s1656_s16 = inlined_call_operand.vmem [shape: f32[4,4], index: 16, kind: input, shape index: {}]   ;;  %s1657_s17 = inlined_call_operand.hbm [shape: f32[2,4,2], index: 17, kind: output, shape index: {0}]   ;;  %s1658_s18 = inlined_call_operand.hbm [shape: f32[2,4,4], index: 18, kind: output, shape index: {1}]   ;;  %s1659_s19 = inlined_call_operand.hbm [shape: f32[1,1], index: 19, kind: output, shape index: {2}]  }
   0x1   :  { %1661 = sst [smem:[#allocation10_spill]] %s1640_s0 }
   0x2   :  { %1662 = sst [smem:[#allocation11_spill]] %s1641_s1 }
   0x3   :  { %1663 = sst [smem:[#allocation12_spill]] %s1642_s2 }
   0x4   :  { %1664 = sst [smem:[#allocation13_spill]] %s1643_s3 }
   0x5   :  { %25 = vsyncpa [#allocation4], 0  ;;  %s1665_s20 = sld [smem:[#allocation10_spill]]  ;;  %vm68_vm0 = vcmask 261120   ;;  %vm72_vm1 = vcmask 254976  }
   0xb   :  { %v1380_v0 = vld [vmem:[%s1665_s20] sm:$0xff]  ;;  %v1385_v1 = vld [vmem:[%s1665_s20 + $0x8] sm:$0x3] }
   0xc   :  { %v69_v2 = vsel %vm68_vm0, %v1380_v0, 0.0 }
   0xd   :  { %26 = vsyncpa [#allocation6], 0  ;;  %70 = vadd.xlane.f32.xlu0 %v69_v2  ;;  %v73_v3 = vsel %vm72_vm1, %v1385_v1, 0.0  ;;  %v160_v14 = vld [vmem:[%s1646_s6] sm:$0xff]  ;;  %v161_v15 = vld [vmem:[%s1646_s6 + $0x8] sm:$0xff]  ;;  %v1266_v17 = vmov 0.0|0.0   ;;  %v113_v29 = vlaneseq }
   0xe   :  { %v162_v16 = vld [vmem:[%s1646_s6 + $0x10] sm:$0xff]  ;;  %1112 = vmatprep.subr.bf16.mxu0 %v1266_v17  ;;  %v1113_v18 = vpack.c.bf16 %v161_v15, %v160_v14  ;;  %v163_v19 = vld [vmem:[%s1646_s6 + $0x18] sm:$0xff]  ;;  %vm1267_vm2 = vmmov 0   ;;  %v1268_v20 = vmov 0.0   ;;  %1118 = vmatprep.subr.bf16.mxu1 %v1266_v17  ;;  %v159_v22 = vld [vmem:[%s1645_s5] sm:$0xf] }
   0xf   :  { %1055 = vmatprep.mubr.msk.f32.mxu0 %vm1267_vm2, %v1268_v20  ;;  %1066 = vmatprep.mubr.msk.f32.mxu1 %vm1267_vm2, %v1268_v20  ;;  %v1116_v21 = vpack.c.bf16 %v163_v19, %v162_v16  ;;  %v1421_v30 = vshrl.u32 %v113_v29, 7  ;;  %s1666_s0 = sld [smem:[#allocation11_spill]]  ;;  %s1667_s1 = sld [smem:[#allocation12_spill]]  ;;  %vm118_vm3 = vcmask 258049   ;;  %vm126_vm4 = vcmask 261126   ;;  %v253_v55 = vld [vmem:[%s1648_s8] sm:$0xff] }
  0x10   :  { %1114 = vmatpush3.bf16.msra.mxu0 %v1113_v18  ;;  %v254_v56 = vld [vmem:[%s1648_s8 + $0x8] sm:$0xff]  ;;  %v543_v57 = vld [vmem:[%s1650_s10] sm:$0xff]  ;;  %v255_v60 = vld [vmem:[%s1648_s8 + $0x10] sm:$0xff]  ;;  %vm238_vm5 = vcmask 257024   ;;  %vm889_vm6 = vcmask 1041408   ;;  %s1668_s23 = sld [smem:[#allocation13_spill]] }
  0x11   :  { %74 = vadd.xlane.f32.xlu0 %v73_v3  ;;  %1115 = vmatprep.subr.bf16.mxu0 %v1266_v17  ;;  %v115_v35 = vsub.s32 0, %v1421_v30  ;;  %v122_v37 = vsub.s32 5, %v1421_v30  ;;  %v1119_v58 = vpack.c.bf16 %v254_v56, %v253_v55  ;;  %v544_v59 = vld [vmem:[%s1650_s10 + $0x8] sm:$0xff]  ;;  %v256_v61 = vld [vmem:[%s1648_s8 + $0x18] sm:$0xff]  ;;  %v545_v63 = vld [vmem:[%s1650_s10 + $0x10] sm:$0xff]  ;;  %s1272_s3 = smov [#allocation3]  }
  0x12   :  { %v1125_v62 = vpack.c.bf16 %v544_v59, %v543_v57  ;;  %v546_v2 = vld [vmem:[%s1650_s10 + $0x18] sm:$0xff]  ;;  %v1122_v3 = vpack.c.bf16 %v256_v61, %v255_v60  ;;  %v1482_v15 = vld [vmem:[%s1665_s20 + $0x10] sm:$0xff] }
  0x13   :  { %1120 = vmatpush3.bf16.msra.mxu1 %v1119_v58  ;;  %v846_v19 = vrot.slane %v1482_v15, 1 }
  0x14   :  { %1117 = vmatpush3.bf16.msra.mxu0 %v1116_v21  ;;  %1121 = vmatprep.subr.bf16.mxu1 %v1266_v17 }
  0x15   :  { %1124 = vmatprep.subr.bf16.mxu0 %v1266_v17  ;;  %v998_v32 = vld [vmem:[%s1666_s0] ss:$0 sm:$0xff] }
  0x16   :  { %v999_v34 = vld [vmem:[%s1667_s1] ss:$0 sm:$0xff] }
  0x17   :  { %1056 = vmatmul.mubr.msk.f32.vlgmr.msra.gmra.mrb[0].mxu0 %vm68_vm0, %v159_v22  ;;  %1123 = vmatpush3.bf16.msra.mxu1 %v1122_v3  ;;  %v848_v22 = vsel %vm238_vm5, %v846_v19, 0.0  ;;  %v1269_v3 = vmov 32  }
  0x18   :  { %1087 = vmatprep.mubr.msk.f32.mxu0 %vm1267_vm2, %v1268_v20  ;;  %1126 = vmatpush3.bf16.msra.mxu0 %v1125_v62 }
  0x19   :  { %1127 = vmatprep.subr.bf16.mxu0 %v1266_v17  ;;  %1069 = vmatprep.subr.mxu1 %v1268_v20 }
  0x1a   :  { %1153 = vset.pattern.permute.xlu0 %v1269_v3 }
  0x9a   :  { %v71_v4 = vpop.xlane.xlu0 %70 }
  0x9b   :  { %v77_v5 = vmul.f32 0.03125, %v71_v4  ;;  %v1128_v4 = vpack.c.bf16 %v546_v2, %v545_v63 }
  0x9d   :  { %v79_v6 = vsub.f32 %v1380_v0, %v77_v5  ;;  %1129 = vmatpush3.bf16.msra.mxu0 %v1128_v4  ;;  %v1270_v4 = vmov 33  }
  0x9e   :  { %v75_v7 = vpop.xlane.xlu0 %74  ;;  %1136 = vmatprep.subr.bf16.mxu0 %v1266_v17  ;;  %1154 = vset.pattern.permute.xlu1 %v1270_v4 }
  0x9f   :  { %v78_v8 = vmul.f32 0.03125, %v75_v7  ;;  %v81_v9 = vmul.f32 %v79_v6, %v79_v6 }
  0xa1   :  { %v80_v10 = vsub.f32 %v1385_v1, %v78_v8  ;;  %v83_v11 = vsel %vm68_vm0, %v81_v9, 0.0  ;;  %v890_v9 = vrot.slane %v1380_v0, 6 }
  0xa2   :  { %84 = vadd.xlane.f32.xlu1 %v83_v11  ;;  %v834_v11 = vrot.slane %v1380_v0, 1  ;;  %v849_v0 = vrot.slane %v848_v22, 4 }
  0xa3   :  { %v82_v12 = vmul.f32 %v80_v10, %v80_v10 }
  0xa5   :  { %v86_v13 = vsel %vm72_vm1, %v82_v12, 0.0 }
  0xa6   :  { %87 = vadd.xlane.f32.xlu1 %v86_v13  ;;  %v836_v13 = vsel %vm238_vm5, %v834_v11, 0.0 }
  0xa7   :  { %v837_v16 = vrot.slane %v836_v13, 4 }
  0xa9   :  { %v838_v21 = vadd.f32 %v837_v16, %v836_v13  ;;  %v1003_v16 = vld [vmem:[%s1649_s9] ss:$0 sm:$0xff] }
  0xea   :  { %v1468_v5 = vpop.f32.mrb[0].mxu0 }
  0xeb   :  { %v1057_v7 = vpop.f32.mrb[1].mxu0 }
  0xec   :  { %v903_v7 = vrot.slane %v1482_v15, 6 }
 0x12f   :  { %v85_v23 = vpop.xlane.xlu1 %84 }
 0x130   :  { %v89_v24 = vmul.f32 0.03125, %v85_v23  ;;  %v839_v23 = vrot.slane %v838_v21, 2 }
 0x132   :  { %v91_v25 = vadd.f32 1e-05, %v89_v24 }
 0x133   :  { %v88_v26 = vpop.xlane.xlu1 %87 }
 0x134   :  { %1156 = vrsqrt.f32 %v91_v25  ;;  %v90_v27 = vmul.f32 0.03125, %v88_v26  ;;  %v850_v25 = vadd.f32 %v849_v0, %v848_v22  ;;  %v840_v26 = vadd.f32 %v839_v23, %v838_v21 }
 0x136   :  { %v92_v28 = vadd.f32 1e-05, %v90_v27  ;;  %v841_v29 = vrot.slane %v840_v26, 1 }
 0x138   :  { %1158 = vrsqrt.f32 %v92_v28  ;;  %v851_v28 = vrot.slane %v850_v25, 2 }
 0x13e   :  { %v1157_v31 = vpop.eup %1156 }
 0x13f   :  { %v95_v33 = vmul.f32 %v1157_v31, %v79_v6  ;;  %v237_v6 = vmul.f32 %v1468_v5, %v1468_v5 }
 0x141   :  { %v103_v36 = vmul.f32 %v998_v32, %v95_v33  ;;  %v239_v8 = vsel %vm238_vm5, %v237_v6, 0.0  ;;  %v842_v33 = vadd.f32 %v841_v29, %v840_v26  ;;  %v997_v6 = vld [vmem:[%s1665_s20 + $0x18] sm:$0x3] }
 0x142   :  { %v1159_v38 = vpop.eup %1158 }
 0x143   :  { %v111_v39 = vadd.f32 %v999_v34, %v103_v36  ;;  %v96_v40 = vmul.f32 %v1159_v38, %v80_v10  ;;  %v891_v10 = vrot.slane %v1385_v1, 6 }
 0x145   :  { %v116_v41 = vrot.slane %v111_v39, %v115_v35  ;;  %v123_v42 = vrot.slane %v111_v39, %v122_v37  ;;  %v104_v43 = vmul.f32 %v998_v32, %v96_v40  ;;  %v892_v12 = vsel %vm889_vm6, %v890_v9, %v891_v10 }
 0x146   :  { %v894_v14 = vsel %vm238_vm5, %v892_v12, 0.0  ;;  %v852_v32 = vadd.f32 %v851_v28, %v850_v25  ;;  %v844_v37 = vmul.f32 0.25, %v842_v33 }
 0x147   :  { %v117_v44 = vmul.f32 %v116_v41, %v111_v39  ;;  %v124_v45 = vmul.f32 %v123_v42, %v111_v39  ;;  %v112_v46 = vadd.f32 %v999_v34, %v104_v43  ;;  %v895_v18 = vrot.slane %v894_v14, 4 }
 0x148   :  { %v853_v36 = vrot.slane %v852_v32, 1  ;;  %v860_v40 = vmul.f32 %v844_v37, %v844_v37 }
 0x149   :  { %119 = vst.msk [vmem:[#allocation2 - $0x1] sm:$0x1e] %vm118_vm3, %v117_v44  ;;  %v125_v47 = vmul.f32 %v123_v42, %v112_v46  ;;  %v896_v1 = vadd.f32 %v895_v18, %v894_v14 }
 0x14a   :  { %127 = vst.msk [vmem:[#allocation2 - $0x2] sm:$0xc0] %vm126_vm4, %v124_v45  ;;  %v854_v39 = vadd.f32 %v853_v36, %v852_v32  ;;  %v861_v43 = vsel %vm68_vm0, %v860_v40, 0.0 }
 0x14b   :  { %128 = vst.msk [vmem:[#allocation2 + $0x6] sm:$0x3] %vm72_vm1, %v125_v47  ;;  %v897_v24 = vrot.slane %v896_v1, 2 }
 0x14c   :  { %v855_v42 = vmul.f32 0.25, %v854_v39  ;;  %v1010_v39 = vld [vmem:[%s1651_s11] ss:$0 sm:$0xff] }
 0x14d   :  { %v898_v27 = vadd.f32 %v897_v24, %v896_v1 }
 0x14e   :  { %v856_v45 = vmul.f32 %v855_v42, %v844_v37  ;;  %v871_v23 = vmul.f32 %v855_v42, %v855_v42 }
 0x14f   :  { %v899_v31 = vrot.slane %v898_v27, 1 }
 0x150   :  { %v857_v46 = vsel %vm68_vm0, %v856_v45, 0.0  ;;  %v872_v26 = vsel %vm68_vm0, %v871_v23, 0.0  ;;  %v634_v23 = vld [vmem:[%s1652_s12 + $0x8] sm:$0xff] }
 0x151   :  { %v900_v34 = vadd.f32 %v899_v31, %v898_v27 }
 0x152   :  { %v129_v48 = vld [vmem:[#allocation2] sm:$0xff] }
 0x153   :  { %v132_v49 = vsel %vm68_vm0, %v129_v48, 0.0  ;;  %v1486_v38 = vmul.f32 0.25, %v900_v34 }
 0x154   :  { %133 = vadd.xlane.f32.xlu0 %v132_v49 }
 0x155   :  { %v919_v41 = vmul.f32 %v1486_v38, %v1486_v38 }
 0x157   :  { %v920_v44 = vsel %vm68_vm0, %v919_v41, 0.0 }
 0x158   :  { %240 = vadd.xlane.f32.xlu0 %v239_v8  ;;  %v904_v8 = vrot.slane %v997_v6, 6 }
 0x15a   :  { %v905_v9 = vsel %vm889_vm6, %v903_v7, %v904_v8 }
 0x15c   :  { %862 = vadd.xlane.f32.xlu0 %v861_v43 }
 0x160   :  { %921 = vadd.xlane.f32.xlu0 %v920_v44 }
 0x164   :  { %858 = vadd.xlane.f32.xlu0 %v857_v46 }
 0x1e1   :  { %v134_v50 = vpop.xlane.xlu0 %133 }
 0x1e2   :  { %v135_v51 = vmul.f32 0.03125, %v134_v50 }
 0x1e4   :  { %v1435_v52 = vsub.f32 %v129_v48, %v135_v51  ;;  %v1000_v51 = vld [vmem:[%s1668_s23] ss:$0 sm:$0xff] }
 0x1e5   :  { %v241_v57 = vpop.xlane.xlu0 %240 }
 0x1e6   :  { %v137_v53 = vmul.f32 %v1435_v52, %v1435_v52  ;;  %vm244_vm7 = vcmp.eq.f32.partialorder %v241_v57, inf  ;;  %v247_v59 = vand.u32 2147483648, %v241_v57  ;;  %vm246_vm8 = vcmp.eq.f32.partialorder %v241_v57, 0.0 }
 0x1e8   :  { %v138_v54 = vsel %vm68_vm0, %v137_v53, 0.0 }
 0x1e9   :  { %139 = vadd.xlane.f32.xlu1 %v138_v54  ;;  %v1001_v54 = vld [vmem:[%s1644_s4] ss:$0 sm:$0xff]  ;;  %v863_v40 = vpop.xlane.xlu0 %862 }
 0x1ea   :  { %vm866_vm10 = vcmp.eq.f32.partialorder %v863_v40, inf  ;;  %vm868_vm11 = vcmp.eq.f32.partialorder %v863_v40, 0.0 }
 0x276   :  { %v140_v47 = vpop.xlane.xlu1 %139 }
 0x277   :  { %v141_v48 = vmul.f32 0.03125, %v140_v47 }
 0x279   :  { %v142_v49 = vadd.f32 1e-05, %v141_v48 }
 0x27b   :  { %1160 = vrsqrt.f32 %v142_v49 }
 0x27c   :  { %1162 = vrsqrt.f32 %v241_v57 }
 0x285   :  { %v1161_v50 = vpop.eup %1160 }
 0x286   :  { %v144_v53 = vmul.f32 %v1161_v50, %v1435_v52  ;;  %v1163_v58 = vpop.eup %1162 }
 0x287   :  { %v243_v52 = vmul.f32 %v1163_v58, %v241_v57 }
 0x288   :  { %v151_v55 = vmul.f32 %v1000_v51, %v144_v53 }
 0x289   :  { %v245_v60 = vsel %vm244_vm7, %v241_v57, %v243_v52  ;;  %vm452_vm7 = vcmask 11264  }
 0x28a   :  { %v158_v56 = vadd.f32 %v1001_v54, %v151_v55  ;;  %v248_v61 = vsel %vm246_vm8, %v247_v59, %v245_v60  ;;  %v869_v55 = vand.u32 2147483648, %v863_v40 }
 0x28b   :  { %v249_v62 = vadd.f32 1e-06, %v248_v61 }
 0x28c   :  { %1067 = vmatmul.mubr.msk.f32.vlgmr.msra.gmra.mrb[0].mxu1 %vm68_vm0, %v158_v56  ;;  %1088 = vmatmul.mubr.msk.f32.vlgmr.msra.gmra.mrb[2].mxu0 %vm68_vm0, %v158_v56 }
 0x28d   :  { %1071 = vmatprep.mubr.msk.f32.mxu1 %vm1267_vm2, %v1268_v20  ;;  %1109 = vmatprep.mubr.msk.f32.mxu0 %vm1267_vm2, %v1268_v20  ;;  %1164 = vrcp.f32 %v249_v62 }
 0x297   :  { %v1165_v63 = vpop.eup %1164 }
 0x298   :  { %v1507_v2 = vmul.f32 %v1165_v63, %v1468_v5  ;;  %v907_v5 = vsel %vm238_vm5, %v905_v9, 0.0 }
 0x299   :  { %v908_v10 = vrot.slane %v907_v5, 4 }
 0x29a   :  { %1070 = vmatpush3.xpose.msk.msra.mxu1 %vm68_vm0, %v1507_v2 }
 0x29b   :  { %1074 = vmatprep.subr.mxu1 %v1268_v20  ;;  %v909_v11 = vadd.f32 %v908_v10, %v907_v5 }
 0x29d   :  { %v910_v12 = vrot.slane %v909_v11, 2 }
 0x29f   :  { %v911_v13 = vadd.f32 %v910_v12, %v909_v11 }
 0x2a1   :  { %v912_v14 = vrot.slane %v911_v13, 1 }
 0x2a3   :  { %v913_v18 = vadd.f32 %v912_v14, %v911_v13 }
 0x2a5   :  { %v914_v24 = vmul.f32 0.25, %v913_v18 }
 0x2a7   :  { %v930_v27 = vmul.f32 %v914_v24, %v914_v24  ;;  %v915_v31 = vmul.f32 %v914_v24, %v1486_v38  ;;  %v922_v38 = vpop.xlane.xlu0 %921 }
 0x2a8   :  { %vm925_vm14 = vcmp.eq.f32.partialorder %v922_v38, inf  ;;  %v928_v6 = vand.u32 2147483648, %v922_v38  ;;  %vm927_vm3 = vcmp.eq.f32.partialorder %v922_v38, 0.0 }
 0x2a9   :  { %v931_v29 = vsel %vm68_vm0, %v930_v27, 0.0  ;;  %v916_v32 = vsel %vm68_vm0, %v915_v31, 0.0 }
 0x2ab   :  { %v859_v31 = vpop.xlane.xlu0 %858 }
 0x35f   :  { %v333_v19 = vpop.f32.mrb[0].mxu1  ;;  %v620_v21 = vpop.f32.mrb[2].mxu0 }
 0x360   :  { %v1521_v1 = vadd.f32 %v1003_v16, %v333_v19  ;;  %v1068_v15 = vpop.f32.mrb[1].mxu1  ;;  %v1089_v22 = vpop.f32.mrb[3].mxu0  ;;  %v1537_v41 = vadd.f32 %v1010_v39, %v620_v21 }
 0x362   :  { %359 = vperm.xlu0 %1153, %v1521_v1   ;;  %v337_v0 = vmul.f32 %v1521_v1, %v1521_v1  ;;  %v352_v28 = vmul.f32 1.442695, %v1521_v1  ;;  %vm351_vm9 = vcmp.gt.f32.partialorder %v1521_v1, 0.0  ;;  %v624_v42 = vmul.f32 %v1537_v41, %v1537_v41 }
 0x364   :  { %v338_v25 = vsel %vm68_vm0, %v337_v0, 0.0  ;;  %1166 = vpow2.f32 %v352_v28  ;;  %v625_v44 = vmul.f32 %v624_v42, %v1537_v41  ;;  %v633_v0 = vld [vmem:[%s1652_s12] sm:$0xff]  ;;  %v635_v28 = vld [vmem:[%s1652_s12 + $0x10] sm:$0xff] }
 0x365   :  { %339 = vadd.xlane.f32.xlu1 %v338_v25  ;;  %1168 = vrsqrt.f32 %v863_v40  ;;  %v455_v25 = vrot.slane %v1507_v2, 2  ;;  %v636_v2 = vld [vmem:[%s1652_s12 + $0x18] sm:$0xff] }
 0x366   :  { %1155 = vset.pattern.permute.xlu0 %v1270_v4  ;;  %1170 = vrsqrt.f32 %v922_v38  ;;  %v626_v47 = vmul.f32 0.044715, %v625_v44  ;;  %v726_v44 = vld [vmem:[%s1654_s14] sm:$0xff] }
 0x368   :  { %v627_v53 = vadd.f32 %v626_v47, %v1537_v41 }
 0x369   :  { %873 = vadd.xlane.f32.xlu1 %v872_v26  ;;  %v1131_v26 = vpack.c.bf16 %v634_v23, %v633_v0 }
 0x36a   :  { %v628_v62 = vmul.f32 0.7978846, %v627_v53 }
 0x36d   :  { %932 = vadd.xlane.f32.xlu1 %v931_v29 }
 0x36e   :  { %v1167_v33 = vpop.eup %1166 }
 0x36f   :  { %v1005_v34 = vadd.f32 -1.0, %v1167_v33  ;;  %v1169_v46 = vpop.eup %1168  ;;  %v1134_v33 = vpack.c.bf16 %v636_v2, %v635_v28 }
 0x370   :  { %v1171_v49 = vpop.eup %1170  ;;  %v865_v50 = vmul.f32 %v1169_v46, %v863_v40  ;;  %v729_v46 = vld [vmem:[%s1654_s14 + $0x18] sm:$0xff] }
 0x371   :  { %917 = vadd.xlane.f32.xlu1 %v916_v32  ;;  %v355_v36 = vsel %vm351_vm9, %v1521_v1, %v1005_v34  ;;  %v924_v58 = vmul.f32 %v1171_v49, %v922_v38  ;;  %v1271_v49 = vmov 0   ;;  %vm949_vm9 = vcmask 0  }
 0x372   :  { %v356_v37 = vadd.f32 1.0, %v355_v36  ;;  %v867_v57 = vsel %vm866_vm10, %v863_v40, %v865_v50 }
 0x373   :  { %v870_v4 = vsel %vm868_vm11, %v869_v55, %v867_v57  ;;  %v926_v7 = vsel %vm925_vm14, %v922_v38, %v924_v58 }
 0x374   :  { %v929_v13 = vsel %vm927_vm3, %v928_v6, %v926_v7 }
 0x382   :  { %440 = vperm.xlu1 %1154, %v356_v37  }
 0x3e1   :  { %v360_v53 = vpop.permute.xlu0 %359 }
 0x3f2   :  { %v340_v43 = vpop.xlane.xlu1 %339 }
 0x3f3   :  { %1172 = vrsqrt.f32 %v340_v43  ;;  %vm343_vm12 = vcmp.eq.f32.partialorder %v340_v43, inf  ;;  %v346_v56 = vand.u32 2147483648, %v340_v43  ;;  %vm345_vm13 = vcmp.eq.f32.partialorder %v340_v43, 0.0 }
 0x3f6   :  { %v874_v45 = vpop.xlane.xlu1 %873 }
 0x3f7   :  { %1174 = vrsqrt.f32 %v874_v45  ;;  %vm877_vm15 = vcmp.eq.f32.partialorder %v874_v45, inf  ;;  %v880_v61 = vand.u32 2147483648, %v874_v45  ;;  %vm879_vm1 = vcmp.eq.f32.partialorder %v874_v45, 0.0 }
 0x3fa   :  { %v933_v48 = vpop.xlane.xlu1 %932 }
 0x3fb   :  { %1176 = vrsqrt.f32 %v933_v48  ;;  %vm936_vm4 = vcmp.eq.f32.partialorder %v933_v48, inf  ;;  %v939_v10 = vand.u32 2147483648, %v933_v48  ;;  %vm938_vm5 = vcmp.eq.f32.partialorder %v933_v48, 0.0 }
 0x3fd   :  { %v1173_v51 = vpop.eup %1172 }
 0x3fe   :  { %v342_v54 = vmul.f32 %v1173_v51, %v340_v43  ;;  %v918_v37 = vpop.xlane.xlu1 %917  ;;  %v537_v51 = vsub.s32 1, %v1421_v30  ;;  %v1012_v30 = vld [vmem:[%s1653_s13] ss:$0 sm:$0xff]  ;;  %s956_s13 = sshll.u32 %s1272_s3, 4  ;;  %s957_s13 = int_to_ptr.vmem [resolvable:$true] %s956_s13 }
 0x3ff   :  { %s1196_s26 = scalar_lea.vmem %s957_s13, 128  ;;  %p1201_p1 = scmp.lt.s32.totalorder %s957_s13, %s957_s13 }
 0x400   :  { %v344_v52 = vsel %vm343_vm12, %v340_v43, %v342_v54  ;;  %p1197_p0 = scmp.ne.s32.totalorder %s957_s13, %s1196_s26  ;;  %p1202_p2 = scmp.lt.s32.totalorder %s1196_s26, %s1196_s26 }
 0x401   :  { %v1175_v59 = vpop.eup %1174  ;;  %v347_v60 = vsel %vm345_vm13, %v346_v56, %v344_v52  ;;  %v456_v52 = vrot.slane %v360_v53, 4 }
 0x402   :  { %v348_v63 = vadd.f32 1e-06, %v347_v60  ;;  %v876_v3 = vmul.f32 %v1175_v59, %v874_v45  ;;  %v441_v57 = vpop.permute.xlu1 %440  ;;  %p1203_p3 = por %p1202_p2, %p1201_p1 }
 0x404   :  { %1178 = vrcp.f32 %v348_v63  ;;  %v878_v8 = vsel %vm877_vm15, %v874_v45, %v876_v3  ;;  %p1204_p4 = pnand %p1203_p3, %p1197_p0 }
 0x405   :  { %v1177_v9 = vpop.eup %1176  ;;  %v881_v5 = vsel %vm879_vm1, %v880_v61, %v878_v8  ;;  %1180 = vtanh.f32 %v628_v62  ;;  %v532_v61 = vrot.slane %v441_v57, 4 }
 0x406   :  { %v882_v11 = vmul.f32 %v881_v5, %v870_v4  ;;  %v935_v12 = vmul.f32 %v1177_v9, %v933_v48 }
 0x408   :  { %v883_v14 = vmax.f32 %v882_v11, 1e-08  ;;  %v937_v16 = vsel %vm936_vm4, %v933_v48, %v935_v12  ;;  %v252_v48 = vld [vmem:[%s1647_s7] sm:$0x3] }
 0x409   :  { %v940_v18 = vsel %vm938_vm5, %v939_v10, %v937_v16 }
 0x40a   :  { %1182 = vrcp.f32 %v883_v14  ;;  %v941_v19 = vmul.f32 %v940_v18, %v929_v13 }
 0x40c   :  { %v942_v21 = vmax.f32 %v941_v19, 1e-08 }
 0x40e   :  { %v1179_v15 = vpop.eup %1178  ;;  %1184 = vrcp.f32 %v942_v21 }
 0x40f   :  { %v350_v22 = vmul.f32 %v1179_v15, %v1521_v1  ;;  %v1181_v24 = vpop.eup %1180 }
 0x410   :  { %v630_v1 = vadd.f32 1.0, %v1181_v24 }
 0x411   :  { %1072 = vmatmul.mubr.msk.f32.vlgmr.msra.gmra.mrb[2].mxu1 %vm68_vm0, %v350_v22  ;;  %v454_v27 = vrot.slane %v350_v22, 4 }
 0x412   :  { %1075 = vmatpush3.xpose.msk.msra.mxu1 %vm68_vm0, %v455_v25  ;;  %1076 = vmatprep.mubr.msk.f32.mxu1 %vm1267_vm2, %v1268_v20  ;;  %v631_v34 = vmul.f32 0.5, %v630_v1 }
 0x413   :  { %1130 = vmatprep.subr.bf16.mxu1 %v1266_v17 }
 0x414   :  { %v1183_v29 = vpop.eup %1182  ;;  %v632_v38 = vmul.f32 %v631_v34, %v1537_v41  ;;  %v728_v41 = vld [vmem:[%s1654_s14 + $0x10] sm:$0xff] }
 0x415   :  { %v885_v32 = vmul.f32 %v1183_v29, %v859_v31  ;;  %1077 = vmatmul.mubr.msk.f32.vlgmr.msra.gmra.mrb[4].mxu1 %vm68_vm0, %v454_v27  ;;  %v1140_v47 = vpack.c.bf16 %v729_v46, %v728_v41 }
 0x416   :  { %1132 = vmatpush3.bf16.msra.mxu1 %v1131_v26  ;;  %1098 = vmatprep.mubr.msk.f32.mxu1 %vm1267_vm2, %v1268_v20  ;;  %v727_v20 = vld [vmem:[%s1654_s14 + $0x8] sm:$0xff]  ;;  %vm444_vm2 = vcmp.gt.f32.partialorder %v252_v48, 0.0 }
 0x417   :  { %1133 = vmatprep.subr.bf16.mxu1 %v1266_v17  ;;  %v886_v39 = vsub.f32 1.0, %v885_v32  ;;  %v1137_v45 = vpack.c.bf16 %v727_v20, %v726_v44  ;;  %v445_v50 = vsel %vm444_vm2, 1, %v1271_v49 }
 0x418   :  { %v1185_v36 = vpop.eup %1184  ;;  %v538_v58 = vrot.slane %v445_v50, %v537_v51 }
 0x419   :  { %v944_v40 = vmul.f32 %v1185_v36, %v918_v37  ;;  %1138 = vmatpush3.bf16.msra.mxu0 %v1137_v45 }
 0x41a   :  { %1135 = vmatpush3.bf16.msra.mxu1 %v1134_v33  ;;  %1139 = vmatprep.subr.bf16.mxu0 %v1266_v17  ;;  %v449_v17 = vrot.slane %v445_v50, %v115_v35  ;;  %vm539_vm8 = vcmp.eq.s32.totalorder %v538_v58, 1 }
 0x41b   :  { %v945_v42 = vsub.f32 1.0, %v944_v40 }
 0x41c   :  { %vm450_vm6 = vcmp.eq.s32.totalorder %v449_v17, 1 }
 0x41d   :  { %v946_v43 = vadd.f32 %v945_v42, %v886_v39  ;;  %1099 = vmatmul.mubr.msk.f32.vlgmr.msra.gmra.mrb[6].mxu1 %vm68_vm0, %v632_v38  ;;  %1141 = vmatpush3.bf16.msra.mxu0 %v1140_v47 }
 0x41f   :  { %v948_v19 = vmul.f32 0.5, %v946_v43 }
 0x421   :  { %950 = vst.msk [vmem:[#allocation7] sm:$0x1] %vm949_vm9, %v948_v19 }
 0x4e4   :  { %v434_v54 = vpop.f32.mrb[2].mxu1 }
 0x4e5   :  { %v435_v55 = vadd.f32 %v434_v54, %v360_v53  ;;  %v1073_v56 = vpop.f32.mrb[3].mxu1 }
 0x4e7   :  { %v443_v59 = vmul.f32 %v441_v57, %v435_v55 }
 0x4e8   :  { %v528_v60 = vpop.f32.mrb[4].mxu1 }
 0x4e9   :  { %v451_v62 = vsel %vm450_vm6, %v443_v59, -3.4028235e+38  ;;  %v529_v63 = vadd.f32 %v528_v60, %v456_v52  ;;  %v1078_v3 = vpop.f32.mrb[5].mxu1 }
 0x4ea   :  { %453 = vst.msk [vmem:[#allocation3] sm:$0xf] %vm452_vm7, %v451_v62 }
 0x4eb   :  { %v534_v35 = vmul.f32 %v532_v61, %v529_v63 }
 0x4ed   :  { %v540_v4 = vsel %vm539_vm8, %v534_v35, -3.4028235e+38 }
 0x4ee   :  { %542 = vst.msk [vmem:[#allocation3 + $0x4] sm:$0xf] %vm452_vm7, %v540_v4 }
 0x4f0   :  { %v713_v6 = vpop.f32.mrb[6].mxu1 }
 0x4f1   :  { %v714_v7 = vadd.f32 %v1012_v30, %v713_v6  ;;  %v1100_v8 = vpop.f32.mrb[7].mxu1 }
 0x4f3   :  { %v717_v9 = vmul.f32 %v714_v7, %v714_v7 }
 0x4f5   :  { %v718_v5 = vmul.f32 %v717_v9, %v714_v7 }
 0x4f7   :  { %v719_v10 = vmul.f32 0.044715, %v718_v5 }
 0x4f9   :  { %v720_v11 = vadd.f32 %v719_v10, %v714_v7 }
 0x4fb   :  { %v721_v12 = vmul.f32 0.7978846, %v720_v11 }
 0x4fd   :  { %1186 = vtanh.f32 %v721_v12 }
 0x507   :  { %v1187_v13 = vpop.eup %1186 }
 0x508   :  { %v723_v14 = vadd.f32 1.0, %v1187_v13 }
 0x50a   :  { %v724_v16 = vmul.f32 0.5, %v723_v14 }
 0x50c   :  { %v725_v18 = vmul.f32 %v724_v16, %v714_v7 }
 0x50e   :  { %1110 = vmatmul.mubr.msk.f32.vlgmr.msra.gmra.mrb[4].mxu0 %vm68_vm0, %v725_v18 }
 0x50f   :  { %1207 = shalt.err (!%p1204_p4)
}
 0x510   :  { %s1208_s20 = scalar_lea.hbm %s1657_s17, 128 }
 0x511   :  { %p1209_p5 = scmp.ne.s32.totalorder %s1657_s17, %s1208_s20  ;;  %p1212_p6 = scmp.lt.u32.totalorder %s1208_s20, %s1657_s17 }
 0x513   :  { %p1214_p7 = pnand %p1212_p6, %p1209_p5 }
 0x515   :  { %1217 = shalt.err (!%p1214_p7)
}
 0x516   :  { %s1273_s6 = smov 64   ;;  %s1274_s0 = smov 4   ;;  %v810_v21 = vld [vmem:[%s1656_s16] sm:$0xf]  ;;  %vm818_vm0 = vcmask 27648   ;;  %vm831_vm10 = vcmask 31748  }
 0x517   :  { %962 = dma.vmem_to_hbm [thread:$0]  %s957_s13, 128, %s1657_s17, [#allocation4], %s1273_s6, %s1273_s6, %s1274_s0   ;;  %v821_v22 = vrot.slane %v810_v21, 4 }
 0x518   :  { %v1014_v15 = vld [vmem:[%s1655_s15] ss:$0 sm:$0xff]  ;;  %s1275_s16 = smov [#allocation5]   ;;  %s1276_s15 = smov [#allocation7]  }
 0x519   :  { %s968_s17 = sshll.u32 %s1275_s16, 4  ;;  %s981_s22 = sshll.u32 %s1276_s15, 4  ;;  %s969_s17 = int_to_ptr.vmem [resolvable:$true] %s968_s17  ;;  %s982_s22 = int_to_ptr.vmem [resolvable:$true] %s981_s22 }
 0x51a   :  { %s1218_s2 = scalar_lea.vmem %s969_s17, 128  ;;  %p1223_p9 = scmp.lt.s32.totalorder %s969_s17, %s969_s17 }
 0x51b   :  { %p1219_p8 = scmp.ne.s32.totalorder %s969_s17, %s1218_s2  ;;  %p1224_p10 = scmp.lt.s32.totalorder %s1218_s2, %s1218_s2 }
 0x51d   :  { %p1225_p11 = por %p1224_p10, %p1223_p9 }
 0x51f   :  { %p1226_p12 = pnand %p1225_p11, %p1219_p8 }
 0x5e1   :  { %v806_v0 = vpop.f32.mrb[4].mxu0 }
 0x5e2   :  { %v807_v23 = vadd.f32 %v1014_v15, %v806_v0  ;;  %v1111_v24 = vpop.f32.mrb[5].mxu0 }
 0x5e4   :  { %v811_v25 = vadd.f32 %v810_v21, %v807_v23  ;;  %v823_v26 = vadd.f32 %v821_v22, %v807_v23 }
 0x5e6   :  { %v1016_v1 = vmul.f32 -1.442695, %v811_v25  ;;  %v1017_v27 = vmul.f32 -1.442695, %v823_v26 }
 0x5e8   :  { %1188 = vpow2.f32 %v1016_v1 }
 0x5e9   :  { %1190 = vpow2.f32 %v1017_v27 }
 0x5f2   :  { %v1189_v28 = vpop.eup %1188 }
 0x5f3   :  { %v1191_v2 = vpop.eup %1190  ;;  %v815_v29 = vadd.f32 1.0, %v1189_v28 }
 0x5f4   :  { %v827_v31 = vadd.f32 1.0, %v1191_v2 }
 0x5f5   :  { %1192 = vrcp.f32 %v815_v29 }
 0x5f6   :  { %1194 = vrcp.f32 %v827_v31 }
 0x5ff   :  { %v1193_v32 = vpop.eup %1192 }
 0x600   :  { %v1195_v33 = vpop.eup %1194  ;;  %819 = vst.msk [vmem:[#allocation5] sm:$0xf] %vm818_vm0, %v1193_v32 }
 0x601   :  { %832 = vst.msk [vmem:[#allocation5] sm:$0xf0] %vm831_vm10, %v1195_v33 }
 0x602   :  { %1229 = shalt.err (!%p1226_p12)
}
 0x603   :  { %s1230_s25 = scalar_lea.hbm %s1658_s18, 128 }
 0x604   :  { %p1231_p13 = scmp.ne.s32.totalorder %s1658_s18, %s1230_s25  ;;  %p1234_p0 = scmp.lt.u32.totalorder %s1230_s25, %s1658_s18 }
 0x606   :  { %p1236_p1 = pnand %p1234_p0, %p1231_p13 }
 0x608   :  { %1239 = shalt.err (!%p1236_p1)
}
 0x609   :  { %974 = dma.vmem_to_hbm [thread:$0]  %s969_s17, 128, %s1658_s18, [#allocation6], %s1273_s6, %s1273_s6, %s1274_s0  }
 0x60a   :  { %s1240_s27 = scalar_lea.vmem %s982_s22, 16  ;;  %s1244_s9 = scalar_lea.vmem %s982_s22, 32 }
 0x60b   :  { %p1241_p2 = scmp.ne.s32.totalorder %s982_s22, %s1240_s27  ;;  %p1245_p3 = scmp.lt.s32.totalorder %s982_s22, %s982_s22 }
 0x60c   :  { %p1246_p4 = scmp.lt.s32.totalorder %s1244_s9, %s1240_s27 }
 0x60e   :  { %p1247_p5 = por %p1246_p4, %p1245_p3 }
 0x610   :  { %p1248_p6 = pnand %p1247_p5, %p1241_p2 }
 0x612   :  { %1251 = shalt.err (!%p1248_p6)
}
 0x613   :  { %s1252_s28 = scalar_lea.hbm %s1659_s19, 16 }
 0x614   :  { %p1253_p7 = scmp.ne.s32.totalorder %s1659_s19, %s1252_s28  ;;  %p1256_p8 = scmp.lt.u32.totalorder %s1252_s28, %s1659_s19 }
 0x616   :  { %p1258_p9 = pnand %p1256_p8, %p1253_p7 }
 0x618   :  { %1261 = shalt.err (!%p1258_p9)
}
 0x619   :  { %984 = dma.vmem_to_hbm [thread:$0]  %s982_s22, 16, %s1659_s19, [#allocation6]  }
 0x61a   :  { %1262 = dma.done.wait [#allocation4], 128  }
 0x61b   :  { %1263 = vsyncadd [#allocation4], 4294967168 }
 0x61c   :  { %1264 = dma.done.wait [#allocation6], 144  }
 0x61d   :  { %1265 = vsyncadd [#allocation6], 4294967152 }
 0x61e   :  { %994 = vsyncpa [#allocation4], 1 }
 0x61f   :  { %995 = vsyncpa [#allocation6], 1 }

// kernel: forward.4
= control target key start
LH: loop header
LB: loop body
LE: loop exit
PB: predicated region body
PF: predicated region fallthrough
CT: control target
= control target key end

     0   :  { %vm89_vm0 = vcmask 261120   ;;  %v4080_v57 = vmov 0.0   ;;  %vm4081_vm1 = vmmov 0   ;;  %s4082_s27 = smov 96   ;;  %s4083_s28 = smov 88   ;;  %vm269_vm2 = vcmask 64512   ;;  %s4834_s0 = inlined_call_operand.vmem [shape: f32[32,32], index: 0, kind: input, shape index: {}]   ;;  %s4835_s4 = inlined_call_operand.vmem [shape: f32[1,32,96], index: 4, kind: input, shape index: {}]   ;;  %s4836_s2 = inlined_call_operand.vmem [shape: f32[1,1,32], index: 2, kind: input, shape index: {}]   ;;  %s4837_s3 = inlined_call_operand.vmem [shape: f32[1,1,32], index: 3, kind: input, shape index: {}]   ;;  %s4838_s5 = inlined_call_operand.vmem [shape: f32[1,1,96], index: 5, kind: input, shape index: {}]   ;;  %s4839_s1 = inlined_call_operand.vmem [shape: f32[4,8,8], index: 1, kind: input, shape index: {}]   ;;  %s4840_s6 = inlined_call_operand.vmem [shape: f32[1,32,32], index: 6, kind: input, shape index: {}]   ;;  %s4841_s7 = inlined_call_operand.vmem [shape: f32[1,1,32], index: 7, kind: input, shape index: {}]   ;;  %s4842_s10 = inlined_call_operand.vmem [shape: f32[1,32,64], index: 10, kind: input, shape index: {}]   ;;  %s4843_s8 = inlined_call_operand.vmem [shape: f32[1,1,32], index: 8, kind: input, shape index: {}]   ;;  %s4844_s9 = inlined_call_operand.vmem [shape: f32[1,1,32], index: 9, kind: input, shape index: {}]   ;;  %s4845_s12 = inlined_call_operand.vmem [shape: f32[1,64,32], index: 12, kind: input, shape index: {}]   ;;  %s4846_s11 = inlined_call_operand.vmem [shape: f32[1,1,64], index: 11, kind: input, shape index: {}]   ;;  %s4847_s13 = inlined_call_operand.vmem [shape: f32[1,1,32], index: 13, kind: input, shape index: {}]   ;;  %s4848_s14 = inlined_call_operand.vmem [shape: f32[1,32], index: 14, kind: input, shape index: {}]   ;;  %s4849_s15 = inlined_call_operand.vmem [shape: f32[1,32], index: 15, kind: input, shape index: {}]   ;;  %s4850_s16 = inlined_call_operand.vmem [shape: f32[32,32], index: 16, kind: output, shape index: {}]  }
   0x1   :  { %4852 = sst [smem:[#allocation3_spill]] %s4834_s0  ;;  %v63_v23 = vld [vmem:[%s4835_s4] sm:$0xff]  ;;  %v64_v24 = vld [vmem:[%s4835_s4 + $0x8] sm:$0xff]  ;;  %v65_v26 = vld [vmem:[%s4835_s4 + $0x10] sm:$0xff]  ;;  %3711 = vmatprep.subr.mxu1 %v4080_v57  ;;  %3713 = vmatprep.mubr.msk.f32.mxu1 %vm4081_vm1, %v4080_v57  ;;  %s4084_s29 = smov 80   ;;  %vm605_vm3 = vcmask 130112  }
   0x2   :  { %s4853_s23 = sld [smem:[#allocation3_spill]]  ;;  %v3916_v25 = vpack.c.bf16 %v64_v24, %v63_v23  ;;  %v66_v27 = vld [vmem:[%s4835_s4 + $0x18] sm:$0xff]  ;;  %v3514_v41 = vld [vmem:[%s4836_s2] ss:$0 sm:$0xff]  ;;  %s4085_s30 = smov 72   ;;  %vm778_vm4 = vcmask 195712  }
   0x3   :  { %v3920_v28 = vpack.c.bf16 %v66_v27, %v65_v26  ;;  %v3515_v43 = vld [vmem:[%s4837_s3] ss:$0 sm:$0xff]  ;;  %s4087_s0 = smov 112   ;;  %s4088_s17 = smov 104   ;;  %vm951_vm5 = vcmask 261312   ;;  %vm3330_vm6 = vcmask 523264  }
   0x4   :  { %3917 = vmatprep.subr.bf16.mxu0 %v3916_v25  ;;  %s4089_s18 = smov 48   ;;  %s4090_s19 = smov 40  }
   0x5   :  { %3919 = vmatpush3.bf16.msra.mxu0 %v3916_v25  ;;  %s4091_s20 = smov 56   ;;  %s4092_s4 = smov 64  }
   0x6   :  { %3921 = vmatprep.subr.bf16.mxu0 %v3920_v28 }
   0x8   :  { %v53_v0 = vld [vmem:[%s4853_s23] sm:$0xff]  ;;  %v54_v1 = vld [vmem:[%s4853_s23 + $0x8] sm:$0xff]  ;;  %v55_v4 = vld [vmem:[%s4853_s23 + $0x10] sm:$0xff] }
   0x9   :  { %v90_v2 = vsel %vm89_vm0, %v53_v0, 0.0  ;;  %v93_v3 = vsel %vm89_vm0, %v54_v1, 0.0  ;;  %v96_v5 = vsel %vm89_vm0, %v55_v4, 0.0  ;;  %v56_v15 = vld [vmem:[%s4853_s23 + $0x18] sm:$0xff]  ;;  %3923 = vmatpush3.bf16.msra.mxu0 %v3920_v28 }
   0xa   :  { %91 = vadd.xlane.f32.xlu0 %v90_v2  ;;  %v99_v17 = vsel %vm89_vm0, %v56_v15, 0.0  ;;  %3706 = vmatprep.subr.mxu0 %v4080_v57 }
   0xe   :  { %94 = vadd.xlane.f32.xlu0 %v93_v3 }
  0x12   :  { %97 = vadd.xlane.f32.xlu0 %v96_v5 }
  0x97   :  { %v92_v6 = vpop.xlane.xlu0 %91 }
  0x98   :  { %v103_v7 = vmul.f32 0.03125, %v92_v6 }
  0x9a   :  { %v107_v8 = vsub.f32 %v53_v0, %v103_v7 }
  0x9b   :  { %v95_v9 = vpop.xlane.xlu0 %94 }
  0x9c   :  { %v104_v10 = vmul.f32 0.03125, %v95_v9  ;;  %v111_v11 = vmul.f32 %v107_v8, %v107_v8 }
  0x9e   :  { %v108_v12 = vsub.f32 %v54_v1, %v104_v10  ;;  %v115_v13 = vsel %vm89_vm0, %v111_v11, 0.0  ;;  %v3516_v1 = vld [vmem:[%s4838_s5] ss:$0 sm:$0xff]  ;;  %s4086_s5 = smov 120  }
  0x9f   :  { %116 = vadd.xlane.f32.xlu1 %v115_v13  ;;  %v98_v18 = vpop.xlane.xlu0 %97 }
  0xa0   :  { %v112_v14 = vmul.f32 %v108_v12, %v108_v12  ;;  %v105_v19 = vmul.f32 0.03125, %v98_v18 }
  0xa2   :  { %v118_v16 = vsel %vm89_vm0, %v112_v14, 0.0  ;;  %v109_v20 = vsub.f32 %v55_v4, %v105_v19 }
  0xa3   :  { %119 = vadd.xlane.f32.xlu1 %v118_v16 }
  0xa4   :  { %v113_v21 = vmul.f32 %v109_v20, %v109_v20 }
  0xa6   :  { %v121_v22 = vsel %vm89_vm0, %v113_v21, 0.0 }
  0xa7   :  { %100 = vadd.xlane.f32.xlu1 %v99_v17  ;;  %122 = vadd.xlane.f32.xlu0 %v121_v22 }
 0x12c   :  { %v117_v29 = vpop.xlane.xlu1 %116 }
 0x12d   :  { %v127_v30 = vmul.f32 0.03125, %v117_v29 }
 0x12f   :  { %v131_v31 = vadd.f32 1e-05, %v127_v30 }
 0x130   :  { %v120_v32 = vpop.xlane.xlu1 %119 }
 0x131   :  { %3972 = vrsqrt.f32 %v131_v31  ;;  %v128_v33 = vmul.f32 0.03125, %v120_v32 }
 0x133   :  { %v132_v34 = vadd.f32 1e-05, %v128_v33 }
 0x134   :  { %v101_v35 = vpop.xlane.xlu1 %100  ;;  %v123_v50 = vpop.xlane.xlu0 %122 }
 0x135   :  { %3974 = vrsqrt.f32 %v132_v34  ;;  %v106_v36 = vmul.f32 0.03125, %v101_v35  ;;  %v129_v51 = vmul.f32 0.03125, %v123_v50 }
 0x137   :  { %v110_v37 = vsub.f32 %v56_v15, %v106_v36  ;;  %v133_v52 = vadd.f32 1e-05, %v129_v51 }
 0x139   :  { %v114_v38 = vmul.f32 %v110_v37, %v110_v37  ;;  %3976 = vrsqrt.f32 %v133_v52 }
 0x13b   :  { %v3973_v39 = vpop.eup %3972  ;;  %v124_v40 = vsel %vm89_vm0, %v114_v38, 0.0 }
 0x13c   :  { %125 = vadd.xlane.f32.xlu1 %v124_v40  ;;  %v139_v42 = vmul.f32 %v3973_v39, %v107_v8 }
 0x13e   :  { %v149_v44 = vmul.f32 %v3514_v41, %v139_v42 }
 0x13f   :  { %v3975_v45 = vpop.eup %3974 }
 0x140   :  { %v159_v46 = vadd.f32 %v3515_v43, %v149_v44  ;;  %v140_v47 = vmul.f32 %v3975_v45, %v108_v12  ;;  %v4285_v12 = vld [vmem:[%s4839_s1] sm:$0xff] }
 0x142   :  { %3700 = vmatprep.mubr.msk.f32.mxu0 %vm89_vm0, %v159_v46  ;;  %v150_v48 = vmul.f32 %v3514_v41, %v140_v47 }
 0x143   :  { %v3977_v53 = vpop.eup %3976 }
 0x144   :  { %v160_v49 = vadd.f32 %v3515_v43, %v150_v48  ;;  %v141_v54 = vmul.f32 %v3977_v53, %v109_v20 }
 0x146   :  { %3701 = vmatmul.mubr.msk.f32.vlgmr.msra.gmra.mrb[0].mxu0 %vm89_vm0, %v160_v49  ;;  %v151_v55 = vmul.f32 %v3514_v41, %v141_v54 }
 0x148   :  { %v161_v56 = vadd.f32 %v3515_v43, %v151_v55 }
 0x14a   :  { %3703 = vmatprep.mubr.msk.f32.mxu0 %vm89_vm0, %v161_v56 }
 0x1c9   :  { %v126_v58 = vpop.xlane.xlu1 %125 }
 0x1ca   :  { %v130_v59 = vmul.f32 0.03125, %v126_v58 }
 0x1cc   :  { %v134_v60 = vadd.f32 1e-05, %v130_v59 }
 0x1ce   :  { %3978 = vrsqrt.f32 %v134_v60 }
 0x1d8   :  { %v3979_v61 = vpop.eup %3978 }
 0x1d9   :  { %v142_v62 = vmul.f32 %v3979_v61, %v110_v37 }
 0x1db   :  { %v152_v63 = vmul.f32 %v3514_v41, %v142_v62 }
 0x1dd   :  { %v162_v0 = vadd.f32 %v3515_v43, %v152_v63 }
 0x1df   :  { %3704 = vmatmul.mubr.msk.f32.gmra.mrb[2].mxu0 %vm89_vm0, %v162_v0 }
 0x1e0   :  { %3708 = vmatprep.mubr.msk.f32.mxu0 %vm4081_vm1, %v4080_v57 }
 0x219   :  { %v3702_v2 = vpop.f32.mrb[0].mxu0 }
 0x21a   :  { %v247_v3 = vpop.f32.mrb[1].mxu0  ;;  %v4242_v5 = vadd.f32 %v3702_v2, %v3516_v1 }
 0x21b   :  { %v4232_v4 = vadd.f32 %v3516_v1, %v247_v3 }
 0x21d   :  { %267 = vrot.lane.b32.xlu0 %v4232_v4, %s4082_s27 }
 0x221   :  { %436 = vrot.lane.b32.xlu0 %v4232_v4, %s4083_s28 }
 0x225   :  { %609 = vrot.lane.b32.xlu0 %v4232_v4, %s4084_s29 }
 0x229   :  { %782 = vrot.lane.b32.xlu0 %v4232_v4, %s4085_s30 }
 0x22d   :  { %954 = vrot.lane.b32.xlu0 %v4242_v5, %s4082_s27 }
 0x231   :  { %1120 = vrot.lane.b32.xlu0 %v4242_v5, %s4086_s5 }
 0x235   :  { %1292 = vrot.lane.b32.xlu0 %v4242_v5, %s4087_s0 }
 0x239   :  { %1464 = vrot.lane.b32.xlu0 %v4242_v5, %s4088_s17 }
 0x28f   :  { %v268_v6 = vpop.permute.xlu0 %267 }
 0x290   :  { %3707 = vmatpush3.xpose.msk.msra.mxu0 %vm269_vm2, %v268_v6 }
 0x291   :  { %3721 = vmatprep.subr.mxu0 %v4080_v57 }
 0x293   :  { %3709 = vmatmul.mubr.msk.f32.vlgmr.msra.gmra.mrb[4].mxu0 %vm269_vm2, %v4232_v4  ;;  %v437_v24 = vpop.permute.xlu0 %436 }
 0x294   :  { %3723 = vmatprep.mubr.msk.f32.mxu0 %vm4081_vm1, %v4080_v57 }
 0x297   :  { %v610_v26 = vpop.permute.xlu0 %609 }
 0x29b   :  { %v783_v29 = vpop.permute.xlu0 %782 }
 0x29f   :  { %v955_v33 = vpop.permute.xlu0 %954 }
 0x2a3   :  { %v1121_v36 = vpop.permute.xlu0 %1120 }
 0x2a7   :  { %v1293_v38 = vpop.permute.xlu0 %1292 }
 0x2ab   :  { %v1465_v41 = vpop.permute.xlu0 %1464 }
 0x2b2   :  { %v3705_v7 = vpop.f32.mrb[2].mxu0 }
 0x2b3   :  { %v257_v8 = vpop.f32.mrb[3].mxu0  ;;  %v4264_v10 = vadd.f32 %v3705_v7, %v3516_v1 }
 0x2b4   :  { %v4258_v9 = vadd.f32 %v3516_v1, %v257_v8 }
 0x2b6   :  { %1805 = vrot.lane.b32.xlu0 %v4258_v9, %s4083_s28 }
 0x2ba   :  { %1977 = vrot.lane.b32.xlu0 %v4258_v9, %s4084_s29 }
 0x2be   :  { %2149 = vrot.lane.b32.xlu0 %v4258_v9, %s4085_s30 }
 0x2c2   :  { %2320 = vrot.lane.b32.xlu0 %v4264_v10, %s4082_s27 }
 0x2c6   :  { %2486 = vrot.lane.b32.xlu0 %v4264_v10, %s4086_s5 }
 0x2ca   :  { %2658 = vrot.lane.b32.xlu0 %v4264_v10, %s4087_s0 }
 0x2ce   :  { %2830 = vrot.lane.b32.xlu0 %v4264_v10, %s4088_s17 }
 0x2d2   :  { %698 = vrot.lane.b32.xlu0 %v4232_v4, %s4089_s18 }
 0x2d6   :  { %871 = vrot.lane.b32.xlu0 %v4232_v4, %s4090_s19 }
 0x2da   :  { %1211 = vrot.lane.b32.xlu0 %v4242_v5, %s4091_s20 }
 0x328   :  { %v1806_v43 = vpop.permute.xlu0 %1805 }
 0x32c   :  { %v1978_v45 = vpop.permute.xlu0 %1977 }
 0x330   :  { %v2150_v48 = vpop.permute.xlu0 %2149 }
 0x334   :  { %v2321_v50 = vpop.permute.xlu0 %2320 }
 0x338   :  { %v2487_v51 = vpop.permute.xlu0 %2486 }
 0x33c   :  { %v2659_v52 = vpop.permute.xlu0 %2658 }
 0x340   :  { %v2831_v53 = vpop.permute.xlu0 %2830 }
 0x366   :  { %v340_v11 = vpop.f32.mrb[4].mxu0 }
 0x367   :  { %v344_v13 = vmul.f32 0.35355338, %v340_v11  ;;  %v3710_v14 = vpop.f32.mrb[5].mxu0  ;;  %v58_v11 = vld [vmem:[%s4839_s1 + $0x8] sm:$0xff] }
 0x369   :  { %v345_v15 = vadd.f32 %v344_v13, %v4285_v12 }
 0x36b   :  { %v346_v16 = vsel %vm269_vm2, %v345_v15, -inf }
 0x36c   :  { %347 = vmax.xlane.f32.xlu1 %v346_v16 }
 0x37d   :  { %357 = vrot.lane.b32.xlu1 %v4232_v4, %s4092_s4 }
 0x381   :  { %434 = vrot.lane.b32.xlu1 %v4232_v4, %s4086_s5 }
 0x3f9   :  { %v348_v17 = vpop.xlane.xlu1 %347 }
 0x3fa   :  { %v349_v18 = vsub.f32 %v345_v15, %v348_v17 }
 0x3fc   :  { %v350_v19 = vmul.f32 1.442695, %v349_v18 }
 0x3fd   :  { %v358_v20 = vpop.permute.xlu1 %357 }
 0x3fe   :  { %3980 = vpow2.f32 %v350_v19  ;;  %3712 = vmatpush3.msra.mxu1 %v358_v20 }
 0x3ff   :  { %3716 = vmatprep.subr.mxu1 %v4080_v57 }
 0x401   :  { %v435_v23 = vpop.permute.xlu1 %434 }
 0x408   :  { %v3981_v21 = vpop.eup %3980 }
 0x409   :  { %v352_v22 = vsel %vm269_vm2, %v3981_v21, 0.0 }
 0x40a   :  { %353 = vadd.xlane.f32.xlu1 %v352_v22 }
 0x41b   :  { %607 = vrot.lane.b32.xlu1 %v4232_v4, %s4087_s0 }
 0x41f   :  { %780 = vrot.lane.b32.xlu1 %v4232_v4, %s4088_s17 }
 0x423   :  { %1122 = vrot.lane.b32.xlu1 %v4242_v5, %s4083_s28 }
 0x427   :  { %1294 = vrot.lane.b32.xlu1 %v4242_v5, %s4084_s29 }
 0x42b   :  { %1466 = vrot.lane.b32.xlu1 %v4242_v5, %s4085_s30 }
 0x42f   :  { %1637 = vrot.lane.b32.xlu1 %v4258_v9, %s4082_s27 }
 0x433   :  { %1803 = vrot.lane.b32.xlu1 %v4258_v9, %s4086_s5 }
 0x437   :  { %1975 = vrot.lane.b32.xlu1 %v4258_v9, %s4087_s0 }
 0x43b   :  { %2147 = vrot.lane.b32.xlu1 %v4258_v9, %s4088_s17 }
 0x43f   :  { %2488 = vrot.lane.b32.xlu1 %v4264_v10, %s4083_s28  ;;  %s4094_s28 = smov 16  }
 0x443   :  { %2660 = vrot.lane.b32.xlu1 %v4264_v10, %s4084_s29  ;;  %s4095_s29 = smov 24  }
 0x447   :  { %2832 = vrot.lane.b32.xlu1 %v4264_v10, %s4085_s30 }
 0x44b   :  { %525 = vrot.lane.b32.xlu1 %v4232_v4, %s4091_s20 }
 0x44f   :  { %1043 = vrot.lane.b32.xlu1 %v4242_v5, %s4092_s4 }
 0x497   :  { %v354_v25 = vpop.xlane.xlu1 %353 }
 0x498   :  { %3982 = vrcp.f32 %v354_v25 }
 0x49b   :  { %v608_v27 = vpop.permute.xlu1 %607 }
 0x49f   :  { %v781_v28 = vpop.permute.xlu1 %780 }
 0x4a2   :  { %v3983_v30 = vpop.eup %3982 }
 0x4a3   :  { %v1123_v31 = vpop.permute.xlu1 %1122  ;;  %v356_v32 = vmul.f32 %v3983_v30, %v3981_v21 }
 0x4a5   :  { %3714 = vmatmul.mubr.msk.f32.vlgmr.msra.gmra.mrb[0].mxu1 %vm269_vm2, %v356_v32 }
 0x4a6   :  { %3717 = vmatpush3.xpose.msk.msra.mxu1 %vm269_vm2, %v437_v24  ;;  %3718 = vmatprep.mubr.msk.f32.mxu1 %vm4081_vm1, %v4080_v57 }
 0x4a7   :  { %v1295_v34 = vpop.permute.xlu1 %1294  ;;  %3726 = vmatprep.subr.mxu1 %v4080_v57 }
 0x4a9   :  { %3719 = vmatmul.mubr.msk.f32.vlgmr.msra.gmra.mrb[2].mxu1 %vm269_vm2, %v435_v23 }
 0x4aa   :  { %3727 = vmatpush3.xpose.msk.msra.mxu1 %vm269_vm2, %v610_v26  ;;  %3728 = vmatprep.mubr.msk.f32.mxu1 %vm4081_vm1, %v4080_v57 }
 0x4ab   :  { %v1467_v35 = vpop.permute.xlu1 %1466  ;;  %3736 = vmatprep.subr.mxu1 %v4080_v57 }
 0x4ad   :  { %3729 = vmatmul.mubr.msk.f32.vlgmr.msra.gmra.mrb[4].mxu1 %vm269_vm2, %v608_v27 }
 0x4ae   :  { %3737 = vmatpush3.xpose.msk.msra.mxu1 %vm269_vm2, %v783_v29  ;;  %3738 = vmatprep.mubr.msk.f32.mxu1 %vm4081_vm1, %v4080_v57 }
 0x4af   :  { %v1638_v37 = vpop.permute.xlu1 %1637  ;;  %3746 = vmatprep.subr.mxu1 %v4080_v57 }
 0x4b1   :  { %3739 = vmatmul.mubr.msk.f32.vlgmr.msra.gmra.mrb[6].mxu1 %vm269_vm2, %v781_v28 }
 0x4b2   :  { %3747 = vmatpush3.xpose.msk.msra.mxu1 %vm269_vm2, %v955_v33  ;;  %3748 = vmatprep.mubr.msk.f32.mxu1 %vm4081_vm1, %v4080_v57 }
 0x4b3   :  { %v1804_v39 = vpop.permute.xlu1 %1803  ;;  %3756 = vmatprep.subr.mxu1 %v4080_v57 }
 0x4b5   :  { %3749 = vmatmul.mubr.msk.f32.vlgmr.msra.gmra.mrb[8].mxu1 %vm269_vm2, %v4242_v5 }
 0x4b6   :  { %3757 = vmatpush3.xpose.msk.msra.mxu1 %vm269_vm2, %v1123_v31  ;;  %3758 = vmatprep.mubr.msk.f32.mxu1 %vm4081_vm1, %v4080_v57 }
 0x4b7   :  { %v1976_v40 = vpop.permute.xlu1 %1975  ;;  %3766 = vmatprep.subr.mxu1 %v4080_v57 }
 0x4b9   :  { %3759 = vmatmul.mubr.msk.f32.vlgmr.msra.gmra.mrb[10].mxu1 %vm269_vm2, %v1121_v36 }
 0x4ba   :  { %3767 = vmatpush3.xpose.msk.msra.mxu1 %vm269_vm2, %v1295_v34  ;;  %3768 = vmatprep.mubr.msk.f32.mxu1 %vm4081_vm1, %v4080_v57 }
 0x4bb   :  { %v2148_v42 = vpop.permute.xlu1 %2147  ;;  %3776 = vmatprep.subr.mxu1 %v4080_v57 }
 0x4bd   :  { %3769 = vmatmul.mubr.msk.f32.vlgmr.msra.gmra.mrb[12].mxu1 %vm269_vm2, %v1293_v38 }
 0x4be   :  { %3777 = vmatpush3.xpose.msk.msra.mxu1 %vm269_vm2, %v1467_v35  ;;  %3778 = vmatprep.mubr.msk.f32.mxu1 %vm4081_vm1, %v4080_v57 }
 0x4bf   :  { %v2489_v44 = vpop.permute.xlu1 %2488  ;;  %3786 = vmatprep.subr.mxu1 %v4080_v57 }
 0x4c1   :  { %3779 = vmatmul.mubr.msk.f32.vlgmr.msra.gmra.mrb[14].mxu1 %vm269_vm2, %v1465_v41 }
 0x4c2   :  { %3787 = vmatpush3.xpose.msk.msra.mxu1 %vm269_vm2, %v1638_v37  ;;  %3788 = vmatprep.mubr.msk.f32.mxu1 %vm4081_vm1, %v4080_v57 }
 0x4c3   :  { %v2661_v46 = vpop.permute.xlu1 %2660  ;;  %3796 = vmatprep.subr.mxu1 %v4080_v57 }
 0x4c5   :  { %3789 = vmatmul.mubr.msk.f32.vlgmr.msra.gmra.mrb[16].mxu1 %vm269_vm2, %v4258_v9 }
 0x4c6   :  { %3797 = vmatpush3.xpose.msk.msra.mxu1 %vm269_vm2, %v1806_v43  ;;  %3798 = vmatprep.mubr.msk.f32.mxu1 %vm4081_vm1, %v4080_v57 }
 0x4c7   :  { %v2833_v47 = vpop.permute.xlu1 %2832  ;;  %3806 = vmatprep.subr.mxu1 %v4080_v57 }
 0x4c9   :  { %3799 = vmatmul.mubr.msk.f32.vlgmr.msra.gmra.mrb[18].mxu1 %vm269_vm2, %v1804_v39 }
 0x4ca   :  { %3807 = vmatpush3.xpose.msk.msra.mxu1 %vm269_vm2, %v1978_v45  ;;  %3808 = vmatprep.mubr.msk.f32.mxu1 %vm4081_vm1, %v4080_v57 }
 0x4cb   :  { %v526_v49 = vpop.permute.xlu1 %525  ;;  %3816 = vmatprep.subr.mxu1 %v4080_v57 }
 0x4cc   :  { %3722 = vmatpush3.msra.mxu0 %v526_v49  ;;  %v59_v49 = vld [vmem:[%s4839_s1 + $0x10] sm:$0xff] }
 0x4cd   :  { %3809 = vmatmul.mubr.msk.f32.vlgmr.msra.gmra.mrb[20].mxu1 %vm269_vm2, %v1976_v40  ;;  %3731 = vmatprep.subr.mxu0 %v4080_v57 }
 0x4ce   :  { %3817 = vmatpush3.xpose.msk.msra.mxu1 %vm269_vm2, %v2150_v48  ;;  %3818 = vmatprep.mubr.msk.f32.mxu1 %vm4081_vm1, %v4080_v57 }
 0x4cf   :  { %3826 = vmatprep.subr.mxu1 %v4080_v57 }
 0x4d1   :  { %3819 = vmatmul.mubr.msk.f32.vlgmr.msra.gmra.mrb[22].mxu1 %vm269_vm2, %v2148_v42 }
 0x4d2   :  { %3827 = vmatpush3.xpose.msk.msra.mxu1 %vm269_vm2, %v2321_v50  ;;  %3828 = vmatprep.mubr.msk.f32.mxu1 %vm4081_vm1, %v4080_v57 }
 0x4d3   :  { %3836 = vmatprep.subr.mxu1 %v4080_v57 }
 0x4d5   :  { %3829 = vmatmul.mubr.msk.f32.vlgmr.msra.gmra.mrb[24].mxu1 %vm269_vm2, %v4264_v10 }
 0x4d6   :  { %3837 = vmatpush3.xpose.msk.msra.mxu1 %vm269_vm2, %v2489_v44  ;;  %3838 = vmatprep.mubr.msk.f32.mxu1 %vm4081_vm1, %v4080_v57 }
 0x4d7   :  { %3846 = vmatprep.subr.mxu1 %v4080_v57 }
 0x4d9   :  { %3839 = vmatmul.mubr.msk.f32.vlgmr.msra.gmra.mrb[26].mxu1 %vm269_vm2, %v2487_v51 }
 0x4da   :  { %3847 = vmatpush3.xpose.msk.msra.mxu1 %vm269_vm2, %v2661_v46  ;;  %3848 = vmatprep.mubr.msk.f32.mxu1 %vm4081_vm1, %v4080_v57 }
 0x4db   :  { %3856 = vmatprep.subr.mxu1 %v4080_v57 }
 0x4dd   :  { %3849 = vmatmul.mubr.msk.f32.vlgmr.msra.gmra.mrb[28].mxu1 %vm269_vm2, %v2659_v52 }
 0x4de   :  { %3857 = vmatpush3.xpose.msk.msra.mxu1 %vm269_vm2, %v2833_v47  ;;  %3858 = vmatprep.mubr.msk.f32.mxu1 %vm4081_vm1, %v4080_v57 }
 0x4e1   :  { %3859 = vmatmul.mubr.msk.f32.vlgmr.msra.gmra.mrb[30].mxu1 %vm269_vm2, %v2831_v53 }
 0x578   :  { %v429_v54 = vpop.f32.mrb[0].mxu1 }
 0x579   :  { %433 = vst.msk [vmem:[#allocation2] sm:$0xff] %vm269_vm2, %v429_v54  ;;  %v3715_v55 = vpop.f32.mrb[1].mxu1 }
 0x57c   :  { %v508_v56 = vpop.f32.mrb[2].mxu1 }
 0x57d   :  { %v512_v58 = vmul.f32 0.35355338, %v508_v56  ;;  %v3720_v59 = vpop.f32.mrb[3].mxu1 }
 0x57f   :  { %v4404_v60 = vadd.f32 %v512_v58, %v4285_v12 }
 0x580   :  { %v681_v61 = vpop.f32.mrb[4].mxu1 }
 0x581   :  { %v685_v62 = vmul.f32 0.35355338, %v681_v61  ;;  %v3730_v63 = vpop.f32.mrb[5].mxu1  ;;  %v514_v0 = vsel %vm269_vm2, %v4404_v60, -inf }
 0x582   :  { %515 = vmax.xlane.f32.xlu1 %v514_v0 }
 0x583   :  { %v4409_v1 = vadd.f32 %v685_v62, %v4285_v12  ;;  %v60_v62 = vld [vmem:[%s4839_s1 + $0x18] sm:$0xff]  ;;  %s4093_s1 = smov 8  }
 0x584   :  { %v854_v2 = vpop.f32.mrb[6].mxu1 }
 0x585   :  { %v858_v3 = vmul.f32 0.35355338, %v854_v2  ;;  %v3740_v4 = vpop.f32.mrb[7].mxu1  ;;  %v687_v6 = vsel %vm269_vm2, %v4409_v1, -inf }
 0x586   :  { %688 = vmax.xlane.f32.xlu0 %v687_v6 }
 0x587   :  { %v4414_v7 = vadd.f32 %v858_v3, %v4285_v12 }
 0x588   :  { %v1026_v8 = vpop.f32.mrb[8].mxu1 }
 0x589   :  { %v1030_v13 = vmul.f32 0.35355338, %v1026_v8  ;;  %v3750_v14 = vpop.f32.mrb[9].mxu1  ;;  %v860_v15 = vsel %vm269_vm2, %v4414_v7, -inf }
 0x58a   :  { %861 = vmax.xlane.f32.xlu0 %v860_v15 }
 0x58b   :  { %v4421_v16 = vadd.f32 %v1030_v13, %v58_v11 }
 0x58c   :  { %v1194_v17 = vpop.f32.mrb[10].mxu1 }
 0x58d   :  { %v1198_v18 = vmul.f32 0.35355338, %v1194_v17  ;;  %v3760_v19 = vpop.f32.mrb[11].mxu1  ;;  %v1032_v12 = vsel %vm269_vm2, %v4421_v16, -inf }
 0x58e   :  { %1033 = vmax.xlane.f32.xlu0 %v1032_v12  ;;  %v4485_v12 = vpop.permute.xlu1 %1043 }
 0x58f   :  { %v4425_v20 = vadd.f32 %v1198_v18, %v58_v11  ;;  %v4481_v18 = vpop.permute.xlu0 %698 }
 0x590   :  { %v1366_v21 = vpop.f32.mrb[12].mxu1 }
 0x591   :  { %v1370_v22 = vmul.f32 0.35355338, %v1366_v21  ;;  %v3770_v23 = vpop.f32.mrb[13].mxu1  ;;  %v1200_v24 = vsel %vm269_vm2, %v4425_v20, -inf }
 0x592   :  { %1201 = vmax.xlane.f32.xlu1 %v1200_v24 }
 0x593   :  { %v4429_v25 = vadd.f32 %v1370_v22, %v58_v11  ;;  %v4483_v19 = vpop.permute.xlu0 %871 }
 0x594   :  { %v1538_v26 = vpop.f32.mrb[14].mxu1 }
 0x595   :  { %v3780_v27 = vpop.f32.mrb[15].mxu1  ;;  %v1372_v28 = vsel %vm269_vm2, %v4429_v25, -inf  ;;  %v1542_v45 = vmul.f32 0.35355338, %v1538_v26 }
 0x596   :  { %1373 = vmax.xlane.f32.xlu0 %v1372_v28 }
 0x597   :  { %v4437_v48 = vadd.f32 %v1542_v45, %v58_v11  ;;  %v4487_v21 = vpop.permute.xlu0 %1211 }
 0x598   :  { %v1709_v29 = vpop.f32.mrb[16].mxu1 }
 0x599   :  { %v3790_v30 = vpop.f32.mrb[17].mxu1  ;;  %v1713_v46 = vmul.f32 0.35355338, %v1709_v29 }
 0x59b   :  { %v4444_v52 = vadd.f32 %v1713_v46, %v59_v49 }
 0x59c   :  { %v1877_v31 = vpop.f32.mrb[18].mxu1 }
 0x59d   :  { %v3800_v32 = vpop.f32.mrb[19].mxu1  ;;  %v1881_v47 = vmul.f32 0.35355338, %v1877_v31  ;;  %v1715_v59 = vsel %vm269_vm2, %v4444_v52, -inf }
 0x59f   :  { %v4446_v53 = vadd.f32 %v1881_v47, %v59_v49 }
 0x5a0   :  { %v2049_v33 = vpop.f32.mrb[20].mxu1 }
 0x5a1   :  { %v3810_v34 = vpop.f32.mrb[21].mxu1  ;;  %v2053_v50 = vmul.f32 0.35355338, %v2049_v33  ;;  %v1883_v61 = vsel %vm269_vm2, %v4446_v53, -inf }
 0x5a3   :  { %1555 = vrot.lane.b32.xlu1 %v4242_v5, %s4090_s19  ;;  %v4448_v54 = vadd.f32 %v2053_v50, %v59_v49 }
 0x5a4   :  { %v2221_v35 = vpop.f32.mrb[22].mxu1 }
 0x5a5   :  { %v3820_v36 = vpop.f32.mrb[23].mxu1  ;;  %v2225_v51 = vmul.f32 0.35355338, %v2221_v35  ;;  %v2055_v63 = vsel %vm269_vm2, %v4448_v54, -inf }
 0x5a7   :  { %v4450_v55 = vadd.f32 %v2225_v51, %v59_v49 }
 0x5a8   :  { %v2392_v37 = vpop.f32.mrb[24].mxu1 }
 0x5a9   :  { %v3830_v38 = vpop.f32.mrb[25].mxu1  ;;  %v2396_v56 = vmul.f32 0.35355338, %v2392_v37  ;;  %v2227_v0 = vsel %vm269_vm2, %v4450_v55, -inf }
 0x5ab   :  { %v4463_v4 = vadd.f32 %v2396_v56, %v60_v62 }
 0x5ac   :  { %1383 = vrot.lane.b32.xlu0 %v4242_v5, %s4089_s18  ;;  %v2560_v39 = vpop.f32.mrb[26].mxu1  ;;  %v1544_v5 = vsel %vm269_vm2, %v4437_v48, -inf }
 0x5ad   :  { %v3840_v40 = vpop.f32.mrb[27].mxu1  ;;  %v2564_v58 = vmul.f32 0.35355338, %v2560_v39  ;;  %v2398_v8 = vsel %vm269_vm2, %v4463_v4, -inf }
 0x5af   :  { %v4465_v6 = vadd.f32 %v2564_v58, %v60_v62 }
 0x5b0   :  { %v2732_v41 = vpop.f32.mrb[28].mxu1 }
 0x5b1   :  { %v3850_v42 = vpop.f32.mrb[29].mxu1  ;;  %v2736_v2 = vmul.f32 0.35355338, %v2732_v41  ;;  %v2566_v11 = vsel %vm269_vm2, %v4465_v6, -inf }
 0x5b3   :  { %v4471_v13 = vadd.f32 %v2736_v2, %v60_v62 }
 0x5b4   :  { %v2904_v43 = vpop.f32.mrb[30].mxu1 }
 0x5b5   :  { %v3860_v44 = vpop.f32.mrb[31].mxu1  ;;  %v2908_v3 = vmul.f32 0.35355338, %v2904_v43  ;;  %v2738_v15 = vsel %vm269_vm2, %v4471_v13, -inf }
 0x5b7   :  { %v4473_v14 = vadd.f32 %v2908_v3, %v60_v62 }
 0x5b9   :  { %v2910_v17 = vsel %vm269_vm2, %v4473_v14, -inf }
 0x5c7   :  { %1545 = vmax.xlane.f32.xlu1 %v1544_v5 }
 0x5cb   :  { %1716 = vmax.xlane.f32.xlu0 %v1715_v59  ;;  %1884 = vmax.xlane.f32.xlu1 %v1883_v61 }
 0x5cf   :  { %2056 = vmax.xlane.f32.xlu0 %v2055_v63  ;;  %2228 = vmax.xlane.f32.xlu1 %v2227_v0 }
 0x5d3   :  { %2399 = vmax.xlane.f32.xlu0 %v2398_v8  ;;  %2567 = vmax.xlane.f32.xlu1 %v2566_v11 }
 0x5d7   :  { %2739 = vmax.xlane.f32.xlu0 %v2738_v15  ;;  %2911 = vmax.xlane.f32.xlu1 %v2910_v17 }
 0x5e8   :  { %1894 = vrot.lane.b32.xlu1 %v4258_v9, %s4091_s20 }
 0x60f   :  { %v516_v22 = vpop.xlane.xlu1 %515 }
 0x610   :  { %v517_v23 = vsub.f32 %v4404_v60, %v516_v22 }
 0x612   :  { %v518_v24 = vmul.f32 1.442695, %v517_v23 }
 0x613   :  { %v689_v26 = vpop.xlane.xlu0 %688 }
 0x614   :  { %3984 = vpow2.f32 %v518_v24  ;;  %v690_v27 = vsub.f32 %v4409_v1, %v689_v26 }
 0x616   :  { %v691_v28 = vmul.f32 1.442695, %v690_v27 }
 0x617   :  { %v862_v29 = vpop.xlane.xlu0 %861 }
 0x618   :  { %3986 = vpow2.f32 %v691_v28 }
 0x61b   :  { %v1034_v30 = vpop.xlane.xlu0 %1033 }
 0x61c   :  { %v1035_v31 = vsub.f32 %v4421_v16, %v1034_v30 }
 0x61e   :  { %v4492_v32 = vpop.eup %3984  ;;  %v1036_v33 = vmul.f32 1.442695, %v1035_v31 }
 0x61f   :  { %v520_v34 = vsel %vm269_vm2, %v4492_v32, 0.0  ;;  %v1202_v41 = vpop.xlane.xlu1 %1201 }
 0x620   :  { %3988 = vpow2.f32 %v1036_v33  ;;  %521 = vadd.xlane.f32.xlu0 %v520_v34  ;;  %v1203_v43 = vsub.f32 %v4425_v20, %v1202_v41 }
 0x622   :  { %v4496_v60 = vpop.eup %3986  ;;  %v1204_v44 = vmul.f32 1.442695, %v1203_v43 }
 0x623   :  { %v1374_v35 = vpop.xlane.xlu0 %1373  ;;  %v693_v1 = vsel %vm269_vm2, %v4496_v60, 0.0  ;;  %v4515_v45 = vpop.permute.xlu1 %1555 }
 0x624   :  { %v1375_v36 = vsub.f32 %v4429_v25, %v1374_v35  ;;  %694 = vadd.xlane.f32.xlu1 %v693_v1  ;;  %v863_v25 = vsub.f32 %v4414_v7, %v862_v29 }
 0x626   :  { %v1376_v37 = vmul.f32 1.442695, %v1375_v36  ;;  %v864_v42 = vmul.f32 1.442695, %v863_v25 }
 0x627   :  { %v4519_v47 = vpop.permute.xlu0 %1383 }
 0x628   :  { %3990 = vpow2.f32 %v1376_v37 }
 0x629   :  { %3992 = vpow2.f32 %v864_v42 }
 0x62a   :  { %v4501_v16 = vpop.eup %3988  ;;  %3994 = vpow2.f32 %v1204_v44 }
 0x62b   :  { %v1038_v38 = vsel %vm269_vm2, %v4501_v16, 0.0 }
 0x62c   :  { %1039 = vadd.xlane.f32.xlu1 %v1038_v38 }
 0x632   :  { %v4505_v39 = vpop.eup %3990 }
 0x633   :  { %v1378_v40 = vsel %vm269_vm2, %v4505_v39, 0.0  ;;  %v4517_v46 = vpop.eup %3992 }
 0x634   :  { %1379 = vadd.xlane.f32.xlu1 %v1378_v40  ;;  %v866_v7 = vsel %vm269_vm2, %v4517_v46, 0.0  ;;  %v4523_v50 = vpop.eup %3994 }
 0x635   :  { %v1206_v58 = vsel %vm269_vm2, %v4523_v50, 0.0 }
 0x636   :  { %1726 = vrot.lane.b32.xlu0 %v4258_v9, %s4092_s4 }
 0x645   :  { %2066 = vrot.lane.b32.xlu1 %v4258_v9, %s4089_s18 }
 0x654   :  { %v1546_v49 = vpop.xlane.xlu1 %1545 }
 0x655   :  { %v1547_v20 = vsub.f32 %v4437_v48, %v1546_v49  ;;  %867 = vadd.xlane.f32.xlu0 %v866_v7 }
 0x657   :  { %v1548_v51 = vmul.f32 1.442695, %v1547_v20 }
 0x658   :  { %v1885_v5 = vpop.xlane.xlu1 %1884  ;;  %v1717_v56 = vpop.xlane.xlu0 %1716 }
 0x659   :  { %3996 = vpow2.f32 %v1548_v51  ;;  %v1886_v59 = vsub.f32 %v4446_v53, %v1885_v5  ;;  %v1718_v61 = vsub.f32 %v4444_v52, %v1717_v56  ;;  %1207 = vadd.xlane.f32.xlu0 %v1206_v58 }
 0x65b   :  { %v1887_v62 = vmul.f32 1.442695, %v1886_v59  ;;  %v1719_v63 = vmul.f32 1.442695, %v1718_v61 }
 0x65c   :  { %v2229_v0 = vpop.xlane.xlu1 %2228  ;;  %v2057_v2 = vpop.xlane.xlu0 %2056 }
 0x65d   :  { %3998 = vpow2.f32 %v1887_v62  ;;  %v2230_v48 = vsub.f32 %v4450_v55, %v2229_v0  ;;  %v2058_v3 = vsub.f32 %v4448_v54, %v2057_v2 }
 0x65e   :  { %4000 = vpow2.f32 %v1719_v63 }
 0x65f   :  { %v2059_v8 = vmul.f32 1.442695, %v2058_v3  ;;  %v2231_v11 = vmul.f32 1.442695, %v2230_v48 }
 0x660   :  { %v2568_v15 = vpop.xlane.xlu1 %2567  ;;  %v2400_v17 = vpop.xlane.xlu0 %2399 }
 0x661   :  { %v2569_v22 = vsub.f32 %v4465_v6, %v2568_v15  ;;  %v2401_v53 = vsub.f32 %v4463_v4, %v2400_v17  ;;  %4002 = vpow2.f32 %v2059_v8 }
 0x662   :  { %4004 = vpow2.f32 %v2231_v11 }
 0x663   :  { %v4534_v52 = vpop.eup %3996  ;;  %v2402_v23 = vmul.f32 1.442695, %v2401_v53  ;;  %v2570_v24 = vmul.f32 1.442695, %v2569_v22 }
 0x664   :  { %v2912_v26 = vpop.xlane.xlu1 %2911  ;;  %v2740_v27 = vpop.xlane.xlu0 %2739  ;;  %v1550_v54 = vsel %vm269_vm2, %v4534_v52, 0.0 }
 0x665   :  { %v2913_v55 = vsub.f32 %v4473_v14, %v2912_v26  ;;  %v2741_v28 = vsub.f32 %v4471_v13, %v2740_v27  ;;  %1551 = vadd.xlane.f32.xlu0 %v1550_v54  ;;  %4006 = vpow2.f32 %v2402_v23 }
 0x666   :  { %4008 = vpow2.f32 %v2570_v24 }
 0x667   :  { %v4540_v6 = vpop.eup %3998  ;;  %v2742_v4 = vmul.f32 1.442695, %v2741_v28  ;;  %v2914_v30 = vmul.f32 1.442695, %v2913_v55 }
 0x668   :  { %v4542_v29 = vpop.eup %4000  ;;  %v1889_v31 = vsel %vm269_vm2, %v4540_v6, 0.0  ;;  %v4582_v43 = vpop.permute.xlu1 %1894 }
 0x669   :  { %1890 = vadd.xlane.f32.xlu1 %v1889_v31  ;;  %v1721_v33 = vsel %vm269_vm2, %v4542_v29, 0.0  ;;  %4010 = vpow2.f32 %v2742_v4 }
 0x66a   :  { %1722 = vadd.xlane.f32.xlu0 %v1721_v33  ;;  %4012 = vpow2.f32 %v2914_v30 }
 0x66b   :  { %v4548_v14 = vpop.eup %4002 }
 0x66c   :  { %v2061_v13 = vsel %vm269_vm2, %v4548_v14, 0.0  ;;  %v4552_v34 = vpop.eup %4004 }
 0x66d   :  { %v2233_v1 = vsel %vm269_vm2, %v4552_v34, 0.0 }
 0x66e   :  { %2062 = vadd.xlane.f32.xlu0 %v2061_v13 }
 0x66f   :  { %v4554_v35 = vpop.eup %4006 }
 0x670   :  { %v2404_v36 = vsel %vm269_vm2, %v4554_v35, 0.0  ;;  %v4560_v37 = vpop.eup %4008 }
 0x671   :  { %2405 = vadd.xlane.f32.xlu1 %v2404_v36  ;;  %v2572_v40 = vsel %vm269_vm2, %v4560_v37, 0.0 }
 0x672   :  { %2234 = vadd.xlane.f32.xlu0 %v2233_v1 }
 0x673   :  { %v4562_v38 = vpop.eup %4010 }
 0x674   :  { %v2744_v25 = vsel %vm269_vm2, %v4562_v38, 0.0  ;;  %v4568_v41 = vpop.eup %4012 }
 0x675   :  { %2745 = vadd.xlane.f32.xlu1 %v2744_v25  ;;  %v2916_v42 = vsel %vm269_vm2, %v4568_v41, 0.0 }
 0x676   :  { %2573 = vadd.xlane.f32.xlu0 %v2572_v40  ;;  %v69_v40 = vld [vmem:[%s4840_s6 + $0x8] sm:$0xff] }
 0x67a   :  { %2917 = vadd.xlane.f32.xlu0 %v2916_v42  ;;  %v70_v42 = vld [vmem:[%s4840_s6 + $0x10] sm:$0xff] }
 0x686   :  { %2409 = vrot.lane.b32.xlu1 %v4264_v10, %s4092_s4 }
 0x68a   :  { %2577 = vrot.lane.b32.xlu1 %v4264_v10, %s4091_s20 }
 0x68e   :  { %2749 = vrot.lane.b32.xlu1 %v4264_v10, %s4089_s18 }
 0x690   :  { %2238 = vrot.lane.b32.xlu0 %v4258_v9, %s4090_s19 }
 0x692   :  { %2921 = vrot.lane.b32.xlu1 %v4264_v10, %s4090_s19 }
 0x6ad   :  { %v522_v44 = vpop.xlane.xlu0 %521 }
 0x6ae   :  { %4014 = vrcp.f32 %v522_v44 }
 0x6b1   :  { %v695_v49 = vpop.xlane.xlu1 %694  ;;  %v1727_v10 = vpop.permute.xlu0 %1726 }
 0x6b2   :  { %4016 = vrcp.f32 %v695_v49 }
 0x6b8   :  { %v4015_v7 = vpop.eup %4014 }
 0x6b9   :  { %v524_v20 = vmul.f32 %v4015_v7, %v4492_v32  ;;  %v1040_v32 = vpop.xlane.xlu1 %1039 }
 0x6bb   :  { %3724 = vmatmul.mubr.msk.f32.vlgmr.msra.gmra.mrb[6].mxu0 %vm269_vm2, %v524_v20 }
 0x6bc   :  { %v4017_v51 = vpop.eup %4016  ;;  %3732 = vmatpush3.msra.mxu0 %v4481_v18  ;;  %3733 = vmatprep.mubr.msk.f32.mxu0 %vm4081_vm1, %v4080_v57 }
 0x6bd   :  { %v697_v9 = vmul.f32 %v4017_v51, %v4496_v60  ;;  %3741 = vmatprep.subr.mxu0 %v4080_v57 }
 0x6bf   :  { %3734 = vmatmul.mubr.msk.f32.vlgmr.msra.gmra.mrb[8].mxu0 %vm269_vm2, %v697_v9 }
 0x6c0   :  { %3742 = vmatpush3.msra.mxu0 %v4483_v19  ;;  %3743 = vmatprep.mubr.msk.f32.mxu0 %vm4081_vm1, %v4080_v57 }
 0x6c1   :  { %3751 = vmatprep.subr.mxu0 %v4080_v57  ;;  %v1380_v56 = vpop.xlane.xlu1 %1379 }
 0x6c5   :  { %v2067_v63 = vpop.permute.xlu1 %2066 }
 0x6e2   :  { %v868_v5 = vpop.xlane.xlu0 %867 }
 0x6e3   :  { %4018 = vrcp.f32 %v868_v5 }
 0x6e4   :  { %4020 = vrcp.f32 %v1040_v32 }
 0x6e6   :  { %v1208_v18 = vpop.xlane.xlu0 %1207 }
 0x6e7   :  { %4022 = vrcp.f32 %v1208_v18 }
 0x6e8   :  { %4024 = vrcp.f32 %v1380_v56 }
 0x6ed   :  { %v4019_v60 = vpop.eup %4018 }
 0x6ee   :  { %v870_v58 = vmul.f32 %v4019_v60, %v4517_v46  ;;  %v4021_v59 = vpop.eup %4020 }
 0x6ef   :  { %v1042_v19 = vmul.f32 %v4021_v59, %v4501_v16 }
 0x6f0   :  { %3744 = vmatmul.mubr.msk.f32.vlgmr.msra.gmra.mrb[10].mxu0 %vm269_vm2, %v870_v58 }
 0x6f1   :  { %3752 = vmatpush3.msra.mxu0 %v4485_v12  ;;  %3753 = vmatprep.mubr.msk.f32.mxu0 %vm4081_vm1, %v4080_v57  ;;  %v4023_v62 = vpop.eup %4022 }
 0x6f2   :  { %v1552_v61 = vpop.xlane.xlu0 %1551  ;;  %3761 = vmatprep.subr.mxu0 %v4080_v57  ;;  %v1210_v12 = vmul.f32 %v4023_v62, %v4523_v50  ;;  %v4025_v46 = vpop.eup %4024 }
 0x6f3   :  { %4026 = vrcp.f32 %v1552_v61 }
 0x6f4   :  { %3754 = vmatmul.mubr.msk.f32.vlgmr.msra.gmra.mrb[12].mxu0 %vm269_vm2, %v1042_v19 }
 0x6f5   :  { %3762 = vmatpush3.msra.mxu0 %v4487_v21  ;;  %3763 = vmatprep.mubr.msk.f32.mxu0 %vm4081_vm1, %v4080_v57  ;;  %v1382_v21 = vmul.f32 %v4025_v46, %v4505_v39 }
 0x6f6   :  { %3771 = vmatprep.subr.mxu0 %v4080_v57  ;;  %v1891_v0 = vpop.xlane.xlu1 %1890 }
 0x6f7   :  { %v1723_v16 = vpop.xlane.xlu0 %1722 }
 0x6f8   :  { %4028 = vrcp.f32 %v1723_v16  ;;  %3764 = vmatmul.mubr.msk.f32.vlgmr.msra.gmra.mrb[14].mxu0 %vm269_vm2, %v1210_v12 }
 0x6f9   :  { %3772 = vmatpush3.msra.mxu0 %v4519_v47  ;;  %3773 = vmatprep.mubr.msk.f32.mxu0 %vm4081_vm1, %v4080_v57  ;;  %4030 = vrcp.f32 %v1891_v0 }
 0x6fa   :  { %3781 = vmatprep.subr.mxu0 %v4080_v57 }
 0x6fb   :  { %v2063_v2 = vpop.xlane.xlu0 %2062 }
 0x6fc   :  { %3774 = vmatmul.mubr.msk.f32.vlgmr.msra.gmra.mrb[16].mxu0 %vm269_vm2, %v1382_v21  ;;  %4032 = vrcp.f32 %v2063_v2 }
 0x6fd   :  { %v4027_v50 = vpop.eup %4026  ;;  %3782 = vmatpush3.msra.mxu0 %v4515_v45  ;;  %3783 = vmatprep.mubr.msk.f32.mxu0 %vm4081_vm1, %v4080_v57 }
 0x6fe   :  { %v1554_v48 = vmul.f32 %v4027_v50, %v4534_v52  ;;  %3791 = vmatprep.subr.mxu0 %v4080_v57  ;;  %v2406_v47 = vpop.xlane.xlu1 %2405 }
 0x6ff   :  { %v2235_v3 = vpop.xlane.xlu0 %2234 }
 0x700   :  { %3784 = vmatmul.mubr.msk.f32.vlgmr.msra.gmra.mrb[18].mxu0 %vm269_vm2, %v1554_v48  ;;  %4034 = vrcp.f32 %v2235_v3 }
 0x701   :  { %3792 = vmatpush3.msra.mxu0 %v1727_v10  ;;  %3793 = vmatprep.mubr.msk.f32.mxu0 %vm4081_vm1, %v4080_v57  ;;  %4036 = vrcp.f32 %v2406_v47 }
 0x702   :  { %v4029_v39 = vpop.eup %4028  ;;  %3801 = vmatprep.subr.mxu0 %v4080_v57  ;;  %v2746_v15 = vpop.xlane.xlu1 %2745 }
 0x703   :  { %v1725_v45 = vmul.f32 %v4029_v39, %v4542_v29  ;;  %v2574_v8 = vpop.xlane.xlu0 %2573  ;;  %v4031_v11 = vpop.eup %4030 }
 0x704   :  { %v1893_v17 = vmul.f32 %v4031_v11, %v4540_v6  ;;  %4038 = vrcp.f32 %v2574_v8 }
 0x705   :  { %3794 = vmatmul.mubr.msk.f32.vlgmr.msra.gmra.mrb[20].mxu0 %vm269_vm2, %v1725_v45  ;;  %4040 = vrcp.f32 %v2746_v15 }
 0x706   :  { %3802 = vmatpush3.msra.mxu0 %v4582_v43  ;;  %3803 = vmatprep.mubr.msk.f32.mxu0 %vm4081_vm1, %v4080_v57  ;;  %v4033_v53 = vpop.eup %4032  ;;  %v2410_v23 = vpop.permute.xlu1 %2409  ;;  %v71_v43 = vld [vmem:[%s4840_s6 + $0x18] sm:$0xff] }
 0x707   :  { %v2918_v22 = vpop.xlane.xlu0 %2917  ;;  %3811 = vmatprep.subr.mxu0 %v4080_v57  ;;  %v2065_v52 = vmul.f32 %v4033_v53, %v4548_v14  ;;  %v3928_v49 = vpack.c.bf16 %v71_v43, %v70_v42 }
 0x708   :  { %4042 = vrcp.f32 %v2918_v22 }
 0x709   :  { %3804 = vmatmul.mubr.msk.f32.vlgmr.msra.gmra.mrb[22].mxu0 %vm269_vm2, %v1893_v17 }
 0x70a   :  { %3812 = vmatpush3.msra.mxu0 %v2067_v63  ;;  %3813 = vmatprep.mubr.msk.f32.mxu0 %vm4081_vm1, %v4080_v57  ;;  %v4035_v26 = vpop.eup %4034  ;;  %v2578_v55 = vpop.permute.xlu1 %2577 }
 0x70b   :  { %v2239_v24 = vpop.permute.xlu0 %2238  ;;  %3821 = vmatprep.subr.mxu0 %v4080_v57  ;;  %v2237_v27 = vmul.f32 %v4035_v26, %v4552_v34  ;;  %v4037_v54 = vpop.eup %4036 }
 0x70c   :  { %v2408_v28 = vmul.f32 %v4037_v54, %v4554_v35 }
 0x70d   :  { %3814 = vmatmul.mubr.msk.f32.vlgmr.msra.gmra.mrb[24].mxu0 %vm269_vm2, %v2065_v52 }
 0x70e   :  { %3822 = vmatpush3.msra.mxu0 %v2239_v24  ;;  %3823 = vmatprep.mubr.msk.f32.mxu0 %vm4081_vm1, %v4080_v57  ;;  %v4039_v6 = vpop.eup %4038  ;;  %v2750_v29 = vpop.permute.xlu1 %2749 }
 0x70f   :  { %3831 = vmatprep.subr.mxu0 %v4080_v57  ;;  %v2576_v4 = vmul.f32 %v4039_v6, %v4560_v37  ;;  %v4041_v30 = vpop.eup %4040 }
 0x710   :  { %v2748_v31 = vmul.f32 %v4041_v30, %v4562_v38 }
 0x711   :  { %3824 = vmatmul.mubr.msk.f32.vlgmr.msra.gmra.mrb[26].mxu0 %vm269_vm2, %v2237_v27  ;;  %v3573_v27 = vld [vmem:[%s4841_s7] ss:$0 sm:$0xff] }
 0x712   :  { %3832 = vmatpush3.msra.mxu0 %v2410_v23  ;;  %3833 = vmatprep.mubr.msk.f32.mxu0 %vm4081_vm1, %v4080_v57  ;;  %v4043_v33 = vpop.eup %4042  ;;  %v2922_v14 = vpop.permute.xlu1 %2921 }
 0x713   :  { %3841 = vmatprep.subr.mxu0 %v4080_v57  ;;  %v2920_v13 = vmul.f32 %v4043_v33, %v4568_v41 }
 0x715   :  { %3834 = vmatmul.mubr.msk.f32.vlgmr.msra.gmra.mrb[28].mxu0 %vm269_vm2, %v2408_v28 }
 0x716   :  { %3842 = vmatpush3.msra.mxu0 %v2578_v55  ;;  %3843 = vmatprep.mubr.msk.f32.mxu0 %vm4081_vm1, %v4080_v57  ;;  %v4076_v55 = vld [vmem:[%s4853_s23 + $0x8] sm:$0xff] }
 0x717   :  { %3851 = vmatprep.subr.mxu0 %v4080_v57 }
 0x719   :  { %3844 = vmatmul.mubr.msk.f32.vlgmr.msra.gmra.mrb[30].mxu0 %vm269_vm2, %v2576_v4  ;;  %v4077_v4 = vld [vmem:[%s4853_s23] sm:$0xff] }
 0x71a   :  { %3852 = vmatpush3.msra.mxu0 %v2750_v29  ;;  %3853 = vmatprep.mubr.msk.f32.mxu0 %vm4081_vm1, %v4080_v57 }
 0x71b   :  { %3861 = vmatprep.subr.mxu0 %v4080_v57 }
 0x71d   :  { %3854 = vmatmul.mubr.msk.f32.vlgmr.msra.gmra.mrb[32].mxu0 %vm269_vm2, %v2748_v31 }
 0x71e   :  { %3862 = vmatpush3.msra.mxu0 %v2922_v14  ;;  %3863 = vmatprep.mubr.msk.f32.mxu0 %vm4081_vm1, %v4080_v57  ;;  %v68_v57 = vld [vmem:[%s4840_s6] sm:$0xff] }
 0x71f   :  { %v3924_v41 = vpack.c.bf16 %v69_v40, %v68_v57 }
 0x721   :  { %3864 = vmatmul.mubr.msk.f32.vlgmr.msra.gmra.mrb[34].mxu0 %vm269_vm2, %v2920_v13  ;;  %3925 = vmatprep.subr.bf16.mxu1 %v3924_v41 }
 0x722   :  { %3927 = vmatpush3.bf16.msra.mxu1 %v3924_v41 }
 0x723   :  { %3929 = vmatprep.subr.bf16.mxu1 %v3928_v49 }
 0x726   :  { %3931 = vmatpush3.bf16.msra.mxu1 %v3928_v49 }
 0x78e   :  { %v597_v34 = vpop.f32.mrb[6].mxu0 }
 0x78f   :  { %602 = vrot.lane.b32.xlu1 %v597_v34, %s4093_s1  ;;  %v3725_v35 = vpop.f32.mrb[7].mxu0 }
 0x790   :  { %v4078_v35 = vld [vmem:[%s4853_s23 + $0x18] sm:$0xff] }
 0x792   :  { %v770_v1 = vpop.f32.mrb[8].mxu0 }
 0x793   :  { %775 = vrot.lane.b32.xlu1 %v770_v1, %s4094_s28  ;;  %v3735_v36 = vpop.f32.mrb[9].mxu0 }
 0x794   :  { %v4079_v36 = vld [vmem:[%s4853_s23 + $0x10] sm:$0xff] }
 0x7c3   :  { %v943_v37 = vpop.f32.mrb[10].mxu0 }
 0x7c4   :  { %948 = vrot.lane.b32.xlu1 %v943_v37, %s4095_s29  ;;  %v3745_v38 = vpop.f32.mrb[11].mxu0 }
 0x7c7   :  { %v1115_v25 = vpop.f32.mrb[12].mxu0 }
 0x7c8   :  { %1119 = vst.msk [vmem:[#allocation2 + $0x8] sm:$0xff] %vm269_vm2, %v1115_v25  ;;  %v3755_v44 = vpop.f32.mrb[13].mxu0 }
 0x7cb   :  { %v1283_v7 = vpop.f32.mrb[14].mxu0 }
 0x7cc   :  { %1288 = vrot.lane.b32.xlu0 %v1283_v7, %s4093_s1  ;;  %v3765_v20 = vpop.f32.mrb[15].mxu0 }
 0x7cf   :  { %v1455_v51 = vpop.f32.mrb[16].mxu0 }
 0x7d0   :  { %1460 = vrot.lane.b32.xlu0 %v1455_v51, %s4094_s28  ;;  %v3775_v9 = vpop.f32.mrb[17].mxu0 }
 0x7d3   :  { %v1627_v10 = vpop.f32.mrb[18].mxu0 }
 0x7d4   :  { %1632 = vrot.lane.b32.xlu1 %v1627_v10, %s4095_s29  ;;  %v3785_v32 = vpop.f32.mrb[19].mxu0 }
 0x7d8   :  { %v1798_v5 = vpop.f32.mrb[20].mxu0 }
 0x7d9   :  { %1802 = vst.msk [vmem:[#allocation2 + $0x10] sm:$0xff] %vm269_vm2, %v1798_v5  ;;  %v3795_v18 = vpop.f32.mrb[21].mxu0 }
 0x7da   :  { %v75_v18 = vld [vmem:[%s4842_s10] sm:$0xff] }
 0x7dc   :  { %v1966_v56 = vpop.f32.mrb[22].mxu0 }
 0x7dd   :  { %1971 = vrot.lane.b32.xlu0 %v1966_v56, %s4093_s1  ;;  %v3805_v60 = vpop.f32.mrb[23].mxu0  ;;  %v76_v56 = vld [vmem:[%s4842_s10 + $0x8] sm:$0xff] }
 0x7e0   :  { %v2138_v58 = vpop.f32.mrb[24].mxu0 }
 0x7e1   :  { %2143 = vrot.lane.b32.xlu1 %v2138_v58, %s4094_s28  ;;  %v3815_v59 = vpop.f32.mrb[25].mxu0  ;;  %v3932_v58 = vpack.c.bf16 %v76_v56, %v75_v18 }
 0x7e2   :  { %v77_v59 = vld [vmem:[%s4842_s10 + $0x10] sm:$0xff] }
 0x7e3   :  { %3933 = vmatprep.subr.bf16.mxu0 %v3932_v58 }
 0x7e4   :  { %v2310_v19 = vpop.f32.mrb[26].mxu0  ;;  %3935 = vmatpush3.bf16.msra.mxu0 %v3932_v58 }
 0x7e5   :  { %2315 = vrot.lane.b32.xlu1 %v2310_v19, %s4095_s29  ;;  %v3825_v61 = vpop.f32.mrb[27].mxu0  ;;  %v78_v19 = vld [vmem:[%s4842_s10 + $0x18] sm:$0xff] }
 0x7e8   :  { %v2481_v62 = vpop.f32.mrb[28].mxu0 }
 0x7e9   :  { %2485 = vst.msk [vmem:[#allocation2 + $0x18] sm:$0xff] %vm269_vm2, %v2481_v62  ;;  %v3835_v63 = vpop.f32.mrb[29].mxu0  ;;  %v3936_v62 = vpack.c.bf16 %v78_v19, %v77_v59 }
 0x7eb   :  { %3937 = vmatprep.subr.bf16.mxu0 %v3936_v62 }
 0x7ec   :  { %v2649_v12 = vpop.f32.mrb[30].mxu0  ;;  %3939 = vmatpush3.bf16.msra.mxu0 %v3936_v62 }
 0x7ed   :  { %2654 = vrot.lane.b32.xlu0 %v2649_v12, %s4093_s1  ;;  %v3845_v46 = vpop.f32.mrb[31].mxu0 }
 0x7f0   :  { %v2821_v0 = vpop.f32.mrb[32].mxu0 }
 0x7f1   :  { %2826 = vrot.lane.b32.xlu0 %v2821_v0, %s4094_s28  ;;  %v3855_v16 = vpop.f32.mrb[33].mxu0 }
 0x7f4   :  { %v2993_v21 = vpop.f32.mrb[34].mxu0 }
 0x7f5   :  { %2998 = vrot.lane.b32.xlu1 %v2993_v21, %s4095_s29  ;;  %v3865_v2 = vpop.f32.mrb[35].mxu0 }
 0x801   :  { %v603_v50 = vpop.permute.xlu1 %602 }
 0x802   :  { %606 = vst.msk [vmem:[#allocation2] sm:$0xff] %vm605_vm3, %v603_v50 }
 0x805   :  { %v776_v48 = vpop.permute.xlu1 %775 }
 0x806   :  { %779 = vst.msk [vmem:[#allocation2] sm:$0xff] %vm778_vm4, %v776_v48 }
 0x836   :  { %v949_v47 = vpop.permute.xlu1 %948 }
 0x837   :  { %952 = vst.msk [vmem:[#allocation2] sm:$0xff] %vm951_vm5, %v949_v47 }
 0x83e   :  { %v1289_v3 = vpop.permute.xlu0 %1288  ;;  %v3002_v39 = vld [vmem:[#allocation2] sm:$0xff] }
 0x83f   :  { %1291 = vst.msk [vmem:[#allocation2 + $0x8] sm:$0xff] %vm605_vm3, %v1289_v3  ;;  %3874 = vmatprep.mubr.msk.f32.mxu1 %vm89_vm0, %v3002_v39 }
 0x842   :  { %v1461_v45 = vpop.permute.xlu0 %1460 }
 0x843   :  { %1463 = vst.msk [vmem:[#allocation2 + $0x8] sm:$0xff] %vm778_vm4, %v1461_v45 }
 0x846   :  { %v1633_v8 = vpop.permute.xlu1 %1632 }
 0x847   :  { %1635 = vst.msk [vmem:[#allocation2 + $0x8] sm:$0xff] %vm951_vm5, %v1633_v8  ;;  %v3574_v8 = vld [vmem:[%s4843_s8] ss:$0 sm:$0xff] }
 0x84e   :  { %v3003_v11 = vld [vmem:[#allocation2 + $0x8] sm:$0xff] }
 0x84f   :  { %v1972_v15 = vpop.permute.xlu0 %1971  ;;  %3875 = vmatmul.mubr.msk.f32.vlgmr.msra.gmra.mrb[32].mxu1 %vm89_vm0, %v3003_v11 }
 0x850   :  { %1974 = vst.msk [vmem:[#allocation2 + $0x10] sm:$0xff] %vm605_vm3, %v1972_v15 }
 0x853   :  { %v2144_v17 = vpop.permute.xlu1 %2143 }
 0x854   :  { %2146 = vst.msk [vmem:[#allocation2 + $0x10] sm:$0xff] %vm778_vm4, %v2144_v17 }
 0x857   :  { %v2316_v22 = vpop.permute.xlu1 %2315 }
 0x858   :  { %2318 = vst.msk [vmem:[#allocation2 + $0x10] sm:$0xff] %vm951_vm5, %v2316_v22  ;;  %v3575_v22 = vld [vmem:[%s4844_s9] ss:$0 sm:$0xff] }
 0x85f   :  { %v2655_v53 = vpop.permute.xlu0 %2654  ;;  %v3004_v52 = vld [vmem:[#allocation2 + $0x10] sm:$0xff] }
 0x860   :  { %2657 = vst.msk [vmem:[#allocation2 + $0x18] sm:$0xff] %vm605_vm3, %v2655_v53  ;;  %3877 = vmatprep.mubr.msk.f32.mxu1 %vm89_vm0, %v3004_v52 }
 0x863   :  { %v2827_v23 = vpop.permute.xlu0 %2826 }
 0x864   :  { %2829 = vst.msk [vmem:[#allocation2 + $0x18] sm:$0xff] %vm778_vm4, %v2827_v23 }
 0x867   :  { %v2999_v24 = vpop.permute.xlu1 %2998 }
 0x868   :  { %3001 = vst.msk [vmem:[#allocation2 + $0x18] sm:$0xff] %vm951_vm5, %v2999_v24 }
 0x86f   :  { %v3005_v26 = vld [vmem:[#allocation2 + $0x18] sm:$0xff] }
 0x870   :  { %3878 = vmatmul.mubr.msk.f32.gmra.mrb[34].mxu1 %vm89_vm0, %v3005_v26 }
 0x922   :  { %v3876_v54 = vpop.f32.mrb[32].mxu1 }
 0x923   :  { %v3104_v28 = vadd.f32 %v4076_v55, %v3876_v54  ;;  %v3084_v6 = vpop.f32.mrb[33].mxu1 }
 0x924   :  { %v3103_v29 = vadd.f32 %v4077_v4, %v3084_v6 }
 0x925   :  { %v4714_v30 = vadd.f32 %v3573_v27, %v3104_v28 }
 0x926   :  { %v4716_v31 = vadd.f32 %v3573_v27, %v3103_v29 }
 0x927   :  { %v3120_v33 = vsel %vm89_vm0, %v4714_v30, 0.0 }
 0x928   :  { %3121 = vadd.xlane.f32.xlu1 %v3120_v33  ;;  %v3117_v14 = vsel %vm89_vm0, %v4716_v31, 0.0 }
 0x929   :  { %3118 = vadd.xlane.f32.xlu0 %v3117_v14 }
 0x943   :  { %v3879_v13 = vpop.f32.mrb[34].mxu1 }
 0x944   :  { %v3094_v34 = vpop.f32.mrb[35].mxu1  ;;  %v3106_v1 = vadd.f32 %v4078_v35, %v3879_v13 }
 0x945   :  { %v3105_v37 = vadd.f32 %v4079_v36, %v3094_v34  ;;  %v80_v36 = vld [vmem:[%s4845_s12] sm:$0xff] }
 0x946   :  { %v4730_v57 = vadd.f32 %v3573_v27, %v3106_v1 }
 0x947   :  { %v4728_v38 = vadd.f32 %v3573_v27, %v3105_v37  ;;  %v81_v37 = vld [vmem:[%s4845_s12 + $0x8] sm:$0xff] }
 0x948   :  { %v3126_v25 = vsel %vm89_vm0, %v4730_v57, 0.0 }
 0x949   :  { %v3123_v40 = vsel %vm89_vm0, %v4728_v38, 0.0 }
 0x94a   :  { %3124 = vadd.xlane.f32.xlu0 %v3123_v40  ;;  %v3940_v40 = vpack.c.bf16 %v81_v37, %v80_v36 }
 0x94c   :  { %3941 = vmatprep.subr.bf16.mxu1 %v3940_v40 }
 0x94d   :  { %3943 = vmatpush3.bf16.msra.mxu1 %v3940_v40 }
 0x94e   :  { %3127 = vadd.xlane.f32.xlu0 %v3126_v25  ;;  %v82_v25 = vld [vmem:[%s4845_s12 + $0x10] sm:$0xff] }
 0x9b5   :  { %v3122_v41 = vpop.xlane.xlu1 %3121 }
 0x9b6   :  { %v3130_v42 = vmul.f32 0.03125, %v3122_v41  ;;  %v3119_v43 = vpop.xlane.xlu0 %3118  ;;  %v83_v41 = vld [vmem:[%s4845_s12 + $0x18] sm:$0xff] }
 0x9b7   :  { %v3129_v44 = vmul.f32 0.03125, %v3119_v43  ;;  %v84_v43 = vld [vmem:[%s4845_s12 + $0x20] sm:$0xff] }
 0x9b8   :  { %v3134_v49 = vsub.f32 %v4714_v30, %v3130_v42  ;;  %v3944_v42 = vpack.c.bf16 %v83_v41, %v82_v25 }
 0x9b9   :  { %v3133_v7 = vsub.f32 %v4716_v31, %v3129_v44  ;;  %v85_v44 = vld [vmem:[%s4845_s12 + $0x28] sm:$0xff] }
 0x9ba   :  { %v3138_v20 = vmul.f32 %v3134_v49, %v3134_v49  ;;  %3945 = vmatprep.subr.bf16.mxu1 %v3944_v42 }
 0x9bb   :  { %v3137_v51 = vmul.f32 %v3133_v7, %v3133_v7  ;;  %3947 = vmatpush3.bf16.msra.mxu1 %v3944_v42 }
 0x9bc   :  { %v3144_v9 = vsel %vm89_vm0, %v3138_v20, 0.0  ;;  %v87_v20 = vld [vmem:[%s4845_s12 + $0x38] sm:$0xff] }
 0x9bd   :  { %3145 = vadd.xlane.f32.xlu1 %v3144_v9  ;;  %v3141_v10 = vsel %vm89_vm0, %v3137_v51, 0.0  ;;  %v3576_v9 = vld [vmem:[%s4846_s11] ss:$0 sm:$0xff] }
 0x9be   :  { %3142 = vadd.xlane.f32.xlu0 %v3141_v10 }
 0x9d7   :  { %v3125_v32 = vpop.xlane.xlu0 %3124 }
 0x9d8   :  { %v3131_v5 = vmul.f32 0.03125, %v3125_v32 }
 0x9da   :  { %v3135_v60 = vsub.f32 %v4728_v38, %v3131_v5 }
 0x9db   :  { %v3128_v61 = vpop.xlane.xlu0 %3127 }
 0x9dc   :  { %v3132_v63 = vmul.f32 0.03125, %v3128_v61  ;;  %v3139_v12 = vmul.f32 %v3135_v60, %v3135_v60 }
 0x9de   :  { %v3136_v46 = vsub.f32 %v4730_v57, %v3132_v63  ;;  %v3147_v0 = vsel %vm89_vm0, %v3139_v12, 0.0 }
 0x9df   :  { %3148 = vadd.xlane.f32.xlu0 %v3147_v0 }
 0x9e0   :  { %v3140_v16 = vmul.f32 %v3136_v46, %v3136_v46 }
 0x9e2   :  { %v3150_v21 = vsel %vm89_vm0, %v3140_v16, 0.0 }
 0x9e3   :  { %3151 = vadd.xlane.f32.xlu1 %v3150_v21 }
 0xa4a   :  { %v3146_v2 = vpop.xlane.xlu1 %3145 }
 0xa4b   :  { %v3154_v50 = vmul.f32 0.03125, %v3146_v2  ;;  %v3143_v48 = vpop.xlane.xlu0 %3142 }
 0xa4c   :  { %v3153_v47 = vmul.f32 0.03125, %v3143_v48 }
 0xa4d   :  { %v3158_v3 = vadd.f32 1e-05, %v3154_v50 }
 0xa4e   :  { %v3157_v39 = vadd.f32 1e-05, %v3153_v47 }
 0xa4f   :  { %4044 = vrsqrt.f32 %v3158_v3 }
 0xa50   :  { %4046 = vrsqrt.f32 %v3157_v39 }
 0xa59   :  { %v4045_v45 = vpop.eup %4044 }
 0xa5a   :  { %v4047_v11 = vpop.eup %4046  ;;  %v3166_v15 = vmul.f32 %v4045_v45, %v3134_v49  ;;  %v3948_v49 = vpack.c.bf16 %v85_v44, %v84_v43 }
 0xa5b   :  { %v3165_v17 = vmul.f32 %v4047_v11, %v3133_v7  ;;  %v86_v7 = vld [vmem:[%s4845_s12 + $0x30] sm:$0xff] }
 0xa5c   :  { %v3176_v53 = vmul.f32 %v3574_v8, %v3166_v15  ;;  %3949 = vmatprep.subr.bf16.mxu1 %v3948_v49  ;;  %v3952_v51 = vpack.c.bf16 %v87_v20, %v86_v7 }
 0xa5d   :  { %v3175_v52 = vmul.f32 %v3574_v8, %v3165_v17  ;;  %3951 = vmatpush3.bf16.msra.mxu1 %v3948_v49 }
 0xa5e   :  { %v3186_v24 = vadd.f32 %v3575_v22, %v3176_v53  ;;  %3953 = vmatprep.subr.bf16.mxu1 %v3952_v51 }
 0xa5f   :  { %v3185_v23 = vadd.f32 %v3575_v22, %v3175_v52 }
 0xa61   :  { %3888 = vmatprep.mubr.msk.f32.mxu0 %vm89_vm0, %v3185_v23  ;;  %3955 = vmatpush3.bf16.msra.mxu1 %v3952_v51 }
 0xa62   :  { %3889 = vmatmul.mubr.msk.f32.vlgmr.msra.gmra.mrb[36].mxu0 %vm89_vm0, %v3186_v24  ;;  %v3585_v24 = vld [vmem:[%s4847_s13] ss:$0 sm:$0xff] }
 0xa6c   :  { %v3149_v26 = vpop.xlane.xlu0 %3148 }
 0xa6d   :  { %v3155_v27 = vmul.f32 0.03125, %v3149_v26 }
 0xa6f   :  { %v3159_v54 = vadd.f32 1e-05, %v3155_v27 }
 0xa70   :  { %v3152_v55 = vpop.xlane.xlu1 %3151 }
 0xa71   :  { %4048 = vrsqrt.f32 %v3159_v54  ;;  %v3156_v28 = vmul.f32 0.03125, %v3152_v55 }
 0xa73   :  { %v3160_v6 = vadd.f32 1e-05, %v3156_v28 }
 0xa75   :  { %4050 = vrsqrt.f32 %v3160_v6 }
 0xa7b   :  { %v4049_v4 = vpop.eup %4048 }
 0xa7c   :  { %v3167_v29 = vmul.f32 %v4049_v4, %v3135_v60 }
 0xa7e   :  { %v3177_v33 = vmul.f32 %v3574_v8, %v3167_v29 }
 0xa7f   :  { %v4051_v14 = vpop.eup %4050 }
 0xa80   :  { %v3187_v13 = vadd.f32 %v3575_v22, %v3177_v33  ;;  %v3168_v34 = vmul.f32 %v4051_v14, %v3136_v46 }
 0xa82   :  { %3891 = vmatprep.mubr.msk.f32.mxu0 %vm89_vm0, %v3187_v13  ;;  %v3178_v35 = vmul.f32 %v3574_v8, %v3168_v34 }
 0xa84   :  { %v3188_v1 = vadd.f32 %v3575_v22, %v3178_v35 }
 0xa86   :  { %3892 = vmatmul.mubr.msk.f32.gmra.mrb[38].mxu0 %vm89_vm0, %v3188_v1 }
 0xb35   :  { %v3890_v10 = vpop.f32.mrb[36].mxu0 }
 0xb36   :  { %v3279_v32 = vadd.f32 %v3890_v10, %v3576_v9  ;;  %v3273_v5 = vpop.f32.mrb[37].mxu0 }
 0xb37   :  { %v3274_v18 = vadd.f32 %v3576_v9, %v3273_v5 }
 0xb38   :  { %v3582_v56 = vmul.f32 -1.702, %v3279_v32 }
 0xb39   :  { %v3581_v60 = vmul.f32 -1.702, %v3274_v18 }
 0xb3a   :  { %v3302_v58 = vmul.f32 1.442695, %v3582_v56 }
 0xb3b   :  { %v3300_v59 = vmul.f32 1.442695, %v3581_v60 }
 0xb3c   :  { %4052 = vpow2.f32 %v3302_v58 }
 0xb3d   :  { %4054 = vpow2.f32 %v3300_v59 }
 0xb46   :  { %v4053_v19 = vpop.eup %4052 }
 0xb47   :  { %v4055_v61 = vpop.eup %4054  ;;  %v3309_v62 = vadd.f32 1.0, %v4053_v19 }
 0xb48   :  { %v3308_v63 = vadd.f32 1.0, %v4055_v61 }
 0xb49   :  { %4056 = vrcp.f32 %v3309_v62 }
 0xb4a   :  { %4058 = vrcp.f32 %v3308_v63 }
 0xb53   :  { %v4057_v12 = vpop.eup %4056 }
 0xb54   :  { %v4059_v46 = vpop.eup %4058  ;;  %v3321_v16 = vmul.f32 %v4057_v12, %v3279_v32  ;;  %v3590_v12 = vld [vmem:[%s4848_s14] ss:$0 sm:$0xff] }
 0xb55   :  { %v3320_v0 = vmul.f32 %v4059_v46, %v3274_v18 }
 0xb57   :  { %3910 = vmatprep.mubr.msk.f32.mxu1 %vm3330_vm6, %v3320_v0 }
 0xb58   :  { %3911 = vmatmul.mubr.msk.f32.vlgmr.msra.gmra.mrb[36].mxu1 %vm3330_vm6, %v3321_v16  ;;  %v3591_v16 = vld [vmem:[%s4849_s15] ss:$0 sm:$0xff] }
 0xb59   :  { %v3893_v21 = vpop.f32.mrb[38].mxu0 }
 0xb5a   :  { %v3289_v2 = vadd.f32 %v3893_v21, %v3576_v9  ;;  %v3283_v50 = vpop.f32.mrb[39].mxu0 }
 0xb5b   :  { %v3284_v48 = vadd.f32 %v3576_v9, %v3283_v50 }
 0xb5c   :  { %v3584_v47 = vmul.f32 -1.702, %v3289_v2 }
 0xb5d   :  { %v3583_v3 = vmul.f32 -1.702, %v3284_v48 }
 0xb5e   :  { %v3306_v39 = vmul.f32 1.442695, %v3584_v47 }
 0xb5f   :  { %v3304_v45 = vmul.f32 1.442695, %v3583_v3 }
 0xb60   :  { %4060 = vpow2.f32 %v3306_v39 }
 0xb61   :  { %4062 = vpow2.f32 %v3304_v45 }
 0xb6a   :  { %v4061_v8 = vpop.eup %4060 }
 0xb6b   :  { %v4063_v11 = vpop.eup %4062  ;;  %v3311_v15 = vadd.f32 1.0, %v4061_v8 }
 0xb6c   :  { %v3310_v17 = vadd.f32 1.0, %v4063_v11 }
 0xb6d   :  { %4064 = vrcp.f32 %v3311_v15 }
 0xb6e   :  { %4066 = vrcp.f32 %v3310_v17 }
 0xb77   :  { %v4065_v22 = vpop.eup %4064 }
 0xb78   :  { %v4067_v53 = vpop.eup %4066  ;;  %v3323_v23 = vmul.f32 %v4065_v22, %v3289_v2 }
 0xb79   :  { %v3322_v52 = vmul.f32 %v4067_v53, %v3284_v48 }
 0xb7b   :  { %3913 = vmatprep.mubr.msk.f32.mxu1 %vm3330_vm6, %v3322_v52 }
 0xb7c   :  { %3914 = vmatmul.mubr.msk.f32.gmra.mrb[38].mxu1 %vm3330_vm6, %v3323_v23 }
 0xc2b   :  { %v3912_v26 = vpop.f32.mrb[36].mxu1 }
 0xc2c   :  { %v3415_v27 = vadd.f32 %v3912_v26, %v3585_v24  ;;  %v3409_v54 = vpop.f32.mrb[37].mxu1 }
 0xc2d   :  { %v3410_v55 = vadd.f32 %v3585_v24, %v3409_v54 }
 0xc2e   :  { %v3429_v28 = vadd.f32 %v3415_v27, %v4714_v30 }
 0xc2f   :  { %v3428_v6 = vadd.f32 %v3410_v55, %v4716_v31 }
 0xc30   :  { %v3437_v4 = vsel %vm89_vm0, %v3429_v28, 0.0 }
 0xc31   :  { %3438 = vadd.xlane.f32.xlu1 %v3437_v4  ;;  %v3434_v29 = vsel %vm89_vm0, %v3428_v6, 0.0 }
 0xc32   :  { %3435 = vadd.xlane.f32.xlu0 %v3434_v29 }
 0xc4f   :  { %v3915_v33 = vpop.f32.mrb[38].mxu1 }
 0xc50   :  { %v3425_v14 = vadd.f32 %v3915_v33, %v3585_v24  ;;  %v3419_v13 = vpop.f32.mrb[39].mxu1 }
 0xc51   :  { %v3420_v34 = vadd.f32 %v3585_v24, %v3419_v13 }
 0xc52   :  { %v3431_v35 = vadd.f32 %v3425_v14, %v4730_v57 }
 0xc53   :  { %v3430_v1 = vadd.f32 %v3420_v34, %v4728_v38 }
 0xc54   :  { %v3443_v36 = vsel %vm89_vm0, %v3431_v35, 0.0 }
 0xc55   :  { %3444 = vadd.xlane.f32.xlu1 %v3443_v36  ;;  %v3440_v30 = vsel %vm89_vm0, %v3430_v1, 0.0 }
 0xc56   :  { %3441 = vadd.xlane.f32.xlu0 %v3440_v30 }
 0xcbe   :  { %v3439_v31 = vpop.xlane.xlu1 %3438 }
 0xcbf   :  { %v3447_v37 = vmul.f32 0.03125, %v3439_v31  ;;  %v3436_v40 = vpop.xlane.xlu0 %3435 }
 0xcc0   :  { %v3446_v25 = vmul.f32 0.03125, %v3436_v40 }
 0xcc1   :  { %v3451_v41 = vsub.f32 %v3429_v28, %v3447_v37 }
 0xcc2   :  { %v3450_v42 = vsub.f32 %v3428_v6, %v3446_v25 }
 0xcc3   :  { %v3455_v43 = vmul.f32 %v3451_v41, %v3451_v41 }
 0xcc4   :  { %v3454_v44 = vmul.f32 %v3450_v42, %v3450_v42 }
 0xcc5   :  { %v3461_v49 = vsel %vm89_vm0, %v3455_v43, 0.0 }
 0xcc6   :  { %3462 = vadd.xlane.f32.xlu1 %v3461_v49  ;;  %v3458_v57 = vsel %vm89_vm0, %v3454_v44, 0.0 }
 0xcc7   :  { %3459 = vadd.xlane.f32.xlu0 %v3458_v57 }
 0xce2   :  { %v3445_v38 = vpop.xlane.xlu1 %3444 }
 0xce3   :  { %v3449_v7 = vmul.f32 0.03125, %v3445_v38  ;;  %v3442_v20 = vpop.xlane.xlu0 %3441 }
 0xce4   :  { %v3448_v51 = vmul.f32 0.03125, %v3442_v20 }
 0xce5   :  { %v3453_v9 = vsub.f32 %v3431_v35, %v3449_v7 }
 0xce6   :  { %v3452_v10 = vsub.f32 %v3430_v1, %v3448_v51 }
 0xce7   :  { %v3457_v32 = vmul.f32 %v3453_v9, %v3453_v9 }
 0xce8   :  { %v3456_v5 = vmul.f32 %v3452_v10, %v3452_v10 }
 0xce9   :  { %v3467_v18 = vsel %vm89_vm0, %v3457_v32, 0.0 }
 0xcea   :  { %3468 = vadd.xlane.f32.xlu1 %v3467_v18  ;;  %v3464_v56 = vsel %vm89_vm0, %v3456_v5, 0.0 }
 0xceb   :  { %3465 = vadd.xlane.f32.xlu0 %v3464_v56 }
 0xd53   :  { %v3463_v60 = vpop.xlane.xlu1 %3462 }
 0xd54   :  { %v3471_v58 = vmul.f32 0.03125, %v3463_v60  ;;  %v3460_v59 = vpop.xlane.xlu0 %3459 }
 0xd55   :  { %v3470_v19 = vmul.f32 0.03125, %v3460_v59 }
 0xd56   :  { %v3475_v61 = vadd.f32 1e-05, %v3471_v58 }
 0xd57   :  { %v3474_v62 = vadd.f32 1e-05, %v3470_v19 }
 0xd58   :  { %4068 = vrsqrt.f32 %v3475_v61 }
 0xd59   :  { %4070 = vrsqrt.f32 %v3474_v62 }
 0xd62   :  { %v4069_v63 = vpop.eup %4068 }
 0xd63   :  { %v4071_v46 = vpop.eup %4070  ;;  %v3483_v0 = vmul.f32 %v4069_v63, %v3451_v41 }
 0xd64   :  { %v3482_v21 = vmul.f32 %v4071_v46, %v3450_v42 }
 0xd65   :  { %v3493_v2 = vmul.f32 %v3590_v12, %v3483_v0 }
 0xd66   :  { %v3492_v50 = vmul.f32 %v3590_v12, %v3482_v21 }
 0xd67   :  { %v3503_v48 = vadd.f32 %v3591_v16, %v3493_v2 }
 0xd68   :  { %v3502_v47 = vadd.f32 %v3591_v16, %v3492_v50 }
 0xd69   :  { %3507 = vst.msk [vmem:[%s4850_s16 + $0x8] sm:$0xff] %vm89_vm0, %v3503_v48 }
 0xd6a   :  { %3506 = vst.msk [vmem:[%s4850_s16] sm:$0xff] %vm89_vm0, %v3502_v47 }
 0xd77   :  { %v3469_v3 = vpop.xlane.xlu1 %3468 }
 0xd78   :  { %v3473_v39 = vmul.f32 0.03125, %v3469_v3  ;;  %v3466_v45 = vpop.xlane.xlu0 %3465 }
 0xd79   :  { %v3472_v8 = vmul.f32 0.03125, %v3466_v45 }
 0xd7a   :  { %v3477_v11 = vadd.f32 1e-05, %v3473_v39 }
 0xd7b   :  { %v3476_v15 = vadd.f32 1e-05, %v3472_v8 }
 0xd7c   :  { %4072 = vrsqrt.f32 %v3477_v11 }
 0xd7d   :  { %4074 = vrsqrt.f32 %v3476_v15 }
 0xd86   :  { %v4073_v17 = vpop.eup %4072 }
 0xd87   :  { %v4075_v22 = vpop.eup %4074  ;;  %v3485_v53 = vmul.f32 %v4073_v17, %v3453_v9 }
 0xd88   :  { %v3484_v52 = vmul.f32 %v4075_v22, %v3452_v10 }
 0xd89   :  { %v3495_v23 = vmul.f32 %v3590_v12, %v3485_v53 }
 0xd8a   :  { %v3494_v24 = vmul.f32 %v3590_v12, %v3484_v52 }
 0xd8b   :  { %v3505_v26 = vadd.f32 %v3591_v16, %v3495_v23 }
 0xd8c   :  { %v3504_v27 = vadd.f32 %v3591_v16, %v3494_v24 }
 0xd8d   :  { %3509 = vst.msk [vmem:[%s4850_s16 + $0x18] sm:$0xff] %vm89_vm0, %v3505_v26 }
 0xd8e   :  { %3508 = vst.msk [vmem:[%s4850_s16 + $0x10] sm:$0xff] %vm89_vm0, %v3504_v27 }

// kernel: forward.3
= control target key start
LH: loop header
LB: loop body
LE: loop exit
PB: predicated region body
PF: predicated region fallthrough
CT: control target
= control target key end

     0   :  { %s5789_s27 = smov 0   ;;  %s6739_s0 = inlined_call_operand.vmem [shape: f32[2,8,768], index: 0, kind: input, shape index: {}]   ;;  %s6740_s1 = inlined_call_operand.vmem [shape: f32[768,32], index: 1, kind: input, shape index: {}]   ;;  %s6741_s2 = inlined_call_operand.vmem [shape: f32[1,32], index: 2, kind: input, shape index: {}]   ;;  %s6742_s3 = inlined_call_operand.vmem [shape: f32[5,32], index: 3, kind: input, shape index: {}]   ;;  %s6743_s4 = inlined_call_operand.vmem [shape: f32[1,32], index: 4, kind: input, shape index: {}]   ;;  %s6744_s5 = inlined_call_operand.vmem [shape: f32[1,32], index: 5, kind: input, shape index: {}]   ;;  %s6745_s6 = inlined_call_operand.vmem [shape: f32[2,1,32], index: 6, kind: input, shape index: {}]   ;;  %s6746_s7 = inlined_call_operand.vmem [shape: f32[2,1,32], index: 7, kind: input, shape index: {}]   ;;  %s6747_s8 = inlined_call_operand.vmem [shape: f32[2,32,96], index: 8, kind: input, shape index: {}]   ;;  %s6748_s9 = inlined_call_operand.vmem [shape: f32[2,1,96], index: 9, kind: input, shape index: {}]   ;;  %s6749_s10 = inlined_call_operand.vmem [shape: f32[2,32,32], index: 10, kind: input, shape index: {}]   ;;  %s6750_s11 = inlined_call_operand.vmem [shape: f32[2,1,32], index: 11, kind: input, shape index: {}]   ;;  %s6751_s12 = inlined_call_operand.vmem [shape: f32[2,1,32], index: 12, kind: input, shape index: {}]   ;;  %s6752_s13 = inlined_call_operand.vmem [shape: f32[2,1,32], index: 13, kind: input, shape index: {}]   ;;  %s6753_s14 = inlined_call_operand.vmem [shape: f32[2,32,64], index: 14, kind: input, shape index: {}]   ;;  %s6754_s15 = inlined_call_operand.vmem [shape: f32[2,1,64], index: 15, kind: input, shape index: {}]   ;;  %s6755_s16 = inlined_call_operand.vmem [shape: f32[2,64,32], index: 16, kind: input, shape index: {}]   ;;  %s6756_s17 = inlined_call_operand.vmem [shape: f32[2,1,32], index: 17, kind: input, shape index: {}]   ;;  %s6757_s18 = inlined_call_operand.vmem [shape: f32[2,10,32], index: 18, kind: output, shape index: {}]  }
   0x1   :  { %6778 = sst [smem:[#allocation4_spill]] %s6739_s0 }
   0x2   :  { %6779 = sst [smem:[#allocation5_spill]] %s6740_s1 }
   0x3   :  { %6780 = sst [smem:[#allocation6_spill]] %s6741_s2 }
   0x4 LB: > { %6781 = sst [smem:[#allocation3_spill]] %s5676_s27  ;;  %s4739_s28 = sadd.s32 4294967295, %s5676_s27   ;;  %s5676_s27 = sphi %s5789_s27, %s28_s27  }
   0x5   : > { %p4743_p0 = scmp.ge.s32.totalorder %s5676_s27, 1  ;;  %p512_p1 = scmp.lt.s32.totalorder %s5676_s27, 3 }
   0x7   : > { %p513_p2 = pnand %p4743_p0, %p512_p1 }
   0x8   : > { %s6782_s0 = sld [smem:[#allocation5_spill]] (!%p513_p2)  ;;  %p5862_p3 = scmp.lt.s32.totalorder (!%p513_p2), %s4739_s28, 1  ;;  %vm891_vm0 = vcmask (!%p513_p2), 253952   ;;  %vm897_vm1 = vcmask (!%p513_p2), 257024   ;;  %vm903_vm2 = vcmask (!%p513_p2), 261124   ;;  %vm909_vm3 = vcmask (!%p513_p2), 261120  }
   0x9   : > { %516 = sbr.rel (%p513_p2) target bundleno = 6816 (0x1aa0), region = 92  ;;  %s6784_s26 = sld [smem:[#allocation4_spill]] (!%p513_p2)  ;;  %vm913_vm4 = vcmask (!%p513_p2), 254976   ;;  %vm5679_vm5 = vmmov (!%p513_p2), 0   ;;  %vm1114_vm6 = vcmask (!%p513_p2), 64512   ;;  %vm1190_vm7 = vcmask (!%p513_p2), 36864  }
   0xa   : > { %s6785_s29 = sld [smem:[#allocation6_spill]] (!%p513_p2)  ;;  %s5680_s21 = smov (!%p513_p2), 96   ;;  %vm1208_vm8 = vcmask (!%p513_p2), 1044480   ;;  %vm1204_vm9 = vcmask (!%p513_p2), 39936   ;;  %vm1281_vm10 = vcmask (!%p513_p2), 61440   ;;  %vm1803_vm11 = vcmask (!%p513_p2), 1042432  }
   0xb   : > { %s5681_s2 = smov (!%p513_p2), 88   ;;  %s6766_s23 = smov (!%p513_p2), 64   ;;  %vm1454_vm12 = vcmask (!%p513_p2), 127040   ;;  %vm1627_vm13 = vcmask (!%p513_p2), 192640   ;;  %vm1800_vm14 = vcmask (!%p513_p2), 258240   ;;  %vm2733_vm15 = vcmask (!%p513_p2), 523264  }
   0xc   : > { %s6772_s24 = smov (!%p513_p2), 80   ;;  %s6768_s25 = smov (!%p513_p2), 72  }
   0xd   : > { %s6762_s30 = smov (!%p513_p2), 40   ;;  %s6764_s19 = smov (!%p513_p2), 48  }
   0xe   : > { %v598_v0 = vld [vmem:[%s6782_s0 + $0x80] sm:$0xff] (!%p513_p2)  ;;  %v599_v1 = vld [vmem:[%s6782_s0 + $0x88] sm:$0xff] (!%p513_p2)  ;;  %v600_v11 = vld [vmem:[%s6782_s0 + $0x90] sm:$0xff] (!%p513_p2)  ;;  %s5691_s1 = smov (!%p513_p2), 8   ;;  %s5692_s20 = smov (!%p513_p2), 16  }
   0xf   : > { %v630_v2 = vld [vmem:[%s6782_s0 + $0x180] sm:$0xff] (!%p513_p2)  ;;  %v5369_v3 = vpack.c.bf16 (!%p513_p2), %v599_v1, %v598_v0  ;;  %v631_v4 = vld [vmem:[%s6782_s0 + $0x188] sm:$0xff] (!%p513_p2)  ;;  %v601_v13 = vld [vmem:[%s6782_s0 + $0x98] sm:$0xff] (!%p513_p2) }
  0x10   : > { %v582_v5 = vld [vmem:[%s6782_s0] sm:$0xff]  ;;  %v583_v6 = vld [vmem:[%s6782_s0 + $0x8] sm:$0xff]  ;;  %v5401_v7 = vpack.c.bf16 %v631_v4, %v630_v2  ;;  %v632_v14 = vld [vmem:[%s6782_s0 + $0x190] sm:$0xff]  ;;  %v5373_v16 = vpack.c.bf16 %v601_v13, %v600_v11  ;;  %s6797_s28 = smov (!%p5862_p3, %s4739_s28), 1 }
  0x11   : > { %v5371_v8 = vpack.c.bf16 %v583_v6, %v582_v5  ;;  %v614_v9 = vld [vmem:[%s6782_s0 + $0x100] sm:$0xff]  ;;  %v615_v10 = vld [vmem:[%s6782_s0 + $0x108] sm:$0xff]  ;;  %5370 = vmatprep.subr.bf16.mxu0 %v5369_v3  ;;  %v633_v15 = vld [vmem:[%s6782_s0 + $0x198] sm:$0xff]  ;;  %s5545_s22 = smul.u32 48, %s6797_s28 }
  0x12   : > { %v5403_v12 = vpack.c.bf16 %v615_v10, %v614_v9  ;;  %5402 = vmatprep.subr.bf16.mxu1 %v5401_v7  ;;  %v5405_v17 = vpack.c.bf16 %v633_v15, %v632_v14  ;;  %v584_v18 = vld [vmem:[%s6782_s0 + $0x10] sm:$0xff]  ;;  %v585_v19 = vld [vmem:[%s6782_s0 + $0x18] sm:$0xff]  ;;  %v602_v23 = vld [vmem:[%s6782_s0 + $0xa0] sm:$0xff] }
  0x13   : > { %5372 = vmatpush3.bf16.msra.mxu0 %v5371_v8  ;;  %v616_v20 = vld [vmem:[%s6782_s0 + $0x110] sm:$0xff]  ;;  %v5375_v21 = vpack.c.bf16 %v585_v19, %v584_v18  ;;  %v617_v22 = vld [vmem:[%s6782_s0 + $0x118] sm:$0xff]  ;;  %v603_v24 = vld [vmem:[%s6782_s0 + $0xa8] sm:$0xff]  ;;  %s5963_s27 = scalar_lea.vmem %s6784_s26, %s5545_s22  ;;  %s6776_s22 = smov 120  }
  0x14   : > { %5404 = vmatpush3.bf16.msra.mxu1 %v5403_v12  ;;  %5374 = vmatprep.subr.bf16.mxu0 %v5373_v16  ;;  %v5407_v25 = vpack.c.bf16 %v617_v22, %v616_v20  ;;  %v5377_v26 = vpack.c.bf16 %v603_v24, %v602_v23  ;;  %v634_v27 = vld [vmem:[%s6782_s0 + $0x1a0] sm:$0xff]  ;;  %v635_v28 = vld [vmem:[%s6782_s0 + $0x1a8] sm:$0xff]  ;;  %v604_v35 = vld [vmem:[%s6782_s0 + $0xb0] sm:$0xff]  ;;  %s6760_s26 = smov 56  }
  0x15   : > { %5406 = vmatprep.subr.bf16.mxu1 %v5405_v17  ;;  %v586_v29 = vld [vmem:[%s6782_s0 + $0x20] sm:$0xff]  ;;  %v5409_v30 = vpack.c.bf16 %v635_v28, %v634_v27  ;;  %v587_v31 = vld [vmem:[%s6782_s0 + $0x28] sm:$0xff]  ;;  %v605_v36 = vld [vmem:[%s6782_s0 + $0xb8] sm:$0xff] }
  0x16   : > { %v618_v32 = vld [vmem:[%s6782_s0 + $0x120] sm:$0xff]  ;;  %v619_v33 = vld [vmem:[%s6782_s0 + $0x128] sm:$0xff]  ;;  %v5379_v34 = vpack.c.bf16 %v587_v31, %v586_v29  ;;  %v636_v37 = vld [vmem:[%s6782_s0 + $0x1b0] sm:$0xff]  ;;  %v5381_v39 = vpack.c.bf16 %v605_v36, %v604_v35 }
  0x17   : > { %5376 = vmatpush3.bf16.msra.mxu0 %v5375_v21  ;;  %v5411_v38 = vpack.c.bf16 %v619_v33, %v618_v32  ;;  %v637_v40 = vld [vmem:[%s6782_s0 + $0x1b8] sm:$0xff]  ;;  %v588_v41 = vld [vmem:[%s6782_s0 + $0x30] sm:$0xff]  ;;  %v606_v46 = vld [vmem:[%s6782_s0 + $0xc0] sm:$0xff] }
  0x18   : > { %5408 = vmatpush3.bf16.msra.mxu1 %v5407_v25  ;;  %5378 = vmatprep.subr.bf16.mxu0 %v5377_v26  ;;  %v589_v42 = vld [vmem:[%s6782_s0 + $0x38] sm:$0xff]  ;;  %v5413_v43 = vpack.c.bf16 %v637_v40, %v636_v37  ;;  %v620_v44 = vld [vmem:[%s6782_s0 + $0x130] sm:$0xff]  ;;  %v607_v47 = vld [vmem:[%s6782_s0 + $0xc8] sm:$0xff] }
  0x19   : > { %5410 = vmatprep.subr.bf16.mxu1 %v5409_v30  ;;  %v621_v45 = vld [vmem:[%s6782_s0 + $0x138] sm:$0xff]  ;;  %v638_v48 = vld [vmem:[%s6782_s0 + $0x1c0] sm:$0xff]  ;;  %v639_v49 = vld [vmem:[%s6782_s0 + $0x1c8] sm:$0xff]  ;;  %v5383_v50 = vpack.c.bf16 %v589_v42, %v588_v41  ;;  %v5385_v52 = vpack.c.bf16 %v607_v47, %v606_v46 }
  0x1a   : > { %v5415_v51 = vpack.c.bf16 %v621_v45, %v620_v44  ;;  %v590_v53 = vld [vmem:[%s6782_s0 + $0x40] sm:$0xff]  ;;  %v591_v54 = vld [vmem:[%s6782_s0 + $0x48] sm:$0xff]  ;;  %v5417_v56 = vpack.c.bf16 %v639_v49, %v638_v48  ;;  %v608_v58 = vld [vmem:[%s6782_s0 + $0xd0] sm:$0xff] }
  0x1b   : > { %5380 = vmatpush3.bf16.msra.mxu0 %v5379_v34  ;;  %v622_v55 = vld [vmem:[%s6782_s0 + $0x140] sm:$0xff]  ;;  %v623_v57 = vld [vmem:[%s6782_s0 + $0x148] sm:$0xff]  ;;  %v609_v59 = vld [vmem:[%s6782_s0 + $0xd8] sm:$0xff]  ;;  %v5387_v62 = vpack.c.bf16 %v591_v54, %v590_v53 }
  0x1c   : > { %5412 = vmatpush3.bf16.msra.mxu1 %v5411_v38  ;;  %5382 = vmatprep.subr.bf16.mxu0 %v5381_v39  ;;  %v640_v60 = vld [vmem:[%s6782_s0 + $0x1d0] sm:$0xff]  ;;  %v641_v61 = vld [vmem:[%s6782_s0 + $0x1d8] sm:$0xff]  ;;  %v5419_v63 = vpack.c.bf16 %v623_v57, %v622_v55  ;;  %v5389_v0 = vpack.c.bf16 %v609_v59, %v608_v58  ;;  %v610_v6 = vld [vmem:[%s6782_s0 + $0xe0] sm:$0xff] }
  0x1d   : > { %5414 = vmatprep.subr.bf16.mxu1 %v5413_v43  ;;  %v592_v1 = vld [vmem:[%s6782_s0 + $0x50] sm:$0xff]  ;;  %v593_v2 = vld [vmem:[%s6782_s0 + $0x58] sm:$0xff]  ;;  %v5421_v4 = vpack.c.bf16 %v641_v61, %v640_v60  ;;  %v611_v7 = vld [vmem:[%s6782_s0 + $0xe8] sm:$0xff] }
  0x1e   : > { %v624_v3 = vld [vmem:[%s6782_s0 + $0x150] sm:$0xff]  ;;  %v625_v5 = vld [vmem:[%s6782_s0 + $0x158] sm:$0xff]  ;;  %v642_v8 = vld [vmem:[%s6782_s0 + $0x1e0] sm:$0xff]  ;;  %v5391_v10 = vpack.c.bf16 %v593_v2, %v592_v1  ;;  %v5393_v14 = vpack.c.bf16 %v611_v7, %v610_v6 }
  0x1f   : > { %5384 = vmatpush3.bf16.msra.mxu0 %v5383_v50  ;;  %v643_v9 = vld [vmem:[%s6782_s0 + $0x1e8] sm:$0xff]  ;;  %v594_v11 = vld [vmem:[%s6782_s0 + $0x60] sm:$0xff]  ;;  %v5423_v13 = vpack.c.bf16 %v625_v5, %v624_v3  ;;  %v579_v17 = vld [vmem:[%s5963_s27 + $0x18] sm:$0xff] }
  0x20   : > { %5416 = vmatpush3.bf16.msra.mxu1 %v5415_v51  ;;  %5386 = vmatprep.subr.bf16.mxu0 %v5385_v52  ;;  %v595_v12 = vld [vmem:[%s6782_s0 + $0x68] sm:$0xff]  ;;  %v626_v15 = vld [vmem:[%s6782_s0 + $0x160] sm:$0xff]  ;;  %v5425_v18 = vpack.c.bf16 %v643_v9, %v642_v8  ;;  %v612_v20 = vld [vmem:[%s6782_s0 + $0xf0] sm:$0xff] }
  0x21   : > { %5418 = vmatprep.subr.bf16.mxu1 %v5417_v56  ;;  %v577_v16 = vld [vmem:[%s5963_s27 + $0x8] sm:$0xff]  ;;  %v613_v21 = vld [vmem:[%s6782_s0 + $0xf8] sm:$0xff]  ;;  %v644_v22 = vld [vmem:[%s6782_s0 + $0x1f0] sm:$0xff]  ;;  %812 = vmatprep.mubr.f32.mxu1 %v579_v17  ;;  %v5395_v24 = vpack.c.bf16 %v595_v12, %v594_v11 }
  0x22   : > { %v627_v19 = vld [vmem:[%s6782_s0 + $0x168] sm:$0xff]  ;;  %742 = vmatprep.mubr.f32.mxu0 %v577_v16  ;;  %v645_v23 = vld [vmem:[%s6782_s0 + $0x1f8] sm:$0xff]  ;;  %v5397_v26 = vpack.c.bf16 %v613_v21, %v612_v20  ;;  %v596_v27 = vld [vmem:[%s6782_s0 + $0x70] sm:$0xff] }
  0x23   : > { %5388 = vmatpush3.bf16.msra.mxu0 %v5387_v62  ;;  %v5427_v25 = vpack.c.bf16 %v627_v19, %v626_v15  ;;  %v597_v28 = vld [vmem:[%s6782_s0 + $0x78] sm:$0xff]  ;;  %v628_v29 = vld [vmem:[%s6782_s0 + $0x170] sm:$0xff]  ;;  %v5429_v30 = vpack.c.bf16 %v645_v23, %v644_v22  ;;  %v662_v32 = vld [vmem:[%s6782_s0 + $0x280] sm:$0xff] }
  0x24   : > { %5420 = vmatpush3.bf16.msra.mxu1 %v5419_v63  ;;  %5390 = vmatprep.subr.bf16.mxu0 %v5389_v0  ;;  %v629_v31 = vld [vmem:[%s6782_s0 + $0x178] sm:$0xff]  ;;  %v663_v33 = vld [vmem:[%s6782_s0 + $0x288] sm:$0xff]  ;;  %v5399_v34 = vpack.c.bf16 %v597_v28, %v596_v27  ;;  %v646_v37 = vld [vmem:[%s6782_s0 + $0x200] sm:$0xff] }
  0x25   : > { %5422 = vmatprep.subr.bf16.mxu1 %v5421_v4  ;;  %v5431_v35 = vpack.c.bf16 %v629_v31, %v628_v29  ;;  %v5433_v36 = vpack.c.bf16 %v663_v33, %v662_v32  ;;  %v647_v38 = vld [vmem:[%s6782_s0 + $0x208] sm:$0xff]  ;;  %v664_v39 = vld [vmem:[%s6782_s0 + $0x290] sm:$0xff]  ;;  %v665_v40 = vld [vmem:[%s6782_s0 + $0x298] sm:$0xff] }
  0x26   : > { %v576_v41 = vld [vmem:[%s5963_s27] sm:$0xff]  ;;  %v5435_v42 = vpack.c.bf16 %v647_v38, %v646_v37  ;;  %v578_v43 = vld [vmem:[%s5963_s27 + $0x10] sm:$0xff]  ;;  %v5437_v44 = vpack.c.bf16 %v665_v40, %v664_v39  ;;  %v649_v46 = vld [vmem:[%s6782_s0 + $0x218] sm:$0xff] }
  0x27   : > { %5392 = vmatpush3.bf16.msra.mxu0 %v5391_v10  ;;  %v648_v45 = vld [vmem:[%s6782_s0 + $0x210] sm:$0xff]  ;;  %v666_v47 = vld [vmem:[%s6782_s0 + $0x2a0] sm:$0xff]  ;;  %v667_v48 = vld [vmem:[%s6782_s0 + $0x2a8] sm:$0xff] }
  0x28   : > { %5424 = vmatpush3.bf16.msra.mxu1 %v5423_v13  ;;  %5394 = vmatprep.subr.bf16.mxu0 %v5393_v14  ;;  %v581_v49 = vld [vmem:[%s5963_s27 + $0x28] sm:$0xff]  ;;  %v5439_v50 = vpack.c.bf16 %v649_v46, %v648_v45  ;;  %v5441_v51 = vpack.c.bf16 %v667_v48, %v666_v47  ;;  %v650_v52 = vld [vmem:[%s6782_s0 + $0x220] sm:$0xff]  ;;  %v668_v54 = vld [vmem:[%s6782_s0 + $0x2b0] sm:$0xff] }
  0x29   : > { %5426 = vmatprep.subr.bf16.mxu1 %v5425_v18  ;;  %v651_v53 = vld [vmem:[%s6782_s0 + $0x228] sm:$0xff]  ;;  %v669_v55 = vld [vmem:[%s6782_s0 + $0x2b8] sm:$0xff]  ;;  %v652_v58 = vld [vmem:[%s6782_s0 + $0x230] sm:$0xff] }
  0x2a   : > { %v5443_v56 = vpack.c.bf16 %v651_v53, %v650_v52  ;;  %v5445_v57 = vpack.c.bf16 %v669_v55, %v668_v54  ;;  %v653_v59 = vld [vmem:[%s6782_s0 + $0x238] sm:$0xff]  ;;  %v670_v60 = vld [vmem:[%s6782_s0 + $0x2c0] sm:$0xff]  ;;  %v671_v61 = vld [vmem:[%s6782_s0 + $0x2c8] sm:$0xff] }
  0x2b   : > { %5396 = vmatpush3.bf16.msra.mxu0 %v5395_v24  ;;  %v5447_v62 = vpack.c.bf16 %v653_v59, %v652_v58  ;;  %v5449_v63 = vpack.c.bf16 %v671_v61, %v670_v60  ;;  %v654_v0 = vld [vmem:[%s6782_s0 + $0x240] sm:$0xff]  ;;  %v655_v1 = vld [vmem:[%s6782_s0 + $0x248] sm:$0xff]  ;;  %v672_v2 = vld [vmem:[%s6782_s0 + $0x2d0] sm:$0xff] }
  0x2c   : > { %5428 = vmatpush3.bf16.msra.mxu1 %v5427_v25  ;;  %5398 = vmatprep.subr.bf16.mxu0 %v5397_v26  ;;  %v673_v3 = vld [vmem:[%s6782_s0 + $0x2d8] sm:$0xff]  ;;  %v5451_v4 = vpack.c.bf16 %v655_v1, %v654_v0  ;;  %v656_v6 = vld [vmem:[%s6782_s0 + $0x250] sm:$0xff]  ;;  %v674_v8 = vld [vmem:[%s6782_s0 + $0x2e0] sm:$0xff] }
  0x2d   : > { %5430 = vmatprep.subr.bf16.mxu1 %v5429_v30  ;;  %v5453_v5 = vpack.c.bf16 %v673_v3, %v672_v2  ;;  %v657_v7 = vld [vmem:[%s6782_s0 + $0x258] sm:$0xff]  ;;  %v675_v9 = vld [vmem:[%s6782_s0 + $0x2e8] sm:$0xff]  ;;  %v658_v12 = vld [vmem:[%s6782_s0 + $0x260] sm:$0xff] }
  0x2e   : > { %v5455_v10 = vpack.c.bf16 %v657_v7, %v656_v6  ;;  %v5457_v11 = vpack.c.bf16 %v675_v9, %v674_v8  ;;  %v659_v13 = vld [vmem:[%s6782_s0 + $0x268] sm:$0xff]  ;;  %v676_v14 = vld [vmem:[%s6782_s0 + $0x2f0] sm:$0xff]  ;;  %v677_v15 = vld [vmem:[%s6782_s0 + $0x2f8] sm:$0xff] }
  0x2f   : > { %5400 = vmatpush3.bf16.msra.mxu0 %v5399_v34  ;;  %v5459_v16 = vpack.c.bf16 %v659_v13, %v658_v12  ;;  %v5461_v17 = vpack.c.bf16 %v677_v15, %v676_v14  ;;  %v660_v18 = vld [vmem:[%s6782_s0 + $0x270] sm:$0xff]  ;;  %v661_v19 = vld [vmem:[%s6782_s0 + $0x278] sm:$0xff]  ;;  %v580_v21 = vld [vmem:[%s5963_s27 + $0x20] sm:$0xff]  ;;  %s6770_s27 = smov 104  }
  0x30   : > { %5432 = vmatpush3.bf16.msra.mxu1 %v5431_v35  ;;  %5434 = vmatprep.subr.bf16.mxu0 %v5433_v36  ;;  %v5463_v20 = vpack.c.bf16 %v661_v19, %v660_v18  ;;  %v888_v22 = vld [vmem:[%s6742_s3] sm:$0x1f]  ;;  %v957_v19 = vld [vmem:[%s6747_s8 + $0x8] sm:$0xff] }
  0x31   : > { %v889_v23 = vld [vmem:[%s6785_s29] sm:$0x1]  ;;  %v894_v35 = vrot.slane %v888_v22, 1  ;;  %v900_v36 = vrot.slane %v888_v22, 5  ;;  %s6774_s29 = smov 112  }
  0x32   : > { %743 = vmatmul.mubr.f32.vlgmr.msra.gmra.mrb[0].mxu0 %v576_v41  ;;  %v890_v24 = vadd.f32 %v889_v23, %v888_v22  ;;  %v4747_v61 = vld [vmem:[%s6743_s4] ss:$0 sm:$0xff]  ;;  %v959_v22 = vld [vmem:[%s6747_s8 + $0x18] sm:$0xff] }
  0x33   : > { %813 = vmatmul.mubr.f32.vlgmr.msra.gmra.mrb[0].mxu1 %v578_v43  ;;  %5436 = vmatpush3.bf16.msra.mxu0 %v5435_v42  ;;  %v956_v18 = vld [vmem:[%s6747_s8] sm:$0xff] }
  0x34   : > { %5438 = vmatprep.subr.bf16.mxu0 %v5437_v44  ;;  %882 = vmatprep.mubr.f32.mxu0 %v581_v49  ;;  %892 = vst.msk [vmem:[#allocation2] sm:$0x1] %vm891_vm0, %v890_v24  ;;  %899 = vst.msk [vmem:[#allocation2 + $0x5] sm:$0x1] %vm891_vm0, %v890_v24 }
  0x37   : > { %5440 = vmatpush3.bf16.msra.mxu0 %v5439_v50 }
  0x38   : > { %5442 = vmatprep.subr.bf16.mxu0 %v5441_v51 }
  0x3b   : > { %5444 = vmatpush3.bf16.msra.mxu0 %v5443_v56 }
  0x3c   : > { %5446 = vmatprep.subr.bf16.mxu0 %v5445_v57 }
  0x3f   : > { %5448 = vmatpush3.bf16.msra.mxu0 %v5447_v62 }
  0x40   : > { %5450 = vmatprep.subr.bf16.mxu0 %v5449_v63  ;;  %v4748_v63 = vld [vmem:[%s6744_s5] ss:$0 sm:$0xff] }
  0x43   : > { %5452 = vmatpush3.bf16.msra.mxu0 %v5451_v4 }
  0x44   : > { %5454 = vmatprep.subr.bf16.mxu0 %v5453_v5 }
  0x47   : > { %5456 = vmatpush3.bf16.msra.mxu0 %v5455_v10 }
  0x48   : > { %5458 = vmatprep.subr.bf16.mxu0 %v5457_v11 }
  0x4b   : > { %5460 = vmatpush3.bf16.msra.mxu0 %v5459_v16 }
  0x4c   : > { %5462 = vmatprep.subr.bf16.mxu0 %v5461_v17 }
  0x4f   : > { %5464 = vmatpush3.bf16.msra.mxu0 %v5463_v20  ;;  %v958_v20 = vld [vmem:[%s6747_s8 + $0x10] sm:$0xff] }
  0x50   : > { %v5469_v23 = vpack.c.bf16 %v959_v22, %v958_v20 }
  0x52   : > { %883 = vmatmul.mubr.f32.vlgmr.msra.gmra.mrb[2].mxu0 %v580_v21  ;;  %v5465_v21 = vpack.c.bf16 %v957_v19, %v956_v18 }
  0x54   : > { %5466 = vmatprep.subr.bf16.mxu1 %v5465_v21 }
  0x55   : > { %5468 = vmatpush3.bf16.msra.mxu1 %v5465_v21 }
  0x56   : > { %5470 = vmatprep.subr.bf16.mxu1 %v5469_v23 }
  0x59   : > { %5472 = vmatpush3.bf16.msra.mxu1 %v5469_v23 }
 0x105   : > { %v4912_v25 = vpop.f32.mrb[0].mxu0 }
 0x106   : > { %v4947_v26 = vpop.f32.mrb[0].mxu1  ;;  %v4913_v27 = vpop.f32.mrb[1].mxu0 }
 0x107   : > { %v4914_v28 = vadd.f32 %v4913_v27, %v4912_v25  ;;  %v4948_v29 = vpop.f32.mrb[1].mxu1 }
 0x108   : > { %v4949_v30 = vadd.f32 %v4948_v29, %v4947_v26 }
 0x10a   : > { %v815_v31 = vadd.f32 %v4949_v30, %v4914_v28 }
 0x125   : > { %v4982_v32 = vpop.f32.mrb[2].mxu0 }
 0x126   : > { %v4983_v33 = vpop.f32.mrb[3].mxu0 }
 0x127   : > { %v4984_v34 = vadd.f32 %v4983_v33, %v4982_v32  ;;  %v4750_v33 = vld [vmem:[%s6746_s7] ss:$0 sm:$0xff] }
 0x129   : > { %v885_v37 = vadd.f32 %v4984_v34, %v815_v31  ;;  %v4749_v31 = vld [vmem:[%s6745_s6] ss:$0 sm:$0xff] }
 0x12b   : > { %v896_v38 = vadd.f32 %v894_v35, %v885_v37  ;;  %v902_v39 = vadd.f32 %v900_v36, %v885_v37 }
 0x12d   : > { %898 = vst.msk [vmem:[#allocation2 + $0x1] sm:$0xf] %vm897_vm1, %v896_v38 }
 0x12e   : > { %904 = vst.msk [vmem:[#allocation2 + $0x2] sm:$0xf0] %vm903_vm2, %v902_v39 }
 0x135   : > { %v905_v40 = vld [vmem:[#allocation2] sm:$0xff]  ;;  %v906_v42 = vld [vmem:[#allocation2 + $0x8] sm:$0x3] }
 0x136   : > { %v910_v41 = vsel %vm909_vm3, %v905_v40, 0.0  ;;  %v914_v43 = vsel %vm913_vm4, %v906_v42, 0.0 }
 0x137   : > { %911 = vadd.xlane.f32.xlu0 %v910_v41  ;;  %v4751_v41 = vld [vmem:[%s6748_s9] ss:$0 sm:$0xff] }
 0x13b   : > { %915 = vadd.xlane.f32.xlu0 %v914_v43 }
 0x1c4   : > { %v912_v44 = vpop.xlane.xlu0 %911 }
 0x1c5   : > { %v918_v45 = vmul.f32 0.03125, %v912_v44 }
 0x1c7   : > { %v920_v46 = vsub.f32 %v905_v40, %v918_v45  ;;  %v5678_v40 = vmov 0.0  }
 0x1c8   : > { %v916_v47 = vpop.xlane.xlu0 %915  ;;  %5116 = vmatprep.subr.mxu1 %v5678_v40  ;;  %5146 = vmatprep.subr.mxu0 %v5678_v40 }
 0x1c9   : > { %v919_v48 = vmul.f32 0.03125, %v916_v47  ;;  %v922_v49 = vmul.f32 %v920_v46, %v920_v46  ;;  %5148 = vmatprep.mubr.msk.f32.mxu0 %vm5679_vm5, %v5678_v40 }
 0x1cb   : > { %v921_v50 = vsub.f32 %v906_v42, %v919_v48  ;;  %v924_v51 = vsel %vm909_vm3, %v922_v49, 0.0 }
 0x1cc   : > { %925 = vadd.xlane.f32.xlu1 %v924_v51 }
 0x1cd   : > { %v923_v52 = vmul.f32 %v921_v50, %v921_v50 }
 0x1cf   : > { %v927_v53 = vsel %vm913_vm4, %v923_v52, 0.0 }
 0x1d0   : > { %928 = vadd.xlane.f32.xlu1 %v927_v53 }
 0x259   : > { %v926_v54 = vpop.xlane.xlu1 %925 }
 0x25a   : > { %v930_v55 = vmul.f32 0.03125, %v926_v54 }
 0x25c   : > { %v932_v56 = vadd.f32 1e-05, %v930_v55 }
 0x25d   : > { %v929_v57 = vpop.xlane.xlu1 %928 }
 0x25e   : > { %5570 = vrsqrt.f32 %v932_v56  ;;  %v931_v58 = vmul.f32 0.03125, %v929_v57 }
 0x260   : > { %v933_v59 = vadd.f32 1e-05, %v931_v58 }
 0x262   : > { %5572 = vrsqrt.f32 %v933_v59 }
 0x268   : > { %v5571_v60 = vpop.eup %5570 }
 0x269   : > { %v936_v62 = vmul.f32 %v5571_v60, %v920_v46 }
 0x26b   : > { %v944_v0 = vmul.f32 %v4747_v61, %v936_v62 }
 0x26c   : > { %v5573_v1 = vpop.eup %5572 }
 0x26d   : > { %v6125_v2 = vadd.f32 %v4748_v63, %v944_v0  ;;  %v937_v3 = vmul.f32 %v5573_v1, %v921_v50 }
 0x26f   : > { %v982_v4 = vsel %vm909_vm3, %v6125_v2, 0.0  ;;  %v945_v5 = vmul.f32 %v4747_v61, %v937_v3 }
 0x270   : > { %983 = vadd.xlane.f32.xlu0 %v982_v4 }
 0x271   : > { %v6129_v6 = vadd.f32 %v4748_v63, %v945_v5 }
 0x273   : > { %v985_v7 = vsel %vm913_vm4, %v6129_v6, 0.0 }
 0x274   : > { %986 = vadd.xlane.f32.xlu1 %v985_v7 }
 0x2fd   : > { %v984_v8 = vpop.xlane.xlu0 %983 }
 0x2fe   : > { %v988_v9 = vmul.f32 0.03125, %v984_v8 }
 0x300   : > { %v990_v10 = vsub.f32 %v6125_v2, %v988_v9 }
 0x301   : > { %v987_v11 = vpop.xlane.xlu1 %986 }
 0x302   : > { %v989_v12 = vmul.f32 0.03125, %v987_v11  ;;  %v992_v13 = vmul.f32 %v990_v10, %v990_v10 }
 0x304   : > { %v991_v14 = vsub.f32 %v6129_v6, %v989_v12  ;;  %v994_v15 = vsel %vm909_vm3, %v992_v13, 0.0 }
 0x305   : > { %995 = vadd.xlane.f32.xlu0 %v994_v15 }
 0x306   : > { %v993_v16 = vmul.f32 %v991_v14, %v991_v14 }
 0x308   : > { %v997_v17 = vsel %vm913_vm4, %v993_v16, 0.0 }
 0x309   : > { %998 = vadd.xlane.f32.xlu1 %v997_v17 }
 0x392   : > { %v996_v24 = vpop.xlane.xlu0 %995 }
 0x393   : > { %v1000_v25 = vmul.f32 0.03125, %v996_v24 }
 0x395   : > { %v1002_v26 = vadd.f32 1e-05, %v1000_v25 }
 0x396   : > { %v999_v27 = vpop.xlane.xlu1 %998 }
 0x397   : > { %5574 = vrsqrt.f32 %v1002_v26  ;;  %v1001_v28 = vmul.f32 0.03125, %v999_v27 }
 0x399   : > { %v1003_v29 = vadd.f32 1e-05, %v1001_v28 }
 0x39b   : > { %5576 = vrsqrt.f32 %v1003_v29 }
 0x3a1   : > { %v5575_v30 = vpop.eup %5574 }
 0x3a2   : > { %v1006_v32 = vmul.f32 %v5575_v30, %v990_v10 }
 0x3a4   : > { %v1014_v34 = vmul.f32 %v4749_v31, %v1006_v32 }
 0x3a5   : > { %v5577_v35 = vpop.eup %5576 }
 0x3a6   : > { %v1007_v36 = vmul.f32 %v5577_v35, %v991_v14  ;;  %v1022_v37 = vadd.f32 %v4750_v33, %v1014_v34 }
 0x3a8   : > { %v1015_v38 = vmul.f32 %v4749_v31, %v1007_v36  ;;  %5113 = vmatprep.mubr.msk.f32.mxu1 %vm909_vm3, %v1022_v37 }
 0x3aa   : > { %v1023_v39 = vadd.f32 %v4750_v33, %v1015_v38 }
 0x3ac   : > { %5114 = vmatmul.mubr.msk.f32.vlgmr.msra.gmra.mrb[2].mxu1 %vm909_vm3, %v1023_v39 }
 0x3ad   : > { %5118 = vmatprep.mubr.msk.f32.mxu1 %vm5679_vm5, %v5678_v40 }
 0x47f   : > { %v5115_v42 = vpop.f32.mrb[2].mxu1 }
 0x480   : > { %v6166_v43 = vadd.f32 %v5115_v42, %v4751_v41  ;;  %v1102_v44 = vpop.f32.mrb[3].mxu1 }
 0x481   : > { %v6168_v45 = vadd.f32 %v4751_v41, %v1102_v44 }
 0x482   : > { %v1805_v8 = vrot.slane %v6166_v43, 5 }
 0x483   : > { %1112 = vrot.lane.b32.xlu0 %v6168_v45, %s5680_s21  ;;  %v1804_v9 = vrot.slane %v6168_v45, 5 }
 0x485   : > { %v6215_v10 = vsel %vm1803_vm11, %v1804_v9, %v1805_v8 }
 0x487   : > { %1285 = vrot.lane.b32.xlu0 %v6168_v45, %s5681_s2 }
 0x4f5   : > { %v1113_v46 = vpop.permute.xlu0 %1112 }
 0x4f6   : > { %5117 = vmatpush3.xpose.msk.msra.mxu1 %vm1114_vm6, %v1113_v46 }
 0x4f7   : > { %5121 = vmatprep.subr.mxu1 %v5678_v40 }
 0x4f9   : > { %5119 = vmatmul.mubr.msk.f32.vlgmr.msra.gmra.mrb[4].mxu1 %vm1114_vm6, %v6168_v45  ;;  %v1286_v63 = vpop.permute.xlu0 %1285 }
 0x4fa   : > { %5123 = vmatprep.mubr.msk.f32.mxu1 %vm5679_vm5, %v5678_v40 }
 0x5cc   : > { %v1185_v47 = vpop.f32.mrb[4].mxu1 }
 0x5cd   : > { %v1189_v48 = vmul.f32 0.35355338, %v1185_v47  ;;  %v5120_v49 = vpop.f32.mrb[5].mxu1 }
 0x5cf   : > { %v1191_v50 = vsel %vm1190_vm7, %v1189_v48, -inf }
 0x5d0   : > { %1192 = vmax.xlane.f32.xlu1 %v1191_v50 }
 0x5e1   : > { %1202 = vrot.lane.b32.xlu1 %v6168_v45, %s6766_s23 }
 0x65d   : > { %v1193_v51 = vpop.xlane.xlu1 %1192 }
 0x65e   : > { %v1194_v52 = vsub.f32 %v1189_v48, %v1193_v51 }
 0x660   : > { %v1195_v53 = vmul.f32 1.442695, %v1194_v52 }
 0x661   : > { %v1203_v54 = vpop.permute.xlu1 %1202 }
 0x662   : > { %5578 = vpow2.f32 %v1195_v53  ;;  %5122 = vmatpush3.msk.msra.mxu1 %vm1208_vm8, %v1203_v54 }
 0x663   : > { %5126 = vmatprep.subr.mxu1 %v5678_v40 }
 0x66c   : > { %v5579_v55 = vpop.eup %5578 }
 0x66d   : > { %v1197_v56 = vsel %vm1190_vm7, %v5579_v55, 0.0 }
 0x66e   : > { %1198 = vadd.xlane.f32.xlu1 %v1197_v56 }
 0x67f   : > { %1283 = vrot.lane.b32.xlu1 %v6168_v45, %s6776_s22 }
 0x683   : > { %1458 = vrot.lane.b32.xlu1 %v6168_v45, %s6772_s24 }
 0x687   : > { %1631 = vrot.lane.b32.xlu1 %v6168_v45, %s6768_s25 }
 0x6fb   : > { %v1199_v57 = vpop.xlane.xlu1 %1198 }
 0x6fc   : > { %5580 = vrcp.f32 %v1199_v57 }
 0x6ff   : > { %v1284_v58 = vpop.permute.xlu1 %1283 }
 0x703   : > { %v6192_v59 = vpop.permute.xlu1 %1458 }
 0x706   : > { %v5581_v60 = vpop.eup %5580 }
 0x707   : > { %v1201_v61 = vmul.f32 %v5581_v60, %v5579_v55  ;;  %v1632_v62 = vpop.permute.xlu1 %1631 }
 0x708   : > { %5147 = vmatpush3.xpose.msk.msra.mxu0 %vm1114_vm6, %v1632_v62 }
 0x709   : > { %5124 = vmatmul.mubr.msk.f32.vlgmr.msra.gmra.mrb[6].mxu1 %vm1204_vm9, %v1201_v61  ;;  %5156 = vmatprep.subr.mxu0 %v5678_v40 }
 0x70a   : > { %5127 = vmatpush3.xpose.msk.msra.mxu1 %vm1114_vm6, %v1286_v63  ;;  %5128 = vmatprep.mubr.msk.f32.mxu1 %vm5679_vm5, %v5678_v40 }
 0x70b   : > { %5131 = vmatprep.subr.mxu1 %v5678_v40 }
 0x70d   : > { %5129 = vmatmul.mubr.msk.f32.vlgmr.msra.gmra.mrb[8].mxu1 %vm1114_vm6, %v1284_v58 }
 0x70e   : > { %5133 = vmatprep.mubr.msk.f32.mxu1 %vm5679_vm5, %v5678_v40 }
 0x7dc   : > { %v1277_v0 = vpop.f32.mrb[6].mxu1 }
 0x7dd   : > { %1282 = vst.msk [vmem:[#allocation2] sm:$0x1f] %vm1281_vm10, %v1277_v0  ;;  %v5125_v1 = vpop.f32.mrb[7].mxu1 }
 0x7e0   : > { %v1357_v3 = vpop.f32.mrb[8].mxu1 }
 0x7e1   : > { %v1361_v4 = vmul.f32 0.35355338, %v1357_v3  ;;  %v5130_v5 = vpop.f32.mrb[9].mxu1 }
 0x7e3   : > { %v1362_v7 = vsel %vm1190_vm7, %v1361_v4, -inf }
 0x7e4   : > { %1363 = vmax.xlane.f32.xlu0 %v1362_v7 }
 0x7fa   : > { %1373 = vrot.lane.b32.xlu0 %v6168_v45, %s6760_s26 }
 0x7fe   : > { %1456 = vrot.lane.b32.xlu0 %v6168_v45, %s6774_s29 }
 0x802   : > { %1629 = vrot.lane.b32.xlu0 %v6168_v45, %s6770_s27 }
 0x806   : > { %1975 = vrot.lane.b32.xlu0 %v6215_v10, %s5681_s2 }
 0x80a   : > { %2147 = vrot.lane.b32.xlu0 %v6215_v10, %s6772_s24  ;;  %s6788_s24 = smov 80  }
 0x80e   : > { %2319 = vrot.lane.b32.xlu0 %v6215_v10, %s6768_s25  ;;  %s6789_s25 = smov 104  }
 0x871   : > { %v1364_v11 = vpop.xlane.xlu0 %1363 }
 0x872   : > { %v1365_v12 = vsub.f32 %v1361_v4, %v1364_v11 }
 0x874   : > { %v1366_v13 = vmul.f32 1.442695, %v1365_v12 }
 0x875   : > { %v1374_v14 = vpop.permute.xlu0 %1373 }
 0x876   : > { %5582 = vpow2.f32 %v1366_v13  ;;  %5132 = vmatpush3.msk.msra.mxu1 %vm1208_vm8, %v1374_v14 }
 0x877   : > { %5136 = vmatprep.subr.mxu1 %v5678_v40 }
 0x879   : > { %v1457_v15 = vpop.permute.xlu0 %1456 }
 0x87d   : > { %v1630_v16 = vpop.permute.xlu0 %1629 }
 0x87e   : > { %5149 = vmatmul.mubr.msk.f32.vlgmr.msra.gmra.mrb[4].mxu0 %vm1114_vm6, %v1630_v16 }
 0x87f   : > { %5158 = vmatprep.mubr.msk.f32.mxu0 %vm5679_vm5, %v5678_v40 }
 0x880   : > { %v5583_v17 = vpop.eup %5582 }
 0x881   : > { %v1368_v18 = vsel %vm1190_vm7, %v5583_v17, 0.0  ;;  %v1976_v20 = vpop.permute.xlu0 %1975 }
 0x882   : > { %1369 = vadd.xlane.f32.xlu1 %v1368_v18 }
 0x885   : > { %v2148_v23 = vpop.permute.xlu0 %2147 }
 0x889   : > { %v2320_v27 = vpop.permute.xlu0 %2319 }
 0x893   : > { %1807 = vrot.lane.b32.xlu1 %v6215_v10, %s5680_s21 }
 0x897   : > { %1973 = vrot.lane.b32.xlu1 %v6215_v10, %s6776_s22  ;;  %s6787_s22 = smov 112  }
 0x89b   : > { %2145 = vrot.lane.b32.xlu1 %v6215_v10, %s6774_s29  ;;  %s6790_s29 = smov 72  }
 0x89f   : > { %2317 = vrot.lane.b32.xlu1 %v6215_v10, %s6770_s27  ;;  %s6793_s27 = smov 40  }
 0x90f   : > { %v1370_v19 = vpop.xlane.xlu1 %1369 }
 0x910   : > { %5584 = vrcp.f32 %v1370_v19 }
 0x913   : > { %v1808_v21 = vpop.permute.xlu1 %1807 }
 0x914   : > { %5157 = vmatpush3.xpose.msk.msra.mxu0 %vm1114_vm6, %v1808_v21 }
 0x915   : > { %5166 = vmatprep.subr.mxu0 %v5678_v40 }
 0x917   : > { %5159 = vmatmul.mubr.msk.f32.vlgmr.msra.gmra.mrb[6].mxu0 %vm1114_vm6, %v6215_v10  ;;  %v1974_v22 = vpop.permute.xlu1 %1973 }
 0x918   : > { %5167 = vmatpush3.xpose.msk.msra.mxu0 %vm1114_vm6, %v1976_v20  ;;  %5168 = vmatprep.mubr.msk.f32.mxu0 %vm5679_vm5, %v5678_v40 }
 0x919   : > { %5176 = vmatprep.subr.mxu0 %v5678_v40 }
 0x91a   : > { %v5585_v24 = vpop.eup %5584 }
 0x91b   : > { %v1372_v25 = vmul.f32 %v5585_v24, %v5583_v17  ;;  %5169 = vmatmul.mubr.msk.f32.vlgmr.msra.gmra.mrb[8].mxu0 %vm1114_vm6, %v1974_v22  ;;  %v2146_v26 = vpop.permute.xlu1 %2145 }
 0x91c   : > { %5177 = vmatpush3.xpose.msk.msra.mxu0 %vm1114_vm6, %v2148_v23  ;;  %5178 = vmatprep.mubr.msk.f32.mxu0 %vm5679_vm5, %v5678_v40 }
 0x91d   : > { %5134 = vmatmul.mubr.msk.f32.vlgmr.msra.gmra.mrb[10].mxu1 %vm1204_vm9, %v1372_v25  ;;  %5186 = vmatprep.subr.mxu0 %v5678_v40 }
 0x91e   : > { %5137 = vmatpush3.xpose.msk.msra.mxu1 %vm1114_vm6, %v6192_v59  ;;  %5138 = vmatprep.mubr.msk.f32.mxu1 %vm5679_vm5, %v5678_v40 }
 0x91f   : > { %5179 = vmatmul.mubr.msk.f32.vlgmr.msra.gmra.mrb[10].mxu0 %vm1114_vm6, %v2146_v26  ;;  %5141 = vmatprep.subr.mxu1 %v5678_v40  ;;  %v2318_v28 = vpop.permute.xlu1 %2317 }
 0x920   : > { %5187 = vmatpush3.xpose.msk.msra.mxu0 %vm1114_vm6, %v2320_v27  ;;  %5188 = vmatprep.mubr.msk.f32.mxu0 %vm5679_vm5, %v5678_v40 }
 0x921   : > { %5139 = vmatmul.mubr.msk.f32.vlgmr.msra.gmra.mrb[12].mxu1 %vm1114_vm6, %v1457_v15 }
 0x922   : > { %5143 = vmatprep.mubr.msk.f32.mxu1 %vm5679_vm5, %v5678_v40 }
 0x923   : > { %5189 = vmatmul.mubr.msk.f32.vlgmr.msra.gmra.mrb[12].mxu0 %vm1114_vm6, %v2318_v28 }
 0x951   : > { %v1703_v29 = vpop.f32.mrb[4].mxu0 }
 0x952   : > { %v1707_v30 = vmul.f32 0.35355338, %v1703_v29  ;;  %v5150_v31 = vpop.f32.mrb[5].mxu0 }
 0x954   : > { %v1708_v32 = vsel %vm1190_vm7, %v1707_v30, -inf }
 0x955   : > { %1709 = vmax.xlane.f32.xlu1 %v1708_v32 }
 0x9e2   : > { %v1710_v33 = vpop.xlane.xlu1 %1709 }
 0x9e3   : > { %v1711_v34 = vsub.f32 %v1707_v30, %v1710_v33 }
 0x9e5   : > { %v1712_v37 = vmul.f32 1.442695, %v1711_v34 }
 0x9e7   : > { %5586 = vpow2.f32 %v1712_v37 }
 0x9ea   : > { %v1879_v35 = vpop.f32.mrb[6].mxu0 }
 0x9eb   : > { %v5160_v36 = vpop.f32.mrb[7].mxu0  ;;  %v1883_v50 = vmul.f32 0.35355338, %v1879_v35 }
 0x9ed   : > { %v1884_v57 = vsel %vm1190_vm7, %v1883_v50, -inf }
 0x9ee   : > { %v2047_v38 = vpop.f32.mrb[8].mxu0 }
 0x9ef   : > { %v5170_v39 = vpop.f32.mrb[9].mxu0  ;;  %v2051_v56 = vmul.f32 0.35355338, %v2047_v38 }
 0x9f0   : > { %v6265_v41 = vpop.f32.mrb[10].mxu1 }
 0x9f1   : > { %v5135_v42 = vpop.f32.mrb[11].mxu1  ;;  %v6269_v55 = vpop.eup %5586  ;;  %v2052_v60 = vsel %vm1190_vm7, %v2051_v56, -inf }
 0x9f2   : > { %v2219_v43 = vpop.f32.mrb[10].mxu0  ;;  %v1714_v58 = vsel %vm1190_vm7, %v6269_v55, 0.0 }
 0x9f3   : > { %v5180_v44 = vpop.f32.mrb[11].mxu0  ;;  %v2223_v59 = vmul.f32 0.35355338, %v2219_v43 }
 0x9f4   : > { %v1530_v46 = vpop.f32.mrb[12].mxu1 }
 0x9f5   : > { %v1534_v47 = vmul.f32 0.35355338, %v1530_v46  ;;  %v5140_v48 = vpop.f32.mrb[13].mxu1  ;;  %v2224_v61 = vsel %vm1190_vm7, %v2223_v59, -inf }
 0x9f6   : > { %v2391_v49 = vpop.f32.mrb[12].mxu0 }
 0x9f7   : > { %v2395_v51 = vmul.f32 0.35355338, %v2391_v49  ;;  %v5190_v52 = vpop.f32.mrb[13].mxu0  ;;  %v1535_v53 = vsel %vm1190_vm7, %v1534_v47, -inf }
 0x9f8   : > { %1536 = vmax.xlane.f32.xlu0 %v1535_v53 }
 0x9f9   : > { %v2396_v54 = vsel %vm1190_vm7, %v2395_v51, -inf }
 0x9fa   : > { %2397 = vmax.xlane.f32.xlu1 %v2396_v54 }
 0x9fc   : > { %1885 = vmax.xlane.f32.xlu0 %v1884_v57 }
 0x9fe   : > { %1715 = vadd.xlane.f32.xlu1 %v1714_v58 }
 0xa00   : > { %2053 = vmax.xlane.f32.xlu0 %v2052_v60  ;;  %v964_v60 = vld [vmem:[%s6749_s10 + $0x18] sm:$0xff] }
 0xa04   : > { %2225 = vmax.xlane.f32.xlu0 %v2224_v61 }
 0xa85   : > { %v1537_v62 = vpop.xlane.xlu0 %1536 }
 0xa86   : > { %v1538_v8 = vsub.f32 %v1534_v47, %v1537_v62 }
 0xa87   : > { %v2398_v63 = vpop.xlane.xlu1 %2397 }
 0xa88   : > { %v2399_v3 = vsub.f32 %v2395_v51, %v2398_v63  ;;  %v1539_v14 = vmul.f32 1.442695, %v1538_v8 }
 0xa89   : > { %v1886_v0 = vpop.xlane.xlu0 %1885 }
 0xa8a   : > { %v1887_v1 = vsub.f32 %v1883_v50, %v1886_v0  ;;  %v2400_v9 = vmul.f32 1.442695, %v2399_v3 }
 0xa8b   : > { %v1716_v27 = vpop.xlane.xlu1 %1715 }
 0xa8c   : > { %v1888_v4 = vmul.f32 1.442695, %v1887_v1 }
 0xa8d   : > { %v2054_v5 = vpop.xlane.xlu0 %2053 }
 0xa8e   : > { %5588 = vpow2.f32 %v1888_v4  ;;  %v2055_v7 = vsub.f32 %v2051_v56, %v2054_v5  ;;  %v962_v56 = vld [vmem:[%s6749_s10 + $0x8] sm:$0xff] }
 0xa90   : > { %v2056_v11 = vmul.f32 1.442695, %v2055_v7 }
 0xa91   : > { %v2226_v12 = vpop.xlane.xlu0 %2225 }
 0xa92   : > { %5590 = vpow2.f32 %v2056_v11  ;;  %v2227_v13 = vsub.f32 %v2223_v59, %v2226_v12  ;;  %v963_v59 = vld [vmem:[%s6749_s10 + $0x10] sm:$0xff] }
 0xa93   : > { %5592 = vpow2.f32 %v2400_v9  ;;  %v5477_v62 = vpack.c.bf16 %v964_v60, %v963_v59  ;;  %v977_v60 = vld [vmem:[%s6755_s16 + $0x20] sm:$0xff] }
 0xa94   : > { %v2228_v15 = vmul.f32 1.442695, %v2227_v13 }
 0xa96   : > { %5594 = vpow2.f32 %v2228_v15  ;;  %v4788_v15 = vld [vmem:[%s6750_s11] ss:$0 sm:$0xff] }
 0xa97   : > { %5596 = vpow2.f32 %v1539_v14 }
 0xa98   : > { %v5589_v16 = vpop.eup %5588 }
 0xa99   : > { %v1890_v17 = vsel %vm1190_vm7, %v5589_v16, 0.0 }
 0xa9a   : > { %1891 = vadd.xlane.f32.xlu0 %v1890_v17 }
 0xa9c   : > { %v5591_v18 = vpop.eup %5590 }
 0xa9d   : > { %v2058_v19 = vsel %vm1190_vm7, %v5591_v18, 0.0  ;;  %v6278_v20 = vpop.eup %5592 }
 0xa9e   : > { %2059 = vadd.xlane.f32.xlu1 %v2058_v19  ;;  %v2402_v23 = vsel %vm1190_vm7, %v6278_v20, 0.0 }
 0xaa0   : > { %v6280_v21 = vpop.eup %5594 }
 0xaa1   : > { %v2230_v22 = vsel %vm1190_vm7, %v6280_v21, 0.0  ;;  %v5597_v24 = vpop.eup %5596 }
 0xaa2   : > { %2231 = vadd.xlane.f32.xlu0 %v2230_v22  ;;  %2403 = vadd.xlane.f32.xlu1 %v2402_v23  ;;  %v1541_v25 = vsel %vm1190_vm7, %v5597_v24, 0.0 }
 0xaa6   : > { %1542 = vadd.xlane.f32.xlu0 %v1541_v25 }
 0xab3   : > { %1719 = vrot.lane.b32.xlu1 %v6168_v45, %s6762_s30 }
 0xab7   : > { %1895 = vrot.lane.b32.xlu1 %v6215_v10, %s6766_s23  ;;  %s6786_s23 = smov 120  }
 0xabb   : > { %2063 = vrot.lane.b32.xlu1 %v6215_v10, %s6760_s26  ;;  %s5693_s26 = smov 24  }
 0xabc   : > { %1546 = vrot.lane.b32.xlu0 %v6168_v45, %s6764_s19 }
 0xabf   : > { %2407 = vrot.lane.b32.xlu1 %v6215_v10, %s6762_s30  ;;  %s6794_s30 = smov 56  }
 0xac0   : > { %2235 = vrot.lane.b32.xlu0 %v6215_v10, %s6764_s19 }
 0xac4   : > { %1451 = vrot.lane.b32.xlu0 %v6265_v41, %s5691_s1 }
 0xb27   : > { %v1892_v26 = vpop.xlane.xlu0 %1891 }
 0xb2b   : > { %v2060_v29 = vpop.xlane.xlu1 %2059 }
 0xb2f   : > { %v2232_v28 = vpop.xlane.xlu0 %2231  ;;  %v2404_v31 = vpop.xlane.xlu1 %2403 }
 0xb33   : > { %v1543_v30 = vpop.xlane.xlu0 %1542  ;;  %v1720_v10 = vpop.permute.xlu1 %1719 }
 0xb34   : > { %5598 = vrcp.f32 %v1543_v30 }
 0xb35   : > { %5600 = vrcp.f32 %v1716_v27 }
 0xb36   : > { %5602 = vrcp.f32 %v1892_v26 }
 0xb37   : > { %v1547_v32 = vpop.permute.xlu0 %1546  ;;  %5604 = vrcp.f32 %v2060_v29  ;;  %v1896_v38 = vpop.permute.xlu1 %1895 }
 0xb38   : > { %5142 = vmatpush3.msk.msra.mxu1 %vm1208_vm8, %v1547_v32  ;;  %5606 = vrcp.f32 %v2232_v28  ;;  %v968_v32 = vld [vmem:[%s6753_s14] sm:$0xff] }
 0xb39   : > { %5151 = vmatprep.subr.mxu1 %v5678_v40  ;;  %5608 = vrcp.f32 %v2404_v31 }
 0xb3b   : > { %v2236_v45 = vpop.permute.xlu0 %2235  ;;  %v2064_v43 = vpop.permute.xlu1 %2063 }
 0xb3e   : > { %v5599_v33 = vpop.eup %5598 }
 0xb3f   : > { %v1545_v34 = vmul.f32 %v5599_v33, %v5597_v24  ;;  %v1452_v35 = vpop.permute.xlu0 %1451  ;;  %v5601_v36 = vpop.eup %5600  ;;  %v970_v33 = vld [vmem:[%s6753_s14 + $0x10] sm:$0xff] }
 0xb40   : > { %1455 = vst.msk [vmem:[#allocation2] sm:$0x1f] %vm1454_vm12, %v1452_v35  ;;  %v1718_v37 = vmul.f32 %v5601_v36, %v6269_v55  ;;  %v5603_v39 = vpop.eup %5602  ;;  %v2408_v49 = vpop.permute.xlu1 %2407  ;;  %v961_v55 = vld [vmem:[%s6749_s10] sm:$0xff] }
 0xb41   : > { %5144 = vmatmul.mubr.msk.f32.vlgmr.msra.gmra.mrb[14].mxu1 %vm1204_vm9, %v1545_v34  ;;  %v1894_v41 = vmul.f32 %v5603_v39, %v5589_v16  ;;  %v5605_v42 = vpop.eup %5604  ;;  %v5473_v58 = vpack.c.bf16 %v962_v56, %v961_v55  ;;  %v971_v34 = vld [vmem:[%s6753_s14 + $0x18] sm:$0xff]  ;;  %v974_v55 = vld [vmem:[%s6755_s16 + $0x8] sm:$0xff] }
 0xb42   : > { %5152 = vmatpush3.msk.msra.mxu1 %vm1208_vm8, %v1720_v10  ;;  %5153 = vmatprep.mubr.msk.f32.mxu1 %vm5679_vm5, %v5678_v40  ;;  %v2062_v44 = vmul.f32 %v5605_v42, %v5591_v18  ;;  %v5607_v46 = vpop.eup %5606  ;;  %v5485_v35 = vpack.c.bf16 %v971_v34, %v970_v33 }
 0xb43   : > { %5161 = vmatprep.subr.mxu1 %v5678_v40  ;;  %v2234_v47 = vmul.f32 %v5607_v46, %v6280_v21  ;;  %v5609_v48 = vpop.eup %5608 }
 0xb44   : > { %v2406_v50 = vmul.f32 %v5609_v48, %v6278_v20 }
 0xb45   : > { %5154 = vmatmul.mubr.msk.f32.vlgmr.msra.gmra.mrb[16].mxu1 %vm1204_vm9, %v1718_v37 }
 0xb46   : > { %5162 = vmatpush3.msk.msra.mxu1 %vm1208_vm8, %v1896_v38  ;;  %5163 = vmatprep.mubr.msk.f32.mxu1 %vm5679_vm5, %v5678_v40 }
 0xb47   : > { %5171 = vmatprep.subr.mxu1 %v5678_v40 }
 0xb49   : > { %5164 = vmatmul.mubr.msk.f32.vlgmr.msra.gmra.mrb[18].mxu1 %vm1204_vm9, %v1894_v41 }
 0xb4a   : > { %5172 = vmatpush3.msk.msra.mxu1 %vm1208_vm8, %v2064_v43  ;;  %5173 = vmatprep.mubr.msk.f32.mxu1 %vm5679_vm5, %v5678_v40 }
 0xb4b   : > { %5181 = vmatprep.subr.mxu1 %v5678_v40 }
 0xb4d   : > { %5174 = vmatmul.mubr.msk.f32.vlgmr.msra.gmra.mrb[20].mxu1 %vm1204_vm9, %v2062_v44  ;;  %v4789_v44 = vld [vmem:[%s6751_s12] ss:$0 sm:$0xff] }
 0xb4e   : > { %5182 = vmatpush3.msk.msra.mxu1 %vm1208_vm8, %v2236_v45  ;;  %5183 = vmatprep.mubr.msk.f32.mxu1 %vm5679_vm5, %v5678_v40  ;;  %v969_v45 = vld [vmem:[%s6753_s14 + $0x8] sm:$0xff] }
 0xb4f   : > { %5191 = vmatprep.subr.mxu1 %v5678_v40  ;;  %v5481_v10 = vpack.c.bf16 %v969_v45, %v968_v32 }
 0xb51   : > { %5184 = vmatmul.mubr.msk.f32.vlgmr.msra.gmra.mrb[22].mxu1 %vm1204_vm9, %v2234_v47  ;;  %v4790_v47 = vld [vmem:[%s6752_s13] ss:$0 sm:$0xff] }
 0xb52   : > { %5192 = vmatpush3.msk.msra.mxu1 %vm1208_vm8, %v2408_v49  ;;  %5193 = vmatprep.mubr.msk.f32.mxu1 %vm5679_vm5, %v5678_v40 }
 0xb53   : > { %5474 = vmatprep.subr.bf16.mxu1 %v5473_v58 }
 0xb55   : > { %5194 = vmatmul.mubr.msk.f32.vlgmr.msra.gmra.mrb[24].mxu1 %vm1204_vm9, %v2406_v50 }
 0xb56   : > { %5476 = vmatpush3.bf16.msra.mxu1 %v5473_v58  ;;  %v976_v58 = vld [vmem:[%s6755_s16 + $0x18] sm:$0xff] }
 0xb57   : > { %5478 = vmatprep.subr.bf16.mxu1 %v5477_v62 }
 0xb5a   : > { %5480 = vmatpush3.bf16.msra.mxu1 %v5477_v62 }
 0xb5b   : > { %5482 = vmatprep.subr.bf16.mxu1 %v5481_v10 }
 0xc14   : > { %v1619_v51 = vpop.f32.mrb[14].mxu1 }
 0xc15   : > { %1624 = vrot.lane.b32.xlu0 %v1619_v51, %s5692_s20  ;;  %v5145_v52 = vpop.f32.mrb[15].mxu1 }
 0xc18   : > { %v1792_v53 = vpop.f32.mrb[16].mxu1 }
 0xc19   : > { %1797 = vrot.lane.b32.xlu0 %v1792_v53, %s5693_s26  ;;  %v5155_v54 = vpop.f32.mrb[17].mxu1 }
 0xc1a   : > { %v973_v54 = vld [vmem:[%s6755_s16] sm:$0xff] }
 0xc1b   : > { %v5489_v56 = vpack.c.bf16 %v974_v55, %v973_v54 }
 0xc1c   : > { %v1968_v57 = vpop.f32.mrb[18].mxu1 }
 0xc1d   : > { %1972 = vst.msk [vmem:[#allocation2 + $0x5] sm:$0x1f] %vm1281_vm10, %v1968_v57  ;;  %v5165_v61 = vpop.f32.mrb[19].mxu1  ;;  %5490 = vmatprep.subr.bf16.mxu0 %v5489_v56  ;;  %v975_v57 = vld [vmem:[%s6755_s16 + $0x10] sm:$0xff] }
 0xc1e   : > { %5492 = vmatpush3.bf16.msra.mxu0 %v5489_v56  ;;  %v5493_v59 = vpack.c.bf16 %v976_v58, %v975_v57  ;;  %v978_v61 = vld [vmem:[%s6755_s16 + $0x28] sm:$0xff]  ;;  %v4828_v56 = vld [vmem:[%s6746_s7 + $0x1] ss:$0 sm:$0xff] }
 0xc1f   : > { %v5497_v62 = vpack.c.bf16 %v978_v61, %v977_v60  ;;  %v4829_v61 = vld [vmem:[%s6748_s9 + $0x1] ss:$0 sm:$0xff] }
 0xc20   : > { %v2136_v63 = vpop.f32.mrb[20].mxu1  ;;  %5494 = vmatprep.subr.bf16.mxu0 %v5493_v59 }
 0xc21   : > { %2141 = vrot.lane.b32.xlu1 %v2136_v63, %s5691_s1  ;;  %v5175_v0 = vpop.f32.mrb[21].mxu1  ;;  %v979_v63 = vld [vmem:[%s6755_s16 + $0x30] sm:$0xff] }
 0xc22   : > { %5496 = vmatpush3.bf16.msra.mxu0 %v5493_v59  ;;  %v980_v0 = vld [vmem:[%s6755_s16 + $0x38] sm:$0xff] }
 0xc23   : > { %5498 = vmatprep.subr.bf16.mxu0 %v5497_v62 }
 0xc24   : > { %v2308_v1 = vpop.f32.mrb[22].mxu1 }
 0xc25   : > { %2313 = vrot.lane.b32.xlu1 %v2308_v1, %s5692_s20  ;;  %v5185_v3 = vpop.f32.mrb[23].mxu1  ;;  %v5501_v1 = vpack.c.bf16 %v980_v0, %v979_v63 }
 0xc26   : > { %5500 = vmatpush3.bf16.msra.mxu0 %v5497_v62  ;;  %v4791_v3 = vld [vmem:[%s6754_s15] ss:$0 sm:$0xff] }
 0xc27   : > { %5502 = vmatprep.subr.bf16.mxu0 %v5501_v1 }
 0xc28   : > { %v2480_v4 = vpop.f32.mrb[24].mxu1 }
 0xc29   : > { %2485 = vrot.lane.b32.xlu1 %v2480_v4, %s5693_s26  ;;  %v5195_v5 = vpop.f32.mrb[25].mxu1 }
 0xc2a   : > { %5504 = vmatpush3.bf16.msra.mxu0 %v5501_v1 }
 0xc2b   : > { %5258 = vmatprep.subr.mxu0 %v5678_v40 }
 0xc87   : > { %v1625_v7 = vpop.permute.xlu0 %1624 }
 0xc88   : > { %1628 = vst.msk [vmem:[#allocation2] sm:$0x1f] %vm1627_vm13, %v1625_v7 }
 0xc8b   : > { %v1798_v8 = vpop.permute.xlu0 %1797 }
 0xc8c   : > { %1801 = vst.msk [vmem:[#allocation2] sm:$0x1f] %vm1800_vm14, %v1798_v8 }
 0xc93   : > { %v2142_v9 = vpop.permute.xlu1 %2141 }
 0xc94   : > { %2144 = vst.msk [vmem:[#allocation2 + $0x5] sm:$0x1f] %vm1454_vm12, %v2142_v9 }
 0xc97   : > { %v2314_v11 = vpop.permute.xlu1 %2313 }
 0xc98   : > { %2316 = vst.msk [vmem:[#allocation2 + $0x5] sm:$0x1f] %vm1627_vm13, %v2314_v11 }
 0xc9b   : > { %v2486_v12 = vpop.permute.xlu1 %2485 }
 0xc9c   : > { %2488 = vst.msk [vmem:[#allocation2 + $0x5] sm:$0x1f] %vm1800_vm14, %v2486_v12 }
 0xca3   : > { %v2489_v13 = vld [vmem:[#allocation2] sm:$0xff]  ;;  %v2490_v14 = vld [vmem:[#allocation2 + $0x8] sm:$0x3] }
 0xca4   : > { %5204 = vmatprep.mubr.msk.f32.mxu1 %vm909_vm3, %v2489_v13 }
 0xca5   : > { %5205 = vmatmul.mubr.msk.f32.vlgmr.msra.gmra.mrb[26].mxu1 %vm909_vm3, %v2490_v14 }
 0xca6   : > { %5484 = vmatpush3.bf16.msra.mxu1 %v5481_v10 }
 0xca7   : > { %5486 = vmatprep.subr.bf16.mxu1 %v5485_v35 }
 0xcaa   : > { %5488 = vmatpush3.bf16.msra.mxu1 %v5485_v35 }
 0xd78   : > { %v5206_v16 = vpop.f32.mrb[26].mxu1 }
 0xd79   : > { %v2573_v17 = vadd.f32 %v5206_v16, %v6129_v6  ;;  %v2563_v18 = vpop.f32.mrb[27].mxu1 }
 0xd7a   : > { %v2572_v19 = vadd.f32 %v2563_v18, %v6125_v2 }
 0xd7b   : > { %v6362_v20 = vadd.f32 %v4788_v15, %v2573_v17 }
 0xd7c   : > { %v6364_v21 = vadd.f32 %v4788_v15, %v2572_v19 }
 0xd7d   : > { %v2585_v22 = vsel %vm913_vm4, %v6362_v20, 0.0 }
 0xd7e   : > { %2586 = vadd.xlane.f32.xlu1 %v2585_v22  ;;  %v2582_v23 = vsel %vm909_vm3, %v6364_v21, 0.0 }
 0xd7f   : > { %2583 = vadd.xlane.f32.xlu0 %v2582_v23 }
 0xe0b   : > { %v2587_v24 = vpop.xlane.xlu1 %2586 }
 0xe0c   : > { %v2589_v25 = vmul.f32 0.03125, %v2587_v24  ;;  %v2584_v26 = vpop.xlane.xlu0 %2583  ;;  %v4796_v24 = vld [vmem:[%s6756_s17] ss:$0 sm:$0xff] }
 0xe0d   : > { %v2588_v27 = vmul.f32 0.03125, %v2584_v26 }
 0xe0e   : > { %v2591_v6 = vsub.f32 %v6362_v20, %v2589_v25 }
 0xe0f   : > { %v2590_v2 = vsub.f32 %v6364_v21, %v2588_v27 }
 0xe10   : > { %v2593_v30 = vmul.f32 %v2591_v6, %v2591_v6 }
 0xe11   : > { %v2592_v28 = vmul.f32 %v2590_v2, %v2590_v2 }
 0xe12   : > { %v2597_v31 = vsel %vm913_vm4, %v2593_v30, 0.0 }
 0xe13   : > { %v2594_v29 = vsel %vm909_vm3, %v2592_v28, 0.0 }
 0xe14   : > { %2595 = vadd.xlane.f32.xlu0 %v2594_v29 }
 0xe18   : > { %2598 = vadd.xlane.f32.xlu0 %v2597_v31 }
 0xea1   : > { %v2596_v36 = vpop.xlane.xlu0 %2595 }
 0xea2   : > { %v2600_v37 = vmul.f32 0.03125, %v2596_v36 }
 0xea4   : > { %v2602_v38 = vadd.f32 1e-05, %v2600_v37  ;;  %v4801_v37 = vld [vmem:[%s6747_s8 + $0x20] sm:$0xff] }
 0xea5   : > { %v2599_v39 = vpop.xlane.xlu0 %2598 }
 0xea6   : > { %5610 = vrsqrt.f32 %v2602_v38  ;;  %v2601_v41 = vmul.f32 0.03125, %v2599_v39  ;;  %v4802_v38 = vld [vmem:[%s6747_s8 + $0x28] sm:$0xff] }
 0xea7   : > { %v5505_v39 = vpack.c.bf16 %v4802_v38, %v4801_v37 }
 0xea8   : > { %v2603_v42 = vadd.f32 1e-05, %v2601_v41  ;;  %v4803_v41 = vld [vmem:[%s6747_s8 + $0x30] sm:$0xff] }
 0xea9   : > { %5506 = vmatprep.subr.bf16.mxu1 %v5505_v39 }
 0xeaa   : > { %5612 = vrsqrt.f32 %v2603_v42  ;;  %v4804_v42 = vld [vmem:[%s6747_s8 + $0x38] sm:$0xff] }
 0xeb0   : > { %v5611_v43 = vpop.eup %5610 }
 0xeb1   : > { %v2606_v46 = vmul.f32 %v5611_v43, %v2590_v2  ;;  %v5509_v43 = vpack.c.bf16 %v4804_v42, %v4803_v41 }
 0xeb3   : > { %v2614_v48 = vmul.f32 %v4789_v44, %v2606_v46 }
 0xeb4   : > { %v5613_v49 = vpop.eup %5612 }
 0xeb5   : > { %v2607_v50 = vmul.f32 %v5613_v49, %v2591_v6  ;;  %v2622_v51 = vadd.f32 %v4790_v47, %v2614_v48 }
 0xeb7   : > { %v2615_v52 = vmul.f32 %v4789_v44, %v2607_v50  ;;  %5215 = vmatprep.mubr.msk.f32.mxu1 %vm909_vm3, %v2622_v51 }
 0xeb9   : > { %v2623_v53 = vadd.f32 %v4790_v47, %v2615_v52  ;;  %v4827_v52 = vld [vmem:[%s6745_s6 + $0x1] ss:$0 sm:$0xff] }
 0xebb   : > { %5216 = vmatmul.mubr.msk.f32.vlgmr.msra.gmra.mrb[28].mxu1 %vm909_vm3, %v2623_v53 }
 0xebc   : > { %5508 = vmatpush3.bf16.msra.mxu1 %v5505_v39 }
 0xebd   : > { %5510 = vmatprep.subr.bf16.mxu1 %v5509_v43 }
 0xec0   : > { %5512 = vmatpush3.bf16.msra.mxu1 %v5509_v43 }
 0xec1   : > { %5248 = vmatprep.subr.mxu1 %v5678_v40 }
 0xf8e   : > { %v5217_v4 = vpop.f32.mrb[28].mxu1 }
 0xf8f   : > { %v2708_v5 = vadd.f32 %v5217_v4, %v4791_v3  ;;  %v2702_v7 = vpop.f32.mrb[29].mxu1 }
 0xf90   : > { %v2703_v8 = vadd.f32 %v4791_v3, %v2702_v7 }
 0xf91   : > { %v4795_v9 = vmul.f32 -1.702, %v2708_v5 }
 0xf92   : > { %v4794_v11 = vmul.f32 -1.702, %v2703_v8 }
 0xf93   : > { %v2717_v12 = vmul.f32 1.442695, %v4795_v9 }
 0xf94   : > { %v2715_v13 = vmul.f32 1.442695, %v4794_v11 }
 0xf95   : > { %5614 = vpow2.f32 %v2717_v12 }
 0xf96   : > { %5616 = vpow2.f32 %v2715_v13 }
 0xf9f   : > { %v5615_v14 = vpop.eup %5614 }
 0xfa0   : > { %v5617_v15 = vpop.eup %5616  ;;  %v2720_v16 = vadd.f32 1.0, %v5615_v14 }
 0xfa1   : > { %v2719_v17 = vadd.f32 1.0, %v5617_v15 }
 0xfa2   : > { %5618 = vrcp.f32 %v2720_v16 }
 0xfa3   : > { %5620 = vrcp.f32 %v2719_v17 }
 0xfac   : > { %v5619_v18 = vpop.eup %5618 }
 0xfad   : > { %v5621_v19 = vpop.eup %5620  ;;  %v2726_v23 = vmul.f32 %v5619_v18, %v2708_v5 }
 0xfae   : > { %v2725_v22 = vmul.f32 %v5621_v19, %v2703_v8 }
 0xfb0   : > { %5234 = vmatprep.mubr.msk.f32.mxu0 %vm2733_vm15, %v2725_v22 }
 0xfb1   : > { %5235 = vmatmul.mubr.msk.f32.vlgmr.msra.gmra.mrb[14].mxu0 %vm2733_vm15, %v2726_v23 }
 0xfb2   : > { %5260 = vmatprep.mubr.msk.f32.mxu0 %vm5679_vm5, %v5678_v40 }
0x1084   : > { %v5236_v25 = vpop.f32.mrb[14].mxu0 }
0x1085   : > { %v2812_v26 = vadd.f32 %v5236_v25, %v4796_v24  ;;  %v2806_v27 = vpop.f32.mrb[15].mxu0 }
0x1086   : > { %v2807_v6 = vadd.f32 %v4796_v24, %v2806_v27 }
0x1087   : > { %v6430_v2 = vadd.f32 %v2812_v26, %v6362_v20 }
0x1088   : > { %v6433_v28 = vadd.f32 %v2807_v6, %v6364_v21 }
0x1089   : > { %v2860_v29 = vsel %vm913_vm4, %v6430_v2, 0.0 }
0x108a   : > { %2861 = vadd.xlane.f32.xlu1 %v2860_v29  ;;  %v2857_v30 = vsel %vm909_vm3, %v6433_v28, 0.0 }
0x108b   : > { %2858 = vadd.xlane.f32.xlu0 %v2857_v30 }
0x1117   : > { %v2862_v31 = vpop.xlane.xlu1 %2861 }
0x1118   : > { %v2864_v32 = vmul.f32 0.03125, %v2862_v31  ;;  %v2859_v45 = vpop.xlane.xlu0 %2858 }
0x1119   : > { %v2863_v10 = vmul.f32 0.03125, %v2859_v45 }
0x111a   : > { %v2866_v33 = vsub.f32 %v6430_v2, %v2864_v32 }
0x111b   : > { %v2865_v20 = vsub.f32 %v6433_v28, %v2863_v10 }
0x111c   : > { %v2868_v34 = vmul.f32 %v2866_v33, %v2866_v33 }
0x111d   : > { %v2867_v35 = vmul.f32 %v2865_v20, %v2865_v20 }
0x111e   : > { %v2872_v21 = vsel %vm913_vm4, %v2868_v34, 0.0 }
0x111f   : > { %2873 = vadd.xlane.f32.xlu1 %v2872_v21  ;;  %v2869_v36 = vsel %vm909_vm3, %v2867_v35, 0.0 }
0x1120   : > { %2870 = vadd.xlane.f32.xlu0 %v2869_v36 }
0x11ac   : > { %v2874_v44 = vpop.xlane.xlu1 %2873 }
0x11ad   : > { %v2876_v46 = vmul.f32 0.03125, %v2874_v44  ;;  %v2871_v47 = vpop.xlane.xlu0 %2870 }
0x11ae   : > { %v2875_v48 = vmul.f32 0.03125, %v2871_v47 }
0x11af   : > { %v2878_v49 = vadd.f32 1e-05, %v2876_v46 }
0x11b0   : > { %v2877_v50 = vadd.f32 1e-05, %v2875_v48 }
0x11b1   : > { %5622 = vrsqrt.f32 %v2878_v49 }
0x11b2   : > { %5624 = vrsqrt.f32 %v2877_v50 }
0x11bb   : > { %v5623_v51 = vpop.eup %5622 }
0x11bc   : > { %v5625_v53 = vpop.eup %5624  ;;  %v2882_v54 = vmul.f32 %v5623_v51, %v2866_v33 }
0x11bd   : > { %v2881_v55 = vmul.f32 %v5625_v53, %v2865_v20 }
0x11be   : > { %v2890_v57 = vmul.f32 %v4827_v52, %v2882_v54 }
0x11bf   : > { %v2889_v58 = vmul.f32 %v4827_v52, %v2881_v55 }
0x11c0   : > { %v2898_v60 = vadd.f32 %v4828_v56, %v2890_v57 }
0x11c1   : > { %v2897_v59 = vadd.f32 %v4828_v56, %v2889_v58 }
0x11c3   : > { %5245 = vmatprep.mubr.msk.f32.mxu1 %vm909_vm3, %v2897_v59 }
0x11c4   : > { %5246 = vmatmul.mubr.msk.f32.vlgmr.msra.gmra.mrb[30].mxu1 %vm909_vm3, %v2898_v60 }
0x11c5   : > { %5250 = vmatprep.mubr.msk.f32.mxu1 %vm5679_vm5, %v5678_v40 }
0x1297   : > { %v5247_v62 = vpop.f32.mrb[30].mxu1 }
0x1298   : > { %v2977_v63 = vpop.f32.mrb[31].mxu1  ;;  %v2983_v1 = vadd.f32 %v5247_v62, %v4829_v61 }
0x1299   : > { %v6469_v0 = vadd.f32 %v4829_v61, %v2977_v63 }
0x129a   : > { %v3671_v3 = vrot.slane %v2983_v1, 5 }
0x129b   : > { %3155 = vrot.lane.b32.xlu1 %v6469_v0, %s5681_s2  ;;  %2987 = vrot.lane.b32.xlu0 %v6469_v0, %s5680_s21  ;;  %v3670_v4 = vrot.slane %v6469_v0, 5 }
0x129d   : > { %v6485_v5 = vsel %vm1803_vm11, %v3670_v4, %v3671_v3 }
0x129f   : > { %3153 = vrot.lane.b32.xlu1 %v6469_v0, %s6786_s23  ;;  %3325 = vrot.lane.b32.xlu0 %v6469_v0, %s6787_s22 }
0x12a3   : > { %3327 = vrot.lane.b32.xlu1 %v6469_v0, %s6788_s24  ;;  %3497 = vrot.lane.b32.xlu0 %v6469_v0, %s6789_s25 }
0x12a7   : > { %3499 = vrot.lane.b32.xlu1 %v6469_v0, %s6790_s29  ;;  %3841 = vrot.lane.b32.xlu0 %v6485_v5, %s5681_s2  ;;  %s6792_s2 = smov 48  }
0x12ab   : > { %4013 = vrot.lane.b32.xlu0 %v6485_v5, %s6788_s24  ;;  %3673 = vrot.lane.b32.xlu1 %v6485_v5, %s5680_s21  ;;  %s6791_s21 = smov 64   ;;  %s4879_s24 = sshll.u32 %s6797_s28, 4 }
0x12af   : > { %4185 = vrot.lane.b32.xlu0 %v6485_v5, %s6790_s29  ;;  %3839 = vrot.lane.b32.xlu1 %v6485_v5, %s6786_s23 }
0x12b3   : > { %4011 = vrot.lane.b32.xlu1 %v6485_v5, %s6787_s22 }
0x12b7   : > { %4183 = vrot.lane.b32.xlu1 %v6485_v5, %s6789_s25 }
0x130d   : > { %v3156_v7 = vpop.permute.xlu1 %3155  ;;  %v2988_v8 = vpop.permute.xlu0 %2987 }
0x130e   : > { %5249 = vmatpush3.xpose.msk.msra.mxu1 %vm1114_vm6, %v2988_v8  ;;  %5259 = vmatpush3.xpose.msk.msra.mxu0 %vm1114_vm6, %v3156_v7 }
0x130f   : > { %5268 = vmatprep.subr.mxu0 %v5678_v40  ;;  %5253 = vmatprep.subr.mxu1 %v5678_v40 }
0x1311   : > { %v3154_v9 = vpop.permute.xlu1 %3153  ;;  %5251 = vmatmul.mubr.msk.f32.vlgmr.msra.gmra.mrb[32].mxu1 %vm1114_vm6, %v6469_v0  ;;  %v3326_v11 = vpop.permute.xlu0 %3325 }
0x1312   : > { %5261 = vmatmul.mubr.msk.f32.vlgmr.msra.gmra.mrb[16].mxu0 %vm1114_vm6, %v3154_v9  ;;  %5255 = vmatprep.mubr.msk.f32.mxu1 %vm5679_vm5, %v5678_v40 }
0x1313   : > { %5270 = vmatprep.mubr.msk.f32.mxu0 %vm5679_vm5, %v5678_v40 }
0x1315   : > { %v3328_v12 = vpop.permute.xlu1 %3327  ;;  %v3498_v13 = vpop.permute.xlu0 %3497 }
0x1316   : > { %5269 = vmatpush3.xpose.msk.msra.mxu0 %vm1114_vm6, %v3328_v12 }
0x1317   : > { %5278 = vmatprep.subr.mxu0 %v5678_v40 }
0x1319   : > { %v3500_v14 = vpop.permute.xlu1 %3499  ;;  %5271 = vmatmul.mubr.msk.f32.vlgmr.msra.gmra.mrb[18].mxu0 %vm1114_vm6, %v3326_v11  ;;  %v3842_v15 = vpop.permute.xlu0 %3841 }
0x131a   : > { %5279 = vmatpush3.xpose.msk.msra.mxu0 %vm1114_vm6, %v3500_v14  ;;  %5280 = vmatprep.mubr.msk.f32.mxu0 %vm5679_vm5, %v5678_v40 }
0x131b   : > { %5288 = vmatprep.subr.mxu0 %v5678_v40 }
0x131d   : > { %5281 = vmatmul.mubr.msk.f32.vlgmr.msra.gmra.mrb[20].mxu0 %vm1114_vm6, %v3498_v13  ;;  %v3674_v16 = vpop.permute.xlu1 %3673  ;;  %v4014_v18 = vpop.permute.xlu0 %4013 }
0x131e   : > { %5289 = vmatpush3.xpose.msk.msra.mxu0 %vm1114_vm6, %v3674_v16  ;;  %5290 = vmatprep.mubr.msk.f32.mxu0 %vm5679_vm5, %v5678_v40 }
0x131f   : > { %5298 = vmatprep.subr.mxu0 %v5678_v40 }
0x1321   : > { %5291 = vmatmul.mubr.msk.f32.vlgmr.msra.gmra.mrb[22].mxu0 %vm1114_vm6, %v6485_v5  ;;  %v3840_v17 = vpop.permute.xlu1 %3839  ;;  %v4186_v22 = vpop.permute.xlu0 %4185 }
0x1322   : > { %5299 = vmatpush3.xpose.msk.msra.mxu0 %vm1114_vm6, %v3842_v15  ;;  %5300 = vmatprep.mubr.msk.f32.mxu0 %vm5679_vm5, %v5678_v40 }
0x1323   : > { %5308 = vmatprep.subr.mxu0 %v5678_v40 }
0x1325   : > { %5301 = vmatmul.mubr.msk.f32.vlgmr.msra.gmra.mrb[24].mxu0 %vm1114_vm6, %v3840_v17  ;;  %v4012_v19 = vpop.permute.xlu1 %4011 }
0x1326   : > { %5309 = vmatpush3.xpose.msk.msra.mxu0 %vm1114_vm6, %v4014_v18  ;;  %5310 = vmatprep.mubr.msk.f32.mxu0 %vm5679_vm5, %v5678_v40 }
0x1327   : > { %5318 = vmatprep.subr.mxu0 %v5678_v40 }
0x1329   : > { %5311 = vmatmul.mubr.msk.f32.vlgmr.msra.gmra.mrb[26].mxu0 %vm1114_vm6, %v4012_v19  ;;  %v4184_v23 = vpop.permute.xlu1 %4183 }
0x132a   : > { %5319 = vmatpush3.xpose.msk.msra.mxu0 %vm1114_vm6, %v4186_v22  ;;  %5320 = vmatprep.mubr.msk.f32.mxu0 %vm5679_vm5, %v5678_v40 }
0x132d   : > { %5321 = vmatmul.mubr.msk.f32.vlgmr.msra.gmra.mrb[28].mxu0 %vm1114_vm6, %v4184_v23 }
0x13e4   : > { %v3059_v24 = vpop.f32.mrb[32].mxu1 }
0x13e5   : > { %v3063_v25 = vmul.f32 0.35355338, %v3059_v24  ;;  %v5252_v26 = vpop.f32.mrb[33].mxu1  ;;  %v3227_v27 = vpop.f32.mrb[16].mxu0 }
0x13e6   : > { %v3231_v6 = vmul.f32 0.35355338, %v3227_v27  ;;  %v5262_v29 = vpop.f32.mrb[17].mxu0 }
0x13e7   : > { %v3064_v30 = vsel %vm1190_vm7, %v3063_v25, -inf }
0x13e8   : > { %3065 = vmax.xlane.f32.xlu0 %v3064_v30  ;;  %v3232_v31 = vsel %vm1190_vm7, %v3231_v6, -inf }
0x13e9   : > { %3233 = vmax.xlane.f32.xlu1 %v3232_v31 }
0x13ec   : > { %v3399_v32 = vpop.f32.mrb[18].mxu0 }
0x13ed   : > { %v6544_v45 = vmul.f32 0.35355338, %v3399_v32  ;;  %v5272_v10 = vpop.f32.mrb[19].mxu0 }
0x13ef   : > { %v3404_v33 = vsel %vm1190_vm7, %v6544_v45, -inf }
0x13f0   : > { %v3571_v20 = vpop.f32.mrb[20].mxu0  ;;  %3405 = vmax.xlane.f32.xlu0 %v3404_v33 }
0x13f1   : > { %v3575_v34 = vmul.f32 0.35355338, %v3571_v20  ;;  %v5282_v35 = vpop.f32.mrb[21].mxu0 }
0x13f3   : > { %v3576_v21 = vsel %vm1190_vm7, %v3575_v34, -inf }
0x13f4   : > { %3577 = vmax.xlane.f32.xlu0 %v3576_v21  ;;  %v3745_v36 = vpop.f32.mrb[22].mxu0 }
0x13f5   : > { %v3749_v37 = vmul.f32 0.35355338, %v3745_v36  ;;  %v5292_v38 = vpop.f32.mrb[23].mxu0 }
0x13f7   : > { %v3750_v39 = vsel %vm1190_vm7, %v3749_v37, -inf }
0x13f8   : > { %3751 = vmax.xlane.f32.xlu0 %v3750_v39  ;;  %v3913_v41 = vpop.f32.mrb[24].mxu0 }
0x13f9   : > { %v3917_v42 = vmul.f32 0.35355338, %v3913_v41  ;;  %v5302_v43 = vpop.f32.mrb[25].mxu0 }
0x13fb   : > { %v3918_v44 = vsel %vm1190_vm7, %v3917_v42, -inf }
0x13fc   : > { %3919 = vmax.xlane.f32.xlu1 %v3918_v44  ;;  %v4085_v46 = vpop.f32.mrb[26].mxu0 }
0x13fd   : > { %v4089_v47 = vmul.f32 0.35355338, %v4085_v46  ;;  %v5312_v48 = vpop.f32.mrb[27].mxu0 }
0x13ff   : > { %v4090_v49 = vsel %vm1190_vm7, %v4089_v47, -inf }
0x1400   : > { %4091 = vmax.xlane.f32.xlu0 %v4090_v49  ;;  %v4257_v50 = vpop.f32.mrb[28].mxu0 }
0x1401   : > { %v5322_v51 = vpop.f32.mrb[29].mxu0  ;;  %v4261_v52 = vmul.f32 0.35355338, %v4257_v50 }
0x1403   : > { %v4262_v53 = vsel %vm1190_vm7, %v4261_v52, -inf }
0x140d   : > { %3075 = vrot.lane.b32.xlu1 %v6469_v0, %s6791_s21 }
0x1431   : > { %4263 = vmax.xlane.f32.xlu1 %v4262_v53 }
0x1442   : > { %3415 = vrot.lane.b32.xlu1 %v6469_v0, %s6792_s2 }
0x1446   : > { %3587 = vrot.lane.b32.xlu1 %v6469_v0, %s6793_s27 }
0x144a   : > { %3761 = vrot.lane.b32.xlu1 %v6485_v5, %s6791_s21  ;;  %s575_s21 = scalar_lea.vmem %s6757_s18, %s4879_s24 }
0x1475   : > { %v3066_v54 = vpop.xlane.xlu0 %3065 }
0x1476   : > { %v3067_v55 = vsub.f32 %v3063_v25, %v3066_v54  ;;  %v3234_v56 = vpop.xlane.xlu1 %3233 }
0x1477   : > { %v3235_v57 = vsub.f32 %v3231_v6, %v3234_v56 }
0x1478   : > { %v3068_v58 = vmul.f32 1.442695, %v3067_v55 }
0x1479   : > { %v3236_v59 = vmul.f32 1.442695, %v3235_v57 }
0x147a   : > { %5626 = vpow2.f32 %v3068_v58 }
0x147b   : > { %5628 = vpow2.f32 %v3236_v59 }
0x147d   : > { %v3406_v60 = vpop.xlane.xlu0 %3405 }
0x147e   : > { %v3407_v13 = vsub.f32 %v6544_v45, %v3406_v60 }
0x1480   : > { %v3408_v15 = vmul.f32 1.442695, %v3407_v13  ;;  %v4806_v13 = vld [vmem:[%s6749_s10 + $0x20] sm:$0xff] }
0x1481   : > { %v3578_v61 = vpop.xlane.xlu0 %3577 }
0x1482   : > { %v3579_v62 = vsub.f32 %v3575_v34, %v3578_v61 }
0x1484   : > { %v5627_v63 = vpop.eup %5626  ;;  %v3580_v1 = vmul.f32 1.442695, %v3579_v62 }
0x1485   : > { %v6561_v3 = vpop.eup %5628  ;;  %v3070_v4 = vsel %vm1190_vm7, %v5627_v63, 0.0  ;;  %v3752_v14 = vpop.xlane.xlu0 %3751 }
0x1486   : > { %5630 = vpow2.f32 %v3580_v1  ;;  %3071 = vadd.xlane.f32.xlu0 %v3070_v4  ;;  %v3238_v7 = vsel %vm1190_vm7, %v6561_v3, 0.0  ;;  %v3753_v16 = vsub.f32 %v3749_v37, %v3752_v14  ;;  %v4807_v14 = vld [vmem:[%s6749_s10 + $0x28] sm:$0xff] }
0x1487   : > { %3239 = vadd.xlane.f32.xlu1 %v3238_v7  ;;  %5632 = vpow2.f32 %v3408_v15 }
0x1488   : > { %v3754_v18 = vmul.f32 1.442695, %v3753_v16  ;;  %v5513_v16 = vpack.c.bf16 %v4807_v14, %v4806_v13  ;;  %v4819_v13 = vld [vmem:[%s6755_s16 + $0x48] sm:$0xff] }
0x1489   : > { %v3920_v8 = vpop.xlane.xlu1 %3919 }
0x148a   : > { %5634 = vpow2.f32 %v3754_v18  ;;  %v3921_v22 = vsub.f32 %v3917_v42, %v3920_v8  ;;  %v4809_v18 = vld [vmem:[%s6749_s10 + $0x38] sm:$0xff]  ;;  %5514 = vmatprep.subr.bf16.mxu0 %v5513_v16 }
0x148b   : > { %5516 = vmatpush3.bf16.msra.mxu0 %v5513_v16  ;;  %v4821_v16 = vld [vmem:[%s6755_s16 + $0x58] sm:$0xff] }
0x148c   : > { %v3922_v24 = vmul.f32 1.442695, %v3921_v22 }
0x148d   : > { %v3076_v9 = vpop.permute.xlu1 %3075  ;;  %v4092_v17 = vpop.xlane.xlu0 %4091 }
0x148e   : > { %5254 = vmatpush3.msk.msra.mxu1 %vm1208_vm8, %v3076_v9  ;;  %v4093_v19 = vsub.f32 %v4089_v47, %v4092_v17  ;;  %v4808_v17 = vld [vmem:[%s6749_s10 + $0x30] sm:$0xff] }
0x148f   : > { %5263 = vmatprep.subr.mxu1 %v5678_v40  ;;  %v5517_v22 = vpack.c.bf16 %v4809_v18, %v4808_v17  ;;  %v4822_v18 = vld [vmem:[%s6755_s16 + $0x60] sm:$0xff] }
0x1490   : > { %v6568_v11 = vpop.eup %5630  ;;  %v4094_v23 = vmul.f32 1.442695, %v4093_v19 }
0x1491   : > { %v3582_v12 = vsel %vm1190_vm7, %v6568_v11, 0.0  ;;  %v5633_v25 = vpop.eup %5632  ;;  %5518 = vmatprep.subr.bf16.mxu0 %v5517_v22 }
0x1492   : > { %3583 = vadd.xlane.f32.xlu1 %v3582_v12  ;;  %5636 = vpow2.f32 %v4094_v23  ;;  %5520 = vmatpush3.bf16.msra.mxu0 %v5517_v22 }
0x1493   : > { %5638 = vpow2.f32 %v3922_v24 }
0x1494   : > { %v5635_v26 = vpop.eup %5634 }
0x1495   : > { %v3756_v6 = vsel %vm1190_vm7, %v5635_v26, 0.0 }
0x149c   : > { %3243 = vrot.lane.b32.xlu0 %v6469_v0, %s6794_s30  ;;  %v3410_v0 = vsel %vm1190_vm7, %v5633_v25, 0.0  ;;  %v6579_v29 = vpop.eup %5636 }
0x149d   : > { %v4096_v32 = vsel %vm1190_vm7, %v6579_v29, 0.0  ;;  %v5639_v45 = vpop.eup %5638 }
0x149e   : > { %v3924_v10 = vsel %vm1190_vm7, %v5639_v45, 0.0 }
0x14a3   : > { %3929 = vrot.lane.b32.xlu1 %v6485_v5, %s6794_s30 }
0x14bb   : > { %3411 = vadd.xlane.f32.xlu0 %v3410_v0 }
0x14be   : > { %v4264_v27 = vpop.xlane.xlu1 %4263 }
0x14bf   : > { %v4265_v30 = vsub.f32 %v4261_v52, %v4264_v27  ;;  %3757 = vadd.xlane.f32.xlu0 %v3756_v6 }
0x14c1   : > { %v4266_v31 = vmul.f32 1.442695, %v4265_v30 }
0x14c2   : > { %v3416_v34 = vpop.permute.xlu1 %3415 }
0x14c3   : > { %5640 = vpow2.f32 %v4266_v31  ;;  %4097 = vadd.xlane.f32.xlu0 %v4096_v32 }
0x14c6   : > { %v3588_v35 = vpop.permute.xlu1 %3587 }
0x14c7   : > { %3925 = vadd.xlane.f32.xlu1 %v3924_v10 }
0x14ca   : > { %v3762_v21 = vpop.permute.xlu1 %3761 }
0x14cd   : > { %v6584_v33 = vpop.eup %5640 }
0x14ce   : > { %v4268_v20 = vsel %vm1190_vm7, %v6584_v33, 0.0 }
0x14cf   : > { %4269 = vadd.xlane.f32.xlu0 %v4268_v20  ;;  %v4866_v20 = vld [vmem:[%s6750_s11 + $0x1] ss:$0 sm:$0xff] }
0x14d8   : > { %4273 = vrot.lane.b32.xlu1 %v6485_v5, %s6793_s27 }
0x14e5   : > { %4101 = vrot.lane.b32.xlu0 %v6485_v5, %s6792_s2 }
0x1513   : > { %v3072_v36 = vpop.xlane.xlu0 %3071 }
0x1514   : > { %5642 = vrcp.f32 %v3072_v36  ;;  %v3240_v37 = vpop.xlane.xlu1 %3239 }
0x1515   : > { %5644 = vrcp.f32 %v3240_v37 }
0x1517   : > { %v3244_v42 = vpop.permute.xlu0 %3243 }
0x151e   : > { %v5643_v38 = vpop.eup %5642 }
0x151f   : > { %v3074_v39 = vmul.f32 %v5643_v38, %v5627_v63  ;;  %v5645_v41 = vpop.eup %5644  ;;  %v3584_v43 = vpop.xlane.xlu1 %3583 }
0x1520   : > { %v3242_v5 = vmul.f32 %v5645_v41, %v6561_v3 }
0x1521   : > { %5256 = vmatmul.mubr.msk.f32.vlgmr.msra.gmra.mrb[34].mxu1 %vm1204_vm9, %v3074_v39 }
0x1522   : > { %5264 = vmatpush3.msk.msra.mxu1 %vm1208_vm8, %v3244_v42  ;;  %5265 = vmatprep.mubr.msk.f32.mxu1 %vm5679_vm5, %v5678_v40 }
0x1523   : > { %5273 = vmatprep.subr.mxu1 %v5678_v40  ;;  %v3930_v47 = vpop.permute.xlu1 %3929 }
0x1525   : > { %5266 = vmatmul.mubr.msk.f32.vlgmr.msra.gmra.mrb[36].mxu1 %vm1204_vm9, %v3242_v5 }
0x1526   : > { %5274 = vmatpush3.msk.msra.mxu1 %vm1208_vm8, %v3416_v34  ;;  %5275 = vmatprep.mubr.msk.f32.mxu1 %vm5679_vm5, %v5678_v40 }
0x1527   : > { %5283 = vmatprep.subr.mxu1 %v5678_v40 }
0x1548   : > { %v3412_v44 = vpop.xlane.xlu0 %3411 }
0x1549   : > { %5646 = vrcp.f32 %v3412_v44 }
0x154a   : > { %5648 = vrcp.f32 %v3584_v43 }
0x154c   : > { %v3758_v46 = vpop.xlane.xlu0 %3757 }
0x154d   : > { %5650 = vrcp.f32 %v3758_v46 }
0x1550   : > { %v4098_v50 = vpop.xlane.xlu0 %4097 }
0x1553   : > { %v5647_v48 = vpop.eup %5646 }
0x1554   : > { %v3414_v49 = vmul.f32 %v5647_v48, %v5633_v25  ;;  %v3926_v51 = vpop.xlane.xlu1 %3925  ;;  %v5649_v52 = vpop.eup %5648 }
0x1555   : > { %5652 = vrcp.f32 %v3926_v51  ;;  %v3586_v53 = vmul.f32 %v5649_v52, %v6568_v11  ;;  %v4814_v51 = vld [vmem:[%s6753_s14 + $0x28] sm:$0xff] }
0x1556   : > { %5276 = vmatmul.mubr.msk.f32.vlgmr.msra.gmra.mrb[38].mxu1 %vm1204_vm9, %v3414_v49  ;;  %5654 = vrcp.f32 %v4098_v50  ;;  %v4813_v50 = vld [vmem:[%s6753_s14 + $0x20] sm:$0xff] }
0x1557   : > { %5284 = vmatpush3.msk.msra.mxu1 %vm1208_vm8, %v3588_v35  ;;  %5285 = vmatprep.mubr.msk.f32.mxu1 %vm5679_vm5, %v5678_v40  ;;  %v5651_v54 = vpop.eup %5650  ;;  %v5521_v52 = vpack.c.bf16 %v4814_v51, %v4813_v50 }
0x1558   : > { %5293 = vmatprep.subr.mxu1 %v5678_v40  ;;  %v3760_v55 = vmul.f32 %v5651_v54, %v5635_v26  ;;  %v4274_v62 = vpop.permute.xlu1 %4273  ;;  %v4816_v54 = vld [vmem:[%s6753_s14 + $0x38] sm:$0xff] }
0x155a   : > { %5286 = vmatmul.mubr.msk.f32.vlgmr.msra.gmra.mrb[40].mxu1 %vm1204_vm9, %v3586_v53  ;;  %v4815_v53 = vld [vmem:[%s6753_s14 + $0x30] sm:$0xff] }
0x155b   : > { %5294 = vmatpush3.msk.msra.mxu1 %vm1208_vm8, %v3762_v21  ;;  %5295 = vmatprep.mubr.msk.f32.mxu1 %vm5679_vm5, %v5678_v40 }
0x155c   : > { %v4270_v56 = vpop.xlane.xlu0 %4269  ;;  %5303 = vmatprep.subr.mxu1 %v5678_v40 }
0x155d   : > { %5656 = vrcp.f32 %v4270_v56 }
0x155e   : > { %5296 = vmatmul.mubr.msk.f32.vlgmr.msra.gmra.mrb[42].mxu1 %vm1204_vm9, %v3760_v55  ;;  %v5525_v55 = vpack.c.bf16 %v4816_v54, %v4815_v53 }
0x155f   : > { %v5653_v57 = vpop.eup %5652  ;;  %5304 = vmatpush3.msk.msra.mxu1 %vm1208_vm8, %v3930_v47  ;;  %5305 = vmatprep.mubr.msk.f32.mxu1 %vm5679_vm5, %v5678_v40 }
0x1560   : > { %v3928_v58 = vmul.f32 %v5653_v57, %v5639_v45  ;;  %v4102_v59 = vpop.permute.xlu0 %4101  ;;  %5313 = vmatprep.subr.mxu1 %v5678_v40  ;;  %v5655_v60 = vpop.eup %5654 }
0x1561   : > { %v4100_v61 = vmul.f32 %v5655_v60, %v6579_v29 }
0x1562   : > { %5306 = vmatmul.mubr.msk.f32.vlgmr.msra.gmra.mrb[44].mxu1 %vm1204_vm9, %v3928_v58 }
0x1563   : > { %5314 = vmatpush3.msk.msra.mxu1 %vm1208_vm8, %v4102_v59  ;;  %5315 = vmatprep.mubr.msk.f32.mxu1 %vm5679_vm5, %v5678_v40 }
0x1564   : > { %5323 = vmatprep.subr.mxu1 %v5678_v40 }
0x1566   : > { %5316 = vmatmul.mubr.msk.f32.vlgmr.msra.gmra.mrb[46].mxu1 %vm1204_vm9, %v4100_v61 }
0x1567   : > { %v5657_v63 = vpop.eup %5656  ;;  %5324 = vmatpush3.msk.msra.mxu1 %vm1208_vm8, %v4274_v62  ;;  %5325 = vmatprep.mubr.msk.f32.mxu1 %vm5679_vm5, %v5678_v40 }
0x1568   : > { %v4272_v1 = vmul.f32 %v5657_v63, %v6584_v33  ;;  %5522 = vmatprep.subr.bf16.mxu1 %v5521_v52  ;;  %v4867_v63 = vld [vmem:[%s6751_s12 + $0x1] ss:$0 sm:$0xff] }
0x156a   : > { %5326 = vmatmul.mubr.msk.f32.vlgmr.msra.gmra.mrb[48].mxu1 %vm1204_vm9, %v4272_v1 }
0x156b   : > { %5524 = vmatpush3.bf16.msra.mxu1 %v5521_v52 }
0x156c   : > { %5526 = vmatprep.subr.bf16.mxu1 %v5525_v55 }
0x156f   : > { %5528 = vmatpush3.bf16.msra.mxu1 %v5525_v55 }
0x15f4   : > { %v3148_v3 = vpop.f32.mrb[34].mxu1 }
0x15f5   : > { %3152 = vst.msk [vmem:[#allocation2] sm:$0x1f] %vm1281_vm10, %v3148_v3  ;;  %v5257_v4 = vpop.f32.mrb[35].mxu1  ;;  %v4868_v3 = vld [vmem:[%s6752_s13 + $0x1] ss:$0 sm:$0xff] }
0x15f8   : > { %v3316_v7 = vpop.f32.mrb[36].mxu1 }
0x15f9   : > { %3321 = vrot.lane.b32.xlu0 %v3316_v7, %s5691_s1  ;;  %v5267_v8 = vpop.f32.mrb[37].mxu1 }
0x1629   : > { %v3488_v9 = vpop.f32.mrb[38].mxu1 }
0x162a   : > { %3493 = vrot.lane.b32.xlu0 %v3488_v9, %s5692_s20  ;;  %v5277_v11 = vpop.f32.mrb[39].mxu1 }
0x162d   : > { %v3660_v12 = vpop.f32.mrb[40].mxu1 }
0x162e   : > { %3665 = vrot.lane.b32.xlu0 %v3660_v12, %s5693_s26  ;;  %v5287_v40 = vpop.f32.mrb[41].mxu1 }
0x162f   : > { %v4818_v40 = vld [vmem:[%s6755_s16 + $0x40] sm:$0xff] }
0x1630   : > { %v5529_v14 = vpack.c.bf16 %v4819_v13, %v4818_v40 }
0x1631   : > { %v3834_v15 = vpop.f32.mrb[42].mxu1 }
0x1632   : > { %3838 = vst.msk [vmem:[#allocation2 + $0x5] sm:$0x1f] %vm1281_vm10, %v3834_v15  ;;  %v5297_v19 = vpop.f32.mrb[43].mxu1  ;;  %5530 = vmatprep.subr.bf16.mxu0 %v5529_v14  ;;  %v4820_v15 = vld [vmem:[%s6755_s16 + $0x50] sm:$0xff] }
0x1633   : > { %v5533_v17 = vpack.c.bf16 %v4821_v16, %v4820_v15  ;;  %v4823_v19 = vld [vmem:[%s6755_s16 + $0x68] sm:$0xff] }
0x1634   : > { %v5537_v22 = vpack.c.bf16 %v4823_v19, %v4822_v18 }
0x1635   : > { %v4002_v23 = vpop.f32.mrb[44].mxu1 }
0x1636   : > { %4007 = vrot.lane.b32.xlu1 %v4002_v23, %s5691_s1  ;;  %v5307_v24 = vpop.f32.mrb[45].mxu1  ;;  %v4824_v23 = vld [vmem:[%s6755_s16 + $0x70] sm:$0xff] }
0x1637   : > { %v4825_v24 = vld [vmem:[%s6755_s16 + $0x78] sm:$0xff] }
0x1639   : > { %v4174_v25 = vpop.f32.mrb[46].mxu1 }
0x163a   : > { %4179 = vrot.lane.b32.xlu1 %v4174_v25, %s5692_s20  ;;  %v5317_v0 = vpop.f32.mrb[47].mxu1  ;;  %v5541_v25 = vpack.c.bf16 %v4825_v24, %v4824_v23 }
0x163b   : > { %v4869_v0 = vld [vmem:[%s6754_s15 + $0x1] ss:$0 sm:$0xff] }
0x163d   : > { %v4346_v26 = vpop.f32.mrb[48].mxu1 }
0x163e   : > { %4351 = vrot.lane.b32.xlu1 %v4346_v26, %s5693_s26  ;;  %v5327_v27 = vpop.f32.mrb[49].mxu1 }
0x166b   : > { %v3322_v6 = vpop.permute.xlu0 %3321 }
0x166c   : > { %3324 = vst.msk [vmem:[#allocation2] sm:$0x1f] %vm1454_vm12, %v3322_v6 }
0x169c   : > { %v3494_v29 = vpop.permute.xlu0 %3493 }
0x169d   : > { %3496 = vst.msk [vmem:[#allocation2] sm:$0x1f] %vm1627_vm13, %v3494_v29 }
0x16a0   : > { %v3666_v30 = vpop.permute.xlu0 %3665 }
0x16a1   : > { %3668 = vst.msk [vmem:[#allocation2] sm:$0x1f] %vm1800_vm14, %v3666_v30 }
0x16a8   : > { %v4008_v31 = vpop.permute.xlu1 %4007 }
0x16a9   : > { %4010 = vst.msk [vmem:[#allocation2 + $0x5] sm:$0x1f] %vm1454_vm12, %v4008_v31 }
0x16ac   : > { %v4180_v32 = vpop.permute.xlu1 %4179 }
0x16ad   : > { %4182 = vst.msk [vmem:[#allocation2 + $0x5] sm:$0x1f] %vm1627_vm13, %v4180_v32 }
0x16b0   : > { %v4352_v45 = vpop.permute.xlu1 %4351 }
0x16b1   : > { %4354 = vst.msk [vmem:[#allocation2 + $0x5] sm:$0x1f] %vm1800_vm14, %v4352_v45 }
0x16b8   : > { %v4355_v10 = vld [vmem:[#allocation2] sm:$0xff]  ;;  %v4356_v33 = vld [vmem:[#allocation2 + $0x8] sm:$0x3] }
0x16b9   : > { %5336 = vmatprep.mubr.msk.f32.mxu0 %vm909_vm3, %v4355_v10 }
0x16ba   : > { %5337 = vmatmul.mubr.msk.f32.vlgmr.msra.gmra.mrb[30].mxu0 %vm909_vm3, %v4356_v33 }
0x16bb   : > { %5532 = vmatpush3.bf16.msra.mxu0 %v5529_v14 }
0x16bc   : > { %5534 = vmatprep.subr.bf16.mxu0 %v5533_v17 }
0x16bf   : > { %5536 = vmatpush3.bf16.msra.mxu0 %v5533_v17 }
0x16c0   : > { %5538 = vmatprep.subr.bf16.mxu0 %v5537_v22 }
0x16c3   : > { %5540 = vmatpush3.bf16.msra.mxu0 %v5537_v22 }
0x16c4   : > { %5542 = vmatprep.subr.bf16.mxu0 %v5541_v25 }
0x16c7   : > { %5544 = vmatpush3.bf16.msra.mxu0 %v5541_v25 }
0x178d   : > { %v5338_v34 = vpop.f32.mrb[30].mxu0 }
0x178e   : > { %v4439_v35 = vadd.f32 %v5338_v34, %v6430_v2  ;;  %v4429_v21 = vpop.f32.mrb[31].mxu0 }
0x178f   : > { %v4438_v36 = vadd.f32 %v4429_v21, %v6433_v28 }
0x1790   : > { %v6664_v37 = vadd.f32 %v4866_v20, %v4439_v35 }
0x1791   : > { %v6666_v38 = vadd.f32 %v4866_v20, %v4438_v36 }
0x1792   : > { %v4451_v39 = vsel %vm913_vm4, %v6664_v37, 0.0 }
0x1793   : > { %4452 = vadd.xlane.f32.xlu1 %v4451_v39  ;;  %v4448_v41 = vsel %vm909_vm3, %v6666_v38, 0.0 }
0x1794   : > { %4449 = vadd.xlane.f32.xlu0 %v4448_v41  ;;  %v4874_v41 = vld [vmem:[%s6756_s17 + $0x1] ss:$0 sm:$0xff] }
0x1820   : > { %v4453_v42 = vpop.xlane.xlu1 %4452 }
0x1821   : > { %v4455_v5 = vmul.f32 0.03125, %v4453_v42  ;;  %v4450_v43 = vpop.xlane.xlu0 %4449 }
0x1822   : > { %v4454_v44 = vmul.f32 0.03125, %v4450_v43 }
0x1823   : > { %v4457_v2 = vsub.f32 %v6664_v37, %v4455_v5 }
0x1824   : > { %v4456_v28 = vsub.f32 %v6666_v38, %v4454_v44 }
0x1825   : > { %v4459_v48 = vmul.f32 %v4457_v2, %v4457_v2 }
0x1826   : > { %v4458_v46 = vmul.f32 %v4456_v28, %v4456_v28 }
0x1827   : > { %v4463_v49 = vsel %vm913_vm4, %v4459_v48, 0.0 }
0x1828   : > { %v4460_v47 = vsel %vm909_vm3, %v4458_v46, 0.0 }
0x1829   : > { %4461 = vadd.xlane.f32.xlu0 %v4460_v47 }
0x182d   : > { %4464 = vadd.xlane.f32.xlu0 %v4463_v49 }
0x18b6   : > { %v4462_v56 = vpop.xlane.xlu0 %4461 }
0x18b7   : > { %v4466_v57 = vmul.f32 0.03125, %v4462_v56 }
0x18b9   : > { %v4468_v58 = vadd.f32 1e-05, %v4466_v57 }
0x18ba   : > { %v4465_v59 = vpop.xlane.xlu0 %4464 }
0x18bb   : > { %5658 = vrsqrt.f32 %v4468_v58  ;;  %v4467_v60 = vmul.f32 0.03125, %v4465_v59 }
0x18bd   : > { %v4469_v61 = vadd.f32 1e-05, %v4467_v60 }
0x18bf   : > { %5660 = vrsqrt.f32 %v4469_v61 }
0x18c5   : > { %v5659_v62 = vpop.eup %5658 }
0x18c6   : > { %v4472_v1 = vmul.f32 %v5659_v62, %v4456_v28 }
0x18c8   : > { %v4480_v4 = vmul.f32 %v4867_v63, %v4472_v1 }
0x18c9   : > { %v5661_v7 = vpop.eup %5660 }
0x18ca   : > { %v4473_v8 = vmul.f32 %v5661_v7, %v4457_v2  ;;  %v4488_v9 = vadd.f32 %v4868_v3, %v4480_v4 }
0x18cc   : > { %v4481_v11 = vmul.f32 %v4867_v63, %v4473_v8  ;;  %5347 = vmatprep.mubr.msk.f32.mxu1 %vm909_vm3, %v4488_v9 }
0x18ce   : > { %v4489_v12 = vadd.f32 %v4868_v3, %v4481_v11 }
0x18d0   : > { %5348 = vmatmul.mubr.msk.f32.vlgmr.msra.gmra.mrb[50].mxu1 %vm909_vm3, %v4489_v12 }
0x19a3   : > { %v5349_v26 = vpop.f32.mrb[50].mxu1 }
0x19a4   : > { %v4574_v27 = vadd.f32 %v5349_v26, %v4869_v0  ;;  %v4568_v6 = vpop.f32.mrb[51].mxu1 }
0x19a5   : > { %v4569_v29 = vadd.f32 %v4869_v0, %v4568_v6 }
0x19a6   : > { %v4873_v30 = vmul.f32 -1.702, %v4574_v27 }
0x19a7   : > { %v4872_v31 = vmul.f32 -1.702, %v4569_v29 }
0x19a8   : > { %v4583_v32 = vmul.f32 1.442695, %v4873_v30 }
0x19a9   : > { %v4581_v45 = vmul.f32 1.442695, %v4872_v31 }
0x19aa   : > { %5662 = vpow2.f32 %v4583_v32 }
0x19ab   : > { %5664 = vpow2.f32 %v4581_v45 }
0x19b4   : > { %v5663_v10 = vpop.eup %5662 }
0x19b5   : > { %v5665_v33 = vpop.eup %5664  ;;  %v4586_v20 = vadd.f32 1.0, %v5663_v10 }
0x19b6   : > { %v4585_v34 = vadd.f32 1.0, %v5665_v33 }
0x19b7   : > { %5666 = vrcp.f32 %v4586_v20 }
0x19b8   : > { %5668 = vrcp.f32 %v4585_v34 }
0x19c1   : > { %v5667_v35 = vpop.eup %5666 }
0x19c2   : > { %v5669_v21 = vpop.eup %5668  ;;  %v4592_v39 = vmul.f32 %v5667_v35, %v4574_v27 }
0x19c3   : > { %v4591_v36 = vmul.f32 %v5669_v21, %v4569_v29 }
0x19c5   : > { %5366 = vmatprep.mubr.msk.f32.mxu0 %vm2733_vm15, %v4591_v36 }
0x19c6   : > { %5367 = vmatmul.mubr.msk.f32.vlgmr.msra.gmra.mrb[32].mxu0 %vm2733_vm15, %v4592_v39 }
0x1a99   : > { %v5368_v42 = vpop.f32.mrb[32].mxu0 }
0x1a9a   : > { %v4677_v5 = vadd.f32 %v5368_v42, %v4874_v41  ;;  %v4671_v43 = vpop.f32.mrb[33].mxu0 }
0x1a9b   : > { %v4672_v44 = vadd.f32 %v4874_v41, %v4671_v43 }
0x1a9c   : > { %v4681_v2 = vadd.f32 %v4677_v5, %v6664_v37 }
0x1a9d   : > { %v4680_v28 = vadd.f32 %v4672_v44, %v6666_v38 }
0x1a9e   : > { %4683 = vst.msk [vmem:[%s575_s21 + $0x8] sm:$0x3] %vm913_vm4, %v4681_v2 }
0x1a9f   : > { %4682 = vst.msk [vmem:[%s575_s21] sm:$0xff] %vm909_vm3, %v4680_v28 }
0x1aa0 PF: > { %s6795_s2 = sld [smem:[#allocation3_spill]] }
0x1aa6   : > { %s28_s27 = sadd.s32 1, %s6795_s2  }
0x1aa7   : > { %p25_p4 = scmp.ge.s32.totalorder %s28_s27, 4  }
0x1aa9   :  { %27 = sbr.rel (!%p25_p4) target bundleno = 4 (0x4), region = 134 }

</bundles_post_ra>
